<compile_context>
chip_gen: v7x
topology: tpu7x:2x2x1
jax: 0.10.0
libtpu: 0.0.40
codegen_flags: <defaults>
</compile_context>

<pallas_src>
import jax
import jax.numpy as jnp
from jax.experimental import pallas as pl
from jax.experimental.pallas import tpu as pltpu

# ---- SimpleConvNN hyper-parameters (n1_chan=4, n1_kern=3, n2_kern=3) ----
N1_CHAN = 4
N1_KERN = 3
N2_KERN = 3
IMG = 28
N_OUT = 10
H1 = IMG - N1_KERN + 1                               # conv1 output spatial size (26)
H2 = (H1 - N2_KERN) // 2 + 1                         # conv2 (stride 2) output spatial size (12)
MPSIZE = (IMG - (N1_KERN + N2_KERN) + 1) // 2 + 1    # == H2  -> global max pool
assert MPSIZE == H2

HP = IMG // 2              # 14 : input polyphase spatial extent
HA = (H1 + 1) // 2         # 13 : conv1-output polyphase spatial extent
BATCH_TILE = 128           # images per grid step (lane dim)
A1_ROWS = 2 * 2 * N1_CHAN * HA   # 208 flattened (p, q, c, row) conv1-output rows


def _a1_idx(p, q, c, r):
    """Flat row index into the conv1-output scratch for phase (p,q), channel c, row r."""
    return ((p * 2 + q) * N1_CHAN + c) * HA + r


def simple_convnn_kernel(xp_ref, w1_ref, b1_ref, w2_ref, b2_ref, o_ref, a1_ref):
    # xp_ref: (4*HP, HP, B) VMEM   polyphase input rows: xp[(2p+q)*14 + r, s, b] = img_b[2r+p, 2s+q]
    # w1_ref: (C1*K1*K1,)   SMEM   index c*9 + di*3 + dj
    # b1_ref: (C1,)         SMEM
    # w2_ref: (10*C1*K2*K2,) SMEM  index ((o*C1 + c)*3 + di)*3 + dj
    # b2_ref: (10,)         SMEM
    # o_ref : (10, B)       VMEM   lane-dense output slab (classes x batch-tile)
    # a1_ref: (A1_ROWS, HA, B) VMEM scratch: ReLU(conv1) in stride-2 polyphase row layout

    # ---------------- conv1 (stride 1, VALID) + ReLU, row-by-row into VMEM scratch ----------
    @pl.loop(0, HA)
    def _(r):
        # Operand reuse: load each of the 8 polyphase input rows touched by output row r
        # exactly once, derive the 16 column-shifted (13, B) views, and fan them out into
        # all 16 (p, q, c) accumulators.  Per-row live set stays well inside 64 vregs.
        xv = {}
        for pi in range(2):
            for qi in range(2):
                for ro in range(2):
                    row = xp_ref[(2 * pi + qi) * HP + r + ro]      # (14, B) — one load
                    xv[(pi, qi, ro, 0)] = row[0:HA, :]             # (13, B) col offset 0
                    xv[(pi, qi, ro, 1)] = row[1:1 + HA, :]         # (13, B) col offset 1
        for p in range(2):
            for q in range(2):
                for c in range(N1_CHAN):
                    acc = None
                    for di in range(N1_KERN):
                        pi, ro = (p + di) % 2, (p + di) // 2
                        for dj in range(N1_KERN):
                            qi, so = (q + dj) % 2, (q + dj) // 2
                            w = w1_ref[c * (N1_KERN * N1_KERN) + di * N1_KERN + dj]
                            term = w * xv[(pi, qi, ro, so)]        # scalar * lane-dense slab
                            acc = (b1_ref[c] + term) if acc is None else (acc + term)
                    a1_ref[_a1_idx(p, q, c, r)] = jnp.maximum(acc, 0.0)   # (13, B)

    # -------- conv2 (stride 2, VALID) + ReLU + global max, row-blocked, tap-outer -----------
    # Running max; ReLU output is >= 0 so zero-init is exact.
    o_ref[...] = jnp.zeros_like(o_ref)

    @pl.loop(0, H2)
    def _(u):
        accs = [None] * N_OUT        # 10 per-row accumulators of shape (12, B)
        for c in range(N1_CHAN):
            for di in range(N2_KERN):
                pp, io = di % 2, di // 2
                r0 = a1_ref[_a1_idx(pp, 0, c, u + io)]             # (13, B), loaded once
                r1 = a1_ref[_a1_idx(pp, 1, c, u + io)]             # (13, B), loaded once
                t0 = r0[0:H2, :]        # tap dj = 0
                t1 = r1[0:H2, :]        # tap dj = 1
                t2 = r0[1:1 + H2, :]    # tap dj = 2
                for o in range(N_OUT):
                    base = ((o * N1_CHAN + c) * N2_KERN + di) * N2_KERN
                    contrib = (w2_ref[base + 0] * t0
                               + w2_ref[base + 1] * t1
                               + w2_ref[base + 2] * t2)
                    accs[o] = (b2_ref[o] + contrib) if accs[o] is None else (accs[o] + contrib)
        # ReLU + max over the 12 columns per class -> (1, B); stack -> (10, B); row-max fold.
        rows = [jnp.max(jnp.maximum(a, 0.0), axis=0, keepdims=True) for a in accs]
        o_ref[...] = jnp.maximum(o_ref[...], jnp.concatenate(rows, axis=0))


@jax.jit
def simple_convnn_forward(x, w1, b1, w2, b2):
    """x: (N, 784) or (N, 1, 28, 28); w1: (C1,1,K1,K1); b1: (C1,); w2: (10,C1,K2,K2); b2: (10,)."""
    n = x.shape[0]
    B = BATCH_TILE
    npad = ((n + B - 1) // B) * B

    xr = x.reshape(n, IMG, IMG).astype(jnp.float32)
    xr = jnp.pad(xr, ((0, npad - n), (0, 0), (0, 0)))        # pad ragged batch tile with zeros
    # Single-transpose polyphase repack: xp[(2p+q)*14 + r, s, b] = x[b, 2r+p, 2s+q]
    x5 = xr.reshape(npad, HP, 2, HP, 2)                      # (b, r, p, s, q)
    xp = jnp.transpose(x5, (2, 4, 1, 3, 0))                  # (p, q, r, s, b)
    xp = xp.reshape(4 * HP, HP, npad)                        # (56, 14, npad)

    # flatten weights/biases for scalar SMEM reads (PyTorch OIHW layouts, row-major)
    w1f = w1.reshape(-1).astype(jnp.float32)                 # (C1*K1*K1,)
    b1f = b1.reshape(-1).astype(jnp.float32)                 # (C1,)
    w2f = w2.reshape(-1).astype(jnp.float32)                 # (10*C1*K2*K2,)
    b2f = b2.reshape(-1).astype(jnp.float32)                 # (10,)

    out = pl.pallas_call(
        simple_convnn_kernel,
        out_shape=jax.ShapeDtypeStruct((N_OUT, npad), jnp.float32),
        grid_spec=pltpu.PrefetchScalarGridSpec(
            num_scalar_prefetch=0,
            grid=(npad // B,),
            in_specs=[
                pl.BlockSpec((4 * HP, HP, B), lambda i: (0, 0, i)),
                pl.BlockSpec(memory_space=pltpu.MemorySpace.SMEM),
                pl.BlockSpec(memory_space=pltpu.MemorySpace.SMEM),
                pl.BlockSpec(memory_space=pltpu.MemorySpace.SMEM),
                pl.BlockSpec(memory_space=pltpu.MemorySpace.SMEM),
            ],
            out_specs=pl.BlockSpec((N_OUT, B), lambda i: (0, i)),
            scratch_shapes=[pltpu.VMEM((A1_ROWS, HA, B), jnp.float32)],   # ~1.3 MiB at B=128
        ),
        compiler_params=pltpu.CompilerParams(
            dimension_semantics=("parallel",),
            vmem_limit_bytes=32 * 1024 * 1024,
        ),
    )(xp, w1f, b1f, w2f, b2f)

    return jnp.transpose(out)[:n]                            # (n, 10), matches x.view(-1, 10)


def reference_forward(x, w1, b1, w2, b2):
    """Pure-JAX reference mirroring the PyTorch forward exactly."""
    n = x.shape[0]
    xr = x.reshape(n, 1, IMG, IMG).astype(jnp.float32)
    y = jax.lax.conv_general_dilated(
        xr, w1, window_strides=(1, 1), padding="VALID",
        dimension_numbers=("NCHW", "OIHW", "NCHW"),
        precision=jax.lax.Precision.HIGHEST)
    y = jnp.maximum(y + b1[None, :, None, None], 0.0)
    y = jax.lax.conv_general_dilated(
        y, w2, window_strides=(2, 2), padding="VALID",
        dimension_numbers=("NCHW", "OIHW", "NCHW"),
        precision=jax.lax.Precision.HIGHEST)
    y = jnp.maximum(y + b2[None, :, None, None], 0.0)
    y = jnp.max(y, axis=(2, 3))          # MaxPool2d(mpsize) with kernel == full spatial extent
    return y.reshape(-1, N_OUT)


if __name__ == "__main__":
    key = jax.random.PRNGKey(0)
    k_x, k_w1, k_b1, k_w2, k_b2 = jax.random.split(key, 5)

    batch = 2
    x = jax.random.normal(k_x, (batch, IMG * IMG), jnp.float32)          # flat MNIST-like input
    w1 = 0.2 * jax.random.normal(k_w1, (N1_CHAN, 1, N1_KERN, N1_KERN), jnp.float32)
    b1 = 0.1 * jax.random.normal(k_b1, (N1_CHAN,), jnp.float32)
    w2 = 0.2 * jax.random.normal(k_w2, (N_OUT, N1_CHAN, N2_KERN, N2_KERN), jnp.float32)
    b2 = 0.1 * jax.random.normal(k_b2, (N_OUT,), jnp.float32)

    out = simple_convnn_forward(x, w1, b1, w2, b2)
    out = jax.block_until_ready(out)
    assert out.shape == (batch, N_OUT)

    ref = reference_forward(x, w1, b1, w2, b2)
    max_err = float(jnp.max(jnp.abs(out - ref)))
    assert max_err < 1e-4, f"mismatch vs reference, max abs err = {max_err}"

    print("KERNEL_OK")
</pallas_src>

<mosaic_0001>
module attributes {stable_mosaic.version = 11 : i64} {
  func.func @simple_convnn_kernel(%arg0: i32, %arg1: memref<56x14x128xf32, #tpu.memory_space<vmem>>, %arg2: memref<36xf32, #tpu.memory_space<smem>>, %arg3: memref<4xf32, #tpu.memory_space<smem>>, %arg4: memref<360xf32, #tpu.memory_space<smem>>, %arg5: memref<10xf32, #tpu.memory_space<smem>>, %arg6: memref<10x128xf32, #tpu.memory_space<vmem>>, %arg7: memref<208x13x128xf32, #tpu.memory_space<vmem>>) attributes {dimension_semantics = [#tpu.dimension_semantics<parallel>], iteration_bounds = array<i64: 1>, scalar_prefetch = 0 : i64, scratch_operands = 1 : i64, tpu.core_type = #tpu.core_type<tc>, window_params = [{transform_indices = @transform_0, window_bounds = array<i64: 56, 14, 128>}, {transform_indices = @transform_1, window_bounds = array<i64: 36>}, {transform_indices = @transform_2, window_bounds = array<i64: 4>}, {transform_indices = @transform_3, window_bounds = array<i64: 360>}, {transform_indices = @transform_4, window_bounds = array<i64: 10>}, {transform_indices = @transform_5, window_bounds = array<i64: 10, 128>}]} {
    %c0_i32 = arith.constant 0 : i32
    %c13_i32 = arith.constant 13 : i32
    %0 = arith.addi %c0_i32, %c13_i32 : i32
    %c1_i32 = arith.constant 1 : i32
    scf.for %arg8 = %c0_i32 to %0 step %c1_i32  : i32 {
      %c1_i32_5 = arith.constant 1 : i32
      %4 = arith.muli %arg8, %c1_i32_5 : i32
      %c0_i32_6 = arith.constant 0 : i32
      %5 = arith.addi %c0_i32_6, %4 : i32
      %c0_i32_7 = arith.constant 0 : i32
      %6 = arith.addi %c0_i32_7, %5 : i32
      %c0_i32_8 = arith.constant 0 : i32
      %7 = arith.addi %6, %c0_i32_8 : i32
      %8 = arith.index_cast %7 : i32 to index
      %c0_9 = arith.constant 0 : index
      %c0_10 = arith.constant 0 : index
      %9 = vector.load %arg1[%8, %c0_9, %c0_10] : memref<56x14x128xf32, #tpu.memory_space<vmem>>, vector<1x14x128xf32>
      %10 = vector.shape_cast %9 : vector<1x14x128xf32> to vector<14x128xf32>
      %11 = vector.extract_strided_slice %10 {offsets = [0, 0], sizes = [13, 128], strides = [1, 1]} : vector<14x128xf32> to vector<13x128xf32>
      %12 = vector.extract_strided_slice %10 {offsets = [1, 0], sizes = [13, 128], strides = [1, 1]} : vector<14x128xf32> to vector<13x128xf32>
      %c0_i32_11 = arith.constant 0 : i32
      %13 = arith.addi %c0_i32_11, %5 : i32
      %c1_i32_12 = arith.constant 1 : i32
      %14 = arith.addi %13, %c1_i32_12 : i32
      %15 = arith.index_cast %14 : i32 to index
      %c0_13 = arith.constant 0 : index
      %c0_14 = arith.constant 0 : index
      %16 = vector.load %arg1[%15, %c0_13, %c0_14] : memref<56x14x128xf32, #tpu.memory_space<vmem>>, vector<1x14x128xf32>
      %17 = vector.shape_cast %16 : vector<1x14x128xf32> to vector<14x128xf32>
      %18 = vector.extract_strided_slice %17 {offsets = [0, 0], sizes = [13, 128], strides = [1, 1]} : vector<14x128xf32> to vector<13x128xf32>
      %19 = vector.extract_strided_slice %17 {offsets = [1, 0], sizes = [13, 128], strides = [1, 1]} : vector<14x128xf32> to vector<13x128xf32>
      %c14_i32 = arith.constant 14 : i32
      %20 = arith.addi %c14_i32, %5 : i32
      %c0_i32_15 = arith.constant 0 : i32
      %21 = arith.addi %20, %c0_i32_15 : i32
      %22 = arith.index_cast %21 : i32 to index
      %c0_16 = arith.constant 0 : index
      %c0_17 = arith.constant 0 : index
      %23 = vector.load %arg1[%22, %c0_16, %c0_17] : memref<56x14x128xf32, #tpu.memory_space<vmem>>, vector<1x14x128xf32>
      %24 = vector.shape_cast %23 : vector<1x14x128xf32> to vector<14x128xf32>
      %25 = vector.extract_strided_slice %24 {offsets = [0, 0], sizes = [13, 128], strides = [1, 1]} : vector<14x128xf32> to vector<13x128xf32>
      %26 = vector.extract_strided_slice %24 {offsets = [1, 0], sizes = [13, 128], strides = [1, 1]} : vector<14x128xf32> to vector<13x128xf32>
      %c14_i32_18 = arith.constant 14 : i32
      %27 = arith.addi %c14_i32_18, %5 : i32
      %c1_i32_19 = arith.constant 1 : i32
      %28 = arith.addi %27, %c1_i32_19 : i32
      %29 = arith.index_cast %28 : i32 to index
      %c0_20 = arith.constant 0 : index
      %c0_21 = arith.constant 0 : index
      %30 = vector.load %arg1[%29, %c0_20, %c0_21] : memref<56x14x128xf32, #tpu.memory_space<vmem>>, vector<1x14x128xf32>
      %31 = vector.shape_cast %30 : vector<1x14x128xf32> to vector<14x128xf32>
      %32 = vector.extract_strided_slice %31 {offsets = [0, 0], sizes = [13, 128], strides = [1, 1]} : vector<14x128xf32> to vector<13x128xf32>
      %33 = vector.extract_strided_slice %31 {offsets = [1, 0], sizes = [13, 128], strides = [1, 1]} : vector<14x128xf32> to vector<13x128xf32>
      %c28_i32 = arith.constant 28 : i32
      %34 = arith.addi %c28_i32, %5 : i32
      %c0_i32_22 = arith.constant 0 : i32
      %35 = arith.addi %34, %c0_i32_22 : i32
      %36 = arith.index_cast %35 : i32 to index
      %c0_23 = arith.constant 0 : index
      %c0_24 = arith.constant 0 : index
      %37 = vector.load %arg1[%36, %c0_23, %c0_24] : memref<56x14x128xf32, #tpu.memory_space<vmem>>, vector<1x14x128xf32>
      %38 = vector.shape_cast %37 : vector<1x14x128xf32> to vector<14x128xf32>
      %39 = vector.extract_strided_slice %38 {offsets = [0, 0], sizes = [13, 128], strides = [1, 1]} : vector<14x128xf32> to vector<13x128xf32>
      %40 = vector.extract_strided_slice %38 {offsets = [1, 0], sizes = [13, 128], strides = [1, 1]} : vector<14x128xf32> to vector<13x128xf32>
      %c28_i32_25 = arith.constant 28 : i32
      %41 = arith.addi %c28_i32_25, %5 : i32
      %c1_i32_26 = arith.constant 1 : i32
      %42 = arith.addi %41, %c1_i32_26 : i32
      %43 = arith.index_cast %42 : i32 to index
      %c0_27 = arith.constant 0 : index
      %c0_28 = arith.constant 0 : index
      %44 = vector.load %arg1[%43, %c0_27, %c0_28] : memref<56x14x128xf32, #tpu.memory_space<vmem>>, vector<1x14x128xf32>
      %45 = vector.shape_cast %44 : vector<1x14x128xf32> to vector<14x128xf32>
      %46 = vector.extract_strided_slice %45 {offsets = [0, 0], sizes = [13, 128], strides = [1, 1]} : vector<14x128xf32> to vector<13x128xf32>
      %47 = vector.extract_strided_slice %45 {offsets = [1, 0], sizes = [13, 128], strides = [1, 1]} : vector<14x128xf32> to vector<13x128xf32>
      %c42_i32 = arith.constant 42 : i32
      %48 = arith.addi %c42_i32, %5 : i32
      %c0_i32_29 = arith.constant 0 : i32
      %49 = arith.addi %48, %c0_i32_29 : i32
      %50 = arith.index_cast %49 : i32 to index
      %c0_30 = arith.constant 0 : index
      %c0_31 = arith.constant 0 : index
      %51 = vector.load %arg1[%50, %c0_30, %c0_31] : memref<56x14x128xf32, #tpu.memory_space<vmem>>, vector<1x14x128xf32>
      %52 = vector.shape_cast %51 : vector<1x14x128xf32> to vector<14x128xf32>
      %53 = vector.extract_strided_slice %52 {offsets = [0, 0], sizes = [13, 128], strides = [1, 1]} : vector<14x128xf32> to vector<13x128xf32>
      %54 = vector.extract_strided_slice %52 {offsets = [1, 0], sizes = [13, 128], strides = [1, 1]} : vector<14x128xf32> to vector<13x128xf32>
      %c42_i32_32 = arith.constant 42 : i32
      %55 = arith.addi %c42_i32_32, %5 : i32
      %c1_i32_33 = arith.constant 1 : i32
      %56 = arith.addi %55, %c1_i32_33 : i32
      %57 = arith.index_cast %56 : i32 to index
      %c0_34 = arith.constant 0 : index
      %c0_35 = arith.constant 0 : index
      %58 = vector.load %arg1[%57, %c0_34, %c0_35] : memref<56x14x128xf32, #tpu.memory_space<vmem>>, vector<1x14x128xf32>
      %59 = vector.shape_cast %58 : vector<1x14x128xf32> to vector<14x128xf32>
      %60 = vector.extract_strided_slice %59 {offsets = [0, 0], sizes = [13, 128], strides = [1, 1]} : vector<14x128xf32> to vector<13x128xf32>
      %61 = vector.extract_strided_slice %59 {offsets = [1, 0], sizes = [13, 128], strides = [1, 1]} : vector<14x128xf32> to vector<13x128xf32>
      %c0_36 = arith.constant 0 : index
      %62 = memref.load %arg2[%c0_36] : memref<36xf32, #tpu.memory_space<smem>>
      %63 = vector.broadcast %62 : f32 to vector<13x128xf32>
      %64 = arith.mulf %63, %11 : vector<13x128xf32>
      %c0_37 = arith.constant 0 : index
      %65 = memref.load %arg3[%c0_37] : memref<4xf32, #tpu.memory_space<smem>>
      %66 = vector.broadcast %65 : f32 to vector<13x128xf32>
      %67 = arith.addf %66, %64 : vector<13x128xf32>
      %c1 = arith.constant 1 : index
      %68 = memref.load %arg2[%c1] : memref<36xf32, #tpu.memory_space<smem>>
      %69 = vector.broadcast %68 : f32 to vector<13x128xf32>
      %70 = arith.mulf %69, %25 : vector<13x128xf32>
      %71 = arith.addf %67, %70 : vector<13x128xf32>
      %c2 = arith.constant 2 : index
      %72 = memref.load %arg2[%c2] : memref<36xf32, #tpu.memory_space<smem>>
      %73 = vector.broadcast %72 : f32 to vector<13x128xf32>
      %74 = arith.mulf %73, %12 : vector<13x128xf32>
      %75 = arith.addf %71, %74 : vector<13x128xf32>
      %c3 = arith.constant 3 : index
      %76 = memref.load %arg2[%c3] : memref<36xf32, #tpu.memory_space<smem>>
      %77 = vector.broadcast %76 : f32 to vector<13x128xf32>
      %78 = arith.mulf %77, %39 : vector<13x128xf32>
      %79 = arith.addf %75, %78 : vector<13x128xf32>
      %c4 = arith.constant 4 : index
      %80 = memref.load %arg2[%c4] : memref<36xf32, #tpu.memory_space<smem>>
      %81 = vector.broadcast %80 : f32 to vector<13x128xf32>
      %82 = arith.mulf %81, %53 : vector<13x128xf32>
      %83 = arith.addf %79, %82 : vector<13x128xf32>
      %c5 = arith.constant 5 : index
      %84 = memref.load %arg2[%c5] : memref<36xf32, #tpu.memory_space<smem>>
      %85 = vector.broadcast %84 : f32 to vector<13x128xf32>
      %86 = arith.mulf %85, %40 : vector<13x128xf32>
      %87 = arith.addf %83, %86 : vector<13x128xf32>
      %c6 = arith.constant 6 : index
      %88 = memref.load %arg2[%c6] : memref<36xf32, #tpu.memory_space<smem>>
      %89 = vector.broadcast %88 : f32 to vector<13x128xf32>
      %90 = arith.mulf %89, %18 : vector<13x128xf32>
      %91 = arith.addf %87, %90 : vector<13x128xf32>
      %c7 = arith.constant 7 : index
      %92 = memref.load %arg2[%c7] : memref<36xf32, #tpu.memory_space<smem>>
      %93 = vector.broadcast %92 : f32 to vector<13x128xf32>
      %94 = arith.mulf %93, %32 : vector<13x128xf32>
      %95 = arith.addf %91, %94 : vector<13x128xf32>
      %c8 = arith.constant 8 : index
      %96 = memref.load %arg2[%c8] : memref<36xf32, #tpu.memory_space<smem>>
      %97 = vector.broadcast %96 : f32 to vector<13x128xf32>
      %98 = arith.mulf %97, %19 : vector<13x128xf32>
      %99 = arith.addf %95, %98 : vector<13x128xf32>
      %cst_38 = arith.constant 0.000000e+00 : f32
      %100 = vector.broadcast %cst_38 : f32 to vector<13x128xf32>
      %101 = arith.maximumf %99, %100 : vector<13x128xf32>
      %c0_i32_39 = arith.constant 0 : i32
      %102 = arith.addi %c0_i32_39, %5 : i32
      %103 = arith.index_cast %102 : i32 to index
      %c0_40 = arith.constant 0 : index
      %c0_41 = arith.constant 0 : index
      %104 = vector.load %arg7[%103, %c0_40, %c0_41] : memref<208x13x128xf32, #tpu.memory_space<vmem>>, vector<1x13x128xf32>
      %105 = vector.shape_cast %104 : vector<1x13x128xf32> to vector<13x128xf32>
      %106 = vector.shape_cast %101 : vector<13x128xf32> to vector<1x13x128xf32>
      tpu.vector_store %arg7[%103, %c0_40, %c0_41], %106 {strides = array<i32>} : memref<208x13x128xf32, #tpu.memory_space<vmem>>, vector<1x13x128xf32>,
      %c9 = arith.constant 9 : index
      %107 = memref.load %arg2[%c9] : memref<36xf32, #tpu.memory_space<smem>>
      %108 = vector.broadcast %107 : f32 to vector<13x128xf32>
      %109 = arith.mulf %108, %11 : vector<13x128xf32>
      %c1_42 = arith.constant 1 : index
      %110 = memref.load %arg3[%c1_42] : memref<4xf32, #tpu.memory_space<smem>>
      %111 = vector.broadcast %110 : f32 to vector<13x128xf32>
      %112 = arith.addf %111, %109 : vector<13x128xf32>
      %c10 = arith.constant 10 : index
      %113 = memref.load %arg2[%c10] : memref<36xf32, #tpu.memory_space<smem>>
      %114 = vector.broadcast %113 : f32 to vector<13x128xf32>
      %115 = arith.mulf %114, %25 : vector<13x128xf32>
      %116 = arith.addf %112, %115 : vector<13x128xf32>
      %c11 = arith.constant 11 : index
      %117 = memref.load %arg2[%c11] : memref<36xf32, #tpu.memory_space<smem>>
      %118 = vector.broadcast %117 : f32 to vector<13x128xf32>
      %119 = arith.mulf %118, %12 : vector<13x128xf32>
      %120 = arith.addf %116, %119 : vector<13x128xf32>
      %c12 = arith.constant 12 : index
      %121 = memref.load %arg2[%c12] : memref<36xf32, #tpu.memory_space<smem>>
      %122 = vector.broadcast %121 : f32 to vector<13x128xf32>
      %123 = arith.mulf %122, %39 : vector<13x128xf32>
      %124 = arith.addf %120, %123 : vector<13x128xf32>
      %c13 = arith.constant 13 : index
      %125 = memref.load %arg2[%c13] : memref<36xf32, #tpu.memory_space<smem>>
      %126 = vector.broadcast %125 : f32 to vector<13x128xf32>
      %127 = arith.mulf %126, %53 : vector<13x128xf32>
      %128 = arith.addf %124, %127 : vector<13x128xf32>
      %c14 = arith.constant 14 : index
      %129 = memref.load %arg2[%c14] : memref<36xf32, #tpu.memory_space<smem>>
      %130 = vector.broadcast %129 : f32 to vector<13x128xf32>
      %131 = arith.mulf %130, %40 : vector<13x128xf32>
      %132 = arith.addf %128, %131 : vector<13x128xf32>
      %c15 = arith.constant 15 : index
      %133 = memref.load %arg2[%c15] : memref<36xf32, #tpu.memory_space<smem>>
      %134 = vector.broadcast %133 : f32 to vector<13x128xf32>
      %135 = arith.mulf %134, %18 : vector<13x128xf32>
      %136 = arith.addf %132, %135 : vector<13x128xf32>
      %c16 = arith.constant 16 : index
      %137 = memref.load %arg2[%c16] : memref<36xf32, #tpu.memory_space<smem>>
      %138 = vector.broadcast %137 : f32 to vector<13x128xf32>
      %139 = arith.mulf %138, %32 : vector<13x128xf32>
      %140 = arith.addf %136, %139 : vector<13x128xf32>
      %c17 = arith.constant 17 : index
      %141 = memref.load %arg2[%c17] : memref<36xf32, #tpu.memory_space<smem>>
      %142 = vector.broadcast %141 : f32 to vector<13x128xf32>
      %143 = arith.mulf %142, %19 : vector<13x128xf32>
      %144 = arith.addf %140, %143 : vector<13x128xf32>
      %cst_43 = arith.constant 0.000000e+00 : f32
      %145 = vector.broadcast %cst_43 : f32 to vector<13x128xf32>
      %146 = arith.maximumf %144, %145 : vector<13x128xf32>
      %c13_i32_44 = arith.constant 13 : i32
      %147 = arith.addi %c13_i32_44, %5 : i32
      %148 = arith.index_cast %147 : i32 to index
      %c0_45 = arith.constant 0 : index
      %c0_46 = arith.constant 0 : index
      %149 = vector.load %arg7[%148, %c0_45, %c0_46] : memref<208x13x128xf32, #tpu.memory_space<vmem>>, vector<1x13x128xf32>
      %150 = vector.shape_cast %149 : vector<1x13x128xf32> to vector<13x128xf32>
      %151 = vector.shape_cast %146 : vector<13x128xf32> to vector<1x13x128xf32>
      tpu.vector_store %arg7[%148, %c0_45, %c0_46], %151 {strides = array<i32>} : memref<208x13x128xf32, #tpu.memory_space<vmem>>, vector<1x13x128xf32>,
      %c18 = arith.constant 18 : index
      %152 = memref.load %arg2[%c18] : memref<36xf32, #tpu.memory_space<smem>>
      %153 = vector.broadcast %152 : f32 to vector<13x128xf32>
      %154 = arith.mulf %153, %11 : vector<13x128xf32>
      %c2_47 = arith.constant 2 : index
      %155 = memref.load %arg3[%c2_47] : memref<4xf32, #tpu.memory_space<smem>>
      %156 = vector.broadcast %155 : f32 to vector<13x128xf32>
      %157 = arith.addf %156, %154 : vector<13x128xf32>
      %c19 = arith.constant 19 : index
      %158 = memref.load %arg2[%c19] : memref<36xf32, #tpu.memory_space<smem>>
      %159 = vector.broadcast %158 : f32 to vector<13x128xf32>
      %160 = arith.mulf %159, %25 : vector<13x128xf32>
      %161 = arith.addf %157, %160 : vector<13x128xf32>
      %c20 = arith.constant 20 : index
      %162 = memref.load %arg2[%c20] : memref<36xf32, #tpu.memory_space<smem>>
      %163 = vector.broadcast %162 : f32 to vector<13x128xf32>
      %164 = arith.mulf %163, %12 : vector<13x128xf32>
      %165 = arith.addf %161, %164 : vector<13x128xf32>
      %c21 = arith.constant 21 : index
      %166 = memref.load %arg2[%c21] : memref<36xf32, #tpu.memory_space<smem>>
      %167 = vector.broadcast %166 : f32 to vector<13x128xf32>
      %168 = arith.mulf %167, %39 : vector<13x128xf32>
      %169 = arith.addf %165, %168 : vector<13x128xf32>
      %c22 = arith.constant 22 : index
      %170 = memref.load %arg2[%c22] : memref<36xf32, #tpu.memory_space<smem>>
      %171 = vector.broadcast %170 : f32 to vector<13x128xf32>
      %172 = arith.mulf %171, %53 : vector<13x128xf32>
      %173 = arith.addf %169, %172 : vector<13x128xf32>
      %c23 = arith.constant 23 : index
      %174 = memref.load %arg2[%c23] : memref<36xf32, #tpu.memory_space<smem>>
      %175 = vector.broadcast %174 : f32 to vector<13x128xf32>
      %176 = arith.mulf %175, %40 : vector<13x128xf32>
      %177 = arith.addf %173, %176 : vector<13x128xf32>
      %c24 = arith.constant 24 : index
      %178 = memref.load %arg2[%c24] : memref<36xf32, #tpu.memory_space<smem>>
      %179 = vector.broadcast %178 : f32 to vector<13x128xf32>
      %180 = arith.mulf %179, %18 : vector<13x128xf32>
      %181 = arith.addf %177, %180 : vector<13x128xf32>
      %c25 = arith.constant 25 : index
      %182 = memref.load %arg2[%c25] : memref<36xf32, #tpu.memory_space<smem>>
      %183 = vector.broadcast %182 : f32 to vector<13x128xf32>
      %184 = arith.mulf %183, %32 : vector<13x128xf32>
      %185 = arith.addf %181, %184 : vector<13x128xf32>
      %c26 = arith.constant 26 : index
      %186 = memref.load %arg2[%c26] : memref<36xf32, #tpu.memory_space<smem>>
      %187 = vector.broadcast %186 : f32 to vector<13x128xf32>
      %188 = arith.mulf %187, %19 : vector<13x128xf32>
      %189 = arith.addf %185, %188 : vector<13x128xf32>
      %cst_48 = arith.constant 0.000000e+00 : f32
      %190 = vector.broadcast %cst_48 : f32 to vector<13x128xf32>
      %191 = arith.maximumf %189, %190 : vector<13x128xf32>
      %c26_i32 = arith.constant 26 : i32
      %192 = arith.addi %c26_i32, %5 : i32
      %193 = arith.index_cast %192 : i32 to index
      %c0_49 = arith.constant 0 : index
      %c0_50 = arith.constant 0 : index
      %194 = vector.load %arg7[%193, %c0_49, %c0_50] : memref<208x13x128xf32, #tpu.memory_space<vmem>>, vector<1x13x128xf32>
      %195 = vector.shape_cast %194 : vector<1x13x128xf32> to vector<13x128xf32>
      %196 = vector.shape_cast %191 : vector<13x128xf32> to vector<1x13x128xf32>
      tpu.vector_store %arg7[%193, %c0_49, %c0_50], %196 {strides = array<i32>} : memref<208x13x128xf32, #tpu.memory_space<vmem>>, vector<1x13x128xf32>,
      %c27 = arith.constant 27 : index
      %197 = memref.load %arg2[%c27] : memref<36xf32, #tpu.memory_space<smem>>
      %198 = vector.broadcast %197 : f32 to vector<13x128xf32>
      %199 = arith.mulf %198, %11 : vector<13x128xf32>
      %c3_51 = arith.constant 3 : index
      %200 = memref.load %arg3[%c3_51] : memref<4xf32, #tpu.memory_space<smem>>
      %201 = vector.broadcast %200 : f32 to vector<13x128xf32>
      %202 = arith.addf %201, %199 : vector<13x128xf32>
      %c28 = arith.constant 28 : index
      %203 = memref.load %arg2[%c28] : memref<36xf32, #tpu.memory_space<smem>>
      %204 = vector.broadcast %203 : f32 to vector<13x128xf32>
      %205 = arith.mulf %204, %25 : vector<13x128xf32>
      %206 = arith.addf %202, %205 : vector<13x128xf32>
      %c29 = arith.constant 29 : index
      %207 = memref.load %arg2[%c29] : memref<36xf32, #tpu.memory_space<smem>>
      %208 = vector.broadcast %207 : f32 to vector<13x128xf32>
      %209 = arith.mulf %208, %12 : vector<13x128xf32>
      %210 = arith.addf %206, %209 : vector<13x128xf32>
      %c30 = arith.constant 30 : index
      %211 = memref.load %arg2[%c30] : memref<36xf32, #tpu.memory_space<smem>>
      %212 = vector.broadcast %211 : f32 to vector<13x128xf32>
      %213 = arith.mulf %212, %39 : vector<13x128xf32>
      %214 = arith.addf %210, %213 : vector<13x128xf32>
      %c31 = arith.constant 31 : index
      %215 = memref.load %arg2[%c31] : memref<36xf32, #tpu.memory_space<smem>>
      %216 = vector.broadcast %215 : f32 to vector<13x128xf32>
      %217 = arith.mulf %216, %53 : vector<13x128xf32>
      %218 = arith.addf %214, %217 : vector<13x128xf32>
      %c32 = arith.constant 32 : index
      %219 = memref.load %arg2[%c32] : memref<36xf32, #tpu.memory_space<smem>>
      %220 = vector.broadcast %219 : f32 to vector<13x128xf32>
      %221 = arith.mulf %220, %40 : vector<13x128xf32>
      %222 = arith.addf %218, %221 : vector<13x128xf32>
      %c33 = arith.constant 33 : index
      %223 = memref.load %arg2[%c33] : memref<36xf32, #tpu.memory_space<smem>>
      %224 = vector.broadcast %223 : f32 to vector<13x128xf32>
      %225 = arith.mulf %224, %18 : vector<13x128xf32>
      %226 = arith.addf %222, %225 : vector<13x128xf32>
      %c34 = arith.constant 34 : index
      %227 = memref.load %arg2[%c34] : memref<36xf32, #tpu.memory_space<smem>>
      %228 = vector.broadcast %227 : f32 to vector<13x128xf32>
      %229 = arith.mulf %228, %32 : vector<13x128xf32>
      %230 = arith.addf %226, %229 : vector<13x128xf32>
      %c35 = arith.constant 35 : index
      %231 = memref.load %arg2[%c35] : memref<36xf32, #tpu.memory_space<smem>>
      %232 = vector.broadcast %231 : f32 to vector<13x128xf32>
      %233 = arith.mulf %232, %19 : vector<13x128xf32>
      %234 = arith.addf %230, %233 : vector<13x128xf32>
      %cst_52 = arith.constant 0.000000e+00 : f32
      %235 = vector.broadcast %cst_52 : f32 to vector<13x128xf32>
      %236 = arith.maximumf %234, %235 : vector<13x128xf32>
      %c39_i32 = arith.constant 39 : i32
      %237 = arith.addi %c39_i32, %5 : i32
      %238 = arith.index_cast %237 : i32 to index
      %c0_53 = arith.constant 0 : index
      %c0_54 = arith.constant 0 : index
      %239 = vector.load %arg7[%238, %c0_53, %c0_54] : memref<208x13x128xf32, #tpu.memory_space<vmem>>, vector<1x13x128xf32>
      %240 = vector.shape_cast %239 : vector<1x13x128xf32> to vector<13x128xf32>
      %241 = vector.shape_cast %236 : vector<13x128xf32> to vector<1x13x128xf32>
      tpu.vector_store %arg7[%238, %c0_53, %c0_54], %241 {strides = array<i32>} : memref<208x13x128xf32, #tpu.memory_space<vmem>>, vector<1x13x128xf32>,
      %c0_55 = arith.constant 0 : index
      %242 = memref.load %arg2[%c0_55] : memref<36xf32, #tpu.memory_space<smem>>
      %243 = vector.broadcast %242 : f32 to vector<13x128xf32>
      %244 = arith.mulf %243, %25 : vector<13x128xf32>
      %c0_56 = arith.constant 0 : index
      %245 = memref.load %arg3[%c0_56] : memref<4xf32, #tpu.memory_space<smem>>
      %246 = vector.broadcast %245 : f32 to vector<13x128xf32>
      %247 = arith.addf %246, %244 : vector<13x128xf32>
      %c1_57 = arith.constant 1 : index
      %248 = memref.load %arg2[%c1_57] : memref<36xf32, #tpu.memory_space<smem>>
      %249 = vector.broadcast %248 : f32 to vector<13x128xf32>
      %250 = arith.mulf %249, %12 : vector<13x128xf32>
      %251 = arith.addf %247, %250 : vector<13x128xf32>
      %c2_58 = arith.constant 2 : index
      %252 = memref.load %arg2[%c2_58] : memref<36xf32, #tpu.memory_space<smem>>
      %253 = vector.broadcast %252 : f32 to vector<13x128xf32>
      %254 = arith.mulf %253, %26 : vector<13x128xf32>
      %255 = arith.addf %251, %254 : vector<13x128xf32>
      %c3_59 = arith.constant 3 : index
      %256 = memref.load %arg2[%c3_59] : memref<36xf32, #tpu.memory_space<smem>>
      %257 = vector.broadcast %256 : f32 to vector<13x128xf32>
      %258 = arith.mulf %257, %53 : vector<13x128xf32>
      %259 = arith.addf %255, %258 : vector<13x128xf32>
      %c4_60 = arith.constant 4 : index
      %260 = memref.load %arg2[%c4_60] : memref<36xf32, #tpu.memory_space<smem>>
      %261 = vector.broadcast %260 : f32 to vector<13x128xf32>
      %262 = arith.mulf %261, %40 : vector<13x128xf32>
      %263 = arith.addf %259, %262 : vector<13x128xf32>
      %c5_61 = arith.constant 5 : index
      %264 = memref.load %arg2[%c5_61] : memref<36xf32, #tpu.memory_space<smem>>
      %265 = vector.broadcast %264 : f32 to vector<13x128xf32>
      %266 = arith.mulf %265, %54 : vector<13x128xf32>
      %267 = arith.addf %263, %266 : vector<13x128xf32>
      %c6_62 = arith.constant 6 : index
      %268 = memref.load %arg2[%c6_62] : memref<36xf32, #tpu.memory_space<smem>>
      %269 = vector.broadcast %268 : f32 to vector<13x128xf32>
      %270 = arith.mulf %269, %32 : vector<13x128xf32>
      %271 = arith.addf %267, %270 : vector<13x128xf32>
      %c7_63 = arith.constant 7 : index
      %272 = memref.load %arg2[%c7_63] : memref<36xf32, #tpu.memory_space<smem>>
      %273 = vector.broadcast %272 : f32 to vector<13x128xf32>
      %274 = arith.mulf %273, %19 : vector<13x128xf32>
      %275 = arith.addf %271, %274 : vector<13x128xf32>
      %c8_64 = arith.constant 8 : index
      %276 = memref.load %arg2[%c8_64] : memref<36xf32, #tpu.memory_space<smem>>
      %277 = vector.broadcast %276 : f32 to vector<13x128xf32>
      %278 = arith.mulf %277, %33 : vector<13x128xf32>
      %279 = arith.addf %275, %278 : vector<13x128xf32>
      %cst_65 = arith.constant 0.000000e+00 : f32
      %280 = vector.broadcast %cst_65 : f32 to vector<13x128xf32>
      %281 = arith.maximumf %279, %280 : vector<13x128xf32>
      %c52_i32 = arith.constant 52 : i32
      %282 = arith.addi %c52_i32, %5 : i32
      %283 = arith.index_cast %282 : i32 to index
      %c0_66 = arith.constant 0 : index
      %c0_67 = arith.constant 0 : index
      %284 = vector.load %arg7[%283, %c0_66, %c0_67] : memref<208x13x128xf32, #tpu.memory_space<vmem>>, vector<1x13x128xf32>
      %285 = vector.shape_cast %284 : vector<1x13x128xf32> to vector<13x128xf32>
      %286 = vector.shape_cast %281 : vector<13x128xf32> to vector<1x13x128xf32>
      tpu.vector_store %arg7[%283, %c0_66, %c0_67], %286 {strides = array<i32>} : memref<208x13x128xf32, #tpu.memory_space<vmem>>, vector<1x13x128xf32>,
      %c9_68 = arith.constant 9 : index
      %287 = memref.load %arg2[%c9_68] : memref<36xf32, #tpu.memory_space<smem>>
      %288 = vector.broadcast %287 : f32 to vector<13x128xf32>
      %289 = arith.mulf %288, %25 : vector<13x128xf32>
      %c1_69 = arith.constant 1 : index
      %290 = memref.load %arg3[%c1_69] : memref<4xf32, #tpu.memory_space<smem>>
      %291 = vector.broadcast %290 : f32 to vector<13x128xf32>
      %292 = arith.addf %291, %289 : vector<13x128xf32>
      %c10_70 = arith.constant 10 : index
      %293 = memref.load %arg2[%c10_70] : memref<36xf32, #tpu.memory_space<smem>>
      %294 = vector.broadcast %293 : f32 to vector<13x128xf32>
      %295 = arith.mulf %294, %12 : vector<13x128xf32>
      %296 = arith.addf %292, %295 : vector<13x128xf32>
      %c11_71 = arith.constant 11 : index
      %297 = memref.load %arg2[%c11_71] : memref<36xf32, #tpu.memory_space<smem>>
      %298 = vector.broadcast %297 : f32 to vector<13x128xf32>
      %299 = arith.mulf %298, %26 : vector<13x128xf32>
      %300 = arith.addf %296, %299 : vector<13x128xf32>
      %c12_72 = arith.constant 12 : index
      %301 = memref.load %arg2[%c12_72] : memref<36xf32, #tpu.memory_space<smem>>
      %302 = vector.broadcast %301 : f32 to vector<13x128xf32>
      %303 = arith.mulf %302, %53 : vector<13x128xf32>
      %304 = arith.addf %300, %303 : vector<13x128xf32>
      %c13_73 = arith.constant 13 : index
      %305 = memref.load %arg2[%c13_73] : memref<36xf32, #tpu.memory_space<smem>>
      %306 = vector.broadcast %305 : f32 to vector<13x128xf32>
      %307 = arith.mulf %306, %40 : vector<13x128xf32>
      %308 = arith.addf %304, %307 : vector<13x128xf32>
      %c14_74 = arith.constant 14 : index
      %309 = memref.load %arg2[%c14_74] : memref<36xf32, #tpu.memory_space<smem>>
      %310 = vector.broadcast %309 : f32 to vector<13x128xf32>
      %311 = arith.mulf %310, %54 : vector<13x128xf32>
      %312 = arith.addf %308, %311 : vector<13x128xf32>
      %c15_75 = arith.constant 15 : index
      %313 = memref.load %arg2[%c15_75] : memref<36xf32, #tpu.memory_space<smem>>
      %314 = vector.broadcast %313 : f32 to vector<13x128xf32>
      %315 = arith.mulf %314, %32 : vector<13x128xf32>
      %316 = arith.addf %312, %315 : vector<13x128xf32>
      %c16_76 = arith.constant 16 : index
      %317 = memref.load %arg2[%c16_76] : memref<36xf32, #tpu.memory_space<smem>>
      %318 = vector.broadcast %317 : f32 to vector<13x128xf32>
      %319 = arith.mulf %318, %19 : vector<13x128xf32>
      %320 = arith.addf %316, %319 : vector<13x128xf32>
      %c17_77 = arith.constant 17 : index
      %321 = memref.load %arg2[%c17_77] : memref<36xf32, #tpu.memory_space<smem>>
      %322 = vector.broadcast %321 : f32 to vector<13x128xf32>
      %323 = arith.mulf %322, %33 : vector<13x128xf32>
      %324 = arith.addf %320, %323 : vector<13x128xf32>
      %cst_78 = arith.constant 0.000000e+00 : f32
      %325 = vector.broadcast %cst_78 : f32 to vector<13x128xf32>
      %326 = arith.maximumf %324, %325 : vector<13x128xf32>
      %c65_i32 = arith.constant 65 : i32
      %327 = arith.addi %c65_i32, %5 : i32
      %328 = arith.index_cast %327 : i32 to index
      %c0_79 = arith.constant 0 : index
      %c0_80 = arith.constant 0 : index
      %329 = vector.load %arg7[%328, %c0_79, %c0_80] : memref<208x13x128xf32, #tpu.memory_space<vmem>>, vector<1x13x128xf32>
      %330 = vector.shape_cast %329 : vector<1x13x128xf32> to vector<13x128xf32>
      %331 = vector.shape_cast %326 : vector<13x128xf32> to vector<1x13x128xf32>
      tpu.vector_store %arg7[%328, %c0_79, %c0_80], %331 {strides = array<i32>} : memref<208x13x128xf32, #tpu.memory_space<vmem>>, vector<1x13x128xf32>,
      %c18_81 = arith.constant 18 : index
      %332 = memref.load %arg2[%c18_81] : memref<36xf32, #tpu.memory_space<smem>>
      %333 = vector.broadcast %332 : f32 to vector<13x128xf32>
      %334 = arith.mulf %333, %25 : vector<13x128xf32>
      %c2_82 = arith.constant 2 : index
      %335 = memref.load %arg3[%c2_82] : memref<4xf32, #tpu.memory_space<smem>>
      %336 = vector.broadcast %335 : f32 to vector<13x128xf32>
      %337 = arith.addf %336, %334 : vector<13x128xf32>
      %c19_83 = arith.constant 19 : index
      %338 = memref.load %arg2[%c19_83] : memref<36xf32, #tpu.memory_space<smem>>
      %339 = vector.broadcast %338 : f32 to vector<13x128xf32>
      %340 = arith.mulf %339, %12 : vector<13x128xf32>
      %341 = arith.addf %337, %340 : vector<13x128xf32>
      %c20_84 = arith.constant 20 : index
      %342 = memref.load %arg2[%c20_84] : memref<36xf32, #tpu.memory_space<smem>>
      %343 = vector.broadcast %342 : f32 to vector<13x128xf32>
      %344 = arith.mulf %343, %26 : vector<13x128xf32>
      %345 = arith.addf %341, %344 : vector<13x128xf32>
      %c21_85 = arith.constant 21 : index
      %346 = memref.load %arg2[%c21_85] : memref<36xf32, #tpu.memory_space<smem>>
      %347 = vector.broadcast %346 : f32 to vector<13x128xf32>
      %348 = arith.mulf %347, %53 : vector<13x128xf32>
      %349 = arith.addf %345, %348 : vector<13x128xf32>
      %c22_86 = arith.constant 22 : index
      %350 = memref.load %arg2[%c22_86] : memref<36xf32, #tpu.memory_space<smem>>
      %351 = vector.broadcast %350 : f32 to vector<13x128xf32>
      %352 = arith.mulf %351, %40 : vector<13x128xf32>
      %353 = arith.addf %349, %352 : vector<13x128xf32>
      %c23_87 = arith.constant 23 : index
      %354 = memref.load %arg2[%c23_87] : memref<36xf32, #tpu.memory_space<smem>>
      %355 = vector.broadcast %354 : f32 to vector<13x128xf32>
      %356 = arith.mulf %355, %54 : vector<13x128xf32>
      %357 = arith.addf %353, %356 : vector<13x128xf32>
      %c24_88 = arith.constant 24 : index
      %358 = memref.load %arg2[%c24_88] : memref<36xf32, #tpu.memory_space<smem>>
      %359 = vector.broadcast %358 : f32 to vector<13x128xf32>
      %360 = arith.mulf %359, %32 : vector<13x128xf32>
      %361 = arith.addf %357, %360 : vector<13x128xf32>
      %c25_89 = arith.constant 25 : index
      %362 = memref.load %arg2[%c25_89] : memref<36xf32, #tpu.memory_space<smem>>
      %363 = vector.broadcast %362 : f32 to vector<13x128xf32>
      %364 = arith.mulf %363, %19 : vector<13x128xf32>
      %365 = arith.addf %361, %364 : vector<13x128xf32>
      %c26_90 = arith.constant 26 : index
      %366 = memref.load %arg2[%c26_90] : memref<36xf32, #tpu.memory_space<smem>>
      %367 = vector.broadcast %366 : f32 to vector<13x128xf32>
      %368 = arith.mulf %367, %33 : vector<13x128xf32>
      %369 = arith.addf %365, %368 : vector<13x128xf32>
      %cst_91 = arith.constant 0.000000e+00 : f32
      %370 = vector.broadcast %cst_91 : f32 to vector<13x128xf32>
      %371 = arith.maximumf %369, %370 : vector<13x128xf32>
      %c78_i32 = arith.constant 78 : i32
      %372 = arith.addi %c78_i32, %5 : i32
      %373 = arith.index_cast %372 : i32 to index
      %c0_92 = arith.constant 0 : index
      %c0_93 = arith.constant 0 : index
      %374 = vector.load %arg7[%373, %c0_92, %c0_93] : memref<208x13x128xf32, #tpu.memory_space<vmem>>, vector<1x13x128xf32>
      %375 = vector.shape_cast %374 : vector<1x13x128xf32> to vector<13x128xf32>
      %376 = vector.shape_cast %371 : vector<13x128xf32> to vector<1x13x128xf32>
      tpu.vector_store %arg7[%373, %c0_92, %c0_93], %376 {strides = array<i32>} : memref<208x13x128xf32, #tpu.memory_space<vmem>>, vector<1x13x128xf32>,
      %c27_94 = arith.constant 27 : index
      %377 = memref.load %arg2[%c27_94] : memref<36xf32, #tpu.memory_space<smem>>
      %378 = vector.broadcast %377 : f32 to vector<13x128xf32>
      %379 = arith.mulf %378, %25 : vector<13x128xf32>
      %c3_95 = arith.constant 3 : index
      %380 = memref.load %arg3[%c3_95] : memref<4xf32, #tpu.memory_space<smem>>
      %381 = vector.broadcast %380 : f32 to vector<13x128xf32>
      %382 = arith.addf %381, %379 : vector<13x128xf32>
      %c28_96 = arith.constant 28 : index
      %383 = memref.load %arg2[%c28_96] : memref<36xf32, #tpu.memory_space<smem>>
      %384 = vector.broadcast %383 : f32 to vector<13x128xf32>
      %385 = arith.mulf %384, %12 : vector<13x128xf32>
      %386 = arith.addf %382, %385 : vector<13x128xf32>
      %c29_97 = arith.constant 29 : index
      %387 = memref.load %arg2[%c29_97] : memref<36xf32, #tpu.memory_space<smem>>
      %388 = vector.broadcast %387 : f32 to vector<13x128xf32>
      %389 = arith.mulf %388, %26 : vector<13x128xf32>
      %390 = arith.addf %386, %389 : vector<13x128xf32>
      %c30_98 = arith.constant 30 : index
      %391 = memref.load %arg2[%c30_98] : memref<36xf32, #tpu.memory_space<smem>>
      %392 = vector.broadcast %391 : f32 to vector<13x128xf32>
      %393 = arith.mulf %392, %53 : vector<13x128xf32>
      %394 = arith.addf %390, %393 : vector<13x128xf32>
      %c31_99 = arith.constant 31 : index
      %395 = memref.load %arg2[%c31_99] : memref<36xf32, #tpu.memory_space<smem>>
      %396 = vector.broadcast %395 : f32 to vector<13x128xf32>
      %397 = arith.mulf %396, %40 : vector<13x128xf32>
      %398 = arith.addf %394, %397 : vector<13x128xf32>
      %c32_100 = arith.constant 32 : index
      %399 = memref.load %arg2[%c32_100] : memref<36xf32, #tpu.memory_space<smem>>
      %400 = vector.broadcast %399 : f32 to vector<13x128xf32>
      %401 = arith.mulf %400, %54 : vector<13x128xf32>
      %402 = arith.addf %398, %401 : vector<13x128xf32>
      %c33_101 = arith.constant 33 : index
      %403 = memref.load %arg2[%c33_101] : memref<36xf32, #tpu.memory_space<smem>>
      %404 = vector.broadcast %403 : f32 to vector<13x128xf32>
      %405 = arith.mulf %404, %32 : vector<13x128xf32>
      %406 = arith.addf %402, %405 : vector<13x128xf32>
      %c34_102 = arith.constant 34 : index
      %407 = memref.load %arg2[%c34_102] : memref<36xf32, #tpu.memory_space<smem>>
      %408 = vector.broadcast %407 : f32 to vector<13x128xf32>
      %409 = arith.mulf %408, %19 : vector<13x128xf32>
      %410 = arith.addf %406, %409 : vector<13x128xf32>
      %c35_103 = arith.constant 35 : index
      %411 = memref.load %arg2[%c35_103] : memref<36xf32, #tpu.memory_space<smem>>
      %412 = vector.broadcast %411 : f32 to vector<13x128xf32>
      %413 = arith.mulf %412, %33 : vector<13x128xf32>
      %414 = arith.addf %410, %413 : vector<13x128xf32>
      %cst_104 = arith.constant 0.000000e+00 : f32
      %415 = vector.broadcast %cst_104 : f32 to vector<13x128xf32>
      %416 = arith.maximumf %414, %415 : vector<13x128xf32>
      %c91_i32 = arith.constant 91 : i32
      %417 = arith.addi %c91_i32, %5 : i32
      %418 = arith.index_cast %417 : i32 to index
      %c0_105 = arith.constant 0 : index
      %c0_106 = arith.constant 0 : index
      %419 = vector.load %arg7[%418, %c0_105, %c0_106] : memref<208x13x128xf32, #tpu.memory_space<vmem>>, vector<1x13x128xf32>
      %420 = vector.shape_cast %419 : vector<1x13x128xf32> to vector<13x128xf32>
      %421 = vector.shape_cast %416 : vector<13x128xf32> to vector<1x13x128xf32>
      tpu.vector_store %arg7[%418, %c0_105, %c0_106], %421 {strides = array<i32>} : memref<208x13x128xf32, #tpu.memory_space<vmem>>, vector<1x13x128xf32>,
      %c0_107 = arith.constant 0 : index
      %422 = memref.load %arg2[%c0_107] : memref<36xf32, #tpu.memory_space<smem>>
      %423 = vector.broadcast %422 : f32 to vector<13x128xf32>
      %424 = arith.mulf %423, %39 : vector<13x128xf32>
      %c0_108 = arith.constant 0 : index
      %425 = memref.load %arg3[%c0_108] : memref<4xf32, #tpu.memory_space<smem>>
      %426 = vector.broadcast %425 : f32 to vector<13x128xf32>
      %427 = arith.addf %426, %424 : vector<13x128xf32>
      %c1_109 = arith.constant 1 : index
      %428 = memref.load %arg2[%c1_109] : memref<36xf32, #tpu.memory_space<smem>>
      %429 = vector.broadcast %428 : f32 to vector<13x128xf32>
      %430 = arith.mulf %429, %53 : vector<13x128xf32>
      %431 = arith.addf %427, %430 : vector<13x128xf32>
      %c2_110 = arith.constant 2 : index
      %432 = memref.load %arg2[%c2_110] : memref<36xf32, #tpu.memory_space<smem>>
      %433 = vector.broadcast %432 : f32 to vector<13x128xf32>
      %434 = arith.mulf %433, %40 : vector<13x128xf32>
      %435 = arith.addf %431, %434 : vector<13x128xf32>
      %c3_111 = arith.constant 3 : index
      %436 = memref.load %arg2[%c3_111] : memref<36xf32, #tpu.memory_space<smem>>
      %437 = vector.broadcast %436 : f32 to vector<13x128xf32>
      %438 = arith.mulf %437, %18 : vector<13x128xf32>
      %439 = arith.addf %435, %438 : vector<13x128xf32>
      %c4_112 = arith.constant 4 : index
      %440 = memref.load %arg2[%c4_112] : memref<36xf32, #tpu.memory_space<smem>>
      %441 = vector.broadcast %440 : f32 to vector<13x128xf32>
      %442 = arith.mulf %441, %32 : vector<13x128xf32>
      %443 = arith.addf %439, %442 : vector<13x128xf32>
      %c5_113 = arith.constant 5 : index
      %444 = memref.load %arg2[%c5_113] : memref<36xf32, #tpu.memory_space<smem>>
      %445 = vector.broadcast %444 : f32 to vector<13x128xf32>
      %446 = arith.mulf %445, %19 : vector<13x128xf32>
      %447 = arith.addf %443, %446 : vector<13x128xf32>
      %c6_114 = arith.constant 6 : index
      %448 = memref.load %arg2[%c6_114] : memref<36xf32, #tpu.memory_space<smem>>
      %449 = vector.broadcast %448 : f32 to vector<13x128xf32>
      %450 = arith.mulf %449, %46 : vector<13x128xf32>
      %451 = arith.addf %447, %450 : vector<13x128xf32>
      %c7_115 = arith.constant 7 : index
      %452 = memref.load %arg2[%c7_115] : memref<36xf32, #tpu.memory_space<smem>>
      %453 = vector.broadcast %452 : f32 to vector<13x128xf32>
      %454 = arith.mulf %453, %60 : vector<13x128xf32>
      %455 = arith.addf %451, %454 : vector<13x128xf32>
      %c8_116 = arith.constant 8 : index
      %456 = memref.load %arg2[%c8_116] : memref<36xf32, #tpu.memory_space<smem>>
      %457 = vector.broadcast %456 : f32 to vector<13x128xf32>
      %458 = arith.mulf %457, %47 : vector<13x128xf32>
      %459 = arith.addf %455, %458 : vector<13x128xf32>
      %cst_117 = arith.constant 0.000000e+00 : f32
      %460 = vector.broadcast %cst_117 : f32 to vector<13x128xf32>
      %461 = arith.maximumf %459, %460 : vector<13x128xf32>
      %c104_i32 = arith.constant 104 : i32
      %462 = arith.addi %c104_i32, %5 : i32
      %463 = arith.index_cast %462 : i32 to index
      %c0_118 = arith.constant 0 : index
      %c0_119 = arith.constant 0 : index
      %464 = vector.load %arg7[%463, %c0_118, %c0_119] : memref<208x13x128xf32, #tpu.memory_space<vmem>>, vector<1x13x128xf32>
      %465 = vector.shape_cast %464 : vector<1x13x128xf32> to vector<13x128xf32>
      %466 = vector.shape_cast %461 : vector<13x128xf32> to vector<1x13x128xf32>
      tpu.vector_store %arg7[%463, %c0_118, %c0_119], %466 {strides = array<i32>} : memref<208x13x128xf32, #tpu.memory_space<vmem>>, vector<1x13x128xf32>,
      %c9_120 = arith.constant 9 : index
      %467 = memref.load %arg2[%c9_120] : memref<36xf32, #tpu.memory_space<smem>>
      %468 = vector.broadcast %467 : f32 to vector<13x128xf32>
      %469 = arith.mulf %468, %39 : vector<13x128xf32>
      %c1_121 = arith.constant 1 : index
      %470 = memref.load %arg3[%c1_121] : memref<4xf32, #tpu.memory_space<smem>>
      %471 = vector.broadcast %470 : f32 to vector<13x128xf32>
      %472 = arith.addf %471, %469 : vector<13x128xf32>
      %c10_122 = arith.constant 10 : index
      %473 = memref.load %arg2[%c10_122] : memref<36xf32, #tpu.memory_space<smem>>
      %474 = vector.broadcast %473 : f32 to vector<13x128xf32>
      %475 = arith.mulf %474, %53 : vector<13x128xf32>
      %476 = arith.addf %472, %475 : vector<13x128xf32>
      %c11_123 = arith.constant 11 : index
      %477 = memref.load %arg2[%c11_123] : memref<36xf32, #tpu.memory_space<smem>>
      %478 = vector.broadcast %477 : f32 to vector<13x128xf32>
      %479 = arith.mulf %478, %40 : vector<13x128xf32>
      %480 = arith.addf %476, %479 : vector<13x128xf32>
      %c12_124 = arith.constant 12 : index
      %481 = memref.load %arg2[%c12_124] : memref<36xf32, #tpu.memory_space<smem>>
      %482 = vector.broadcast %481 : f32 to vector<13x128xf32>
      %483 = arith.mulf %482, %18 : vector<13x128xf32>
      %484 = arith.addf %480, %483 : vector<13x128xf32>
      %c13_125 = arith.constant 13 : index
      %485 = memref.load %arg2[%c13_125] : memref<36xf32, #tpu.memory_space<smem>>
      %486 = vector.broadcast %485 : f32 to vector<13x128xf32>
      %487 = arith.mulf %486, %32 : vector<13x128xf32>
      %488 = arith.addf %484, %487 : vector<13x128xf32>
      %c14_126 = arith.constant 14 : index
      %489 = memref.load %arg2[%c14_126] : memref<36xf32, #tpu.memory_space<smem>>
      %490 = vector.broadcast %489 : f32 to vector<13x128xf32>
      %491 = arith.mulf %490, %19 : vector<13x128xf32>
      %492 = arith.addf %488, %491 : vector<13x128xf32>
      %c15_127 = arith.constant 15 : index
      %493 = memref.load %arg2[%c15_127] : memref<36xf32, #tpu.memory_space<smem>>
      %494 = vector.broadcast %493 : f32 to vector<13x128xf32>
      %495 = arith.mulf %494, %46 : vector<13x128xf32>
      %496 = arith.addf %492, %495 : vector<13x128xf32>
      %c16_128 = arith.constant 16 : index
      %497 = memref.load %arg2[%c16_128] : memref<36xf32, #tpu.memory_space<smem>>
      %498 = vector.broadcast %497 : f32 to vector<13x128xf32>
      %499 = arith.mulf %498, %60 : vector<13x128xf32>
      %500 = arith.addf %496, %499 : vector<13x128xf32>
      %c17_129 = arith.constant 17 : index
      %501 = memref.load %arg2[%c17_129] : memref<36xf32, #tpu.memory_space<smem>>
      %502 = vector.broadcast %501 : f32 to vector<13x128xf32>
      %503 = arith.mulf %502, %47 : vector<13x128xf32>
      %504 = arith.addf %500, %503 : vector<13x128xf32>
      %cst_130 = arith.constant 0.000000e+00 : f32
      %505 = vector.broadcast %cst_130 : f32 to vector<13x128xf32>
      %506 = arith.maximumf %504, %505 : vector<13x128xf32>
      %c117_i32 = arith.constant 117 : i32
      %507 = arith.addi %c117_i32, %5 : i32
      %508 = arith.index_cast %507 : i32 to index
      %c0_131 = arith.constant 0 : index
      %c0_132 = arith.constant 0 : index
      %509 = vector.load %arg7[%508, %c0_131, %c0_132] : memref<208x13x128xf32, #tpu.memory_space<vmem>>, vector<1x13x128xf32>
      %510 = vector.shape_cast %509 : vector<1x13x128xf32> to vector<13x128xf32>
      %511 = vector.shape_cast %506 : vector<13x128xf32> to vector<1x13x128xf32>
      tpu.vector_store %arg7[%508, %c0_131, %c0_132], %511 {strides = array<i32>} : memref<208x13x128xf32, #tpu.memory_space<vmem>>, vector<1x13x128xf32>,
      %c18_133 = arith.constant 18 : index
      %512 = memref.load %arg2[%c18_133] : memref<36xf32, #tpu.memory_space<smem>>
      %513 = vector.broadcast %512 : f32 to vector<13x128xf32>
      %514 = arith.mulf %513, %39 : vector<13x128xf32>
      %c2_134 = arith.constant 2 : index
      %515 = memref.load %arg3[%c2_134] : memref<4xf32, #tpu.memory_space<smem>>
      %516 = vector.broadcast %515 : f32 to vector<13x128xf32>
      %517 = arith.addf %516, %514 : vector<13x128xf32>
      %c19_135 = arith.constant 19 : index
      %518 = memref.load %arg2[%c19_135] : memref<36xf32, #tpu.memory_space<smem>>
      %519 = vector.broadcast %518 : f32 to vector<13x128xf32>
      %520 = arith.mulf %519, %53 : vector<13x128xf32>
      %521 = arith.addf %517, %520 : vector<13x128xf32>
      %c20_136 = arith.constant 20 : index
      %522 = memref.load %arg2[%c20_136] : memref<36xf32, #tpu.memory_space<smem>>
      %523 = vector.broadcast %522 : f32 to vector<13x128xf32>
      %524 = arith.mulf %523, %40 : vector<13x128xf32>
      %525 = arith.addf %521, %524 : vector<13x128xf32>
      %c21_137 = arith.constant 21 : index
      %526 = memref.load %arg2[%c21_137] : memref<36xf32, #tpu.memory_space<smem>>
      %527 = vector.broadcast %526 : f32 to vector<13x128xf32>
      %528 = arith.mulf %527, %18 : vector<13x128xf32>
      %529 = arith.addf %525, %528 : vector<13x128xf32>
      %c22_138 = arith.constant 22 : index
      %530 = memref.load %arg2[%c22_138] : memref<36xf32, #tpu.memory_space<smem>>
      %531 = vector.broadcast %530 : f32 to vector<13x128xf32>
      %532 = arith.mulf %531, %32 : vector<13x128xf32>
      %533 = arith.addf %529, %532 : vector<13x128xf32>
      %c23_139 = arith.constant 23 : index
      %534 = memref.load %arg2[%c23_139] : memref<36xf32, #tpu.memory_space<smem>>
      %535 = vector.broadcast %534 : f32 to vector<13x128xf32>
      %536 = arith.mulf %535, %19 : vector<13x128xf32>
      %537 = arith.addf %533, %536 : vector<13x128xf32>
      %c24_140 = arith.constant 24 : index
      %538 = memref.load %arg2[%c24_140] : memref<36xf32, #tpu.memory_space<smem>>
      %539 = vector.broadcast %538 : f32 to vector<13x128xf32>
      %540 = arith.mulf %539, %46 : vector<13x128xf32>
      %541 = arith.addf %537, %540 : vector<13x128xf32>
      %c25_141 = arith.constant 25 : index
      %542 = memref.load %arg2[%c25_141] : memref<36xf32, #tpu.memory_space<smem>>
      %543 = vector.broadcast %542 : f32 to vector<13x128xf32>
      %544 = arith.mulf %543, %60 : vector<13x128xf32>
      %545 = arith.addf %541, %544 : vector<13x128xf32>
      %c26_142 = arith.constant 26 : index
      %546 = memref.load %arg2[%c26_142] : memref<36xf32, #tpu.memory_space<smem>>
      %547 = vector.broadcast %546 : f32 to vector<13x128xf32>
      %548 = arith.mulf %547, %47 : vector<13x128xf32>
      %549 = arith.addf %545, %548 : vector<13x128xf32>
      %cst_143 = arith.constant 0.000000e+00 : f32
      %550 = vector.broadcast %cst_143 : f32 to vector<13x128xf32>
      %551 = arith.maximumf %549, %550 : vector<13x128xf32>
      %c130_i32 = arith.constant 130 : i32
      %552 = arith.addi %c130_i32, %5 : i32
      %553 = arith.index_cast %552 : i32 to index
      %c0_144 = arith.constant 0 : index
      %c0_145 = arith.constant 0 : index
      %554 = vector.load %arg7[%553, %c0_144, %c0_145] : memref<208x13x128xf32, #tpu.memory_space<vmem>>, vector<1x13x128xf32>
      %555 = vector.shape_cast %554 : vector<1x13x128xf32> to vector<13x128xf32>
      %556 = vector.shape_cast %551 : vector<13x128xf32> to vector<1x13x128xf32>
      tpu.vector_store %arg7[%553, %c0_144, %c0_145], %556 {strides = array<i32>} : memref<208x13x128xf32, #tpu.memory_space<vmem>>, vector<1x13x128xf32>,
      %c27_146 = arith.constant 27 : index
      %557 = memref.load %arg2[%c27_146] : memref<36xf32, #tpu.memory_space<smem>>
      %558 = vector.broadcast %557 : f32 to vector<13x128xf32>
      %559 = arith.mulf %558, %39 : vector<13x128xf32>
      %c3_147 = arith.constant 3 : index
      %560 = memref.load %arg3[%c3_147] : memref<4xf32, #tpu.memory_space<smem>>
      %561 = vector.broadcast %560 : f32 to vector<13x128xf32>
      %562 = arith.addf %561, %559 : vector<13x128xf32>
      %c28_148 = arith.constant 28 : index
      %563 = memref.load %arg2[%c28_148] : memref<36xf32, #tpu.memory_space<smem>>
      %564 = vector.broadcast %563 : f32 to vector<13x128xf32>
      %565 = arith.mulf %564, %53 : vector<13x128xf32>
      %566 = arith.addf %562, %565 : vector<13x128xf32>
      %c29_149 = arith.constant 29 : index
      %567 = memref.load %arg2[%c29_149] : memref<36xf32, #tpu.memory_space<smem>>
      %568 = vector.broadcast %567 : f32 to vector<13x128xf32>
      %569 = arith.mulf %568, %40 : vector<13x128xf32>
      %570 = arith.addf %566, %569 : vector<13x128xf32>
      %c30_150 = arith.constant 30 : index
      %571 = memref.load %arg2[%c30_150] : memref<36xf32, #tpu.memory_space<smem>>
      %572 = vector.broadcast %571 : f32 to vector<13x128xf32>
      %573 = arith.mulf %572, %18 : vector<13x128xf32>
      %574 = arith.addf %570, %573 : vector<13x128xf32>
      %c31_151 = arith.constant 31 : index
      %575 = memref.load %arg2[%c31_151] : memref<36xf32, #tpu.memory_space<smem>>
      %576 = vector.broadcast %575 : f32 to vector<13x128xf32>
      %577 = arith.mulf %576, %32 : vector<13x128xf32>
      %578 = arith.addf %574, %577 : vector<13x128xf32>
      %c32_152 = arith.constant 32 : index
      %579 = memref.load %arg2[%c32_152] : memref<36xf32, #tpu.memory_space<smem>>
      %580 = vector.broadcast %579 : f32 to vector<13x128xf32>
      %581 = arith.mulf %580, %19 : vector<13x128xf32>
      %582 = arith.addf %578, %581 : vector<13x128xf32>
      %c33_153 = arith.constant 33 : index
      %583 = memref.load %arg2[%c33_153] : memref<36xf32, #tpu.memory_space<smem>>
      %584 = vector.broadcast %583 : f32 to vector<13x128xf32>
      %585 = arith.mulf %584, %46 : vector<13x128xf32>
      %586 = arith.addf %582, %585 : vector<13x128xf32>
      %c34_154 = arith.constant 34 : index
      %587 = memref.load %arg2[%c34_154] : memref<36xf32, #tpu.memory_space<smem>>
      %588 = vector.broadcast %587 : f32 to vector<13x128xf32>
      %589 = arith.mulf %588, %60 : vector<13x128xf32>
      %590 = arith.addf %586, %589 : vector<13x128xf32>
      %c35_155 = arith.constant 35 : index
      %591 = memref.load %arg2[%c35_155] : memref<36xf32, #tpu.memory_space<smem>>
      %592 = vector.broadcast %591 : f32 to vector<13x128xf32>
      %593 = arith.mulf %592, %47 : vector<13x128xf32>
      %594 = arith.addf %590, %593 : vector<13x128xf32>
      %cst_156 = arith.constant 0.000000e+00 : f32
      %595 = vector.broadcast %cst_156 : f32 to vector<13x128xf32>
      %596 = arith.maximumf %594, %595 : vector<13x128xf32>
      %c143_i32 = arith.constant 143 : i32
      %597 = arith.addi %c143_i32, %5 : i32
      %598 = arith.index_cast %597 : i32 to index
      %c0_157 = arith.constant 0 : index
      %c0_158 = arith.constant 0 : index
      %599 = vector.load %arg7[%598, %c0_157, %c0_158] : memref<208x13x128xf32, #tpu.memory_space<vmem>>, vector<1x13x128xf32>
      %600 = vector.shape_cast %599 : vector<1x13x128xf32> to vector<13x128xf32>
      %601 = vector.shape_cast %596 : vector<13x128xf32> to vector<1x13x128xf32>
      tpu.vector_store %arg7[%598, %c0_157, %c0_158], %601 {strides = array<i32>} : memref<208x13x128xf32, #tpu.memory_space<vmem>>, vector<1x13x128xf32>,
      %c0_159 = arith.constant 0 : index
      %602 = memref.load %arg2[%c0_159] : memref<36xf32, #tpu.memory_space<smem>>
      %603 = vector.broadcast %602 : f32 to vector<13x128xf32>
      %604 = arith.mulf %603, %53 : vector<13x128xf32>
      %c0_160 = arith.constant 0 : index
      %605 = memref.load %arg3[%c0_160] : memref<4xf32, #tpu.memory_space<smem>>
      %606 = vector.broadcast %605 : f32 to vector<13x128xf32>
      %607 = arith.addf %606, %604 : vector<13x128xf32>
      %c1_161 = arith.constant 1 : index
      %608 = memref.load %arg2[%c1_161] : memref<36xf32, #tpu.memory_space<smem>>
      %609 = vector.broadcast %608 : f32 to vector<13x128xf32>
      %610 = arith.mulf %609, %40 : vector<13x128xf32>
      %611 = arith.addf %607, %610 : vector<13x128xf32>
      %c2_162 = arith.constant 2 : index
      %612 = memref.load %arg2[%c2_162] : memref<36xf32, #tpu.memory_space<smem>>
      %613 = vector.broadcast %612 : f32 to vector<13x128xf32>
      %614 = arith.mulf %613, %54 : vector<13x128xf32>
      %615 = arith.addf %611, %614 : vector<13x128xf32>
      %c3_163 = arith.constant 3 : index
      %616 = memref.load %arg2[%c3_163] : memref<36xf32, #tpu.memory_space<smem>>
      %617 = vector.broadcast %616 : f32 to vector<13x128xf32>
      %618 = arith.mulf %617, %32 : vector<13x128xf32>
      %619 = arith.addf %615, %618 : vector<13x128xf32>
      %c4_164 = arith.constant 4 : index
      %620 = memref.load %arg2[%c4_164] : memref<36xf32, #tpu.memory_space<smem>>
      %621 = vector.broadcast %620 : f32 to vector<13x128xf32>
      %622 = arith.mulf %621, %19 : vector<13x128xf32>
      %623 = arith.addf %619, %622 : vector<13x128xf32>
      %c5_165 = arith.constant 5 : index
      %624 = memref.load %arg2[%c5_165] : memref<36xf32, #tpu.memory_space<smem>>
      %625 = vector.broadcast %624 : f32 to vector<13x128xf32>
      %626 = arith.mulf %625, %33 : vector<13x128xf32>
      %627 = arith.addf %623, %626 : vector<13x128xf32>
      %c6_166 = arith.constant 6 : index
      %628 = memref.load %arg2[%c6_166] : memref<36xf32, #tpu.memory_space<smem>>
      %629 = vector.broadcast %628 : f32 to vector<13x128xf32>
      %630 = arith.mulf %629, %60 : vector<13x128xf32>
      %631 = arith.addf %627, %630 : vector<13x128xf32>
      %c7_167 = arith.constant 7 : index
      %632 = memref.load %arg2[%c7_167] : memref<36xf32, #tpu.memory_space<smem>>
      %633 = vector.broadcast %632 : f32 to vector<13x128xf32>
      %634 = arith.mulf %633, %47 : vector<13x128xf32>
      %635 = arith.addf %631, %634 : vector<13x128xf32>
      %c8_168 = arith.constant 8 : index
      %636 = memref.load %arg2[%c8_168] : memref<36xf32, #tpu.memory_space<smem>>
      %637 = vector.broadcast %636 : f32 to vector<13x128xf32>
      %638 = arith.mulf %637, %61 : vector<13x128xf32>
      %639 = arith.addf %635, %638 : vector<13x128xf32>
      %cst_169 = arith.constant 0.000000e+00 : f32
      %640 = vector.broadcast %cst_169 : f32 to vector<13x128xf32>
      %641 = arith.maximumf %639, %640 : vector<13x128xf32>
      %c156_i32 = arith.constant 156 : i32
      %642 = arith.addi %c156_i32, %5 : i32
      %643 = arith.index_cast %642 : i32 to index
      %c0_170 = arith.constant 0 : index
      %c0_171 = arith.constant 0 : index
      %644 = vector.load %arg7[%643, %c0_170, %c0_171] : memref<208x13x128xf32, #tpu.memory_space<vmem>>, vector<1x13x128xf32>
      %645 = vector.shape_cast %644 : vector<1x13x128xf32> to vector<13x128xf32>
      %646 = vector.shape_cast %641 : vector<13x128xf32> to vector<1x13x128xf32>
      tpu.vector_store %arg7[%643, %c0_170, %c0_171], %646 {strides = array<i32>} : memref<208x13x128xf32, #tpu.memory_space<vmem>>, vector<1x13x128xf32>,
      %c9_172 = arith.constant 9 : index
      %647 = memref.load %arg2[%c9_172] : memref<36xf32, #tpu.memory_space<smem>>
      %648 = vector.broadcast %647 : f32 to vector<13x128xf32>
      %649 = arith.mulf %648, %53 : vector<13x128xf32>
      %c1_173 = arith.constant 1 : index
      %650 = memref.load %arg3[%c1_173] : memref<4xf32, #tpu.memory_space<smem>>
      %651 = vector.broadcast %650 : f32 to vector<13x128xf32>
      %652 = arith.addf %651, %649 : vector<13x128xf32>
      %c10_174 = arith.constant 10 : index
      %653 = memref.load %arg2[%c10_174] : memref<36xf32, #tpu.memory_space<smem>>
      %654 = vector.broadcast %653 : f32 to vector<13x128xf32>
      %655 = arith.mulf %654, %40 : vector<13x128xf32>
      %656 = arith.addf %652, %655 : vector<13x128xf32>
      %c11_175 = arith.constant 11 : index
      %657 = memref.load %arg2[%c11_175] : memref<36xf32, #tpu.memory_space<smem>>
      %658 = vector.broadcast %657 : f32 to vector<13x128xf32>
      %659 = arith.mulf %658, %54 : vector<13x128xf32>
      %660 = arith.addf %656, %659 : vector<13x128xf32>
      %c12_176 = arith.constant 12 : index
      %661 = memref.load %arg2[%c12_176] : memref<36xf32, #tpu.memory_space<smem>>
      %662 = vector.broadcast %661 : f32 to vector<13x128xf32>
      %663 = arith.mulf %662, %32 : vector<13x128xf32>
      %664 = arith.addf %660, %663 : vector<13x128xf32>
      %c13_177 = arith.constant 13 : index
      %665 = memref.load %arg2[%c13_177] : memref<36xf32, #tpu.memory_space<smem>>
      %666 = vector.broadcast %665 : f32 to vector<13x128xf32>
      %667 = arith.mulf %666, %19 : vector<13x128xf32>
      %668 = arith.addf %664, %667 : vector<13x128xf32>
      %c14_178 = arith.constant 14 : index
      %669 = memref.load %arg2[%c14_178] : memref<36xf32, #tpu.memory_space<smem>>
      %670 = vector.broadcast %669 : f32 to vector<13x128xf32>
      %671 = arith.mulf %670, %33 : vector<13x128xf32>
      %672 = arith.addf %668, %671 : vector<13x128xf32>
      %c15_179 = arith.constant 15 : index
      %673 = memref.load %arg2[%c15_179] : memref<36xf32, #tpu.memory_space<smem>>
      %674 = vector.broadcast %673 : f32 to vector<13x128xf32>
      %675 = arith.mulf %674, %60 : vector<13x128xf32>
      %676 = arith.addf %672, %675 : vector<13x128xf32>
      %c16_180 = arith.constant 16 : index
      %677 = memref.load %arg2[%c16_180] : memref<36xf32, #tpu.memory_space<smem>>
      %678 = vector.broadcast %677 : f32 to vector<13x128xf32>
      %679 = arith.mulf %678, %47 : vector<13x128xf32>
      %680 = arith.addf %676, %679 : vector<13x128xf32>
      %c17_181 = arith.constant 17 : index
      %681 = memref.load %arg2[%c17_181] : memref<36xf32, #tpu.memory_space<smem>>
      %682 = vector.broadcast %681 : f32 to vector<13x128xf32>
      %683 = arith.mulf %682, %61 : vector<13x128xf32>
      %684 = arith.addf %680, %683 : vector<13x128xf32>
      %cst_182 = arith.constant 0.000000e+00 : f32
      %685 = vector.broadcast %cst_182 : f32 to vector<13x128xf32>
      %686 = arith.maximumf %684, %685 : vector<13x128xf32>
      %c169_i32 = arith.constant 169 : i32
      %687 = arith.addi %c169_i32, %5 : i32
      %688 = arith.index_cast %687 : i32 to index
      %c0_183 = arith.constant 0 : index
      %c0_184 = arith.constant 0 : index
      %689 = vector.load %arg7[%688, %c0_183, %c0_184] : memref<208x13x128xf32, #tpu.memory_space<vmem>>, vector<1x13x128xf32>
      %690 = vector.shape_cast %689 : vector<1x13x128xf32> to vector<13x128xf32>
      %691 = vector.shape_cast %686 : vector<13x128xf32> to vector<1x13x128xf32>
      tpu.vector_store %arg7[%688, %c0_183, %c0_184], %691 {strides = array<i32>} : memref<208x13x128xf32, #tpu.memory_space<vmem>>, vector<1x13x128xf32>,
      %c18_185 = arith.constant 18 : index
      %692 = memref.load %arg2[%c18_185] : memref<36xf32, #tpu.memory_space<smem>>
      %693 = vector.broadcast %692 : f32 to vector<13x128xf32>
      %694 = arith.mulf %693, %53 : vector<13x128xf32>
      %c2_186 = arith.constant 2 : index
      %695 = memref.load %arg3[%c2_186] : memref<4xf32, #tpu.memory_space<smem>>
      %696 = vector.broadcast %695 : f32 to vector<13x128xf32>
      %697 = arith.addf %696, %694 : vector<13x128xf32>
      %c19_187 = arith.constant 19 : index
      %698 = memref.load %arg2[%c19_187] : memref<36xf32, #tpu.memory_space<smem>>
      %699 = vector.broadcast %698 : f32 to vector<13x128xf32>
      %700 = arith.mulf %699, %40 : vector<13x128xf32>
      %701 = arith.addf %697, %700 : vector<13x128xf32>
      %c20_188 = arith.constant 20 : index
      %702 = memref.load %arg2[%c20_188] : memref<36xf32, #tpu.memory_space<smem>>
      %703 = vector.broadcast %702 : f32 to vector<13x128xf32>
      %704 = arith.mulf %703, %54 : vector<13x128xf32>
      %705 = arith.addf %701, %704 : vector<13x128xf32>
      %c21_189 = arith.constant 21 : index
      %706 = memref.load %arg2[%c21_189] : memref<36xf32, #tpu.memory_space<smem>>
      %707 = vector.broadcast %706 : f32 to vector<13x128xf32>
      %708 = arith.mulf %707, %32 : vector<13x128xf32>
      %709 = arith.addf %705, %708 : vector<13x128xf32>
      %c22_190 = arith.constant 22 : index
      %710 = memref.load %arg2[%c22_190] : memref<36xf32, #tpu.memory_space<smem>>
      %711 = vector.broadcast %710 : f32 to vector<13x128xf32>
      %712 = arith.mulf %711, %19 : vector<13x128xf32>
      %713 = arith.addf %709, %712 : vector<13x128xf32>
      %c23_191 = arith.constant 23 : index
      %714 = memref.load %arg2[%c23_191] : memref<36xf32, #tpu.memory_space<smem>>
      %715 = vector.broadcast %714 : f32 to vector<13x128xf32>
      %716 = arith.mulf %715, %33 : vector<13x128xf32>
      %717 = arith.addf %713, %716 : vector<13x128xf32>
      %c24_192 = arith.constant 24 : index
      %718 = memref.load %arg2[%c24_192] : memref<36xf32, #tpu.memory_space<smem>>
      %719 = vector.broadcast %718 : f32 to vector<13x128xf32>
      %720 = arith.mulf %719, %60 : vector<13x128xf32>
      %721 = arith.addf %717, %720 : vector<13x128xf32>
      %c25_193 = arith.constant 25 : index
      %722 = memref.load %arg2[%c25_193] : memref<36xf32, #tpu.memory_space<smem>>
      %723 = vector.broadcast %722 : f32 to vector<13x128xf32>
      %724 = arith.mulf %723, %47 : vector<13x128xf32>
      %725 = arith.addf %721, %724 : vector<13x128xf32>
      %c26_194 = arith.constant 26 : index
      %726 = memref.load %arg2[%c26_194] : memref<36xf32, #tpu.memory_space<smem>>
      %727 = vector.broadcast %726 : f32 to vector<13x128xf32>
      %728 = arith.mulf %727, %61 : vector<13x128xf32>
      %729 = arith.addf %725, %728 : vector<13x128xf32>
      %cst_195 = arith.constant 0.000000e+00 : f32
      %730 = vector.broadcast %cst_195 : f32 to vector<13x128xf32>
      %731 = arith.maximumf %729, %730 : vector<13x128xf32>
      %c182_i32 = arith.constant 182 : i32
      %732 = arith.addi %c182_i32, %5 : i32
      %733 = arith.index_cast %732 : i32 to index
      %c0_196 = arith.constant 0 : index
      %c0_197 = arith.constant 0 : index
      %734 = vector.load %arg7[%733, %c0_196, %c0_197] : memref<208x13x128xf32, #tpu.memory_space<vmem>>, vector<1x13x128xf32>
      %735 = vector.shape_cast %734 : vector<1x13x128xf32> to vector<13x128xf32>
      %736 = vector.shape_cast %731 : vector<13x128xf32> to vector<1x13x128xf32>
      tpu.vector_store %arg7[%733, %c0_196, %c0_197], %736 {strides = array<i32>} : memref<208x13x128xf32, #tpu.memory_space<vmem>>, vector<1x13x128xf32>,
      %c27_198 = arith.constant 27 : index
      %737 = memref.load %arg2[%c27_198] : memref<36xf32, #tpu.memory_space<smem>>
      %738 = vector.broadcast %737 : f32 to vector<13x128xf32>
      %739 = arith.mulf %738, %53 : vector<13x128xf32>
      %c3_199 = arith.constant 3 : index
      %740 = memref.load %arg3[%c3_199] : memref<4xf32, #tpu.memory_space<smem>>
      %741 = vector.broadcast %740 : f32 to vector<13x128xf32>
      %742 = arith.addf %741, %739 : vector<13x128xf32>
      %c28_200 = arith.constant 28 : index
      %743 = memref.load %arg2[%c28_200] : memref<36xf32, #tpu.memory_space<smem>>
      %744 = vector.broadcast %743 : f32 to vector<13x128xf32>
      %745 = arith.mulf %744, %40 : vector<13x128xf32>
      %746 = arith.addf %742, %745 : vector<13x128xf32>
      %c29_201 = arith.constant 29 : index
      %747 = memref.load %arg2[%c29_201] : memref<36xf32, #tpu.memory_space<smem>>
      %748 = vector.broadcast %747 : f32 to vector<13x128xf32>
      %749 = arith.mulf %748, %54 : vector<13x128xf32>
      %750 = arith.addf %746, %749 : vector<13x128xf32>
      %c30_202 = arith.constant 30 : index
      %751 = memref.load %arg2[%c30_202] : memref<36xf32, #tpu.memory_space<smem>>
      %752 = vector.broadcast %751 : f32 to vector<13x128xf32>
      %753 = arith.mulf %752, %32 : vector<13x128xf32>
      %754 = arith.addf %750, %753 : vector<13x128xf32>
      %c31_203 = arith.constant 31 : index
      %755 = memref.load %arg2[%c31_203] : memref<36xf32, #tpu.memory_space<smem>>
      %756 = vector.broadcast %755 : f32 to vector<13x128xf32>
      %757 = arith.mulf %756, %19 : vector<13x128xf32>
      %758 = arith.addf %754, %757 : vector<13x128xf32>
      %c32_204 = arith.constant 32 : index
      %759 = memref.load %arg2[%c32_204] : memref<36xf32, #tpu.memory_space<smem>>
      %760 = vector.broadcast %759 : f32 to vector<13x128xf32>
      %761 = arith.mulf %760, %33 : vector<13x128xf32>
      %762 = arith.addf %758, %761 : vector<13x128xf32>
      %c33_205 = arith.constant 33 : index
      %763 = memref.load %arg2[%c33_205] : memref<36xf32, #tpu.memory_space<smem>>
      %764 = vector.broadcast %763 : f32 to vector<13x128xf32>
      %765 = arith.mulf %764, %60 : vector<13x128xf32>
      %766 = arith.addf %762, %765 : vector<13x128xf32>
      %c34_206 = arith.constant 34 : index
      %767 = memref.load %arg2[%c34_206] : memref<36xf32, #tpu.memory_space<smem>>
      %768 = vector.broadcast %767 : f32 to vector<13x128xf32>
      %769 = arith.mulf %768, %47 : vector<13x128xf32>
      %770 = arith.addf %766, %769 : vector<13x128xf32>
      %c35_207 = arith.constant 35 : index
      %771 = memref.load %arg2[%c35_207] : memref<36xf32, #tpu.memory_space<smem>>
      %772 = vector.broadcast %771 : f32 to vector<13x128xf32>
      %773 = arith.mulf %772, %61 : vector<13x128xf32>
      %774 = arith.addf %770, %773 : vector<13x128xf32>
      %cst_208 = arith.constant 0.000000e+00 : f32
      %775 = vector.broadcast %cst_208 : f32 to vector<13x128xf32>
      %776 = arith.maximumf %774, %775 : vector<13x128xf32>
      %c195_i32 = arith.constant 195 : i32
      %777 = arith.addi %c195_i32, %5 : i32
      %778 = arith.index_cast %777 : i32 to index
      %c0_209 = arith.constant 0 : index
      %c0_210 = arith.constant 0 : index
      %779 = vector.load %arg7[%778, %c0_209, %c0_210] : memref<208x13x128xf32, #tpu.memory_space<vmem>>, vector<1x13x128xf32>
      %780 = vector.shape_cast %779 : vector<1x13x128xf32> to vector<13x128xf32>
      %781 = vector.shape_cast %776 : vector<13x128xf32> to vector<1x13x128xf32>
      tpu.vector_store %arg7[%778, %c0_209, %c0_210], %781 {strides = array<i32>} : memref<208x13x128xf32, #tpu.memory_space<vmem>>, vector<1x13x128xf32>,
    }
    %c13_i32_0 = arith.constant 13 : i32
    %cst = arith.constant 0.000000e+00 : f32
    %1 = vector.broadcast %cst : f32 to vector<10x128xf32>
    %c0 = arith.constant 0 : index
    %c0_1 = arith.constant 0 : index
    %2 = vector.load %arg6[%c0, %c0_1] : memref<10x128xf32, #tpu.memory_space<vmem>>, vector<10x128xf32>
    tpu.vector_store %arg6[%c0, %c0_1], %1 {strides = array<i32>} : memref<10x128xf32, #tpu.memory_space<vmem>>, vector<10x128xf32>,
    %c0_i32_2 = arith.constant 0 : i32
    %c12_i32 = arith.constant 12 : i32
    %3 = arith.addi %c0_i32_2, %c12_i32 : i32
    %c1_i32_3 = arith.constant 1 : i32
    scf.for %arg8 = %c0_i32_2 to %3 step %c1_i32_3  : i32 {
      %c1_i32_5 = arith.constant 1 : i32
      %4 = arith.muli %arg8, %c1_i32_5 : i32
      %c0_i32_6 = arith.constant 0 : i32
      %5 = arith.addi %c0_i32_6, %4 : i32
      %c0_i32_7 = arith.constant 0 : i32
      %6 = arith.addi %5, %c0_i32_7 : i32
      %c0_i32_8 = arith.constant 0 : i32
      %7 = arith.addi %c0_i32_8, %6 : i32
      %8 = arith.index_cast %7 : i32 to index
      %c0_9 = arith.constant 0 : index
      %c0_10 = arith.constant 0 : index
      %9 = vector.load %arg7[%8, %c0_9, %c0_10] : memref<208x13x128xf32, #tpu.memory_space<vmem>>, vector<1x13x128xf32>
      %10 = vector.shape_cast %9 : vector<1x13x128xf32> to vector<13x128xf32>
      %c0_i32_11 = arith.constant 0 : i32
      %11 = arith.addi %5, %c0_i32_11 : i32
      %c52_i32 = arith.constant 52 : i32
      %12 = arith.addi %c52_i32, %11 : i32
      %13 = arith.index_cast %12 : i32 to index
      %c0_12 = arith.constant 0 : index
      %c0_13 = arith.constant 0 : index
      %14 = vector.load %arg7[%13, %c0_12, %c0_13] : memref<208x13x128xf32, #tpu.memory_space<vmem>>, vector<1x13x128xf32>
      %15 = vector.shape_cast %14 : vector<1x13x128xf32> to vector<13x128xf32>
      %16 = vector.extract_strided_slice %10 {offsets = [0, 0], sizes = [12, 128], strides = [1, 1]} : vector<13x128xf32> to vector<12x128xf32>
      %17 = vector.extract_strided_slice %15 {offsets = [0, 0], sizes = [12, 128], strides = [1, 1]} : vector<13x128xf32> to vector<12x128xf32>
      %18 = vector.extract_strided_slice %10 {offsets = [1, 0], sizes = [12, 128], strides = [1, 1]} : vector<13x128xf32> to vector<12x128xf32>
      %c0_14 = arith.constant 0 : index
      %19 = memref.load %arg4[%c0_14] : memref<360xf32, #tpu.memory_space<smem>>
      %20 = vector.broadcast %19 : f32 to vector<12x128xf32>
      %21 = arith.mulf %20, %16 : vector<12x128xf32>
      %c1 = arith.constant 1 : index
      %22 = memref.load %arg4[%c1] : memref<360xf32, #tpu.memory_space<smem>>
      %23 = vector.broadcast %22 : f32 to vector<12x128xf32>
      %24 = arith.mulf %23, %17 : vector<12x128xf32>
      %25 = arith.addf %21, %24 : vector<12x128xf32>
      %c2 = arith.constant 2 : index
      %26 = memref.load %arg4[%c2] : memref<360xf32, #tpu.memory_space<smem>>
      %27 = vector.broadcast %26 : f32 to vector<12x128xf32>
      %28 = arith.mulf %27, %18 : vector<12x128xf32>
      %29 = arith.addf %25, %28 : vector<12x128xf32>
      %c0_15 = arith.constant 0 : index
      %30 = memref.load %arg5[%c0_15] : memref<10xf32, #tpu.memory_space<smem>>
      %31 = vector.broadcast %30 : f32 to vector<12x128xf32>
      %32 = arith.addf %31, %29 : vector<12x128xf32>
      %c36 = arith.constant 36 : index
      %33 = memref.load %arg4[%c36] : memref<360xf32, #tpu.memory_space<smem>>
      %34 = vector.broadcast %33 : f32 to vector<12x128xf32>
      %35 = arith.mulf %34, %16 : vector<12x128xf32>
      %c37 = arith.constant 37 : index
      %36 = memref.load %arg4[%c37] : memref<360xf32, #tpu.memory_space<smem>>
      %37 = vector.broadcast %36 : f32 to vector<12x128xf32>
      %38 = arith.mulf %37, %17 : vector<12x128xf32>
      %39 = arith.addf %35, %38 : vector<12x128xf32>
      %c38 = arith.constant 38 : index
      %40 = memref.load %arg4[%c38] : memref<360xf32, #tpu.memory_space<smem>>
      %41 = vector.broadcast %40 : f32 to vector<12x128xf32>
      %42 = arith.mulf %41, %18 : vector<12x128xf32>
      %43 = arith.addf %39, %42 : vector<12x128xf32>
      %c1_16 = arith.constant 1 : index
      %44 = memref.load %arg5[%c1_16] : memref<10xf32, #tpu.memory_space<smem>>
      %45 = vector.broadcast %44 : f32 to vector<12x128xf32>
      %46 = arith.addf %45, %43 : vector<12x128xf32>
      %c72 = arith.constant 72 : index
      %47 = memref.load %arg4[%c72] : memref<360xf32, #tpu.memory_space<smem>>
      %48 = vector.broadcast %47 : f32 to vector<12x128xf32>
      %49 = arith.mulf %48, %16 : vector<12x128xf32>
      %c73 = arith.constant 73 : index
      %50 = memref.load %arg4[%c73] : memref<360xf32, #tpu.memory_space<smem>>
      %51 = vector.broadcast %50 : f32 to vector<12x128xf32>
      %52 = arith.mulf %51, %17 : vector<12x128xf32>
      %53 = arith.addf %49, %52 : vector<12x128xf32>
      %c74 = arith.constant 74 : index
      %54 = memref.load %arg4[%c74] : memref<360xf32, #tpu.memory_space<smem>>
      %55 = vector.broadcast %54 : f32 to vector<12x128xf32>
      %56 = arith.mulf %55, %18 : vector<12x128xf32>
      %57 = arith.addf %53, %56 : vector<12x128xf32>
      %c2_17 = arith.constant 2 : index
      %58 = memref.load %arg5[%c2_17] : memref<10xf32, #tpu.memory_space<smem>>
      %59 = vector.broadcast %58 : f32 to vector<12x128xf32>
      %60 = arith.addf %59, %57 : vector<12x128xf32>
      %c108 = arith.constant 108 : index
      %61 = memref.load %arg4[%c108] : memref<360xf32, #tpu.memory_space<smem>>
      %62 = vector.broadcast %61 : f32 to vector<12x128xf32>
      %63 = arith.mulf %62, %16 : vector<12x128xf32>
      %c109 = arith.constant 109 : index
      %64 = memref.load %arg4[%c109] : memref<360xf32, #tpu.memory_space<smem>>
      %65 = vector.broadcast %64 : f32 to vector<12x128xf32>
      %66 = arith.mulf %65, %17 : vector<12x128xf32>
      %67 = arith.addf %63, %66 : vector<12x128xf32>
      %c110 = arith.constant 110 : index
      %68 = memref.load %arg4[%c110] : memref<360xf32, #tpu.memory_space<smem>>
      %69 = vector.broadcast %68 : f32 to vector<12x128xf32>
      %70 = arith.mulf %69, %18 : vector<12x128xf32>
      %71 = arith.addf %67, %70 : vector<12x128xf32>
      %c3 = arith.constant 3 : index
      %72 = memref.load %arg5[%c3] : memref<10xf32, #tpu.memory_space<smem>>
      %73 = vector.broadcast %72 : f32 to vector<12x128xf32>
      %74 = arith.addf %73, %71 : vector<12x128xf32>
      %c144 = arith.constant 144 : index
      %75 = memref.load %arg4[%c144] : memref<360xf32, #tpu.memory_space<smem>>
      %76 = vector.broadcast %75 : f32 to vector<12x128xf32>
      %77 = arith.mulf %76, %16 : vector<12x128xf32>
      %c145 = arith.constant 145 : index
      %78 = memref.load %arg4[%c145] : memref<360xf32, #tpu.memory_space<smem>>
      %79 = vector.broadcast %78 : f32 to vector<12x128xf32>
      %80 = arith.mulf %79, %17 : vector<12x128xf32>
      %81 = arith.addf %77, %80 : vector<12x128xf32>
      %c146 = arith.constant 146 : index
      %82 = memref.load %arg4[%c146] : memref<360xf32, #tpu.memory_space<smem>>
      %83 = vector.broadcast %82 : f32 to vector<12x128xf32>
      %84 = arith.mulf %83, %18 : vector<12x128xf32>
      %85 = arith.addf %81, %84 : vector<12x128xf32>
      %c4 = arith.constant 4 : index
      %86 = memref.load %arg5[%c4] : memref<10xf32, #tpu.memory_space<smem>>
      %87 = vector.broadcast %86 : f32 to vector<12x128xf32>
      %88 = arith.addf %87, %85 : vector<12x128xf32>
      %c180 = arith.constant 180 : index
      %89 = memref.load %arg4[%c180] : memref<360xf32, #tpu.memory_space<smem>>
      %90 = vector.broadcast %89 : f32 to vector<12x128xf32>
      %91 = arith.mulf %90, %16 : vector<12x128xf32>
      %c181 = arith.constant 181 : index
      %92 = memref.load %arg4[%c181] : memref<360xf32, #tpu.memory_space<smem>>
      %93 = vector.broadcast %92 : f32 to vector<12x128xf32>
      %94 = arith.mulf %93, %17 : vector<12x128xf32>
      %95 = arith.addf %91, %94 : vector<12x128xf32>
      %c182 = arith.constant 182 : index
      %96 = memref.load %arg4[%c182] : memref<360xf32, #tpu.memory_space<smem>>
      %97 = vector.broadcast %96 : f32 to vector<12x128xf32>
      %98 = arith.mulf %97, %18 : vector<12x128xf32>
      %99 = arith.addf %95, %98 : vector<12x128xf32>
      %c5 = arith.constant 5 : index
      %100 = memref.load %arg5[%c5] : memref<10xf32, #tpu.memory_space<smem>>
      %101 = vector.broadcast %100 : f32 to vector<12x128xf32>
      %102 = arith.addf %101, %99 : vector<12x128xf32>
      %c216 = arith.constant 216 : index
      %103 = memref.load %arg4[%c216] : memref<360xf32, #tpu.memory_space<smem>>
      %104 = vector.broadcast %103 : f32 to vector<12x128xf32>
      %105 = arith.mulf %104, %16 : vector<12x128xf32>
      %c217 = arith.constant 217 : index
      %106 = memref.load %arg4[%c217] : memref<360xf32, #tpu.memory_space<smem>>
      %107 = vector.broadcast %106 : f32 to vector<12x128xf32>
      %108 = arith.mulf %107, %17 : vector<12x128xf32>
      %109 = arith.addf %105, %108 : vector<12x128xf32>
      %c218 = arith.constant 218 : index
      %110 = memref.load %arg4[%c218] : memref<360xf32, #tpu.memory_space<smem>>
      %111 = vector.broadcast %110 : f32 to vector<12x128xf32>
      %112 = arith.mulf %111, %18 : vector<12x128xf32>
      %113 = arith.addf %109, %112 : vector<12x128xf32>
      %c6 = arith.constant 6 : index
      %114 = memref.load %arg5[%c6] : memref<10xf32, #tpu.memory_space<smem>>
      %115 = vector.broadcast %114 : f32 to vector<12x128xf32>
      %116 = arith.addf %115, %113 : vector<12x128xf32>
      %c252 = arith.constant 252 : index
      %117 = memref.load %arg4[%c252] : memref<360xf32, #tpu.memory_space<smem>>
      %118 = vector.broadcast %117 : f32 to vector<12x128xf32>
      %119 = arith.mulf %118, %16 : vector<12x128xf32>
      %c253 = arith.constant 253 : index
      %120 = memref.load %arg4[%c253] : memref<360xf32, #tpu.memory_space<smem>>
      %121 = vector.broadcast %120 : f32 to vector<12x128xf32>
      %122 = arith.mulf %121, %17 : vector<12x128xf32>
      %123 = arith.addf %119, %122 : vector<12x128xf32>
      %c254 = arith.constant 254 : index
      %124 = memref.load %arg4[%c254] : memref<360xf32, #tpu.memory_space<smem>>
      %125 = vector.broadcast %124 : f32 to vector<12x128xf32>
      %126 = arith.mulf %125, %18 : vector<12x128xf32>
      %127 = arith.addf %123, %126 : vector<12x128xf32>
      %c7 = arith.constant 7 : index
      %128 = memref.load %arg5[%c7] : memref<10xf32, #tpu.memory_space<smem>>
      %129 = vector.broadcast %128 : f32 to vector<12x128xf32>
      %130 = arith.addf %129, %127 : vector<12x128xf32>
      %c288 = arith.constant 288 : index
      %131 = memref.load %arg4[%c288] : memref<360xf32, #tpu.memory_space<smem>>
      %132 = vector.broadcast %131 : f32 to vector<12x128xf32>
      %133 = arith.mulf %132, %16 : vector<12x128xf32>
      %c289 = arith.constant 289 : index
      %134 = memref.load %arg4[%c289] : memref<360xf32, #tpu.memory_space<smem>>
      %135 = vector.broadcast %134 : f32 to vector<12x128xf32>
      %136 = arith.mulf %135, %17 : vector<12x128xf32>
      %137 = arith.addf %133, %136 : vector<12x128xf32>
      %c290 = arith.constant 290 : index
      %138 = memref.load %arg4[%c290] : memref<360xf32, #tpu.memory_space<smem>>
      %139 = vector.broadcast %138 : f32 to vector<12x128xf32>
      %140 = arith.mulf %139, %18 : vector<12x128xf32>
      %141 = arith.addf %137, %140 : vector<12x128xf32>
      %c8 = arith.constant 8 : index
      %142 = memref.load %arg5[%c8] : memref<10xf32, #tpu.memory_space<smem>>
      %143 = vector.broadcast %142 : f32 to vector<12x128xf32>
      %144 = arith.addf %143, %141 : vector<12x128xf32>
      %c324 = arith.constant 324 : index
      %145 = memref.load %arg4[%c324] : memref<360xf32, #tpu.memory_space<smem>>
      %146 = vector.broadcast %145 : f32 to vector<12x128xf32>
      %147 = arith.mulf %146, %16 : vector<12x128xf32>
      %c325 = arith.constant 325 : index
      %148 = memref.load %arg4[%c325] : memref<360xf32, #tpu.memory_space<smem>>
      %149 = vector.broadcast %148 : f32 to vector<12x128xf32>
      %150 = arith.mulf %149, %17 : vector<12x128xf32>
      %151 = arith.addf %147, %150 : vector<12x128xf32>
      %c326 = arith.constant 326 : index
      %152 = memref.load %arg4[%c326] : memref<360xf32, #tpu.memory_space<smem>>
      %153 = vector.broadcast %152 : f32 to vector<12x128xf32>
      %154 = arith.mulf %153, %18 : vector<12x128xf32>
      %155 = arith.addf %151, %154 : vector<12x128xf32>
      %c9 = arith.constant 9 : index
      %156 = memref.load %arg5[%c9] : memref<10xf32, #tpu.memory_space<smem>>
      %157 = vector.broadcast %156 : f32 to vector<12x128xf32>
      %158 = arith.addf %157, %155 : vector<12x128xf32>
      %c0_i32_18 = arith.constant 0 : i32
      %159 = arith.addi %5, %c0_i32_18 : i32
      %c104_i32 = arith.constant 104 : i32
      %160 = arith.addi %c104_i32, %159 : i32
      %161 = arith.index_cast %160 : i32 to index
      %c0_19 = arith.constant 0 : index
      %c0_20 = arith.constant 0 : index
      %162 = vector.load %arg7[%161, %c0_19, %c0_20] : memref<208x13x128xf32, #tpu.memory_space<vmem>>, vector<1x13x128xf32>
      %163 = vector.shape_cast %162 : vector<1x13x128xf32> to vector<13x128xf32>
      %c0_i32_21 = arith.constant 0 : i32
      %164 = arith.addi %5, %c0_i32_21 : i32
      %c156_i32 = arith.constant 156 : i32
      %165 = arith.addi %c156_i32, %164 : i32
      %166 = arith.index_cast %165 : i32 to index
      %c0_22 = arith.constant 0 : index
      %c0_23 = arith.constant 0 : index
      %167 = vector.load %arg7[%166, %c0_22, %c0_23] : memref<208x13x128xf32, #tpu.memory_space<vmem>>, vector<1x13x128xf32>
      %168 = vector.shape_cast %167 : vector<1x13x128xf32> to vector<13x128xf32>
      %169 = vector.extract_strided_slice %163 {offsets = [0, 0], sizes = [12, 128], strides = [1, 1]} : vector<13x128xf32> to vector<12x128xf32>
      %170 = vector.extract_strided_slice %168 {offsets = [0, 0], sizes = [12, 128], strides = [1, 1]} : vector<13x128xf32> to vector<12x128xf32>
      %171 = vector.extract_strided_slice %163 {offsets = [1, 0], sizes = [12, 128], strides = [1, 1]} : vector<13x128xf32> to vector<12x128xf32>
      %c3_24 = arith.constant 3 : index
      %172 = memref.load %arg4[%c3_24] : memref<360xf32, #tpu.memory_space<smem>>
      %173 = vector.broadcast %172 : f32 to vector<12x128xf32>
      %174 = arith.mulf %173, %169 : vector<12x128xf32>
      %c4_25 = arith.constant 4 : index
      %175 = memref.load %arg4[%c4_25] : memref<360xf32, #tpu.memory_space<smem>>
      %176 = vector.broadcast %175 : f32 to vector<12x128xf32>
      %177 = arith.mulf %176, %170 : vector<12x128xf32>
      %178 = arith.addf %174, %177 : vector<12x128xf32>
      %c5_26 = arith.constant 5 : index
      %179 = memref.load %arg4[%c5_26] : memref<360xf32, #tpu.memory_space<smem>>
      %180 = vector.broadcast %179 : f32 to vector<12x128xf32>
      %181 = arith.mulf %180, %171 : vector<12x128xf32>
      %182 = arith.addf %178, %181 : vector<12x128xf32>
      %183 = arith.addf %32, %182 : vector<12x128xf32>
      %c39 = arith.constant 39 : index
      %184 = memref.load %arg4[%c39] : memref<360xf32, #tpu.memory_space<smem>>
      %185 = vector.broadcast %184 : f32 to vector<12x128xf32>
      %186 = arith.mulf %185, %169 : vector<12x128xf32>
      %c40 = arith.constant 40 : index
      %187 = memref.load %arg4[%c40] : memref<360xf32, #tpu.memory_space<smem>>
      %188 = vector.broadcast %187 : f32 to vector<12x128xf32>
      %189 = arith.mulf %188, %170 : vector<12x128xf32>
      %190 = arith.addf %186, %189 : vector<12x128xf32>
      %c41 = arith.constant 41 : index
      %191 = memref.load %arg4[%c41] : memref<360xf32, #tpu.memory_space<smem>>
      %192 = vector.broadcast %191 : f32 to vector<12x128xf32>
      %193 = arith.mulf %192, %171 : vector<12x128xf32>
      %194 = arith.addf %190, %193 : vector<12x128xf32>
      %195 = arith.addf %46, %194 : vector<12x128xf32>
      %c75 = arith.constant 75 : index
      %196 = memref.load %arg4[%c75] : memref<360xf32, #tpu.memory_space<smem>>
      %197 = vector.broadcast %196 : f32 to vector<12x128xf32>
      %198 = arith.mulf %197, %169 : vector<12x128xf32>
      %c76 = arith.constant 76 : index
      %199 = memref.load %arg4[%c76] : memref<360xf32, #tpu.memory_space<smem>>
      %200 = vector.broadcast %199 : f32 to vector<12x128xf32>
      %201 = arith.mulf %200, %170 : vector<12x128xf32>
      %202 = arith.addf %198, %201 : vector<12x128xf32>
      %c77 = arith.constant 77 : index
      %203 = memref.load %arg4[%c77] : memref<360xf32, #tpu.memory_space<smem>>
      %204 = vector.broadcast %203 : f32 to vector<12x128xf32>
      %205 = arith.mulf %204, %171 : vector<12x128xf32>
      %206 = arith.addf %202, %205 : vector<12x128xf32>
      %207 = arith.addf %60, %206 : vector<12x128xf32>
      %c111 = arith.constant 111 : index
      %208 = memref.load %arg4[%c111] : memref<360xf32, #tpu.memory_space<smem>>
      %209 = vector.broadcast %208 : f32 to vector<12x128xf32>
      %210 = arith.mulf %209, %169 : vector<12x128xf32>
      %c112 = arith.constant 112 : index
      %211 = memref.load %arg4[%c112] : memref<360xf32, #tpu.memory_space<smem>>
      %212 = vector.broadcast %211 : f32 to vector<12x128xf32>
      %213 = arith.mulf %212, %170 : vector<12x128xf32>
      %214 = arith.addf %210, %213 : vector<12x128xf32>
      %c113 = arith.constant 113 : index
      %215 = memref.load %arg4[%c113] : memref<360xf32, #tpu.memory_space<smem>>
      %216 = vector.broadcast %215 : f32 to vector<12x128xf32>
      %217 = arith.mulf %216, %171 : vector<12x128xf32>
      %218 = arith.addf %214, %217 : vector<12x128xf32>
      %219 = arith.addf %74, %218 : vector<12x128xf32>
      %c147 = arith.constant 147 : index
      %220 = memref.load %arg4[%c147] : memref<360xf32, #tpu.memory_space<smem>>
      %221 = vector.broadcast %220 : f32 to vector<12x128xf32>
      %222 = arith.mulf %221, %169 : vector<12x128xf32>
      %c148 = arith.constant 148 : index
      %223 = memref.load %arg4[%c148] : memref<360xf32, #tpu.memory_space<smem>>
      %224 = vector.broadcast %223 : f32 to vector<12x128xf32>
      %225 = arith.mulf %224, %170 : vector<12x128xf32>
      %226 = arith.addf %222, %225 : vector<12x128xf32>
      %c149 = arith.constant 149 : index
      %227 = memref.load %arg4[%c149] : memref<360xf32, #tpu.memory_space<smem>>
      %228 = vector.broadcast %227 : f32 to vector<12x128xf32>
      %229 = arith.mulf %228, %171 : vector<12x128xf32>
      %230 = arith.addf %226, %229 : vector<12x128xf32>
      %231 = arith.addf %88, %230 : vector<12x128xf32>
      %c183 = arith.constant 183 : index
      %232 = memref.load %arg4[%c183] : memref<360xf32, #tpu.memory_space<smem>>
      %233 = vector.broadcast %232 : f32 to vector<12x128xf32>
      %234 = arith.mulf %233, %169 : vector<12x128xf32>
      %c184 = arith.constant 184 : index
      %235 = memref.load %arg4[%c184] : memref<360xf32, #tpu.memory_space<smem>>
      %236 = vector.broadcast %235 : f32 to vector<12x128xf32>
      %237 = arith.mulf %236, %170 : vector<12x128xf32>
      %238 = arith.addf %234, %237 : vector<12x128xf32>
      %c185 = arith.constant 185 : index
      %239 = memref.load %arg4[%c185] : memref<360xf32, #tpu.memory_space<smem>>
      %240 = vector.broadcast %239 : f32 to vector<12x128xf32>
      %241 = arith.mulf %240, %171 : vector<12x128xf32>
      %242 = arith.addf %238, %241 : vector<12x128xf32>
      %243 = arith.addf %102, %242 : vector<12x128xf32>
      %c219 = arith.constant 219 : index
      %244 = memref.load %arg4[%c219] : memref<360xf32, #tpu.memory_space<smem>>
      %245 = vector.broadcast %244 : f32 to vector<12x128xf32>
      %246 = arith.mulf %245, %169 : vector<12x128xf32>
      %c220 = arith.constant 220 : index
      %247 = memref.load %arg4[%c220] : memref<360xf32, #tpu.memory_space<smem>>
      %248 = vector.broadcast %247 : f32 to vector<12x128xf32>
      %249 = arith.mulf %248, %170 : vector<12x128xf32>
      %250 = arith.addf %246, %249 : vector<12x128xf32>
      %c221 = arith.constant 221 : index
      %251 = memref.load %arg4[%c221] : memref<360xf32, #tpu.memory_space<smem>>
      %252 = vector.broadcast %251 : f32 to vector<12x128xf32>
      %253 = arith.mulf %252, %171 : vector<12x128xf32>
      %254 = arith.addf %250, %253 : vector<12x128xf32>
      %255 = arith.addf %116, %254 : vector<12x128xf32>
      %c255 = arith.constant 255 : index
      %256 = memref.load %arg4[%c255] : memref<360xf32, #tpu.memory_space<smem>>
      %257 = vector.broadcast %256 : f32 to vector<12x128xf32>
      %258 = arith.mulf %257, %169 : vector<12x128xf32>
      %c256 = arith.constant 256 : index
      %259 = memref.load %arg4[%c256] : memref<360xf32, #tpu.memory_space<smem>>
      %260 = vector.broadcast %259 : f32 to vector<12x128xf32>
      %261 = arith.mulf %260, %170 : vector<12x128xf32>
      %262 = arith.addf %258, %261 : vector<12x128xf32>
      %c257 = arith.constant 257 : index
      %263 = memref.load %arg4[%c257] : memref<360xf32, #tpu.memory_space<smem>>
      %264 = vector.broadcast %263 : f32 to vector<12x128xf32>
      %265 = arith.mulf %264, %171 : vector<12x128xf32>
      %266 = arith.addf %262, %265 : vector<12x128xf32>
      %267 = arith.addf %130, %266 : vector<12x128xf32>
      %c291 = arith.constant 291 : index
      %268 = memref.load %arg4[%c291] : memref<360xf32, #tpu.memory_space<smem>>
      %269 = vector.broadcast %268 : f32 to vector<12x128xf32>
      %270 = arith.mulf %269, %169 : vector<12x128xf32>
      %c292 = arith.constant 292 : index
      %271 = memref.load %arg4[%c292] : memref<360xf32, #tpu.memory_space<smem>>
      %272 = vector.broadcast %271 : f32 to vector<12x128xf32>
      %273 = arith.mulf %272, %170 : vector<12x128xf32>
      %274 = arith.addf %270, %273 : vector<12x128xf32>
      %c293 = arith.constant 293 : index
      %275 = memref.load %arg4[%c293] : memref<360xf32, #tpu.memory_space<smem>>
      %276 = vector.broadcast %275 : f32 to vector<12x128xf32>
      %277 = arith.mulf %276, %171 : vector<12x128xf32>
      %278 = arith.addf %274, %277 : vector<12x128xf32>
      %279 = arith.addf %144, %278 : vector<12x128xf32>
      %c327 = arith.constant 327 : index
      %280 = memref.load %arg4[%c327] : memref<360xf32, #tpu.memory_space<smem>>
      %281 = vector.broadcast %280 : f32 to vector<12x128xf32>
      %282 = arith.mulf %281, %169 : vector<12x128xf32>
      %c328 = arith.constant 328 : index
      %283 = memref.load %arg4[%c328] : memref<360xf32, #tpu.memory_space<smem>>
      %284 = vector.broadcast %283 : f32 to vector<12x128xf32>
      %285 = arith.mulf %284, %170 : vector<12x128xf32>
      %286 = arith.addf %282, %285 : vector<12x128xf32>
      %c329 = arith.constant 329 : index
      %287 = memref.load %arg4[%c329] : memref<360xf32, #tpu.memory_space<smem>>
      %288 = vector.broadcast %287 : f32 to vector<12x128xf32>
      %289 = arith.mulf %288, %171 : vector<12x128xf32>
      %290 = arith.addf %286, %289 : vector<12x128xf32>
      %291 = arith.addf %158, %290 : vector<12x128xf32>
      %c1_i32_27 = arith.constant 1 : i32
      %292 = arith.addi %5, %c1_i32_27 : i32
      %c0_i32_28 = arith.constant 0 : i32
      %293 = arith.addi %c0_i32_28, %292 : i32
      %294 = arith.index_cast %293 : i32 to index
      %c0_29 = arith.constant 0 : index
      %c0_30 = arith.constant 0 : index
      %295 = vector.load %arg7[%294, %c0_29, %c0_30] : memref<208x13x128xf32, #tpu.memory_space<vmem>>, vector<1x13x128xf32>
      %296 = vector.shape_cast %295 : vector<1x13x128xf32> to vector<13x128xf32>
      %c1_i32_31 = arith.constant 1 : i32
      %297 = arith.addi %5, %c1_i32_31 : i32
      %c52_i32_32 = arith.constant 52 : i32
      %298 = arith.addi %c52_i32_32, %297 : i32
      %299 = arith.index_cast %298 : i32 to index
      %c0_33 = arith.constant 0 : index
      %c0_34 = arith.constant 0 : index
      %300 = vector.load %arg7[%299, %c0_33, %c0_34] : memref<208x13x128xf32, #tpu.memory_space<vmem>>, vector<1x13x128xf32>
      %301 = vector.shape_cast %300 : vector<1x13x128xf32> to vector<13x128xf32>
      %302 = vector.extract_strided_slice %296 {offsets = [0, 0], sizes = [12, 128], strides = [1, 1]} : vector<13x128xf32> to vector<12x128xf32>
      %303 = vector.extract_strided_slice %301 {offsets = [0, 0], sizes = [12, 128], strides = [1, 1]} : vector<13x128xf32> to vector<12x128xf32>
      %304 = vector.extract_strided_slice %296 {offsets = [1, 0], sizes = [12, 128], strides = [1, 1]} : vector<13x128xf32> to vector<12x128xf32>
      %c6_35 = arith.constant 6 : index
      %305 = memref.load %arg4[%c6_35] : memref<360xf32, #tpu.memory_space<smem>>
      %306 = vector.broadcast %305 : f32 to vector<12x128xf32>
      %307 = arith.mulf %306, %302 : vector<12x128xf32>
      %c7_36 = arith.constant 7 : index
      %308 = memref.load %arg4[%c7_36] : memref<360xf32, #tpu.memory_space<smem>>
      %309 = vector.broadcast %308 : f32 to vector<12x128xf32>
      %310 = arith.mulf %309, %303 : vector<12x128xf32>
      %311 = arith.addf %307, %310 : vector<12x128xf32>
      %c8_37 = arith.constant 8 : index
      %312 = memref.load %arg4[%c8_37] : memref<360xf32, #tpu.memory_space<smem>>
      %313 = vector.broadcast %312 : f32 to vector<12x128xf32>
      %314 = arith.mulf %313, %304 : vector<12x128xf32>
      %315 = arith.addf %311, %314 : vector<12x128xf32>
      %316 = arith.addf %183, %315 : vector<12x128xf32>
      %c42 = arith.constant 42 : index
      %317 = memref.load %arg4[%c42] : memref<360xf32, #tpu.memory_space<smem>>
      %318 = vector.broadcast %317 : f32 to vector<12x128xf32>
      %319 = arith.mulf %318, %302 : vector<12x128xf32>
      %c43 = arith.constant 43 : index
      %320 = memref.load %arg4[%c43] : memref<360xf32, #tpu.memory_space<smem>>
      %321 = vector.broadcast %320 : f32 to vector<12x128xf32>
      %322 = arith.mulf %321, %303 : vector<12x128xf32>
      %323 = arith.addf %319, %322 : vector<12x128xf32>
      %c44 = arith.constant 44 : index
      %324 = memref.load %arg4[%c44] : memref<360xf32, #tpu.memory_space<smem>>
      %325 = vector.broadcast %324 : f32 to vector<12x128xf32>
      %326 = arith.mulf %325, %304 : vector<12x128xf32>
      %327 = arith.addf %323, %326 : vector<12x128xf32>
      %328 = arith.addf %195, %327 : vector<12x128xf32>
      %c78 = arith.constant 78 : index
      %329 = memref.load %arg4[%c78] : memref<360xf32, #tpu.memory_space<smem>>
      %330 = vector.broadcast %329 : f32 to vector<12x128xf32>
      %331 = arith.mulf %330, %302 : vector<12x128xf32>
      %c79 = arith.constant 79 : index
      %332 = memref.load %arg4[%c79] : memref<360xf32, #tpu.memory_space<smem>>
      %333 = vector.broadcast %332 : f32 to vector<12x128xf32>
      %334 = arith.mulf %333, %303 : vector<12x128xf32>
      %335 = arith.addf %331, %334 : vector<12x128xf32>
      %c80 = arith.constant 80 : index
      %336 = memref.load %arg4[%c80] : memref<360xf32, #tpu.memory_space<smem>>
      %337 = vector.broadcast %336 : f32 to vector<12x128xf32>
      %338 = arith.mulf %337, %304 : vector<12x128xf32>
      %339 = arith.addf %335, %338 : vector<12x128xf32>
      %340 = arith.addf %207, %339 : vector<12x128xf32>
      %c114 = arith.constant 114 : index
      %341 = memref.load %arg4[%c114] : memref<360xf32, #tpu.memory_space<smem>>
      %342 = vector.broadcast %341 : f32 to vector<12x128xf32>
      %343 = arith.mulf %342, %302 : vector<12x128xf32>
      %c115 = arith.constant 115 : index
      %344 = memref.load %arg4[%c115] : memref<360xf32, #tpu.memory_space<smem>>
      %345 = vector.broadcast %344 : f32 to vector<12x128xf32>
      %346 = arith.mulf %345, %303 : vector<12x128xf32>
      %347 = arith.addf %343, %346 : vector<12x128xf32>
      %c116 = arith.constant 116 : index
      %348 = memref.load %arg4[%c116] : memref<360xf32, #tpu.memory_space<smem>>
      %349 = vector.broadcast %348 : f32 to vector<12x128xf32>
      %350 = arith.mulf %349, %304 : vector<12x128xf32>
      %351 = arith.addf %347, %350 : vector<12x128xf32>
      %352 = arith.addf %219, %351 : vector<12x128xf32>
      %c150 = arith.constant 150 : index
      %353 = memref.load %arg4[%c150] : memref<360xf32, #tpu.memory_space<smem>>
      %354 = vector.broadcast %353 : f32 to vector<12x128xf32>
      %355 = arith.mulf %354, %302 : vector<12x128xf32>
      %c151 = arith.constant 151 : index
      %356 = memref.load %arg4[%c151] : memref<360xf32, #tpu.memory_space<smem>>
      %357 = vector.broadcast %356 : f32 to vector<12x128xf32>
      %358 = arith.mulf %357, %303 : vector<12x128xf32>
      %359 = arith.addf %355, %358 : vector<12x128xf32>
      %c152 = arith.constant 152 : index
      %360 = memref.load %arg4[%c152] : memref<360xf32, #tpu.memory_space<smem>>
      %361 = vector.broadcast %360 : f32 to vector<12x128xf32>
      %362 = arith.mulf %361, %304 : vector<12x128xf32>
      %363 = arith.addf %359, %362 : vector<12x128xf32>
      %364 = arith.addf %231, %363 : vector<12x128xf32>
      %c186 = arith.constant 186 : index
      %365 = memref.load %arg4[%c186] : memref<360xf32, #tpu.memory_space<smem>>
      %366 = vector.broadcast %365 : f32 to vector<12x128xf32>
      %367 = arith.mulf %366, %302 : vector<12x128xf32>
      %c187 = arith.constant 187 : index
      %368 = memref.load %arg4[%c187] : memref<360xf32, #tpu.memory_space<smem>>
      %369 = vector.broadcast %368 : f32 to vector<12x128xf32>
      %370 = arith.mulf %369, %303 : vector<12x128xf32>
      %371 = arith.addf %367, %370 : vector<12x128xf32>
      %c188 = arith.constant 188 : index
      %372 = memref.load %arg4[%c188] : memref<360xf32, #tpu.memory_space<smem>>
      %373 = vector.broadcast %372 : f32 to vector<12x128xf32>
      %374 = arith.mulf %373, %304 : vector<12x128xf32>
      %375 = arith.addf %371, %374 : vector<12x128xf32>
      %376 = arith.addf %243, %375 : vector<12x128xf32>
      %c222 = arith.constant 222 : index
      %377 = memref.load %arg4[%c222] : memref<360xf32, #tpu.memory_space<smem>>
      %378 = vector.broadcast %377 : f32 to vector<12x128xf32>
      %379 = arith.mulf %378, %302 : vector<12x128xf32>
      %c223 = arith.constant 223 : index
      %380 = memref.load %arg4[%c223] : memref<360xf32, #tpu.memory_space<smem>>
      %381 = vector.broadcast %380 : f32 to vector<12x128xf32>
      %382 = arith.mulf %381, %303 : vector<12x128xf32>
      %383 = arith.addf %379, %382 : vector<12x128xf32>
      %c224 = arith.constant 224 : index
      %384 = memref.load %arg4[%c224] : memref<360xf32, #tpu.memory_space<smem>>
      %385 = vector.broadcast %384 : f32 to vector<12x128xf32>
      %386 = arith.mulf %385, %304 : vector<12x128xf32>
      %387 = arith.addf %383, %386 : vector<12x128xf32>
      %388 = arith.addf %255, %387 : vector<12x128xf32>
      %c258 = arith.constant 258 : index
      %389 = memref.load %arg4[%c258] : memref<360xf32, #tpu.memory_space<smem>>
      %390 = vector.broadcast %389 : f32 to vector<12x128xf32>
      %391 = arith.mulf %390, %302 : vector<12x128xf32>
      %c259 = arith.constant 259 : index
      %392 = memref.load %arg4[%c259] : memref<360xf32, #tpu.memory_space<smem>>
      %393 = vector.broadcast %392 : f32 to vector<12x128xf32>
      %394 = arith.mulf %393, %303 : vector<12x128xf32>
      %395 = arith.addf %391, %394 : vector<12x128xf32>
      %c260 = arith.constant 260 : index
      %396 = memref.load %arg4[%c260] : memref<360xf32, #tpu.memory_space<smem>>
      %397 = vector.broadcast %396 : f32 to vector<12x128xf32>
      %398 = arith.mulf %397, %304 : vector<12x128xf32>
      %399 = arith.addf %395, %398 : vector<12x128xf32>
      %400 = arith.addf %267, %399 : vector<12x128xf32>
      %c294 = arith.constant 294 : index
      %401 = memref.load %arg4[%c294] : memref<360xf32, #tpu.memory_space<smem>>
      %402 = vector.broadcast %401 : f32 to vector<12x128xf32>
      %403 = arith.mulf %402, %302 : vector<12x128xf32>
      %c295 = arith.constant 295 : index
      %404 = memref.load %arg4[%c295] : memref<360xf32, #tpu.memory_space<smem>>
      %405 = vector.broadcast %404 : f32 to vector<12x128xf32>
      %406 = arith.mulf %405, %303 : vector<12x128xf32>
      %407 = arith.addf %403, %406 : vector<12x128xf32>
      %c296 = arith.constant 296 : index
      %408 = memref.load %arg4[%c296] : memref<360xf32, #tpu.memory_space<smem>>
      %409 = vector.broadcast %408 : f32 to vector<12x128xf32>
      %410 = arith.mulf %409, %304 : vector<12x128xf32>
      %411 = arith.addf %407, %410 : vector<12x128xf32>
      %412 = arith.addf %279, %411 : vector<12x128xf32>
      %c330 = arith.constant 330 : index
      %413 = memref.load %arg4[%c330] : memref<360xf32, #tpu.memory_space<smem>>
      %414 = vector.broadcast %413 : f32 to vector<12x128xf32>
      %415 = arith.mulf %414, %302 : vector<12x128xf32>
      %c331 = arith.constant 331 : index
      %416 = memref.load %arg4[%c331] : memref<360xf32, #tpu.memory_space<smem>>
      %417 = vector.broadcast %416 : f32 to vector<12x128xf32>
      %418 = arith.mulf %417, %303 : vector<12x128xf32>
      %419 = arith.addf %415, %418 : vector<12x128xf32>
      %c332 = arith.constant 332 : index
      %420 = memref.load %arg4[%c332] : memref<360xf32, #tpu.memory_space<smem>>
      %421 = vector.broadcast %420 : f32 to vector<12x128xf32>
      %422 = arith.mulf %421, %304 : vector<12x128xf32>
      %423 = arith.addf %419, %422 : vector<12x128xf32>
      %424 = arith.addf %291, %423 : vector<12x128xf32>
      %c0_i32_38 = arith.constant 0 : i32
      %425 = arith.addi %5, %c0_i32_38 : i32
      %c13_i32_39 = arith.constant 13 : i32
      %426 = arith.addi %c13_i32_39, %425 : i32
      %427 = arith.index_cast %426 : i32 to index
      %c0_40 = arith.constant 0 : index
      %c0_41 = arith.constant 0 : index
      %428 = vector.load %arg7[%427, %c0_40, %c0_41] : memref<208x13x128xf32, #tpu.memory_space<vmem>>, vector<1x13x128xf32>
      %429 = vector.shape_cast %428 : vector<1x13x128xf32> to vector<13x128xf32>
      %c0_i32_42 = arith.constant 0 : i32
      %430 = arith.addi %5, %c0_i32_42 : i32
      %c65_i32 = arith.constant 65 : i32
      %431 = arith.addi %c65_i32, %430 : i32
      %432 = arith.index_cast %431 : i32 to index
      %c0_43 = arith.constant 0 : index
      %c0_44 = arith.constant 0 : index
      %433 = vector.load %arg7[%432, %c0_43, %c0_44] : memref<208x13x128xf32, #tpu.memory_space<vmem>>, vector<1x13x128xf32>
      %434 = vector.shape_cast %433 : vector<1x13x128xf32> to vector<13x128xf32>
      %435 = vector.extract_strided_slice %429 {offsets = [0, 0], sizes = [12, 128], strides = [1, 1]} : vector<13x128xf32> to vector<12x128xf32>
      %436 = vector.extract_strided_slice %434 {offsets = [0, 0], sizes = [12, 128], strides = [1, 1]} : vector<13x128xf32> to vector<12x128xf32>
      %437 = vector.extract_strided_slice %429 {offsets = [1, 0], sizes = [12, 128], strides = [1, 1]} : vector<13x128xf32> to vector<12x128xf32>
      %c9_45 = arith.constant 9 : index
      %438 = memref.load %arg4[%c9_45] : memref<360xf32, #tpu.memory_space<smem>>
      %439 = vector.broadcast %438 : f32 to vector<12x128xf32>
      %440 = arith.mulf %439, %435 : vector<12x128xf32>
      %c10 = arith.constant 10 : index
      %441 = memref.load %arg4[%c10] : memref<360xf32, #tpu.memory_space<smem>>
      %442 = vector.broadcast %441 : f32 to vector<12x128xf32>
      %443 = arith.mulf %442, %436 : vector<12x128xf32>
      %444 = arith.addf %440, %443 : vector<12x128xf32>
      %c11 = arith.constant 11 : index
      %445 = memref.load %arg4[%c11] : memref<360xf32, #tpu.memory_space<smem>>
      %446 = vector.broadcast %445 : f32 to vector<12x128xf32>
      %447 = arith.mulf %446, %437 : vector<12x128xf32>
      %448 = arith.addf %444, %447 : vector<12x128xf32>
      %449 = arith.addf %316, %448 : vector<12x128xf32>
      %c45 = arith.constant 45 : index
      %450 = memref.load %arg4[%c45] : memref<360xf32, #tpu.memory_space<smem>>
      %451 = vector.broadcast %450 : f32 to vector<12x128xf32>
      %452 = arith.mulf %451, %435 : vector<12x128xf32>
      %c46 = arith.constant 46 : index
      %453 = memref.load %arg4[%c46] : memref<360xf32, #tpu.memory_space<smem>>
      %454 = vector.broadcast %453 : f32 to vector<12x128xf32>
      %455 = arith.mulf %454, %436 : vector<12x128xf32>
      %456 = arith.addf %452, %455 : vector<12x128xf32>
      %c47 = arith.constant 47 : index
      %457 = memref.load %arg4[%c47] : memref<360xf32, #tpu.memory_space<smem>>
      %458 = vector.broadcast %457 : f32 to vector<12x128xf32>
      %459 = arith.mulf %458, %437 : vector<12x128xf32>
      %460 = arith.addf %456, %459 : vector<12x128xf32>
      %461 = arith.addf %328, %460 : vector<12x128xf32>
      %c81 = arith.constant 81 : index
      %462 = memref.load %arg4[%c81] : memref<360xf32, #tpu.memory_space<smem>>
      %463 = vector.broadcast %462 : f32 to vector<12x128xf32>
      %464 = arith.mulf %463, %435 : vector<12x128xf32>
      %c82 = arith.constant 82 : index
      %465 = memref.load %arg4[%c82] : memref<360xf32, #tpu.memory_space<smem>>
      %466 = vector.broadcast %465 : f32 to vector<12x128xf32>
      %467 = arith.mulf %466, %436 : vector<12x128xf32>
      %468 = arith.addf %464, %467 : vector<12x128xf32>
      %c83 = arith.constant 83 : index
      %469 = memref.load %arg4[%c83] : memref<360xf32, #tpu.memory_space<smem>>
      %470 = vector.broadcast %469 : f32 to vector<12x128xf32>
      %471 = arith.mulf %470, %437 : vector<12x128xf32>
      %472 = arith.addf %468, %471 : vector<12x128xf32>
      %473 = arith.addf %340, %472 : vector<12x128xf32>
      %c117 = arith.constant 117 : index
      %474 = memref.load %arg4[%c117] : memref<360xf32, #tpu.memory_space<smem>>
      %475 = vector.broadcast %474 : f32 to vector<12x128xf32>
      %476 = arith.mulf %475, %435 : vector<12x128xf32>
      %c118 = arith.constant 118 : index
      %477 = memref.load %arg4[%c118] : memref<360xf32, #tpu.memory_space<smem>>
      %478 = vector.broadcast %477 : f32 to vector<12x128xf32>
      %479 = arith.mulf %478, %436 : vector<12x128xf32>
      %480 = arith.addf %476, %479 : vector<12x128xf32>
      %c119 = arith.constant 119 : index
      %481 = memref.load %arg4[%c119] : memref<360xf32, #tpu.memory_space<smem>>
      %482 = vector.broadcast %481 : f32 to vector<12x128xf32>
      %483 = arith.mulf %482, %437 : vector<12x128xf32>
      %484 = arith.addf %480, %483 : vector<12x128xf32>
      %485 = arith.addf %352, %484 : vector<12x128xf32>
      %c153 = arith.constant 153 : index
      %486 = memref.load %arg4[%c153] : memref<360xf32, #tpu.memory_space<smem>>
      %487 = vector.broadcast %486 : f32 to vector<12x128xf32>
      %488 = arith.mulf %487, %435 : vector<12x128xf32>
      %c154 = arith.constant 154 : index
      %489 = memref.load %arg4[%c154] : memref<360xf32, #tpu.memory_space<smem>>
      %490 = vector.broadcast %489 : f32 to vector<12x128xf32>
      %491 = arith.mulf %490, %436 : vector<12x128xf32>
      %492 = arith.addf %488, %491 : vector<12x128xf32>
      %c155 = arith.constant 155 : index
      %493 = memref.load %arg4[%c155] : memref<360xf32, #tpu.memory_space<smem>>
      %494 = vector.broadcast %493 : f32 to vector<12x128xf32>
      %495 = arith.mulf %494, %437 : vector<12x128xf32>
      %496 = arith.addf %492, %495 : vector<12x128xf32>
      %497 = arith.addf %364, %496 : vector<12x128xf32>
      %c189 = arith.constant 189 : index
      %498 = memref.load %arg4[%c189] : memref<360xf32, #tpu.memory_space<smem>>
      %499 = vector.broadcast %498 : f32 to vector<12x128xf32>
      %500 = arith.mulf %499, %435 : vector<12x128xf32>
      %c190 = arith.constant 190 : index
      %501 = memref.load %arg4[%c190] : memref<360xf32, #tpu.memory_space<smem>>
      %502 = vector.broadcast %501 : f32 to vector<12x128xf32>
      %503 = arith.mulf %502, %436 : vector<12x128xf32>
      %504 = arith.addf %500, %503 : vector<12x128xf32>
      %c191 = arith.constant 191 : index
      %505 = memref.load %arg4[%c191] : memref<360xf32, #tpu.memory_space<smem>>
      %506 = vector.broadcast %505 : f32 to vector<12x128xf32>
      %507 = arith.mulf %506, %437 : vector<12x128xf32>
      %508 = arith.addf %504, %507 : vector<12x128xf32>
      %509 = arith.addf %376, %508 : vector<12x128xf32>
      %c225 = arith.constant 225 : index
      %510 = memref.load %arg4[%c225] : memref<360xf32, #tpu.memory_space<smem>>
      %511 = vector.broadcast %510 : f32 to vector<12x128xf32>
      %512 = arith.mulf %511, %435 : vector<12x128xf32>
      %c226 = arith.constant 226 : index
      %513 = memref.load %arg4[%c226] : memref<360xf32, #tpu.memory_space<smem>>
      %514 = vector.broadcast %513 : f32 to vector<12x128xf32>
      %515 = arith.mulf %514, %436 : vector<12x128xf32>
      %516 = arith.addf %512, %515 : vector<12x128xf32>
      %c227 = arith.constant 227 : index
      %517 = memref.load %arg4[%c227] : memref<360xf32, #tpu.memory_space<smem>>
      %518 = vector.broadcast %517 : f32 to vector<12x128xf32>
      %519 = arith.mulf %518, %437 : vector<12x128xf32>
      %520 = arith.addf %516, %519 : vector<12x128xf32>
      %521 = arith.addf %388, %520 : vector<12x128xf32>
      %c261 = arith.constant 261 : index
      %522 = memref.load %arg4[%c261] : memref<360xf32, #tpu.memory_space<smem>>
      %523 = vector.broadcast %522 : f32 to vector<12x128xf32>
      %524 = arith.mulf %523, %435 : vector<12x128xf32>
      %c262 = arith.constant 262 : index
      %525 = memref.load %arg4[%c262] : memref<360xf32, #tpu.memory_space<smem>>
      %526 = vector.broadcast %525 : f32 to vector<12x128xf32>
      %527 = arith.mulf %526, %436 : vector<12x128xf32>
      %528 = arith.addf %524, %527 : vector<12x128xf32>
      %c263 = arith.constant 263 : index
      %529 = memref.load %arg4[%c263] : memref<360xf32, #tpu.memory_space<smem>>
      %530 = vector.broadcast %529 : f32 to vector<12x128xf32>
      %531 = arith.mulf %530, %437 : vector<12x128xf32>
      %532 = arith.addf %528, %531 : vector<12x128xf32>
      %533 = arith.addf %400, %532 : vector<12x128xf32>
      %c297 = arith.constant 297 : index
      %534 = memref.load %arg4[%c297] : memref<360xf32, #tpu.memory_space<smem>>
      %535 = vector.broadcast %534 : f32 to vector<12x128xf32>
      %536 = arith.mulf %535, %435 : vector<12x128xf32>
      %c298 = arith.constant 298 : index
      %537 = memref.load %arg4[%c298] : memref<360xf32, #tpu.memory_space<smem>>
      %538 = vector.broadcast %537 : f32 to vector<12x128xf32>
      %539 = arith.mulf %538, %436 : vector<12x128xf32>
      %540 = arith.addf %536, %539 : vector<12x128xf32>
      %c299 = arith.constant 299 : index
      %541 = memref.load %arg4[%c299] : memref<360xf32, #tpu.memory_space<smem>>
      %542 = vector.broadcast %541 : f32 to vector<12x128xf32>
      %543 = arith.mulf %542, %437 : vector<12x128xf32>
      %544 = arith.addf %540, %543 : vector<12x128xf32>
      %545 = arith.addf %412, %544 : vector<12x128xf32>
      %c333 = arith.constant 333 : index
      %546 = memref.load %arg4[%c333] : memref<360xf32, #tpu.memory_space<smem>>
      %547 = vector.broadcast %546 : f32 to vector<12x128xf32>
      %548 = arith.mulf %547, %435 : vector<12x128xf32>
      %c334 = arith.constant 334 : index
      %549 = memref.load %arg4[%c334] : memref<360xf32, #tpu.memory_space<smem>>
      %550 = vector.broadcast %549 : f32 to vector<12x128xf32>
      %551 = arith.mulf %550, %436 : vector<12x128xf32>
      %552 = arith.addf %548, %551 : vector<12x128xf32>
      %c335 = arith.constant 335 : index
      %553 = memref.load %arg4[%c335] : memref<360xf32, #tpu.memory_space<smem>>
      %554 = vector.broadcast %553 : f32 to vector<12x128xf32>
      %555 = arith.mulf %554, %437 : vector<12x128xf32>
      %556 = arith.addf %552, %555 : vector<12x128xf32>
      %557 = arith.addf %424, %556 : vector<12x128xf32>
      %c0_i32_46 = arith.constant 0 : i32
      %558 = arith.addi %5, %c0_i32_46 : i32
      %c117_i32 = arith.constant 117 : i32
      %559 = arith.addi %c117_i32, %558 : i32
      %560 = arith.index_cast %559 : i32 to index
      %c0_47 = arith.constant 0 : index
      %c0_48 = arith.constant 0 : index
      %561 = vector.load %arg7[%560, %c0_47, %c0_48] : memref<208x13x128xf32, #tpu.memory_space<vmem>>, vector<1x13x128xf32>
      %562 = vector.shape_cast %561 : vector<1x13x128xf32> to vector<13x128xf32>
      %c0_i32_49 = arith.constant 0 : i32
      %563 = arith.addi %5, %c0_i32_49 : i32
      %c169_i32 = arith.constant 169 : i32
      %564 = arith.addi %c169_i32, %563 : i32
      %565 = arith.index_cast %564 : i32 to index
      %c0_50 = arith.constant 0 : index
      %c0_51 = arith.constant 0 : index
      %566 = vector.load %arg7[%565, %c0_50, %c0_51] : memref<208x13x128xf32, #tpu.memory_space<vmem>>, vector<1x13x128xf32>
      %567 = vector.shape_cast %566 : vector<1x13x128xf32> to vector<13x128xf32>
      %568 = vector.extract_strided_slice %562 {offsets = [0, 0], sizes = [12, 128], strides = [1, 1]} : vector<13x128xf32> to vector<12x128xf32>
      %569 = vector.extract_strided_slice %567 {offsets = [0, 0], sizes = [12, 128], strides = [1, 1]} : vector<13x128xf32> to vector<12x128xf32>
      %570 = vector.extract_strided_slice %562 {offsets = [1, 0], sizes = [12, 128], strides = [1, 1]} : vector<13x128xf32> to vector<12x128xf32>
      %c12 = arith.constant 12 : index
      %571 = memref.load %arg4[%c12] : memref<360xf32, #tpu.memory_space<smem>>
      %572 = vector.broadcast %571 : f32 to vector<12x128xf32>
      %573 = arith.mulf %572, %568 : vector<12x128xf32>
      %c13 = arith.constant 13 : index
      %574 = memref.load %arg4[%c13] : memref<360xf32, #tpu.memory_space<smem>>
      %575 = vector.broadcast %574 : f32 to vector<12x128xf32>
      %576 = arith.mulf %575, %569 : vector<12x128xf32>
      %577 = arith.addf %573, %576 : vector<12x128xf32>
      %c14 = arith.constant 14 : index
      %578 = memref.load %arg4[%c14] : memref<360xf32, #tpu.memory_space<smem>>
      %579 = vector.broadcast %578 : f32 to vector<12x128xf32>
      %580 = arith.mulf %579, %570 : vector<12x128xf32>
      %581 = arith.addf %577, %580 : vector<12x128xf32>
      %582 = arith.addf %449, %581 : vector<12x128xf32>
      %c48 = arith.constant 48 : index
      %583 = memref.load %arg4[%c48] : memref<360xf32, #tpu.memory_space<smem>>
      %584 = vector.broadcast %583 : f32 to vector<12x128xf32>
      %585 = arith.mulf %584, %568 : vector<12x128xf32>
      %c49 = arith.constant 49 : index
      %586 = memref.load %arg4[%c49] : memref<360xf32, #tpu.memory_space<smem>>
      %587 = vector.broadcast %586 : f32 to vector<12x128xf32>
      %588 = arith.mulf %587, %569 : vector<12x128xf32>
      %589 = arith.addf %585, %588 : vector<12x128xf32>
      %c50 = arith.constant 50 : index
      %590 = memref.load %arg4[%c50] : memref<360xf32, #tpu.memory_space<smem>>
      %591 = vector.broadcast %590 : f32 to vector<12x128xf32>
      %592 = arith.mulf %591, %570 : vector<12x128xf32>
      %593 = arith.addf %589, %592 : vector<12x128xf32>
      %594 = arith.addf %461, %593 : vector<12x128xf32>
      %c84 = arith.constant 84 : index
      %595 = memref.load %arg4[%c84] : memref<360xf32, #tpu.memory_space<smem>>
      %596 = vector.broadcast %595 : f32 to vector<12x128xf32>
      %597 = arith.mulf %596, %568 : vector<12x128xf32>
      %c85 = arith.constant 85 : index
      %598 = memref.load %arg4[%c85] : memref<360xf32, #tpu.memory_space<smem>>
      %599 = vector.broadcast %598 : f32 to vector<12x128xf32>
      %600 = arith.mulf %599, %569 : vector<12x128xf32>
      %601 = arith.addf %597, %600 : vector<12x128xf32>
      %c86 = arith.constant 86 : index
      %602 = memref.load %arg4[%c86] : memref<360xf32, #tpu.memory_space<smem>>
      %603 = vector.broadcast %602 : f32 to vector<12x128xf32>
      %604 = arith.mulf %603, %570 : vector<12x128xf32>
      %605 = arith.addf %601, %604 : vector<12x128xf32>
      %606 = arith.addf %473, %605 : vector<12x128xf32>
      %c120 = arith.constant 120 : index
      %607 = memref.load %arg4[%c120] : memref<360xf32, #tpu.memory_space<smem>>
      %608 = vector.broadcast %607 : f32 to vector<12x128xf32>
      %609 = arith.mulf %608, %568 : vector<12x128xf32>
      %c121 = arith.constant 121 : index
      %610 = memref.load %arg4[%c121] : memref<360xf32, #tpu.memory_space<smem>>
      %611 = vector.broadcast %610 : f32 to vector<12x128xf32>
      %612 = arith.mulf %611, %569 : vector<12x128xf32>
      %613 = arith.addf %609, %612 : vector<12x128xf32>
      %c122 = arith.constant 122 : index
      %614 = memref.load %arg4[%c122] : memref<360xf32, #tpu.memory_space<smem>>
      %615 = vector.broadcast %614 : f32 to vector<12x128xf32>
      %616 = arith.mulf %615, %570 : vector<12x128xf32>
      %617 = arith.addf %613, %616 : vector<12x128xf32>
      %618 = arith.addf %485, %617 : vector<12x128xf32>
      %c156 = arith.constant 156 : index
      %619 = memref.load %arg4[%c156] : memref<360xf32, #tpu.memory_space<smem>>
      %620 = vector.broadcast %619 : f32 to vector<12x128xf32>
      %621 = arith.mulf %620, %568 : vector<12x128xf32>
      %c157 = arith.constant 157 : index
      %622 = memref.load %arg4[%c157] : memref<360xf32, #tpu.memory_space<smem>>
      %623 = vector.broadcast %622 : f32 to vector<12x128xf32>
      %624 = arith.mulf %623, %569 : vector<12x128xf32>
      %625 = arith.addf %621, %624 : vector<12x128xf32>
      %c158 = arith.constant 158 : index
      %626 = memref.load %arg4[%c158] : memref<360xf32, #tpu.memory_space<smem>>
      %627 = vector.broadcast %626 : f32 to vector<12x128xf32>
      %628 = arith.mulf %627, %570 : vector<12x128xf32>
      %629 = arith.addf %625, %628 : vector<12x128xf32>
      %630 = arith.addf %497, %629 : vector<12x128xf32>
      %c192 = arith.constant 192 : index
      %631 = memref.load %arg4[%c192] : memref<360xf32, #tpu.memory_space<smem>>
      %632 = vector.broadcast %631 : f32 to vector<12x128xf32>
      %633 = arith.mulf %632, %568 : vector<12x128xf32>
      %c193 = arith.constant 193 : index
      %634 = memref.load %arg4[%c193] : memref<360xf32, #tpu.memory_space<smem>>
      %635 = vector.broadcast %634 : f32 to vector<12x128xf32>
      %636 = arith.mulf %635, %569 : vector<12x128xf32>
      %637 = arith.addf %633, %636 : vector<12x128xf32>
      %c194 = arith.constant 194 : index
      %638 = memref.load %arg4[%c194] : memref<360xf32, #tpu.memory_space<smem>>
      %639 = vector.broadcast %638 : f32 to vector<12x128xf32>
      %640 = arith.mulf %639, %570 : vector<12x128xf32>
      %641 = arith.addf %637, %640 : vector<12x128xf32>
      %642 = arith.addf %509, %641 : vector<12x128xf32>
      %c228 = arith.constant 228 : index
      %643 = memref.load %arg4[%c228] : memref<360xf32, #tpu.memory_space<smem>>
      %644 = vector.broadcast %643 : f32 to vector<12x128xf32>
      %645 = arith.mulf %644, %568 : vector<12x128xf32>
      %c229 = arith.constant 229 : index
      %646 = memref.load %arg4[%c229] : memref<360xf32, #tpu.memory_space<smem>>
      %647 = vector.broadcast %646 : f32 to vector<12x128xf32>
      %648 = arith.mulf %647, %569 : vector<12x128xf32>
      %649 = arith.addf %645, %648 : vector<12x128xf32>
      %c230 = arith.constant 230 : index
      %650 = memref.load %arg4[%c230] : memref<360xf32, #tpu.memory_space<smem>>
      %651 = vector.broadcast %650 : f32 to vector<12x128xf32>
      %652 = arith.mulf %651, %570 : vector<12x128xf32>
      %653 = arith.addf %649, %652 : vector<12x128xf32>
      %654 = arith.addf %521, %653 : vector<12x128xf32>
      %c264 = arith.constant 264 : index
      %655 = memref.load %arg4[%c264] : memref<360xf32, #tpu.memory_space<smem>>
      %656 = vector.broadcast %655 : f32 to vector<12x128xf32>
      %657 = arith.mulf %656, %568 : vector<12x128xf32>
      %c265 = arith.constant 265 : index
      %658 = memref.load %arg4[%c265] : memref<360xf32, #tpu.memory_space<smem>>
      %659 = vector.broadcast %658 : f32 to vector<12x128xf32>
      %660 = arith.mulf %659, %569 : vector<12x128xf32>
      %661 = arith.addf %657, %660 : vector<12x128xf32>
      %c266 = arith.constant 266 : index
      %662 = memref.load %arg4[%c266] : memref<360xf32, #tpu.memory_space<smem>>
      %663 = vector.broadcast %662 : f32 to vector<12x128xf32>
      %664 = arith.mulf %663, %570 : vector<12x128xf32>
      %665 = arith.addf %661, %664 : vector<12x128xf32>
      %666 = arith.addf %533, %665 : vector<12x128xf32>
      %c300 = arith.constant 300 : index
      %667 = memref.load %arg4[%c300] : memref<360xf32, #tpu.memory_space<smem>>
      %668 = vector.broadcast %667 : f32 to vector<12x128xf32>
      %669 = arith.mulf %668, %568 : vector<12x128xf32>
      %c301 = arith.constant 301 : index
      %670 = memref.load %arg4[%c301] : memref<360xf32, #tpu.memory_space<smem>>
      %671 = vector.broadcast %670 : f32 to vector<12x128xf32>
      %672 = arith.mulf %671, %569 : vector<12x128xf32>
      %673 = arith.addf %669, %672 : vector<12x128xf32>
      %c302 = arith.constant 302 : index
      %674 = memref.load %arg4[%c302] : memref<360xf32, #tpu.memory_space<smem>>
      %675 = vector.broadcast %674 : f32 to vector<12x128xf32>
      %676 = arith.mulf %675, %570 : vector<12x128xf32>
      %677 = arith.addf %673, %676 : vector<12x128xf32>
      %678 = arith.addf %545, %677 : vector<12x128xf32>
      %c336 = arith.constant 336 : index
      %679 = memref.load %arg4[%c336] : memref<360xf32, #tpu.memory_space<smem>>
      %680 = vector.broadcast %679 : f32 to vector<12x128xf32>
      %681 = arith.mulf %680, %568 : vector<12x128xf32>
      %c337 = arith.constant 337 : index
      %682 = memref.load %arg4[%c337] : memref<360xf32, #tpu.memory_space<smem>>
      %683 = vector.broadcast %682 : f32 to vector<12x128xf32>
      %684 = arith.mulf %683, %569 : vector<12x128xf32>
      %685 = arith.addf %681, %684 : vector<12x128xf32>
      %c338 = arith.constant 338 : index
      %686 = memref.load %arg4[%c338] : memref<360xf32, #tpu.memory_space<smem>>
      %687 = vector.broadcast %686 : f32 to vector<12x128xf32>
      %688 = arith.mulf %687, %570 : vector<12x128xf32>
      %689 = arith.addf %685, %688 : vector<12x128xf32>
      %690 = arith.addf %557, %689 : vector<12x128xf32>
      %c1_i32_52 = arith.constant 1 : i32
      %691 = arith.addi %5, %c1_i32_52 : i32
      %c13_i32_53 = arith.constant 13 : i32
      %692 = arith.addi %c13_i32_53, %691 : i32
      %693 = arith.index_cast %692 : i32 to index
      %c0_54 = arith.constant 0 : index
      %c0_55 = arith.constant 0 : index
      %694 = vector.load %arg7[%693, %c0_54, %c0_55] : memref<208x13x128xf32, #tpu.memory_space<vmem>>, vector<1x13x128xf32>
      %695 = vector.shape_cast %694 : vector<1x13x128xf32> to vector<13x128xf32>
      %c1_i32_56 = arith.constant 1 : i32
      %696 = arith.addi %5, %c1_i32_56 : i32
      %c65_i32_57 = arith.constant 65 : i32
      %697 = arith.addi %c65_i32_57, %696 : i32
      %698 = arith.index_cast %697 : i32 to index
      %c0_58 = arith.constant 0 : index
      %c0_59 = arith.constant 0 : index
      %699 = vector.load %arg7[%698, %c0_58, %c0_59] : memref<208x13x128xf32, #tpu.memory_space<vmem>>, vector<1x13x128xf32>
      %700 = vector.shape_cast %699 : vector<1x13x128xf32> to vector<13x128xf32>
      %701 = vector.extract_strided_slice %695 {offsets = [0, 0], sizes = [12, 128], strides = [1, 1]} : vector<13x128xf32> to vector<12x128xf32>
      %702 = vector.extract_strided_slice %700 {offsets = [0, 0], sizes = [12, 128], strides = [1, 1]} : vector<13x128xf32> to vector<12x128xf32>
      %703 = vector.extract_strided_slice %695 {offsets = [1, 0], sizes = [12, 128], strides = [1, 1]} : vector<13x128xf32> to vector<12x128xf32>
      %c15 = arith.constant 15 : index
      %704 = memref.load %arg4[%c15] : memref<360xf32, #tpu.memory_space<smem>>
      %705 = vector.broadcast %704 : f32 to vector<12x128xf32>
      %706 = arith.mulf %705, %701 : vector<12x128xf32>
      %c16 = arith.constant 16 : index
      %707 = memref.load %arg4[%c16] : memref<360xf32, #tpu.memory_space<smem>>
      %708 = vector.broadcast %707 : f32 to vector<12x128xf32>
      %709 = arith.mulf %708, %702 : vector<12x128xf32>
      %710 = arith.addf %706, %709 : vector<12x128xf32>
      %c17 = arith.constant 17 : index
      %711 = memref.load %arg4[%c17] : memref<360xf32, #tpu.memory_space<smem>>
      %712 = vector.broadcast %711 : f32 to vector<12x128xf32>
      %713 = arith.mulf %712, %703 : vector<12x128xf32>
      %714 = arith.addf %710, %713 : vector<12x128xf32>
      %715 = arith.addf %582, %714 : vector<12x128xf32>
      %c51 = arith.constant 51 : index
      %716 = memref.load %arg4[%c51] : memref<360xf32, #tpu.memory_space<smem>>
      %717 = vector.broadcast %716 : f32 to vector<12x128xf32>
      %718 = arith.mulf %717, %701 : vector<12x128xf32>
      %c52 = arith.constant 52 : index
      %719 = memref.load %arg4[%c52] : memref<360xf32, #tpu.memory_space<smem>>
      %720 = vector.broadcast %719 : f32 to vector<12x128xf32>
      %721 = arith.mulf %720, %702 : vector<12x128xf32>
      %722 = arith.addf %718, %721 : vector<12x128xf32>
      %c53 = arith.constant 53 : index
      %723 = memref.load %arg4[%c53] : memref<360xf32, #tpu.memory_space<smem>>
      %724 = vector.broadcast %723 : f32 to vector<12x128xf32>
      %725 = arith.mulf %724, %703 : vector<12x128xf32>
      %726 = arith.addf %722, %725 : vector<12x128xf32>
      %727 = arith.addf %594, %726 : vector<12x128xf32>
      %c87 = arith.constant 87 : index
      %728 = memref.load %arg4[%c87] : memref<360xf32, #tpu.memory_space<smem>>
      %729 = vector.broadcast %728 : f32 to vector<12x128xf32>
      %730 = arith.mulf %729, %701 : vector<12x128xf32>
      %c88 = arith.constant 88 : index
      %731 = memref.load %arg4[%c88] : memref<360xf32, #tpu.memory_space<smem>>
      %732 = vector.broadcast %731 : f32 to vector<12x128xf32>
      %733 = arith.mulf %732, %702 : vector<12x128xf32>
      %734 = arith.addf %730, %733 : vector<12x128xf32>
      %c89 = arith.constant 89 : index
      %735 = memref.load %arg4[%c89] : memref<360xf32, #tpu.memory_space<smem>>
      %736 = vector.broadcast %735 : f32 to vector<12x128xf32>
      %737 = arith.mulf %736, %703 : vector<12x128xf32>
      %738 = arith.addf %734, %737 : vector<12x128xf32>
      %739 = arith.addf %606, %738 : vector<12x128xf32>
      %c123 = arith.constant 123 : index
      %740 = memref.load %arg4[%c123] : memref<360xf32, #tpu.memory_space<smem>>
      %741 = vector.broadcast %740 : f32 to vector<12x128xf32>
      %742 = arith.mulf %741, %701 : vector<12x128xf32>
      %c124 = arith.constant 124 : index
      %743 = memref.load %arg4[%c124] : memref<360xf32, #tpu.memory_space<smem>>
      %744 = vector.broadcast %743 : f32 to vector<12x128xf32>
      %745 = arith.mulf %744, %702 : vector<12x128xf32>
      %746 = arith.addf %742, %745 : vector<12x128xf32>
      %c125 = arith.constant 125 : index
      %747 = memref.load %arg4[%c125] : memref<360xf32, #tpu.memory_space<smem>>
      %748 = vector.broadcast %747 : f32 to vector<12x128xf32>
      %749 = arith.mulf %748, %703 : vector<12x128xf32>
      %750 = arith.addf %746, %749 : vector<12x128xf32>
      %751 = arith.addf %618, %750 : vector<12x128xf32>
      %c159 = arith.constant 159 : index
      %752 = memref.load %arg4[%c159] : memref<360xf32, #tpu.memory_space<smem>>
      %753 = vector.broadcast %752 : f32 to vector<12x128xf32>
      %754 = arith.mulf %753, %701 : vector<12x128xf32>
      %c160 = arith.constant 160 : index
      %755 = memref.load %arg4[%c160] : memref<360xf32, #tpu.memory_space<smem>>
      %756 = vector.broadcast %755 : f32 to vector<12x128xf32>
      %757 = arith.mulf %756, %702 : vector<12x128xf32>
      %758 = arith.addf %754, %757 : vector<12x128xf32>
      %c161 = arith.constant 161 : index
      %759 = memref.load %arg4[%c161] : memref<360xf32, #tpu.memory_space<smem>>
      %760 = vector.broadcast %759 : f32 to vector<12x128xf32>
      %761 = arith.mulf %760, %703 : vector<12x128xf32>
      %762 = arith.addf %758, %761 : vector<12x128xf32>
      %763 = arith.addf %630, %762 : vector<12x128xf32>
      %c195 = arith.constant 195 : index
      %764 = memref.load %arg4[%c195] : memref<360xf32, #tpu.memory_space<smem>>
      %765 = vector.broadcast %764 : f32 to vector<12x128xf32>
      %766 = arith.mulf %765, %701 : vector<12x128xf32>
      %c196 = arith.constant 196 : index
      %767 = memref.load %arg4[%c196] : memref<360xf32, #tpu.memory_space<smem>>
      %768 = vector.broadcast %767 : f32 to vector<12x128xf32>
      %769 = arith.mulf %768, %702 : vector<12x128xf32>
      %770 = arith.addf %766, %769 : vector<12x128xf32>
      %c197 = arith.constant 197 : index
      %771 = memref.load %arg4[%c197] : memref<360xf32, #tpu.memory_space<smem>>
      %772 = vector.broadcast %771 : f32 to vector<12x128xf32>
      %773 = arith.mulf %772, %703 : vector<12x128xf32>
      %774 = arith.addf %770, %773 : vector<12x128xf32>
      %775 = arith.addf %642, %774 : vector<12x128xf32>
      %c231 = arith.constant 231 : index
      %776 = memref.load %arg4[%c231] : memref<360xf32, #tpu.memory_space<smem>>
      %777 = vector.broadcast %776 : f32 to vector<12x128xf32>
      %778 = arith.mulf %777, %701 : vector<12x128xf32>
      %c232 = arith.constant 232 : index
      %779 = memref.load %arg4[%c232] : memref<360xf32, #tpu.memory_space<smem>>
      %780 = vector.broadcast %779 : f32 to vector<12x128xf32>
      %781 = arith.mulf %780, %702 : vector<12x128xf32>
      %782 = arith.addf %778, %781 : vector<12x128xf32>
      %c233 = arith.constant 233 : index
      %783 = memref.load %arg4[%c233] : memref<360xf32, #tpu.memory_space<smem>>
      %784 = vector.broadcast %783 : f32 to vector<12x128xf32>
      %785 = arith.mulf %784, %703 : vector<12x128xf32>
      %786 = arith.addf %782, %785 : vector<12x128xf32>
      %787 = arith.addf %654, %786 : vector<12x128xf32>
      %c267 = arith.constant 267 : index
      %788 = memref.load %arg4[%c267] : memref<360xf32, #tpu.memory_space<smem>>
      %789 = vector.broadcast %788 : f32 to vector<12x128xf32>
      %790 = arith.mulf %789, %701 : vector<12x128xf32>
      %c268 = arith.constant 268 : index
      %791 = memref.load %arg4[%c268] : memref<360xf32, #tpu.memory_space<smem>>
      %792 = vector.broadcast %791 : f32 to vector<12x128xf32>
      %793 = arith.mulf %792, %702 : vector<12x128xf32>
      %794 = arith.addf %790, %793 : vector<12x128xf32>
      %c269 = arith.constant 269 : index
      %795 = memref.load %arg4[%c269] : memref<360xf32, #tpu.memory_space<smem>>
      %796 = vector.broadcast %795 : f32 to vector<12x128xf32>
      %797 = arith.mulf %796, %703 : vector<12x128xf32>
      %798 = arith.addf %794, %797 : vector<12x128xf32>
      %799 = arith.addf %666, %798 : vector<12x128xf32>
      %c303 = arith.constant 303 : index
      %800 = memref.load %arg4[%c303] : memref<360xf32, #tpu.memory_space<smem>>
      %801 = vector.broadcast %800 : f32 to vector<12x128xf32>
      %802 = arith.mulf %801, %701 : vector<12x128xf32>
      %c304 = arith.constant 304 : index
      %803 = memref.load %arg4[%c304] : memref<360xf32, #tpu.memory_space<smem>>
      %804 = vector.broadcast %803 : f32 to vector<12x128xf32>
      %805 = arith.mulf %804, %702 : vector<12x128xf32>
      %806 = arith.addf %802, %805 : vector<12x128xf32>
      %c305 = arith.constant 305 : index
      %807 = memref.load %arg4[%c305] : memref<360xf32, #tpu.memory_space<smem>>
      %808 = vector.broadcast %807 : f32 to vector<12x128xf32>
      %809 = arith.mulf %808, %703 : vector<12x128xf32>
      %810 = arith.addf %806, %809 : vector<12x128xf32>
      %811 = arith.addf %678, %810 : vector<12x128xf32>
      %c339 = arith.constant 339 : index
      %812 = memref.load %arg4[%c339] : memref<360xf32, #tpu.memory_space<smem>>
      %813 = vector.broadcast %812 : f32 to vector<12x128xf32>
      %814 = arith.mulf %813, %701 : vector<12x128xf32>
      %c340 = arith.constant 340 : index
      %815 = memref.load %arg4[%c340] : memref<360xf32, #tpu.memory_space<smem>>
      %816 = vector.broadcast %815 : f32 to vector<12x128xf32>
      %817 = arith.mulf %816, %702 : vector<12x128xf32>
      %818 = arith.addf %814, %817 : vector<12x128xf32>
      %c341 = arith.constant 341 : index
      %819 = memref.load %arg4[%c341] : memref<360xf32, #tpu.memory_space<smem>>
      %820 = vector.broadcast %819 : f32 to vector<12x128xf32>
      %821 = arith.mulf %820, %703 : vector<12x128xf32>
      %822 = arith.addf %818, %821 : vector<12x128xf32>
      %823 = arith.addf %690, %822 : vector<12x128xf32>
      %c0_i32_60 = arith.constant 0 : i32
      %824 = arith.addi %5, %c0_i32_60 : i32
      %c26_i32 = arith.constant 26 : i32
      %825 = arith.addi %c26_i32, %824 : i32
      %826 = arith.index_cast %825 : i32 to index
      %c0_61 = arith.constant 0 : index
      %c0_62 = arith.constant 0 : index
      %827 = vector.load %arg7[%826, %c0_61, %c0_62] : memref<208x13x128xf32, #tpu.memory_space<vmem>>, vector<1x13x128xf32>
      %828 = vector.shape_cast %827 : vector<1x13x128xf32> to vector<13x128xf32>
      %c0_i32_63 = arith.constant 0 : i32
      %829 = arith.addi %5, %c0_i32_63 : i32
      %c78_i32 = arith.constant 78 : i32
      %830 = arith.addi %c78_i32, %829 : i32
      %831 = arith.index_cast %830 : i32 to index
      %c0_64 = arith.constant 0 : index
      %c0_65 = arith.constant 0 : index
      %832 = vector.load %arg7[%831, %c0_64, %c0_65] : memref<208x13x128xf32, #tpu.memory_space<vmem>>, vector<1x13x128xf32>
      %833 = vector.shape_cast %832 : vector<1x13x128xf32> to vector<13x128xf32>
      %834 = vector.extract_strided_slice %828 {offsets = [0, 0], sizes = [12, 128], strides = [1, 1]} : vector<13x128xf32> to vector<12x128xf32>
      %835 = vector.extract_strided_slice %833 {offsets = [0, 0], sizes = [12, 128], strides = [1, 1]} : vector<13x128xf32> to vector<12x128xf32>
      %836 = vector.extract_strided_slice %828 {offsets = [1, 0], sizes = [12, 128], strides = [1, 1]} : vector<13x128xf32> to vector<12x128xf32>
      %c18 = arith.constant 18 : index
      %837 = memref.load %arg4[%c18] : memref<360xf32, #tpu.memory_space<smem>>
      %838 = vector.broadcast %837 : f32 to vector<12x128xf32>
      %839 = arith.mulf %838, %834 : vector<12x128xf32>
      %c19 = arith.constant 19 : index
      %840 = memref.load %arg4[%c19] : memref<360xf32, #tpu.memory_space<smem>>
      %841 = vector.broadcast %840 : f32 to vector<12x128xf32>
      %842 = arith.mulf %841, %835 : vector<12x128xf32>
      %843 = arith.addf %839, %842 : vector<12x128xf32>
      %c20 = arith.constant 20 : index
      %844 = memref.load %arg4[%c20] : memref<360xf32, #tpu.memory_space<smem>>
      %845 = vector.broadcast %844 : f32 to vector<12x128xf32>
      %846 = arith.mulf %845, %836 : vector<12x128xf32>
      %847 = arith.addf %843, %846 : vector<12x128xf32>
      %848 = arith.addf %715, %847 : vector<12x128xf32>
      %c54 = arith.constant 54 : index
      %849 = memref.load %arg4[%c54] : memref<360xf32, #tpu.memory_space<smem>>
      %850 = vector.broadcast %849 : f32 to vector<12x128xf32>
      %851 = arith.mulf %850, %834 : vector<12x128xf32>
      %c55 = arith.constant 55 : index
      %852 = memref.load %arg4[%c55] : memref<360xf32, #tpu.memory_space<smem>>
      %853 = vector.broadcast %852 : f32 to vector<12x128xf32>
      %854 = arith.mulf %853, %835 : vector<12x128xf32>
      %855 = arith.addf %851, %854 : vector<12x128xf32>
      %c56 = arith.constant 56 : index
      %856 = memref.load %arg4[%c56] : memref<360xf32, #tpu.memory_space<smem>>
      %857 = vector.broadcast %856 : f32 to vector<12x128xf32>
      %858 = arith.mulf %857, %836 : vector<12x128xf32>
      %859 = arith.addf %855, %858 : vector<12x128xf32>
      %860 = arith.addf %727, %859 : vector<12x128xf32>
      %c90 = arith.constant 90 : index
      %861 = memref.load %arg4[%c90] : memref<360xf32, #tpu.memory_space<smem>>
      %862 = vector.broadcast %861 : f32 to vector<12x128xf32>
      %863 = arith.mulf %862, %834 : vector<12x128xf32>
      %c91 = arith.constant 91 : index
      %864 = memref.load %arg4[%c91] : memref<360xf32, #tpu.memory_space<smem>>
      %865 = vector.broadcast %864 : f32 to vector<12x128xf32>
      %866 = arith.mulf %865, %835 : vector<12x128xf32>
      %867 = arith.addf %863, %866 : vector<12x128xf32>
      %c92 = arith.constant 92 : index
      %868 = memref.load %arg4[%c92] : memref<360xf32, #tpu.memory_space<smem>>
      %869 = vector.broadcast %868 : f32 to vector<12x128xf32>
      %870 = arith.mulf %869, %836 : vector<12x128xf32>
      %871 = arith.addf %867, %870 : vector<12x128xf32>
      %872 = arith.addf %739, %871 : vector<12x128xf32>
      %c126 = arith.constant 126 : index
      %873 = memref.load %arg4[%c126] : memref<360xf32, #tpu.memory_space<smem>>
      %874 = vector.broadcast %873 : f32 to vector<12x128xf32>
      %875 = arith.mulf %874, %834 : vector<12x128xf32>
      %c127 = arith.constant 127 : index
      %876 = memref.load %arg4[%c127] : memref<360xf32, #tpu.memory_space<smem>>
      %877 = vector.broadcast %876 : f32 to vector<12x128xf32>
      %878 = arith.mulf %877, %835 : vector<12x128xf32>
      %879 = arith.addf %875, %878 : vector<12x128xf32>
      %c128 = arith.constant 128 : index
      %880 = memref.load %arg4[%c128] : memref<360xf32, #tpu.memory_space<smem>>
      %881 = vector.broadcast %880 : f32 to vector<12x128xf32>
      %882 = arith.mulf %881, %836 : vector<12x128xf32>
      %883 = arith.addf %879, %882 : vector<12x128xf32>
      %884 = arith.addf %751, %883 : vector<12x128xf32>
      %c162 = arith.constant 162 : index
      %885 = memref.load %arg4[%c162] : memref<360xf32, #tpu.memory_space<smem>>
      %886 = vector.broadcast %885 : f32 to vector<12x128xf32>
      %887 = arith.mulf %886, %834 : vector<12x128xf32>
      %c163 = arith.constant 163 : index
      %888 = memref.load %arg4[%c163] : memref<360xf32, #tpu.memory_space<smem>>
      %889 = vector.broadcast %888 : f32 to vector<12x128xf32>
      %890 = arith.mulf %889, %835 : vector<12x128xf32>
      %891 = arith.addf %887, %890 : vector<12x128xf32>
      %c164 = arith.constant 164 : index
      %892 = memref.load %arg4[%c164] : memref<360xf32, #tpu.memory_space<smem>>
      %893 = vector.broadcast %892 : f32 to vector<12x128xf32>
      %894 = arith.mulf %893, %836 : vector<12x128xf32>
      %895 = arith.addf %891, %894 : vector<12x128xf32>
      %896 = arith.addf %763, %895 : vector<12x128xf32>
      %c198 = arith.constant 198 : index
      %897 = memref.load %arg4[%c198] : memref<360xf32, #tpu.memory_space<smem>>
      %898 = vector.broadcast %897 : f32 to vector<12x128xf32>
      %899 = arith.mulf %898, %834 : vector<12x128xf32>
      %c199 = arith.constant 199 : index
      %900 = memref.load %arg4[%c199] : memref<360xf32, #tpu.memory_space<smem>>
      %901 = vector.broadcast %900 : f32 to vector<12x128xf32>
      %902 = arith.mulf %901, %835 : vector<12x128xf32>
      %903 = arith.addf %899, %902 : vector<12x128xf32>
      %c200 = arith.constant 200 : index
      %904 = memref.load %arg4[%c200] : memref<360xf32, #tpu.memory_space<smem>>
      %905 = vector.broadcast %904 : f32 to vector<12x128xf32>
      %906 = arith.mulf %905, %836 : vector<12x128xf32>
      %907 = arith.addf %903, %906 : vector<12x128xf32>
      %908 = arith.addf %775, %907 : vector<12x128xf32>
      %c234 = arith.constant 234 : index
      %909 = memref.load %arg4[%c234] : memref<360xf32, #tpu.memory_space<smem>>
      %910 = vector.broadcast %909 : f32 to vector<12x128xf32>
      %911 = arith.mulf %910, %834 : vector<12x128xf32>
      %c235 = arith.constant 235 : index
      %912 = memref.load %arg4[%c235] : memref<360xf32, #tpu.memory_space<smem>>
      %913 = vector.broadcast %912 : f32 to vector<12x128xf32>
      %914 = arith.mulf %913, %835 : vector<12x128xf32>
      %915 = arith.addf %911, %914 : vector<12x128xf32>
      %c236 = arith.constant 236 : index
      %916 = memref.load %arg4[%c236] : memref<360xf32, #tpu.memory_space<smem>>
      %917 = vector.broadcast %916 : f32 to vector<12x128xf32>
      %918 = arith.mulf %917, %836 : vector<12x128xf32>
      %919 = arith.addf %915, %918 : vector<12x128xf32>
      %920 = arith.addf %787, %919 : vector<12x128xf32>
      %c270 = arith.constant 270 : index
      %921 = memref.load %arg4[%c270] : memref<360xf32, #tpu.memory_space<smem>>
      %922 = vector.broadcast %921 : f32 to vector<12x128xf32>
      %923 = arith.mulf %922, %834 : vector<12x128xf32>
      %c271 = arith.constant 271 : index
      %924 = memref.load %arg4[%c271] : memref<360xf32, #tpu.memory_space<smem>>
      %925 = vector.broadcast %924 : f32 to vector<12x128xf32>
      %926 = arith.mulf %925, %835 : vector<12x128xf32>
      %927 = arith.addf %923, %926 : vector<12x128xf32>
      %c272 = arith.constant 272 : index
      %928 = memref.load %arg4[%c272] : memref<360xf32, #tpu.memory_space<smem>>
      %929 = vector.broadcast %928 : f32 to vector<12x128xf32>
      %930 = arith.mulf %929, %836 : vector<12x128xf32>
      %931 = arith.addf %927, %930 : vector<12x128xf32>
      %932 = arith.addf %799, %931 : vector<12x128xf32>
      %c306 = arith.constant 306 : index
      %933 = memref.load %arg4[%c306] : memref<360xf32, #tpu.memory_space<smem>>
      %934 = vector.broadcast %933 : f32 to vector<12x128xf32>
      %935 = arith.mulf %934, %834 : vector<12x128xf32>
      %c307 = arith.constant 307 : index
      %936 = memref.load %arg4[%c307] : memref<360xf32, #tpu.memory_space<smem>>
      %937 = vector.broadcast %936 : f32 to vector<12x128xf32>
      %938 = arith.mulf %937, %835 : vector<12x128xf32>
      %939 = arith.addf %935, %938 : vector<12x128xf32>
      %c308 = arith.constant 308 : index
      %940 = memref.load %arg4[%c308] : memref<360xf32, #tpu.memory_space<smem>>
      %941 = vector.broadcast %940 : f32 to vector<12x128xf32>
      %942 = arith.mulf %941, %836 : vector<12x128xf32>
      %943 = arith.addf %939, %942 : vector<12x128xf32>
      %944 = arith.addf %811, %943 : vector<12x128xf32>
      %c342 = arith.constant 342 : index
      %945 = memref.load %arg4[%c342] : memref<360xf32, #tpu.memory_space<smem>>
      %946 = vector.broadcast %945 : f32 to vector<12x128xf32>
      %947 = arith.mulf %946, %834 : vector<12x128xf32>
      %c343 = arith.constant 343 : index
      %948 = memref.load %arg4[%c343] : memref<360xf32, #tpu.memory_space<smem>>
      %949 = vector.broadcast %948 : f32 to vector<12x128xf32>
      %950 = arith.mulf %949, %835 : vector<12x128xf32>
      %951 = arith.addf %947, %950 : vector<12x128xf32>
      %c344 = arith.constant 344 : index
      %952 = memref.load %arg4[%c344] : memref<360xf32, #tpu.memory_space<smem>>
      %953 = vector.broadcast %952 : f32 to vector<12x128xf32>
      %954 = arith.mulf %953, %836 : vector<12x128xf32>
      %955 = arith.addf %951, %954 : vector<12x128xf32>
      %956 = arith.addf %823, %955 : vector<12x128xf32>
      %c0_i32_66 = arith.constant 0 : i32
      %957 = arith.addi %5, %c0_i32_66 : i32
      %c130_i32 = arith.constant 130 : i32
      %958 = arith.addi %c130_i32, %957 : i32
      %959 = arith.index_cast %958 : i32 to index
      %c0_67 = arith.constant 0 : index
      %c0_68 = arith.constant 0 : index
      %960 = vector.load %arg7[%959, %c0_67, %c0_68] : memref<208x13x128xf32, #tpu.memory_space<vmem>>, vector<1x13x128xf32>
      %961 = vector.shape_cast %960 : vector<1x13x128xf32> to vector<13x128xf32>
      %c0_i32_69 = arith.constant 0 : i32
      %962 = arith.addi %5, %c0_i32_69 : i32
      %c182_i32 = arith.constant 182 : i32
      %963 = arith.addi %c182_i32, %962 : i32
      %964 = arith.index_cast %963 : i32 to index
      %c0_70 = arith.constant 0 : index
      %c0_71 = arith.constant 0 : index
      %965 = vector.load %arg7[%964, %c0_70, %c0_71] : memref<208x13x128xf32, #tpu.memory_space<vmem>>, vector<1x13x128xf32>
      %966 = vector.shape_cast %965 : vector<1x13x128xf32> to vector<13x128xf32>
      %967 = vector.extract_strided_slice %961 {offsets = [0, 0], sizes = [12, 128], strides = [1, 1]} : vector<13x128xf32> to vector<12x128xf32>
      %968 = vector.extract_strided_slice %966 {offsets = [0, 0], sizes = [12, 128], strides = [1, 1]} : vector<13x128xf32> to vector<12x128xf32>
      %969 = vector.extract_strided_slice %961 {offsets = [1, 0], sizes = [12, 128], strides = [1, 1]} : vector<13x128xf32> to vector<12x128xf32>
      %c21 = arith.constant 21 : index
      %970 = memref.load %arg4[%c21] : memref<360xf32, #tpu.memory_space<smem>>
      %971 = vector.broadcast %970 : f32 to vector<12x128xf32>
      %972 = arith.mulf %971, %967 : vector<12x128xf32>
      %c22 = arith.constant 22 : index
      %973 = memref.load %arg4[%c22] : memref<360xf32, #tpu.memory_space<smem>>
      %974 = vector.broadcast %973 : f32 to vector<12x128xf32>
      %975 = arith.mulf %974, %968 : vector<12x128xf32>
      %976 = arith.addf %972, %975 : vector<12x128xf32>
      %c23 = arith.constant 23 : index
      %977 = memref.load %arg4[%c23] : memref<360xf32, #tpu.memory_space<smem>>
      %978 = vector.broadcast %977 : f32 to vector<12x128xf32>
      %979 = arith.mulf %978, %969 : vector<12x128xf32>
      %980 = arith.addf %976, %979 : vector<12x128xf32>
      %981 = arith.addf %848, %980 : vector<12x128xf32>
      %c57 = arith.constant 57 : index
      %982 = memref.load %arg4[%c57] : memref<360xf32, #tpu.memory_space<smem>>
      %983 = vector.broadcast %982 : f32 to vector<12x128xf32>
      %984 = arith.mulf %983, %967 : vector<12x128xf32>
      %c58 = arith.constant 58 : index
      %985 = memref.load %arg4[%c58] : memref<360xf32, #tpu.memory_space<smem>>
      %986 = vector.broadcast %985 : f32 to vector<12x128xf32>
      %987 = arith.mulf %986, %968 : vector<12x128xf32>
      %988 = arith.addf %984, %987 : vector<12x128xf32>
      %c59 = arith.constant 59 : index
      %989 = memref.load %arg4[%c59] : memref<360xf32, #tpu.memory_space<smem>>
      %990 = vector.broadcast %989 : f32 to vector<12x128xf32>
      %991 = arith.mulf %990, %969 : vector<12x128xf32>
      %992 = arith.addf %988, %991 : vector<12x128xf32>
      %993 = arith.addf %860, %992 : vector<12x128xf32>
      %c93 = arith.constant 93 : index
      %994 = memref.load %arg4[%c93] : memref<360xf32, #tpu.memory_space<smem>>
      %995 = vector.broadcast %994 : f32 to vector<12x128xf32>
      %996 = arith.mulf %995, %967 : vector<12x128xf32>
      %c94 = arith.constant 94 : index
      %997 = memref.load %arg4[%c94] : memref<360xf32, #tpu.memory_space<smem>>
      %998 = vector.broadcast %997 : f32 to vector<12x128xf32>
      %999 = arith.mulf %998, %968 : vector<12x128xf32>
      %1000 = arith.addf %996, %999 : vector<12x128xf32>
      %c95 = arith.constant 95 : index
      %1001 = memref.load %arg4[%c95] : memref<360xf32, #tpu.memory_space<smem>>
      %1002 = vector.broadcast %1001 : f32 to vector<12x128xf32>
      %1003 = arith.mulf %1002, %969 : vector<12x128xf32>
      %1004 = arith.addf %1000, %1003 : vector<12x128xf32>
      %1005 = arith.addf %872, %1004 : vector<12x128xf32>
      %c129 = arith.constant 129 : index
      %1006 = memref.load %arg4[%c129] : memref<360xf32, #tpu.memory_space<smem>>
      %1007 = vector.broadcast %1006 : f32 to vector<12x128xf32>
      %1008 = arith.mulf %1007, %967 : vector<12x128xf32>
      %c130 = arith.constant 130 : index
      %1009 = memref.load %arg4[%c130] : memref<360xf32, #tpu.memory_space<smem>>
      %1010 = vector.broadcast %1009 : f32 to vector<12x128xf32>
      %1011 = arith.mulf %1010, %968 : vector<12x128xf32>
      %1012 = arith.addf %1008, %1011 : vector<12x128xf32>
      %c131 = arith.constant 131 : index
      %1013 = memref.load %arg4[%c131] : memref<360xf32, #tpu.memory_space<smem>>
      %1014 = vector.broadcast %1013 : f32 to vector<12x128xf32>
      %1015 = arith.mulf %1014, %969 : vector<12x128xf32>
      %1016 = arith.addf %1012, %1015 : vector<12x128xf32>
      %1017 = arith.addf %884, %1016 : vector<12x128xf32>
      %c165 = arith.constant 165 : index
      %1018 = memref.load %arg4[%c165] : memref<360xf32, #tpu.memory_space<smem>>
      %1019 = vector.broadcast %1018 : f32 to vector<12x128xf32>
      %1020 = arith.mulf %1019, %967 : vector<12x128xf32>
      %c166 = arith.constant 166 : index
      %1021 = memref.load %arg4[%c166] : memref<360xf32, #tpu.memory_space<smem>>
      %1022 = vector.broadcast %1021 : f32 to vector<12x128xf32>
      %1023 = arith.mulf %1022, %968 : vector<12x128xf32>
      %1024 = arith.addf %1020, %1023 : vector<12x128xf32>
      %c167 = arith.constant 167 : index
      %1025 = memref.load %arg4[%c167] : memref<360xf32, #tpu.memory_space<smem>>
      %1026 = vector.broadcast %1025 : f32 to vector<12x128xf32>
      %1027 = arith.mulf %1026, %969 : vector<12x128xf32>
      %1028 = arith.addf %1024, %1027 : vector<12x128xf32>
      %1029 = arith.addf %896, %1028 : vector<12x128xf32>
      %c201 = arith.constant 201 : index
      %1030 = memref.load %arg4[%c201] : memref<360xf32, #tpu.memory_space<smem>>
      %1031 = vector.broadcast %1030 : f32 to vector<12x128xf32>
      %1032 = arith.mulf %1031, %967 : vector<12x128xf32>
      %c202 = arith.constant 202 : index
      %1033 = memref.load %arg4[%c202] : memref<360xf32, #tpu.memory_space<smem>>
      %1034 = vector.broadcast %1033 : f32 to vector<12x128xf32>
      %1035 = arith.mulf %1034, %968 : vector<12x128xf32>
      %1036 = arith.addf %1032, %1035 : vector<12x128xf32>
      %c203 = arith.constant 203 : index
      %1037 = memref.load %arg4[%c203] : memref<360xf32, #tpu.memory_space<smem>>
      %1038 = vector.broadcast %1037 : f32 to vector<12x128xf32>
      %1039 = arith.mulf %1038, %969 : vector<12x128xf32>
      %1040 = arith.addf %1036, %1039 : vector<12x128xf32>
      %1041 = arith.addf %908, %1040 : vector<12x128xf32>
      %c237 = arith.constant 237 : index
      %1042 = memref.load %arg4[%c237] : memref<360xf32, #tpu.memory_space<smem>>
      %1043 = vector.broadcast %1042 : f32 to vector<12x128xf32>
      %1044 = arith.mulf %1043, %967 : vector<12x128xf32>
      %c238 = arith.constant 238 : index
      %1045 = memref.load %arg4[%c238] : memref<360xf32, #tpu.memory_space<smem>>
      %1046 = vector.broadcast %1045 : f32 to vector<12x128xf32>
      %1047 = arith.mulf %1046, %968 : vector<12x128xf32>
      %1048 = arith.addf %1044, %1047 : vector<12x128xf32>
      %c239 = arith.constant 239 : index
      %1049 = memref.load %arg4[%c239] : memref<360xf32, #tpu.memory_space<smem>>
      %1050 = vector.broadcast %1049 : f32 to vector<12x128xf32>
      %1051 = arith.mulf %1050, %969 : vector<12x128xf32>
      %1052 = arith.addf %1048, %1051 : vector<12x128xf32>
      %1053 = arith.addf %920, %1052 : vector<12x128xf32>
      %c273 = arith.constant 273 : index
      %1054 = memref.load %arg4[%c273] : memref<360xf32, #tpu.memory_space<smem>>
      %1055 = vector.broadcast %1054 : f32 to vector<12x128xf32>
      %1056 = arith.mulf %1055, %967 : vector<12x128xf32>
      %c274 = arith.constant 274 : index
      %1057 = memref.load %arg4[%c274] : memref<360xf32, #tpu.memory_space<smem>>
      %1058 = vector.broadcast %1057 : f32 to vector<12x128xf32>
      %1059 = arith.mulf %1058, %968 : vector<12x128xf32>
      %1060 = arith.addf %1056, %1059 : vector<12x128xf32>
      %c275 = arith.constant 275 : index
      %1061 = memref.load %arg4[%c275] : memref<360xf32, #tpu.memory_space<smem>>
      %1062 = vector.broadcast %1061 : f32 to vector<12x128xf32>
      %1063 = arith.mulf %1062, %969 : vector<12x128xf32>
      %1064 = arith.addf %1060, %1063 : vector<12x128xf32>
      %1065 = arith.addf %932, %1064 : vector<12x128xf32>
      %c309 = arith.constant 309 : index
      %1066 = memref.load %arg4[%c309] : memref<360xf32, #tpu.memory_space<smem>>
      %1067 = vector.broadcast %1066 : f32 to vector<12x128xf32>
      %1068 = arith.mulf %1067, %967 : vector<12x128xf32>
      %c310 = arith.constant 310 : index
      %1069 = memref.load %arg4[%c310] : memref<360xf32, #tpu.memory_space<smem>>
      %1070 = vector.broadcast %1069 : f32 to vector<12x128xf32>
      %1071 = arith.mulf %1070, %968 : vector<12x128xf32>
      %1072 = arith.addf %1068, %1071 : vector<12x128xf32>
      %c311 = arith.constant 311 : index
      %1073 = memref.load %arg4[%c311] : memref<360xf32, #tpu.memory_space<smem>>
      %1074 = vector.broadcast %1073 : f32 to vector<12x128xf32>
      %1075 = arith.mulf %1074, %969 : vector<12x128xf32>
      %1076 = arith.addf %1072, %1075 : vector<12x128xf32>
      %1077 = arith.addf %944, %1076 : vector<12x128xf32>
      %c345 = arith.constant 345 : index
      %1078 = memref.load %arg4[%c345] : memref<360xf32, #tpu.memory_space<smem>>
      %1079 = vector.broadcast %1078 : f32 to vector<12x128xf32>
      %1080 = arith.mulf %1079, %967 : vector<12x128xf32>
      %c346 = arith.constant 346 : index
      %1081 = memref.load %arg4[%c346] : memref<360xf32, #tpu.memory_space<smem>>
      %1082 = vector.broadcast %1081 : f32 to vector<12x128xf32>
      %1083 = arith.mulf %1082, %968 : vector<12x128xf32>
      %1084 = arith.addf %1080, %1083 : vector<12x128xf32>
      %c347 = arith.constant 347 : index
      %1085 = memref.load %arg4[%c347] : memref<360xf32, #tpu.memory_space<smem>>
      %1086 = vector.broadcast %1085 : f32 to vector<12x128xf32>
      %1087 = arith.mulf %1086, %969 : vector<12x128xf32>
      %1088 = arith.addf %1084, %1087 : vector<12x128xf32>
      %1089 = arith.addf %956, %1088 : vector<12x128xf32>
      %c1_i32_72 = arith.constant 1 : i32
      %1090 = arith.addi %5, %c1_i32_72 : i32
      %c26_i32_73 = arith.constant 26 : i32
      %1091 = arith.addi %c26_i32_73, %1090 : i32
      %1092 = arith.index_cast %1091 : i32 to index
      %c0_74 = arith.constant 0 : index
      %c0_75 = arith.constant 0 : index
      %1093 = vector.load %arg7[%1092, %c0_74, %c0_75] : memref<208x13x128xf32, #tpu.memory_space<vmem>>, vector<1x13x128xf32>
      %1094 = vector.shape_cast %1093 : vector<1x13x128xf32> to vector<13x128xf32>
      %c1_i32_76 = arith.constant 1 : i32
      %1095 = arith.addi %5, %c1_i32_76 : i32
      %c78_i32_77 = arith.constant 78 : i32
      %1096 = arith.addi %c78_i32_77, %1095 : i32
      %1097 = arith.index_cast %1096 : i32 to index
      %c0_78 = arith.constant 0 : index
      %c0_79 = arith.constant 0 : index
      %1098 = vector.load %arg7[%1097, %c0_78, %c0_79] : memref<208x13x128xf32, #tpu.memory_space<vmem>>, vector<1x13x128xf32>
      %1099 = vector.shape_cast %1098 : vector<1x13x128xf32> to vector<13x128xf32>
      %1100 = vector.extract_strided_slice %1094 {offsets = [0, 0], sizes = [12, 128], strides = [1, 1]} : vector<13x128xf32> to vector<12x128xf32>
      %1101 = vector.extract_strided_slice %1099 {offsets = [0, 0], sizes = [12, 128], strides = [1, 1]} : vector<13x128xf32> to vector<12x128xf32>
      %1102 = vector.extract_strided_slice %1094 {offsets = [1, 0], sizes = [12, 128], strides = [1, 1]} : vector<13x128xf32> to vector<12x128xf32>
      %c24 = arith.constant 24 : index
      %1103 = memref.load %arg4[%c24] : memref<360xf32, #tpu.memory_space<smem>>
      %1104 = vector.broadcast %1103 : f32 to vector<12x128xf32>
      %1105 = arith.mulf %1104, %1100 : vector<12x128xf32>
      %c25 = arith.constant 25 : index
      %1106 = memref.load %arg4[%c25] : memref<360xf32, #tpu.memory_space<smem>>
      %1107 = vector.broadcast %1106 : f32 to vector<12x128xf32>
      %1108 = arith.mulf %1107, %1101 : vector<12x128xf32>
      %1109 = arith.addf %1105, %1108 : vector<12x128xf32>
      %c26 = arith.constant 26 : index
      %1110 = memref.load %arg4[%c26] : memref<360xf32, #tpu.memory_space<smem>>
      %1111 = vector.broadcast %1110 : f32 to vector<12x128xf32>
      %1112 = arith.mulf %1111, %1102 : vector<12x128xf32>
      %1113 = arith.addf %1109, %1112 : vector<12x128xf32>
      %1114 = arith.addf %981, %1113 : vector<12x128xf32>
      %c60 = arith.constant 60 : index
      %1115 = memref.load %arg4[%c60] : memref<360xf32, #tpu.memory_space<smem>>
      %1116 = vector.broadcast %1115 : f32 to vector<12x128xf32>
      %1117 = arith.mulf %1116, %1100 : vector<12x128xf32>
      %c61 = arith.constant 61 : index
      %1118 = memref.load %arg4[%c61] : memref<360xf32, #tpu.memory_space<smem>>
      %1119 = vector.broadcast %1118 : f32 to vector<12x128xf32>
      %1120 = arith.mulf %1119, %1101 : vector<12x128xf32>
      %1121 = arith.addf %1117, %1120 : vector<12x128xf32>
      %c62 = arith.constant 62 : index
      %1122 = memref.load %arg4[%c62] : memref<360xf32, #tpu.memory_space<smem>>
      %1123 = vector.broadcast %1122 : f32 to vector<12x128xf32>
      %1124 = arith.mulf %1123, %1102 : vector<12x128xf32>
      %1125 = arith.addf %1121, %1124 : vector<12x128xf32>
      %1126 = arith.addf %993, %1125 : vector<12x128xf32>
      %c96 = arith.constant 96 : index
      %1127 = memref.load %arg4[%c96] : memref<360xf32, #tpu.memory_space<smem>>
      %1128 = vector.broadcast %1127 : f32 to vector<12x128xf32>
      %1129 = arith.mulf %1128, %1100 : vector<12x128xf32>
      %c97 = arith.constant 97 : index
      %1130 = memref.load %arg4[%c97] : memref<360xf32, #tpu.memory_space<smem>>
      %1131 = vector.broadcast %1130 : f32 to vector<12x128xf32>
      %1132 = arith.mulf %1131, %1101 : vector<12x128xf32>
      %1133 = arith.addf %1129, %1132 : vector<12x128xf32>
      %c98 = arith.constant 98 : index
      %1134 = memref.load %arg4[%c98] : memref<360xf32, #tpu.memory_space<smem>>
      %1135 = vector.broadcast %1134 : f32 to vector<12x128xf32>
      %1136 = arith.mulf %1135, %1102 : vector<12x128xf32>
      %1137 = arith.addf %1133, %1136 : vector<12x128xf32>
      %1138 = arith.addf %1005, %1137 : vector<12x128xf32>
      %c132 = arith.constant 132 : index
      %1139 = memref.load %arg4[%c132] : memref<360xf32, #tpu.memory_space<smem>>
      %1140 = vector.broadcast %1139 : f32 to vector<12x128xf32>
      %1141 = arith.mulf %1140, %1100 : vector<12x128xf32>
      %c133 = arith.constant 133 : index
      %1142 = memref.load %arg4[%c133] : memref<360xf32, #tpu.memory_space<smem>>
      %1143 = vector.broadcast %1142 : f32 to vector<12x128xf32>
      %1144 = arith.mulf %1143, %1101 : vector<12x128xf32>
      %1145 = arith.addf %1141, %1144 : vector<12x128xf32>
      %c134 = arith.constant 134 : index
      %1146 = memref.load %arg4[%c134] : memref<360xf32, #tpu.memory_space<smem>>
      %1147 = vector.broadcast %1146 : f32 to vector<12x128xf32>
      %1148 = arith.mulf %1147, %1102 : vector<12x128xf32>
      %1149 = arith.addf %1145, %1148 : vector<12x128xf32>
      %1150 = arith.addf %1017, %1149 : vector<12x128xf32>
      %c168 = arith.constant 168 : index
      %1151 = memref.load %arg4[%c168] : memref<360xf32, #tpu.memory_space<smem>>
      %1152 = vector.broadcast %1151 : f32 to vector<12x128xf32>
      %1153 = arith.mulf %1152, %1100 : vector<12x128xf32>
      %c169 = arith.constant 169 : index
      %1154 = memref.load %arg4[%c169] : memref<360xf32, #tpu.memory_space<smem>>
      %1155 = vector.broadcast %1154 : f32 to vector<12x128xf32>
      %1156 = arith.mulf %1155, %1101 : vector<12x128xf32>
      %1157 = arith.addf %1153, %1156 : vector<12x128xf32>
      %c170 = arith.constant 170 : index
      %1158 = memref.load %arg4[%c170] : memref<360xf32, #tpu.memory_space<smem>>
      %1159 = vector.broadcast %1158 : f32 to vector<12x128xf32>
      %1160 = arith.mulf %1159, %1102 : vector<12x128xf32>
      %1161 = arith.addf %1157, %1160 : vector<12x128xf32>
      %1162 = arith.addf %1029, %1161 : vector<12x128xf32>
      %c204 = arith.constant 204 : index
      %1163 = memref.load %arg4[%c204] : memref<360xf32, #tpu.memory_space<smem>>
      %1164 = vector.broadcast %1163 : f32 to vector<12x128xf32>
      %1165 = arith.mulf %1164, %1100 : vector<12x128xf32>
      %c205 = arith.constant 205 : index
      %1166 = memref.load %arg4[%c205] : memref<360xf32, #tpu.memory_space<smem>>
      %1167 = vector.broadcast %1166 : f32 to vector<12x128xf32>
      %1168 = arith.mulf %1167, %1101 : vector<12x128xf32>
      %1169 = arith.addf %1165, %1168 : vector<12x128xf32>
      %c206 = arith.constant 206 : index
      %1170 = memref.load %arg4[%c206] : memref<360xf32, #tpu.memory_space<smem>>
      %1171 = vector.broadcast %1170 : f32 to vector<12x128xf32>
      %1172 = arith.mulf %1171, %1102 : vector<12x128xf32>
      %1173 = arith.addf %1169, %1172 : vector<12x128xf32>
      %1174 = arith.addf %1041, %1173 : vector<12x128xf32>
      %c240 = arith.constant 240 : index
      %1175 = memref.load %arg4[%c240] : memref<360xf32, #tpu.memory_space<smem>>
      %1176 = vector.broadcast %1175 : f32 to vector<12x128xf32>
      %1177 = arith.mulf %1176, %1100 : vector<12x128xf32>
      %c241 = arith.constant 241 : index
      %1178 = memref.load %arg4[%c241] : memref<360xf32, #tpu.memory_space<smem>>
      %1179 = vector.broadcast %1178 : f32 to vector<12x128xf32>
      %1180 = arith.mulf %1179, %1101 : vector<12x128xf32>
      %1181 = arith.addf %1177, %1180 : vector<12x128xf32>
      %c242 = arith.constant 242 : index
      %1182 = memref.load %arg4[%c242] : memref<360xf32, #tpu.memory_space<smem>>
      %1183 = vector.broadcast %1182 : f32 to vector<12x128xf32>
      %1184 = arith.mulf %1183, %1102 : vector<12x128xf32>
      %1185 = arith.addf %1181, %1184 : vector<12x128xf32>
      %1186 = arith.addf %1053, %1185 : vector<12x128xf32>
      %c276 = arith.constant 276 : index
      %1187 = memref.load %arg4[%c276] : memref<360xf32, #tpu.memory_space<smem>>
      %1188 = vector.broadcast %1187 : f32 to vector<12x128xf32>
      %1189 = arith.mulf %1188, %1100 : vector<12x128xf32>
      %c277 = arith.constant 277 : index
      %1190 = memref.load %arg4[%c277] : memref<360xf32, #tpu.memory_space<smem>>
      %1191 = vector.broadcast %1190 : f32 to vector<12x128xf32>
      %1192 = arith.mulf %1191, %1101 : vector<12x128xf32>
      %1193 = arith.addf %1189, %1192 : vector<12x128xf32>
      %c278 = arith.constant 278 : index
      %1194 = memref.load %arg4[%c278] : memref<360xf32, #tpu.memory_space<smem>>
      %1195 = vector.broadcast %1194 : f32 to vector<12x128xf32>
      %1196 = arith.mulf %1195, %1102 : vector<12x128xf32>
      %1197 = arith.addf %1193, %1196 : vector<12x128xf32>
      %1198 = arith.addf %1065, %1197 : vector<12x128xf32>
      %c312 = arith.constant 312 : index
      %1199 = memref.load %arg4[%c312] : memref<360xf32, #tpu.memory_space<smem>>
      %1200 = vector.broadcast %1199 : f32 to vector<12x128xf32>
      %1201 = arith.mulf %1200, %1100 : vector<12x128xf32>
      %c313 = arith.constant 313 : index
      %1202 = memref.load %arg4[%c313] : memref<360xf32, #tpu.memory_space<smem>>
      %1203 = vector.broadcast %1202 : f32 to vector<12x128xf32>
      %1204 = arith.mulf %1203, %1101 : vector<12x128xf32>
      %1205 = arith.addf %1201, %1204 : vector<12x128xf32>
      %c314 = arith.constant 314 : index
      %1206 = memref.load %arg4[%c314] : memref<360xf32, #tpu.memory_space<smem>>
      %1207 = vector.broadcast %1206 : f32 to vector<12x128xf32>
      %1208 = arith.mulf %1207, %1102 : vector<12x128xf32>
      %1209 = arith.addf %1205, %1208 : vector<12x128xf32>
      %1210 = arith.addf %1077, %1209 : vector<12x128xf32>
      %c348 = arith.constant 348 : index
      %1211 = memref.load %arg4[%c348] : memref<360xf32, #tpu.memory_space<smem>>
      %1212 = vector.broadcast %1211 : f32 to vector<12x128xf32>
      %1213 = arith.mulf %1212, %1100 : vector<12x128xf32>
      %c349 = arith.constant 349 : index
      %1214 = memref.load %arg4[%c349] : memref<360xf32, #tpu.memory_space<smem>>
      %1215 = vector.broadcast %1214 : f32 to vector<12x128xf32>
      %1216 = arith.mulf %1215, %1101 : vector<12x128xf32>
      %1217 = arith.addf %1213, %1216 : vector<12x128xf32>
      %c350 = arith.constant 350 : index
      %1218 = memref.load %arg4[%c350] : memref<360xf32, #tpu.memory_space<smem>>
      %1219 = vector.broadcast %1218 : f32 to vector<12x128xf32>
      %1220 = arith.mulf %1219, %1102 : vector<12x128xf32>
      %1221 = arith.addf %1217, %1220 : vector<12x128xf32>
      %1222 = arith.addf %1089, %1221 : vector<12x128xf32>
      %c0_i32_80 = arith.constant 0 : i32
      %1223 = arith.addi %5, %c0_i32_80 : i32
      %c39_i32 = arith.constant 39 : i32
      %1224 = arith.addi %c39_i32, %1223 : i32
      %1225 = arith.index_cast %1224 : i32 to index
      %c0_81 = arith.constant 0 : index
      %c0_82 = arith.constant 0 : index
      %1226 = vector.load %arg7[%1225, %c0_81, %c0_82] : memref<208x13x128xf32, #tpu.memory_space<vmem>>, vector<1x13x128xf32>
      %1227 = vector.shape_cast %1226 : vector<1x13x128xf32> to vector<13x128xf32>
      %c0_i32_83 = arith.constant 0 : i32
      %1228 = arith.addi %5, %c0_i32_83 : i32
      %c91_i32 = arith.constant 91 : i32
      %1229 = arith.addi %c91_i32, %1228 : i32
      %1230 = arith.index_cast %1229 : i32 to index
      %c0_84 = arith.constant 0 : index
      %c0_85 = arith.constant 0 : index
      %1231 = vector.load %arg7[%1230, %c0_84, %c0_85] : memref<208x13x128xf32, #tpu.memory_space<vmem>>, vector<1x13x128xf32>
      %1232 = vector.shape_cast %1231 : vector<1x13x128xf32> to vector<13x128xf32>
      %1233 = vector.extract_strided_slice %1227 {offsets = [0, 0], sizes = [12, 128], strides = [1, 1]} : vector<13x128xf32> to vector<12x128xf32>
      %1234 = vector.extract_strided_slice %1232 {offsets = [0, 0], sizes = [12, 128], strides = [1, 1]} : vector<13x128xf32> to vector<12x128xf32>
      %1235 = vector.extract_strided_slice %1227 {offsets = [1, 0], sizes = [12, 128], strides = [1, 1]} : vector<13x128xf32> to vector<12x128xf32>
      %c27 = arith.constant 27 : index
      %1236 = memref.load %arg4[%c27] : memref<360xf32, #tpu.memory_space<smem>>
      %1237 = vector.broadcast %1236 : f32 to vector<12x128xf32>
      %1238 = arith.mulf %1237, %1233 : vector<12x128xf32>
      %c28 = arith.constant 28 : index
      %1239 = memref.load %arg4[%c28] : memref<360xf32, #tpu.memory_space<smem>>
      %1240 = vector.broadcast %1239 : f32 to vector<12x128xf32>
      %1241 = arith.mulf %1240, %1234 : vector<12x128xf32>
      %1242 = arith.addf %1238, %1241 : vector<12x128xf32>
      %c29 = arith.constant 29 : index
      %1243 = memref.load %arg4[%c29] : memref<360xf32, #tpu.memory_space<smem>>
      %1244 = vector.broadcast %1243 : f32 to vector<12x128xf32>
      %1245 = arith.mulf %1244, %1235 : vector<12x128xf32>
      %1246 = arith.addf %1242, %1245 : vector<12x128xf32>
      %1247 = arith.addf %1114, %1246 : vector<12x128xf32>
      %c63 = arith.constant 63 : index
      %1248 = memref.load %arg4[%c63] : memref<360xf32, #tpu.memory_space<smem>>
      %1249 = vector.broadcast %1248 : f32 to vector<12x128xf32>
      %1250 = arith.mulf %1249, %1233 : vector<12x128xf32>
      %c64 = arith.constant 64 : index
      %1251 = memref.load %arg4[%c64] : memref<360xf32, #tpu.memory_space<smem>>
      %1252 = vector.broadcast %1251 : f32 to vector<12x128xf32>
      %1253 = arith.mulf %1252, %1234 : vector<12x128xf32>
      %1254 = arith.addf %1250, %1253 : vector<12x128xf32>
      %c65 = arith.constant 65 : index
      %1255 = memref.load %arg4[%c65] : memref<360xf32, #tpu.memory_space<smem>>
      %1256 = vector.broadcast %1255 : f32 to vector<12x128xf32>
      %1257 = arith.mulf %1256, %1235 : vector<12x128xf32>
      %1258 = arith.addf %1254, %1257 : vector<12x128xf32>
      %1259 = arith.addf %1126, %1258 : vector<12x128xf32>
      %c99 = arith.constant 99 : index
      %1260 = memref.load %arg4[%c99] : memref<360xf32, #tpu.memory_space<smem>>
      %1261 = vector.broadcast %1260 : f32 to vector<12x128xf32>
      %1262 = arith.mulf %1261, %1233 : vector<12x128xf32>
      %c100 = arith.constant 100 : index
      %1263 = memref.load %arg4[%c100] : memref<360xf32, #tpu.memory_space<smem>>
      %1264 = vector.broadcast %1263 : f32 to vector<12x128xf32>
      %1265 = arith.mulf %1264, %1234 : vector<12x128xf32>
      %1266 = arith.addf %1262, %1265 : vector<12x128xf32>
      %c101 = arith.constant 101 : index
      %1267 = memref.load %arg4[%c101] : memref<360xf32, #tpu.memory_space<smem>>
      %1268 = vector.broadcast %1267 : f32 to vector<12x128xf32>
      %1269 = arith.mulf %1268, %1235 : vector<12x128xf32>
      %1270 = arith.addf %1266, %1269 : vector<12x128xf32>
      %1271 = arith.addf %1138, %1270 : vector<12x128xf32>
      %c135 = arith.constant 135 : index
      %1272 = memref.load %arg4[%c135] : memref<360xf32, #tpu.memory_space<smem>>
      %1273 = vector.broadcast %1272 : f32 to vector<12x128xf32>
      %1274 = arith.mulf %1273, %1233 : vector<12x128xf32>
      %c136 = arith.constant 136 : index
      %1275 = memref.load %arg4[%c136] : memref<360xf32, #tpu.memory_space<smem>>
      %1276 = vector.broadcast %1275 : f32 to vector<12x128xf32>
      %1277 = arith.mulf %1276, %1234 : vector<12x128xf32>
      %1278 = arith.addf %1274, %1277 : vector<12x128xf32>
      %c137 = arith.constant 137 : index
      %1279 = memref.load %arg4[%c137] : memref<360xf32, #tpu.memory_space<smem>>
      %1280 = vector.broadcast %1279 : f32 to vector<12x128xf32>
      %1281 = arith.mulf %1280, %1235 : vector<12x128xf32>
      %1282 = arith.addf %1278, %1281 : vector<12x128xf32>
      %1283 = arith.addf %1150, %1282 : vector<12x128xf32>
      %c171 = arith.constant 171 : index
      %1284 = memref.load %arg4[%c171] : memref<360xf32, #tpu.memory_space<smem>>
      %1285 = vector.broadcast %1284 : f32 to vector<12x128xf32>
      %1286 = arith.mulf %1285, %1233 : vector<12x128xf32>
      %c172 = arith.constant 172 : index
      %1287 = memref.load %arg4[%c172] : memref<360xf32, #tpu.memory_space<smem>>
      %1288 = vector.broadcast %1287 : f32 to vector<12x128xf32>
      %1289 = arith.mulf %1288, %1234 : vector<12x128xf32>
      %1290 = arith.addf %1286, %1289 : vector<12x128xf32>
      %c173 = arith.constant 173 : index
      %1291 = memref.load %arg4[%c173] : memref<360xf32, #tpu.memory_space<smem>>
      %1292 = vector.broadcast %1291 : f32 to vector<12x128xf32>
      %1293 = arith.mulf %1292, %1235 : vector<12x128xf32>
      %1294 = arith.addf %1290, %1293 : vector<12x128xf32>
      %1295 = arith.addf %1162, %1294 : vector<12x128xf32>
      %c207 = arith.constant 207 : index
      %1296 = memref.load %arg4[%c207] : memref<360xf32, #tpu.memory_space<smem>>
      %1297 = vector.broadcast %1296 : f32 to vector<12x128xf32>
      %1298 = arith.mulf %1297, %1233 : vector<12x128xf32>
      %c208 = arith.constant 208 : index
      %1299 = memref.load %arg4[%c208] : memref<360xf32, #tpu.memory_space<smem>>
      %1300 = vector.broadcast %1299 : f32 to vector<12x128xf32>
      %1301 = arith.mulf %1300, %1234 : vector<12x128xf32>
      %1302 = arith.addf %1298, %1301 : vector<12x128xf32>
      %c209 = arith.constant 209 : index
      %1303 = memref.load %arg4[%c209] : memref<360xf32, #tpu.memory_space<smem>>
      %1304 = vector.broadcast %1303 : f32 to vector<12x128xf32>
      %1305 = arith.mulf %1304, %1235 : vector<12x128xf32>
      %1306 = arith.addf %1302, %1305 : vector<12x128xf32>
      %1307 = arith.addf %1174, %1306 : vector<12x128xf32>
      %c243 = arith.constant 243 : index
      %1308 = memref.load %arg4[%c243] : memref<360xf32, #tpu.memory_space<smem>>
      %1309 = vector.broadcast %1308 : f32 to vector<12x128xf32>
      %1310 = arith.mulf %1309, %1233 : vector<12x128xf32>
      %c244 = arith.constant 244 : index
      %1311 = memref.load %arg4[%c244] : memref<360xf32, #tpu.memory_space<smem>>
      %1312 = vector.broadcast %1311 : f32 to vector<12x128xf32>
      %1313 = arith.mulf %1312, %1234 : vector<12x128xf32>
      %1314 = arith.addf %1310, %1313 : vector<12x128xf32>
      %c245 = arith.constant 245 : index
      %1315 = memref.load %arg4[%c245] : memref<360xf32, #tpu.memory_space<smem>>
      %1316 = vector.broadcast %1315 : f32 to vector<12x128xf32>
      %1317 = arith.mulf %1316, %1235 : vector<12x128xf32>
      %1318 = arith.addf %1314, %1317 : vector<12x128xf32>
      %1319 = arith.addf %1186, %1318 : vector<12x128xf32>
      %c279 = arith.constant 279 : index
      %1320 = memref.load %arg4[%c279] : memref<360xf32, #tpu.memory_space<smem>>
      %1321 = vector.broadcast %1320 : f32 to vector<12x128xf32>
      %1322 = arith.mulf %1321, %1233 : vector<12x128xf32>
      %c280 = arith.constant 280 : index
      %1323 = memref.load %arg4[%c280] : memref<360xf32, #tpu.memory_space<smem>>
      %1324 = vector.broadcast %1323 : f32 to vector<12x128xf32>
      %1325 = arith.mulf %1324, %1234 : vector<12x128xf32>
      %1326 = arith.addf %1322, %1325 : vector<12x128xf32>
      %c281 = arith.constant 281 : index
      %1327 = memref.load %arg4[%c281] : memref<360xf32, #tpu.memory_space<smem>>
      %1328 = vector.broadcast %1327 : f32 to vector<12x128xf32>
      %1329 = arith.mulf %1328, %1235 : vector<12x128xf32>
      %1330 = arith.addf %1326, %1329 : vector<12x128xf32>
      %1331 = arith.addf %1198, %1330 : vector<12x128xf32>
      %c315 = arith.constant 315 : index
      %1332 = memref.load %arg4[%c315] : memref<360xf32, #tpu.memory_space<smem>>
      %1333 = vector.broadcast %1332 : f32 to vector<12x128xf32>
      %1334 = arith.mulf %1333, %1233 : vector<12x128xf32>
      %c316 = arith.constant 316 : index
      %1335 = memref.load %arg4[%c316] : memref<360xf32, #tpu.memory_space<smem>>
      %1336 = vector.broadcast %1335 : f32 to vector<12x128xf32>
      %1337 = arith.mulf %1336, %1234 : vector<12x128xf32>
      %1338 = arith.addf %1334, %1337 : vector<12x128xf32>
      %c317 = arith.constant 317 : index
      %1339 = memref.load %arg4[%c317] : memref<360xf32, #tpu.memory_space<smem>>
      %1340 = vector.broadcast %1339 : f32 to vector<12x128xf32>
      %1341 = arith.mulf %1340, %1235 : vector<12x128xf32>
      %1342 = arith.addf %1338, %1341 : vector<12x128xf32>
      %1343 = arith.addf %1210, %1342 : vector<12x128xf32>
      %c351 = arith.constant 351 : index
      %1344 = memref.load %arg4[%c351] : memref<360xf32, #tpu.memory_space<smem>>
      %1345 = vector.broadcast %1344 : f32 to vector<12x128xf32>
      %1346 = arith.mulf %1345, %1233 : vector<12x128xf32>
      %c352 = arith.constant 352 : index
      %1347 = memref.load %arg4[%c352] : memref<360xf32, #tpu.memory_space<smem>>
      %1348 = vector.broadcast %1347 : f32 to vector<12x128xf32>
      %1349 = arith.mulf %1348, %1234 : vector<12x128xf32>
      %1350 = arith.addf %1346, %1349 : vector<12x128xf32>
      %c353 = arith.constant 353 : index
      %1351 = memref.load %arg4[%c353] : memref<360xf32, #tpu.memory_space<smem>>
      %1352 = vector.broadcast %1351 : f32 to vector<12x128xf32>
      %1353 = arith.mulf %1352, %1235 : vector<12x128xf32>
      %1354 = arith.addf %1350, %1353 : vector<12x128xf32>
      %1355 = arith.addf %1222, %1354 : vector<12x128xf32>
      %c0_i32_86 = arith.constant 0 : i32
      %1356 = arith.addi %5, %c0_i32_86 : i32
      %c143_i32 = arith.constant 143 : i32
      %1357 = arith.addi %c143_i32, %1356 : i32
      %1358 = arith.index_cast %1357 : i32 to index
      %c0_87 = arith.constant 0 : index
      %c0_88 = arith.constant 0 : index
      %1359 = vector.load %arg7[%1358, %c0_87, %c0_88] : memref<208x13x128xf32, #tpu.memory_space<vmem>>, vector<1x13x128xf32>
      %1360 = vector.shape_cast %1359 : vector<1x13x128xf32> to vector<13x128xf32>
      %c0_i32_89 = arith.constant 0 : i32
      %1361 = arith.addi %5, %c0_i32_89 : i32
      %c195_i32 = arith.constant 195 : i32
      %1362 = arith.addi %c195_i32, %1361 : i32
      %1363 = arith.index_cast %1362 : i32 to index
      %c0_90 = arith.constant 0 : index
      %c0_91 = arith.constant 0 : index
      %1364 = vector.load %arg7[%1363, %c0_90, %c0_91] : memref<208x13x128xf32, #tpu.memory_space<vmem>>, vector<1x13x128xf32>
      %1365 = vector.shape_cast %1364 : vector<1x13x128xf32> to vector<13x128xf32>
      %1366 = vector.extract_strided_slice %1360 {offsets = [0, 0], sizes = [12, 128], strides = [1, 1]} : vector<13x128xf32> to vector<12x128xf32>
      %1367 = vector.extract_strided_slice %1365 {offsets = [0, 0], sizes = [12, 128], strides = [1, 1]} : vector<13x128xf32> to vector<12x128xf32>
      %1368 = vector.extract_strided_slice %1360 {offsets = [1, 0], sizes = [12, 128], strides = [1, 1]} : vector<13x128xf32> to vector<12x128xf32>
      %c30 = arith.constant 30 : index
      %1369 = memref.load %arg4[%c30] : memref<360xf32, #tpu.memory_space<smem>>
      %1370 = vector.broadcast %1369 : f32 to vector<12x128xf32>
      %1371 = arith.mulf %1370, %1366 : vector<12x128xf32>
      %c31 = arith.constant 31 : index
      %1372 = memref.load %arg4[%c31] : memref<360xf32, #tpu.memory_space<smem>>
      %1373 = vector.broadcast %1372 : f32 to vector<12x128xf32>
      %1374 = arith.mulf %1373, %1367 : vector<12x128xf32>
      %1375 = arith.addf %1371, %1374 : vector<12x128xf32>
      %c32 = arith.constant 32 : index
      %1376 = memref.load %arg4[%c32] : memref<360xf32, #tpu.memory_space<smem>>
      %1377 = vector.broadcast %1376 : f32 to vector<12x128xf32>
      %1378 = arith.mulf %1377, %1368 : vector<12x128xf32>
      %1379 = arith.addf %1375, %1378 : vector<12x128xf32>
      %1380 = arith.addf %1247, %1379 : vector<12x128xf32>
      %c66 = arith.constant 66 : index
      %1381 = memref.load %arg4[%c66] : memref<360xf32, #tpu.memory_space<smem>>
      %1382 = vector.broadcast %1381 : f32 to vector<12x128xf32>
      %1383 = arith.mulf %1382, %1366 : vector<12x128xf32>
      %c67 = arith.constant 67 : index
      %1384 = memref.load %arg4[%c67] : memref<360xf32, #tpu.memory_space<smem>>
      %1385 = vector.broadcast %1384 : f32 to vector<12x128xf32>
      %1386 = arith.mulf %1385, %1367 : vector<12x128xf32>
      %1387 = arith.addf %1383, %1386 : vector<12x128xf32>
      %c68 = arith.constant 68 : index
      %1388 = memref.load %arg4[%c68] : memref<360xf32, #tpu.memory_space<smem>>
      %1389 = vector.broadcast %1388 : f32 to vector<12x128xf32>
      %1390 = arith.mulf %1389, %1368 : vector<12x128xf32>
      %1391 = arith.addf %1387, %1390 : vector<12x128xf32>
      %1392 = arith.addf %1259, %1391 : vector<12x128xf32>
      %c102 = arith.constant 102 : index
      %1393 = memref.load %arg4[%c102] : memref<360xf32, #tpu.memory_space<smem>>
      %1394 = vector.broadcast %1393 : f32 to vector<12x128xf32>
      %1395 = arith.mulf %1394, %1366 : vector<12x128xf32>
      %c103 = arith.constant 103 : index
      %1396 = memref.load %arg4[%c103] : memref<360xf32, #tpu.memory_space<smem>>
      %1397 = vector.broadcast %1396 : f32 to vector<12x128xf32>
      %1398 = arith.mulf %1397, %1367 : vector<12x128xf32>
      %1399 = arith.addf %1395, %1398 : vector<12x128xf32>
      %c104 = arith.constant 104 : index
      %1400 = memref.load %arg4[%c104] : memref<360xf32, #tpu.memory_space<smem>>
      %1401 = vector.broadcast %1400 : f32 to vector<12x128xf32>
      %1402 = arith.mulf %1401, %1368 : vector<12x128xf32>
      %1403 = arith.addf %1399, %1402 : vector<12x128xf32>
      %1404 = arith.addf %1271, %1403 : vector<12x128xf32>
      %c138 = arith.constant 138 : index
      %1405 = memref.load %arg4[%c138] : memref<360xf32, #tpu.memory_space<smem>>
      %1406 = vector.broadcast %1405 : f32 to vector<12x128xf32>
      %1407 = arith.mulf %1406, %1366 : vector<12x128xf32>
      %c139 = arith.constant 139 : index
      %1408 = memref.load %arg4[%c139] : memref<360xf32, #tpu.memory_space<smem>>
      %1409 = vector.broadcast %1408 : f32 to vector<12x128xf32>
      %1410 = arith.mulf %1409, %1367 : vector<12x128xf32>
      %1411 = arith.addf %1407, %1410 : vector<12x128xf32>
      %c140 = arith.constant 140 : index
      %1412 = memref.load %arg4[%c140] : memref<360xf32, #tpu.memory_space<smem>>
      %1413 = vector.broadcast %1412 : f32 to vector<12x128xf32>
      %1414 = arith.mulf %1413, %1368 : vector<12x128xf32>
      %1415 = arith.addf %1411, %1414 : vector<12x128xf32>
      %1416 = arith.addf %1283, %1415 : vector<12x128xf32>
      %c174 = arith.constant 174 : index
      %1417 = memref.load %arg4[%c174] : memref<360xf32, #tpu.memory_space<smem>>
      %1418 = vector.broadcast %1417 : f32 to vector<12x128xf32>
      %1419 = arith.mulf %1418, %1366 : vector<12x128xf32>
      %c175 = arith.constant 175 : index
      %1420 = memref.load %arg4[%c175] : memref<360xf32, #tpu.memory_space<smem>>
      %1421 = vector.broadcast %1420 : f32 to vector<12x128xf32>
      %1422 = arith.mulf %1421, %1367 : vector<12x128xf32>
      %1423 = arith.addf %1419, %1422 : vector<12x128xf32>
      %c176 = arith.constant 176 : index
      %1424 = memref.load %arg4[%c176] : memref<360xf32, #tpu.memory_space<smem>>
      %1425 = vector.broadcast %1424 : f32 to vector<12x128xf32>
      %1426 = arith.mulf %1425, %1368 : vector<12x128xf32>
      %1427 = arith.addf %1423, %1426 : vector<12x128xf32>
      %1428 = arith.addf %1295, %1427 : vector<12x128xf32>
      %c210 = arith.constant 210 : index
      %1429 = memref.load %arg4[%c210] : memref<360xf32, #tpu.memory_space<smem>>
      %1430 = vector.broadcast %1429 : f32 to vector<12x128xf32>
      %1431 = arith.mulf %1430, %1366 : vector<12x128xf32>
      %c211 = arith.constant 211 : index
      %1432 = memref.load %arg4[%c211] : memref<360xf32, #tpu.memory_space<smem>>
      %1433 = vector.broadcast %1432 : f32 to vector<12x128xf32>
      %1434 = arith.mulf %1433, %1367 : vector<12x128xf32>
      %1435 = arith.addf %1431, %1434 : vector<12x128xf32>
      %c212 = arith.constant 212 : index
      %1436 = memref.load %arg4[%c212] : memref<360xf32, #tpu.memory_space<smem>>
      %1437 = vector.broadcast %1436 : f32 to vector<12x128xf32>
      %1438 = arith.mulf %1437, %1368 : vector<12x128xf32>
      %1439 = arith.addf %1435, %1438 : vector<12x128xf32>
      %1440 = arith.addf %1307, %1439 : vector<12x128xf32>
      %c246 = arith.constant 246 : index
      %1441 = memref.load %arg4[%c246] : memref<360xf32, #tpu.memory_space<smem>>
      %1442 = vector.broadcast %1441 : f32 to vector<12x128xf32>
      %1443 = arith.mulf %1442, %1366 : vector<12x128xf32>
      %c247 = arith.constant 247 : index
      %1444 = memref.load %arg4[%c247] : memref<360xf32, #tpu.memory_space<smem>>
      %1445 = vector.broadcast %1444 : f32 to vector<12x128xf32>
      %1446 = arith.mulf %1445, %1367 : vector<12x128xf32>
      %1447 = arith.addf %1443, %1446 : vector<12x128xf32>
      %c248 = arith.constant 248 : index
      %1448 = memref.load %arg4[%c248] : memref<360xf32, #tpu.memory_space<smem>>
      %1449 = vector.broadcast %1448 : f32 to vector<12x128xf32>
      %1450 = arith.mulf %1449, %1368 : vector<12x128xf32>
      %1451 = arith.addf %1447, %1450 : vector<12x128xf32>
      %1452 = arith.addf %1319, %1451 : vector<12x128xf32>
      %c282 = arith.constant 282 : index
      %1453 = memref.load %arg4[%c282] : memref<360xf32, #tpu.memory_space<smem>>
      %1454 = vector.broadcast %1453 : f32 to vector<12x128xf32>
      %1455 = arith.mulf %1454, %1366 : vector<12x128xf32>
      %c283 = arith.constant 283 : index
      %1456 = memref.load %arg4[%c283] : memref<360xf32, #tpu.memory_space<smem>>
      %1457 = vector.broadcast %1456 : f32 to vector<12x128xf32>
      %1458 = arith.mulf %1457, %1367 : vector<12x128xf32>
      %1459 = arith.addf %1455, %1458 : vector<12x128xf32>
      %c284 = arith.constant 284 : index
      %1460 = memref.load %arg4[%c284] : memref<360xf32, #tpu.memory_space<smem>>
      %1461 = vector.broadcast %1460 : f32 to vector<12x128xf32>
      %1462 = arith.mulf %1461, %1368 : vector<12x128xf32>
      %1463 = arith.addf %1459, %1462 : vector<12x128xf32>
      %1464 = arith.addf %1331, %1463 : vector<12x128xf32>
      %c318 = arith.constant 318 : index
      %1465 = memref.load %arg4[%c318] : memref<360xf32, #tpu.memory_space<smem>>
      %1466 = vector.broadcast %1465 : f32 to vector<12x128xf32>
      %1467 = arith.mulf %1466, %1366 : vector<12x128xf32>
      %c319 = arith.constant 319 : index
      %1468 = memref.load %arg4[%c319] : memref<360xf32, #tpu.memory_space<smem>>
      %1469 = vector.broadcast %1468 : f32 to vector<12x128xf32>
      %1470 = arith.mulf %1469, %1367 : vector<12x128xf32>
      %1471 = arith.addf %1467, %1470 : vector<12x128xf32>
      %c320 = arith.constant 320 : index
      %1472 = memref.load %arg4[%c320] : memref<360xf32, #tpu.memory_space<smem>>
      %1473 = vector.broadcast %1472 : f32 to vector<12x128xf32>
      %1474 = arith.mulf %1473, %1368 : vector<12x128xf32>
      %1475 = arith.addf %1471, %1474 : vector<12x128xf32>
      %1476 = arith.addf %1343, %1475 : vector<12x128xf32>
      %c354 = arith.constant 354 : index
      %1477 = memref.load %arg4[%c354] : memref<360xf32, #tpu.memory_space<smem>>
      %1478 = vector.broadcast %1477 : f32 to vector<12x128xf32>
      %1479 = arith.mulf %1478, %1366 : vector<12x128xf32>
      %c355 = arith.constant 355 : index
      %1480 = memref.load %arg4[%c355] : memref<360xf32, #tpu.memory_space<smem>>
      %1481 = vector.broadcast %1480 : f32 to vector<12x128xf32>
      %1482 = arith.mulf %1481, %1367 : vector<12x128xf32>
      %1483 = arith.addf %1479, %1482 : vector<12x128xf32>
      %c356 = arith.constant 356 : index
      %1484 = memref.load %arg4[%c356] : memref<360xf32, #tpu.memory_space<smem>>
      %1485 = vector.broadcast %1484 : f32 to vector<12x128xf32>
      %1486 = arith.mulf %1485, %1368 : vector<12x128xf32>
      %1487 = arith.addf %1483, %1486 : vector<12x128xf32>
      %1488 = arith.addf %1355, %1487 : vector<12x128xf32>
      %c1_i32_92 = arith.constant 1 : i32
      %1489 = arith.addi %5, %c1_i32_92 : i32
      %c39_i32_93 = arith.constant 39 : i32
      %1490 = arith.addi %c39_i32_93, %1489 : i32
      %1491 = arith.index_cast %1490 : i32 to index
      %c0_94 = arith.constant 0 : index
      %c0_95 = arith.constant 0 : index
      %1492 = vector.load %arg7[%1491, %c0_94, %c0_95] : memref<208x13x128xf32, #tpu.memory_space<vmem>>, vector<1x13x128xf32>
      %1493 = vector.shape_cast %1492 : vector<1x13x128xf32> to vector<13x128xf32>
      %c1_i32_96 = arith.constant 1 : i32
      %1494 = arith.addi %5, %c1_i32_96 : i32
      %c91_i32_97 = arith.constant 91 : i32
      %1495 = arith.addi %c91_i32_97, %1494 : i32
      %1496 = arith.index_cast %1495 : i32 to index
      %c0_98 = arith.constant 0 : index
      %c0_99 = arith.constant 0 : index
      %1497 = vector.load %arg7[%1496, %c0_98, %c0_99] : memref<208x13x128xf32, #tpu.memory_space<vmem>>, vector<1x13x128xf32>
      %1498 = vector.shape_cast %1497 : vector<1x13x128xf32> to vector<13x128xf32>
      %1499 = vector.extract_strided_slice %1493 {offsets = [0, 0], sizes = [12, 128], strides = [1, 1]} : vector<13x128xf32> to vector<12x128xf32>
      %1500 = vector.extract_strided_slice %1498 {offsets = [0, 0], sizes = [12, 128], strides = [1, 1]} : vector<13x128xf32> to vector<12x128xf32>
      %1501 = vector.extract_strided_slice %1493 {offsets = [1, 0], sizes = [12, 128], strides = [1, 1]} : vector<13x128xf32> to vector<12x128xf32>
      %c33 = arith.constant 33 : index
      %1502 = memref.load %arg4[%c33] : memref<360xf32, #tpu.memory_space<smem>>
      %1503 = vector.broadcast %1502 : f32 to vector<12x128xf32>
      %1504 = arith.mulf %1503, %1499 : vector<12x128xf32>
      %c34 = arith.constant 34 : index
      %1505 = memref.load %arg4[%c34] : memref<360xf32, #tpu.memory_space<smem>>
      %1506 = vector.broadcast %1505 : f32 to vector<12x128xf32>
      %1507 = arith.mulf %1506, %1500 : vector<12x128xf32>
      %1508 = arith.addf %1504, %1507 : vector<12x128xf32>
      %c35 = arith.constant 35 : index
      %1509 = memref.load %arg4[%c35] : memref<360xf32, #tpu.memory_space<smem>>
      %1510 = vector.broadcast %1509 : f32 to vector<12x128xf32>
      %1511 = arith.mulf %1510, %1501 : vector<12x128xf32>
      %1512 = arith.addf %1508, %1511 : vector<12x128xf32>
      %1513 = arith.addf %1380, %1512 : vector<12x128xf32>
      %c69 = arith.constant 69 : index
      %1514 = memref.load %arg4[%c69] : memref<360xf32, #tpu.memory_space<smem>>
      %1515 = vector.broadcast %1514 : f32 to vector<12x128xf32>
      %1516 = arith.mulf %1515, %1499 : vector<12x128xf32>
      %c70 = arith.constant 70 : index
      %1517 = memref.load %arg4[%c70] : memref<360xf32, #tpu.memory_space<smem>>
      %1518 = vector.broadcast %1517 : f32 to vector<12x128xf32>
      %1519 = arith.mulf %1518, %1500 : vector<12x128xf32>
      %1520 = arith.addf %1516, %1519 : vector<12x128xf32>
      %c71 = arith.constant 71 : index
      %1521 = memref.load %arg4[%c71] : memref<360xf32, #tpu.memory_space<smem>>
      %1522 = vector.broadcast %1521 : f32 to vector<12x128xf32>
      %1523 = arith.mulf %1522, %1501 : vector<12x128xf32>
      %1524 = arith.addf %1520, %1523 : vector<12x128xf32>
      %1525 = arith.addf %1392, %1524 : vector<12x128xf32>
      %c105 = arith.constant 105 : index
      %1526 = memref.load %arg4[%c105] : memref<360xf32, #tpu.memory_space<smem>>
      %1527 = vector.broadcast %1526 : f32 to vector<12x128xf32>
      %1528 = arith.mulf %1527, %1499 : vector<12x128xf32>
      %c106 = arith.constant 106 : index
      %1529 = memref.load %arg4[%c106] : memref<360xf32, #tpu.memory_space<smem>>
      %1530 = vector.broadcast %1529 : f32 to vector<12x128xf32>
      %1531 = arith.mulf %1530, %1500 : vector<12x128xf32>
      %1532 = arith.addf %1528, %1531 : vector<12x128xf32>
      %c107 = arith.constant 107 : index
      %1533 = memref.load %arg4[%c107] : memref<360xf32, #tpu.memory_space<smem>>
      %1534 = vector.broadcast %1533 : f32 to vector<12x128xf32>
      %1535 = arith.mulf %1534, %1501 : vector<12x128xf32>
      %1536 = arith.addf %1532, %1535 : vector<12x128xf32>
      %1537 = arith.addf %1404, %1536 : vector<12x128xf32>
      %c141 = arith.constant 141 : index
      %1538 = memref.load %arg4[%c141] : memref<360xf32, #tpu.memory_space<smem>>
      %1539 = vector.broadcast %1538 : f32 to vector<12x128xf32>
      %1540 = arith.mulf %1539, %1499 : vector<12x128xf32>
      %c142 = arith.constant 142 : index
      %1541 = memref.load %arg4[%c142] : memref<360xf32, #tpu.memory_space<smem>>
      %1542 = vector.broadcast %1541 : f32 to vector<12x128xf32>
      %1543 = arith.mulf %1542, %1500 : vector<12x128xf32>
      %1544 = arith.addf %1540, %1543 : vector<12x128xf32>
      %c143 = arith.constant 143 : index
      %1545 = memref.load %arg4[%c143] : memref<360xf32, #tpu.memory_space<smem>>
      %1546 = vector.broadcast %1545 : f32 to vector<12x128xf32>
      %1547 = arith.mulf %1546, %1501 : vector<12x128xf32>
      %1548 = arith.addf %1544, %1547 : vector<12x128xf32>
      %1549 = arith.addf %1416, %1548 : vector<12x128xf32>
      %c177 = arith.constant 177 : index
      %1550 = memref.load %arg4[%c177] : memref<360xf32, #tpu.memory_space<smem>>
      %1551 = vector.broadcast %1550 : f32 to vector<12x128xf32>
      %1552 = arith.mulf %1551, %1499 : vector<12x128xf32>
      %c178 = arith.constant 178 : index
      %1553 = memref.load %arg4[%c178] : memref<360xf32, #tpu.memory_space<smem>>
      %1554 = vector.broadcast %1553 : f32 to vector<12x128xf32>
      %1555 = arith.mulf %1554, %1500 : vector<12x128xf32>
      %1556 = arith.addf %1552, %1555 : vector<12x128xf32>
      %c179 = arith.constant 179 : index
      %1557 = memref.load %arg4[%c179] : memref<360xf32, #tpu.memory_space<smem>>
      %1558 = vector.broadcast %1557 : f32 to vector<12x128xf32>
      %1559 = arith.mulf %1558, %1501 : vector<12x128xf32>
      %1560 = arith.addf %1556, %1559 : vector<12x128xf32>
      %1561 = arith.addf %1428, %1560 : vector<12x128xf32>
      %c213 = arith.constant 213 : index
      %1562 = memref.load %arg4[%c213] : memref<360xf32, #tpu.memory_space<smem>>
      %1563 = vector.broadcast %1562 : f32 to vector<12x128xf32>
      %1564 = arith.mulf %1563, %1499 : vector<12x128xf32>
      %c214 = arith.constant 214 : index
      %1565 = memref.load %arg4[%c214] : memref<360xf32, #tpu.memory_space<smem>>
      %1566 = vector.broadcast %1565 : f32 to vector<12x128xf32>
      %1567 = arith.mulf %1566, %1500 : vector<12x128xf32>
      %1568 = arith.addf %1564, %1567 : vector<12x128xf32>
      %c215 = arith.constant 215 : index
      %1569 = memref.load %arg4[%c215] : memref<360xf32, #tpu.memory_space<smem>>
      %1570 = vector.broadcast %1569 : f32 to vector<12x128xf32>
      %1571 = arith.mulf %1570, %1501 : vector<12x128xf32>
      %1572 = arith.addf %1568, %1571 : vector<12x128xf32>
      %1573 = arith.addf %1440, %1572 : vector<12x128xf32>
      %c249 = arith.constant 249 : index
      %1574 = memref.load %arg4[%c249] : memref<360xf32, #tpu.memory_space<smem>>
      %1575 = vector.broadcast %1574 : f32 to vector<12x128xf32>
      %1576 = arith.mulf %1575, %1499 : vector<12x128xf32>
      %c250 = arith.constant 250 : index
      %1577 = memref.load %arg4[%c250] : memref<360xf32, #tpu.memory_space<smem>>
      %1578 = vector.broadcast %1577 : f32 to vector<12x128xf32>
      %1579 = arith.mulf %1578, %1500 : vector<12x128xf32>
      %1580 = arith.addf %1576, %1579 : vector<12x128xf32>
      %c251 = arith.constant 251 : index
      %1581 = memref.load %arg4[%c251] : memref<360xf32, #tpu.memory_space<smem>>
      %1582 = vector.broadcast %1581 : f32 to vector<12x128xf32>
      %1583 = arith.mulf %1582, %1501 : vector<12x128xf32>
      %1584 = arith.addf %1580, %1583 : vector<12x128xf32>
      %1585 = arith.addf %1452, %1584 : vector<12x128xf32>
      %c285 = arith.constant 285 : index
      %1586 = memref.load %arg4[%c285] : memref<360xf32, #tpu.memory_space<smem>>
      %1587 = vector.broadcast %1586 : f32 to vector<12x128xf32>
      %1588 = arith.mulf %1587, %1499 : vector<12x128xf32>
      %c286 = arith.constant 286 : index
      %1589 = memref.load %arg4[%c286] : memref<360xf32, #tpu.memory_space<smem>>
      %1590 = vector.broadcast %1589 : f32 to vector<12x128xf32>
      %1591 = arith.mulf %1590, %1500 : vector<12x128xf32>
      %1592 = arith.addf %1588, %1591 : vector<12x128xf32>
      %c287 = arith.constant 287 : index
      %1593 = memref.load %arg4[%c287] : memref<360xf32, #tpu.memory_space<smem>>
      %1594 = vector.broadcast %1593 : f32 to vector<12x128xf32>
      %1595 = arith.mulf %1594, %1501 : vector<12x128xf32>
      %1596 = arith.addf %1592, %1595 : vector<12x128xf32>
      %1597 = arith.addf %1464, %1596 : vector<12x128xf32>
      %c321 = arith.constant 321 : index
      %1598 = memref.load %arg4[%c321] : memref<360xf32, #tpu.memory_space<smem>>
      %1599 = vector.broadcast %1598 : f32 to vector<12x128xf32>
      %1600 = arith.mulf %1599, %1499 : vector<12x128xf32>
      %c322 = arith.constant 322 : index
      %1601 = memref.load %arg4[%c322] : memref<360xf32, #tpu.memory_space<smem>>
      %1602 = vector.broadcast %1601 : f32 to vector<12x128xf32>
      %1603 = arith.mulf %1602, %1500 : vector<12x128xf32>
      %1604 = arith.addf %1600, %1603 : vector<12x128xf32>
      %c323 = arith.constant 323 : index
      %1605 = memref.load %arg4[%c323] : memref<360xf32, #tpu.memory_space<smem>>
      %1606 = vector.broadcast %1605 : f32 to vector<12x128xf32>
      %1607 = arith.mulf %1606, %1501 : vector<12x128xf32>
      %1608 = arith.addf %1604, %1607 : vector<12x128xf32>
      %1609 = arith.addf %1476, %1608 : vector<12x128xf32>
      %c357 = arith.constant 357 : index
      %1610 = memref.load %arg4[%c357] : memref<360xf32, #tpu.memory_space<smem>>
      %1611 = vector.broadcast %1610 : f32 to vector<12x128xf32>
      %1612 = arith.mulf %1611, %1499 : vector<12x128xf32>
      %c358 = arith.constant 358 : index
      %1613 = memref.load %arg4[%c358] : memref<360xf32, #tpu.memory_space<smem>>
      %1614 = vector.broadcast %1613 : f32 to vector<12x128xf32>
      %1615 = arith.mulf %1614, %1500 : vector<12x128xf32>
      %1616 = arith.addf %1612, %1615 : vector<12x128xf32>
      %c359 = arith.constant 359 : index
      %1617 = memref.load %arg4[%c359] : memref<360xf32, #tpu.memory_space<smem>>
      %1618 = vector.broadcast %1617 : f32 to vector<12x128xf32>
      %1619 = arith.mulf %1618, %1501 : vector<12x128xf32>
      %1620 = arith.addf %1616, %1619 : vector<12x128xf32>
      %1621 = arith.addf %1488, %1620 : vector<12x128xf32>
      %cst_100 = arith.constant 0.000000e+00 : f32
      %1622 = vector.broadcast %cst_100 : f32 to vector<12x128xf32>
      %1623 = arith.maximumf %1513, %1622 : vector<12x128xf32>
      %cst_101 = arith.constant dense<0xFF800000> : vector<128xf32>
      %1624 = vector.multi_reduction <maximumf>, %1623, %cst_101 [0] : vector<12x128xf32> to vector<128xf32>
      %1625 = vector.shape_cast %1624 : vector<128xf32> to vector<1x128xf32>
      %cst_102 = arith.constant 0.000000e+00 : f32
      %1626 = vector.broadcast %cst_102 : f32 to vector<12x128xf32>
      %1627 = arith.maximumf %1525, %1626 : vector<12x128xf32>
      %cst_103 = arith.constant dense<0xFF800000> : vector<128xf32>
      %1628 = vector.multi_reduction <maximumf>, %1627, %cst_103 [0] : vector<12x128xf32> to vector<128xf32>
      %1629 = vector.shape_cast %1628 : vector<128xf32> to vector<1x128xf32>
      %cst_104 = arith.constant 0.000000e+00 : f32
      %1630 = vector.broadcast %cst_104 : f32 to vector<12x128xf32>
      %1631 = arith.maximumf %1537, %1630 : vector<12x128xf32>
      %cst_105 = arith.constant dense<0xFF800000> : vector<128xf32>
      %1632 = vector.multi_reduction <maximumf>, %1631, %cst_105 [0] : vector<12x128xf32> to vector<128xf32>
      %1633 = vector.shape_cast %1632 : vector<128xf32> to vector<1x128xf32>
      %cst_106 = arith.constant 0.000000e+00 : f32
      %1634 = vector.broadcast %cst_106 : f32 to vector<12x128xf32>
      %1635 = arith.maximumf %1549, %1634 : vector<12x128xf32>
      %cst_107 = arith.constant dense<0xFF800000> : vector<128xf32>
      %1636 = vector.multi_reduction <maximumf>, %1635, %cst_107 [0] : vector<12x128xf32> to vector<128xf32>
      %1637 = vector.shape_cast %1636 : vector<128xf32> to vector<1x128xf32>
      %cst_108 = arith.constant 0.000000e+00 : f32
      %1638 = vector.broadcast %cst_108 : f32 to vector<12x128xf32>
      %1639 = arith.maximumf %1561, %1638 : vector<12x128xf32>
      %cst_109 = arith.constant dense<0xFF800000> : vector<128xf32>
      %1640 = vector.multi_reduction <maximumf>, %1639, %cst_109 [0] : vector<12x128xf32> to vector<128xf32>
      %1641 = vector.shape_cast %1640 : vector<128xf32> to vector<1x128xf32>
      %cst_110 = arith.constant 0.000000e+00 : f32
      %1642 = vector.broadcast %cst_110 : f32 to vector<12x128xf32>
      %1643 = arith.maximumf %1573, %1642 : vector<12x128xf32>
      %cst_111 = arith.constant dense<0xFF800000> : vector<128xf32>
      %1644 = vector.multi_reduction <maximumf>, %1643, %cst_111 [0] : vector<12x128xf32> to vector<128xf32>
      %1645 = vector.shape_cast %1644 : vector<128xf32> to vector<1x128xf32>
      %cst_112 = arith.constant 0.000000e+00 : f32
      %1646 = vector.broadcast %cst_112 : f32 to vector<12x128xf32>
      %1647 = arith.maximumf %1585, %1646 : vector<12x128xf32>
      %cst_113 = arith.constant dense<0xFF800000> : vector<128xf32>
      %1648 = vector.multi_reduction <maximumf>, %1647, %cst_113 [0] : vector<12x128xf32> to vector<128xf32>
      %1649 = vector.shape_cast %1648 : vector<128xf32> to vector<1x128xf32>
      %cst_114 = arith.constant 0.000000e+00 : f32
      %1650 = vector.broadcast %cst_114 : f32 to vector<12x128xf32>
      %1651 = arith.maximumf %1597, %1650 : vector<12x128xf32>
      %cst_115 = arith.constant dense<0xFF800000> : vector<128xf32>
      %1652 = vector.multi_reduction <maximumf>, %1651, %cst_115 [0] : vector<12x128xf32> to vector<128xf32>
      %1653 = vector.shape_cast %1652 : vector<128xf32> to vector<1x128xf32>
      %cst_116 = arith.constant 0.000000e+00 : f32
      %1654 = vector.broadcast %cst_116 : f32 to vector<12x128xf32>
      %1655 = arith.maximumf %1609, %1654 : vector<12x128xf32>
      %cst_117 = arith.constant dense<0xFF800000> : vector<128xf32>
      %1656 = vector.multi_reduction <maximumf>, %1655, %cst_117 [0] : vector<12x128xf32> to vector<128xf32>
      %1657 = vector.shape_cast %1656 : vector<128xf32> to vector<1x128xf32>
      %cst_118 = arith.constant 0.000000e+00 : f32
      %1658 = vector.broadcast %cst_118 : f32 to vector<12x128xf32>
      %1659 = arith.maximumf %1621, %1658 : vector<12x128xf32>
      %cst_119 = arith.constant dense<0xFF800000> : vector<128xf32>
      %1660 = vector.multi_reduction <maximumf>, %1659, %cst_119 [0] : vector<12x128xf32> to vector<128xf32>
      %1661 = vector.shape_cast %1660 : vector<128xf32> to vector<1x128xf32>
      %c0_120 = arith.constant 0 : index
      %c0_121 = arith.constant 0 : index
      %1662 = vector.load %arg6[%c0_120, %c0_121] : memref<10x128xf32, #tpu.memory_space<vmem>>, vector<10x128xf32>
      %1663 = tpu.concatenate %1625, %1629, %1633, %1637, %1641, %1645, %1649, %1653, %1657, %1661 in 0 : vector<1x128xf32>, vector<1x128xf32>, vector<1x128xf32>, vector<1x128xf32>, vector<1x128xf32>, vector<1x128xf32>, vector<1x128xf32>, vector<1x128xf32>, vector<1x128xf32>, vector<1x128xf32> -> vector<10x128xf32>
      %1664 = arith.maximumf %1662, %1663 : vector<10x128xf32>
      %c0_122 = arith.constant 0 : index
      %c0_123 = arith.constant 0 : index
      %1665 = vector.load %arg6[%c0_122, %c0_123] : memref<10x128xf32, #tpu.memory_space<vmem>>, vector<10x128xf32>
      tpu.vector_store %arg6[%c0_122, %c0_123], %1664 {strides = array<i32>} : memref<10x128xf32, #tpu.memory_space<vmem>>, vector<10x128xf32>,
    }
    %c12_i32_4 = arith.constant 12 : i32
    return
  }
  func.func @transform_0(%arg0: i32) -> (i32, i32, i32) {
    %c0_i32 = arith.constant 0 : i32
    %c0_i32_0 = arith.constant 0 : i32
    %c0_i32_1 = arith.constant 0 : i32
    return %c0_i32, %c0_i32_0, %arg0 : i32, i32, i32
  }
  func.func @transform_1(%arg0: i32) -> i32 {
    %c0_i32 = arith.constant 0 : i32
    %c0_i32_0 = arith.constant 0 : i32
    return %c0_i32 : i32
  }
  func.func @transform_2(%arg0: i32) -> i32 {
    %c0_i32 = arith.constant 0 : i32
    %c0_i32_0 = arith.constant 0 : i32
    return %c0_i32 : i32
  }
  func.func @transform_3(%arg0: i32) -> i32 {
    %c0_i32 = arith.constant 0 : i32
    %c0_i32_0 = arith.constant 0 : i32
    return %c0_i32 : i32
  }
  func.func @transform_4(%arg0: i32) -> i32 {
    %c0_i32 = arith.constant 0 : i32
    %c0_i32_0 = arith.constant 0 : i32
    return %c0_i32 : i32
  }
  func.func @transform_5(%arg0: i32) -> (i32, i32) {
    %c0_i32 = arith.constant 0 : i32
    %c0_i32_0 = arith.constant 0 : i32
    return %c0_i32, %arg0 : i32, i32
  }
}

</mosaic_0001>

<bundles_post_ra>
// kernel: simple_convnn_forward.1
= control target key start
LH: loop header
LB: loop body
LE: loop exit
PB: predicated region body
PF: predicated region fallthrough
CT: control target
= control target key end

     0   :  { %10 = vsyncpa [#allocation4], 0  ;;  %s10118_s0 = inlined_call_operand.vmem [shape: f32[56,14,128], index: 0, kind: input, shape index: {}]   ;;  %s10119_s1 = inlined_call_operand.vmem [shape: f32[36], index: 1, kind: input, shape index: {}]   ;;  %s10120_s2 = inlined_call_operand.vmem [shape: f32[4], index: 2, kind: input, shape index: {}]   ;;  %s10121_s3 = inlined_call_operand.vmem [shape: f32[360], index: 3, kind: input, shape index: {}]   ;;  %s10122_s4 = inlined_call_operand.vmem [shape: f32[10], index: 4, kind: input, shape index: {}]   ;;  %s10123_s5 = inlined_call_operand.vmem [shape: f32[10,128], index: 5, kind: output, shape index: {}]  }
   0x1   :  { %11 = vsyncpa [#allocation6], 0  ;;  %s31_s20 = sshll.u32 %s10120_s2, 4  ;;  %s32_s20 = int_to_ptr.vmem [resolvable:$true] %s31_s20 }
   0x2   :  { %12 = vsyncpa [#allocation9], 0  ;;  %s21_s23 = sshll.u32 %s10119_s1, 4  ;;  %s5736_s24 = scalar_lea.vmem %s32_s20, 16  ;;  %s22_s23 = int_to_ptr.vmem [resolvable:$true] %s21_s23 }
   0x3   :  { %p5737_p0 = scmp.ne.s32.totalorder %s32_s20, %s5736_s24  ;;  %p5741_p1 = scmp.lt.s32.totalorder %s32_s20, %s32_s20 }
   0x4   :  { %p5742_p2 = scmp.lt.s32.totalorder %s5736_s24, %s5736_s24 }
   0x6   :  { %p5743_p3 = por %p5742_p2, %p5741_p1 }
   0x8   :  { %p5744_p4 = pnand %p5743_p3, %p5737_p0 }
   0xa   :  { %5747 = shalt.err (!%p5744_p4)
}
   0xb   :  { %s5806_s25 = smov [#allocation5]   ;;  %s5748_s26 = scalar_lea.vmem %s22_s23, 16 }
   0xc   :  { %34 = dma.vmem_to_smem %s32_s20, 16, %s5806_s25, [#allocation6]  }
   0xd   :  { %p5749_p5 = scmp.ne.s32.totalorder %s22_s23, %s5748_s26  ;;  %p5753_p6 = scmp.lt.s32.totalorder %s22_s23, %s22_s23 }
   0xe   :  { %p5754_p7 = scmp.lt.s32.totalorder %s5748_s26, %s5748_s26 }
  0x10   :  { %p5755_p8 = por %p5754_p7, %p5753_p6 }
  0x12   :  { %p5756_p9 = pnand %p5755_p8, %p5749_p5 }
  0x14   :  { %5759 = shalt.err (!%p5756_p9)
}
  0x15   :  { %s5807_s2 = smov [#allocation3]   ;;  %s41_s28 = sshll.u32 %s10121_s3, 4  ;;  %s42_s28 = int_to_ptr.vmem [resolvable:$true] %s41_s28 }
  0x16   :  { %24 = dma.vmem_to_smem %s22_s23, 16, %s5807_s2, [#allocation4]  }
  0x17   :  { %s51_s6 = sshll.u32 %s10122_s4, 4  ;;  %s5760_s7 = scalar_lea.vmem %s42_s28, 48  ;;  %s52_s6 = int_to_ptr.vmem [resolvable:$true] %s51_s6 }
  0x18   :  { %p5761_p10 = scmp.ne.s32.totalorder %s42_s28, %s5760_s7  ;;  %s5764_s8 = scalar_lea.vmem %s42_s28, 64 }
  0x19   :  { %p5765_p11 = scmp.lt.s32.totalorder %s42_s28, %s42_s28  ;;  %p5766_p12 = scmp.lt.s32.totalorder %s5764_s8, %s5760_s7 }
  0x1b   :  { %p5767_p13 = por %p5766_p12, %p5765_p11 }
  0x1d   :  { %p5768_p0 = pnand %p5767_p13, %p5761_p10 }
  0x1f   :  { %5771 = shalt.err (!%p5768_p0)
}
  0x20   :  { %s5808_s9 = smov [#allocation7]   ;;  %s5772_s10 = scalar_lea.vmem %s52_s6, 16 }
  0x21   :  { %44 = dma.vmem_to_smem %s42_s28, 48, %s5808_s9, [#allocation6]  }
  0x22   :  { %p5773_p1 = scmp.ne.s32.totalorder %s52_s6, %s5772_s10  ;;  %p5777_p2 = scmp.lt.s32.totalorder %s52_s6, %s52_s6 }
  0x23   :  { %p5778_p3 = scmp.lt.s32.totalorder %s5772_s10, %s5772_s10 }
  0x25   :  { %p5779_p4 = por %p5778_p3, %p5777_p2 }
  0x27   :  { %p5780_p5 = pnand %p5779_p4, %p5773_p1 }
  0x29   :  { %5783 = shalt.err (!%p5780_p5)
}
  0x2a   :  { %s5809_s3 = smov [#allocation8]  }
  0x2b   :  { %54 = dma.vmem_to_smem %s52_s6, 16, %s5809_s3, [#allocation9]  }
  0x2c   :  { %5792 = dma.done.wait [#allocation4], 16  }
  0x2d   :  { %5793 = vsyncadd [#allocation4], 4294967280 }
  0x2e   :  { %5794 = dma.done.wait [#allocation6], 64  }
  0x2f   :  { %5795 = vsyncadd [#allocation6], 4294967232 }
  0x30   :  { %5796 = dma.done.wait [#allocation9], 16  }
  0x31   :  { %5797 = vsyncadd [#allocation9], 4294967280 }
  0x32   :  { %67 = sfence }
  0x33   :  { %s5853_s4 = smov 0  }
  0x34 LB: > { %s113_s11 = sld [smem:[#allocation3]]  ;;  %s5050_s13 = sshll.u32 %s5800_s4, 4  ;;  %vm133_vm0 = vcmask 1046528   ;;  %s5800_s4 = sphi %s5853_s4, %s73_s4  }
  0x35   : > { %s117_s12 = sld [smem:[#allocation5]]  ;;  %s5072_s14 = sld [smem:[#allocation3 + $0x1]] }
  0x36   : > { %s5864_s17 = scalar_lea.vmem %s10118_s0, %s5050_s13  ;;  %s5073_s18 = sld [smem:[#allocation3 + $0x2]] }
  0x37   : > { %v5867_v0 = vld [vmem:[%s5864_s17] sm:$0xff]  ;;  %v5870_v1 = vld [vmem:[%s5864_s17 + $0x8] sm:$0x3f]  ;;  %s5074_s19 = sld [smem:[#allocation3 + $0x3]]  ;;  %s5075_s20 = sld [smem:[#allocation3 + $0x4]]  ;;  %v5941_v30 = vld [vmem:[%s5864_s17 + $0x10] sm:$0xff] }
  0x38   : > { %v5873_v2 = vld [vmem:[%s5864_s17 + $0xe0] sm:$0xff]  ;;  %s5875_s21 = sld [smem:[#allocation3 + $0x5]]  ;;  %s5880_s22 = sld [smem:[#allocation3 + $0x6]]  ;;  %v5885_v6 = vld [vmem:[%s5864_s17 + $0xe8] sm:$0x3f]  ;;  %v5944_v31 = vld [vmem:[%s5864_s17 + $0xf0] sm:$0xff] }
  0x39   : > { %s5882_s23 = sld [smem:[#allocation3 + $0x7]]  ;;  %s5890_s24 = sld [smem:[#allocation3 + $0x8]]  ;;  %v5899_v11 = vld [vmem:[%s5864_s17 + $0x1c0] sm:$0xff]  ;;  %v5908_v16 = vld [vmem:[%s5864_s17 + $0x1c8] sm:$0x3f] }
  0x3a   : > { %v114_v3 = vstv %s113_s11  ;;  %s5918_s25 = sld [smem:[#allocation3 + $0x9]]  ;;  %v5923_v21 = vld [vmem:[%s5864_s17 + $0x2a0] sm:$0xff]  ;;  %s5931_s2 = sld [smem:[#allocation3 + $0xa]]  ;;  %v5959_v36 = vld [vmem:[%s5864_s17 + $0x18] sm:$0x3f] }
  0x3b   : > { %v115_v4 = vmul.f32 %v114_v3, %v5867_v0  ;;  %v5878_v5 = vstv %s117_s12  ;;  %v116_v7 = vmul.f32 %v114_v3, %v5870_v1  ;;  %v5888_v8 = vstv %s5072_s14  ;;  %s5920_s26 = sld [smem:[#allocation5 + $0x1]]  ;;  %s5933_s1 = sld [smem:[#allocation3 + $0xb]]  ;;  %v5974_v45 = vld [vmem:[%s5864_s17 + $0x2a8] sm:$0x3f]  ;;  %v5983_v47 = vld [vmem:[%s5864_s17 + $0xf8] sm:$0x3f] }
  0x3c   : > { %v5893_v9 = vmul.f32 %v5873_v2, %v114_v3  ;;  %v5896_v10 = vmul.f32 %v5885_v6, %v114_v3  ;;  %v123_v13 = vmul.f32 %v5873_v2, %v5888_v8  ;;  %v5904_v14 = vstv %s5073_s18  ;;  %s5956_s27 = sld [smem:[#allocation3 + $0xc]]  ;;  %s5969_s28 = sld [smem:[#allocation3 + $0xd]] }
  0x3d   : > { %v119_v12 = vadd.f32 %v5878_v5, %v115_v4  ;;  %v120_v15 = vadd.f32 %v5878_v5, %v116_v7  ;;  %v129_v17 = vmul.f32 %v5904_v14, %v5867_v0  ;;  %v130_v18 = vmul.f32 %v5904_v14, %v5870_v1  ;;  %s5976_s29 = sld [smem:[#allocation3 + $0xe]]  ;;  %s5989_s30 = sld [smem:[#allocation3 + $0xf]] }
  0x3e   : > { %v5914_v19 = vstv %s5074_s19  ;;  %v124_v20 = vmul.f32 %v5885_v6, %v5888_v8  ;;  %v5927_v24 = vstv %s5075_s20  ;;  %v5938_v29 = vstv %s5875_s21  ;;  %s5991_s6 = sld [smem:[#allocation3 + $0x10]]  ;;  %s6011_s7 = sld [smem:[#allocation3 + $0x11]] }
  0x3f   : > { %v125_v22 = vadd.f32 %v123_v13, %v119_v12  ;;  %v143_v23 = vmul.f32 %v5899_v11, %v5914_v19  ;;  %v144_v25 = vmul.f32 %v5908_v16, %v5914_v19  ;;  %v134_v26 = vrot.slane %v129_v17, 1  ;;  %s6043_s8 = sld [smem:[#allocation3 + $0x12]]  ;;  %s6054_s10 = sld [smem:[#allocation3 + $0x13]] }
  0x40   : > { %v135_v27 = vrot.slane %v130_v18, 1  ;;  %v149_v28 = vmul.f32 %v5923_v21, %v5927_v24  ;;  %v155_v32 = vmul.f32 %v5899_v11, %v5938_v29  ;;  %v156_v33 = vmul.f32 %v5908_v16, %v5938_v29  ;;  %s6052_s9 = sld [smem:[#allocation5 + $0x2]]  ;;  %s6060_s3 = sld [smem:[#allocation3 + $0x14]] }
  0x41   : > { %v5951_v34 = vstv %s5880_s22  ;;  %v5954_v35 = vstv %s5882_s23  ;;  %v5967_v40 = vstv %s5890_s24  ;;  %v126_v48 = vadd.f32 %v124_v20, %v120_v15  ;;  %s6066_s11 = sld [smem:[#allocation3 + $0x15]]  ;;  %s6074_s12 = sld [smem:[#allocation3 + $0x16]] }
  0x42   : > { %v136_v37 = vsel %vm133_vm0, %v134_v26, %v135_v27  ;;  %v168_v38 = vmul.f32 %v5941_v30, %v5951_v34  ;;  %v174_v39 = vmul.f32 %v5944_v31, %v5954_v35  ;;  %v159_v42 = vrot.slane %v155_v32, 1  ;;  %s6084_s14 = sld [smem:[#allocation3 + $0x17]]  ;;  %s6086_s15 = sld [smem:[#allocation3 + $0x18]] }
  0x43   : > { %v139_v41 = vadd.f32 %v136_v37, %v125_v22  ;;  %v160_v43 = vrot.slane %v156_v33, 1  ;;  %v180_v44 = vmul.f32 %v5941_v30, %v5967_v40  ;;  %v5980_v46 = vmul.f32 %v5959_v36, %v5967_v40  ;;  %s6090_s16 = scalar_lea.vmem [#allocation2], %s5050_s13  ;;  %s6105_s13 = sld [smem:[#allocation3 + $0x19]] }
  0x44   : > { %v150_v49 = vmul.f32 %v5974_v45, %v5927_v24  ;;  %v169_v50 = vmul.f32 %v5959_v36, %v5951_v34  ;;  %v175_v54 = vmul.f32 %v5983_v47, %v5954_v35  ;;  %v140_v56 = vadd.f32 %v135_v27, %v126_v48  ;;  %s6124_s18 = sld [smem:[#allocation3 + $0x1a]]  ;;  %s6150_s19 = sld [smem:[#allocation3 + $0x1b]] }
  0x45   : > { %v145_v51 = vadd.f32 %v143_v23, %v139_v41  ;;  %v161_v52 = vsel %vm133_vm0, %v159_v42, %v160_v43  ;;  %v184_v53 = vrot.slane %v180_v44, 1  ;;  %v185_v55 = vrot.slane %v5980_v46, 1  ;;  %s6159_s20 = sld [smem:[#allocation5 + $0x3]]  ;;  %s6166_s21 = sld [smem:[#allocation3 + $0x1c]] }
  0x46   : > { %v5998_v57 = vstv %s5918_s25  ;;  %v6001_v58 = vstv %s5920_s26  ;;  %v6006_v61 = vstv %s5931_s2  ;;  %v6009_v62 = vstv %s5933_s1  ;;  %s6168_s22 = sld [smem:[#allocation3 + $0x1d]]  ;;  %s6183_s23 = sld [smem:[#allocation3 + $0x1e]] }
  0x47   : > { %v151_v59 = vadd.f32 %v149_v28, %v145_v51  ;;  %v198_v60 = vmul.f32 %v5998_v57, %v5867_v0  ;;  %v186_v63 = vsel %vm133_vm0, %v184_v53, %v185_v55  ;;  %v146_v3 = vadd.f32 %v144_v25, %v140_v56  ;;  %s6192_s24 = sld [smem:[#allocation3 + $0x1f]]  ;;  %s6199_s25 = sld [smem:[#allocation3 + $0x20]] }
  0x48   : > { %v206_v4 = vmul.f32 %v5873_v2, %v6006_v61  ;;  %v212_v7 = vmul.f32 %v6009_v62, %v5867_v0  ;;  %v6021_v15 = vmul.f32 %v6009_v62, %v5870_v1  ;;  %v6024_v17 = vstv %s5956_s27  ;;  %s6201_s26 = sld [smem:[#allocation3 + $0x21]]  ;;  %s6206_s2 = sld [smem:[#allocation3 + $0x22]] }
  0x49   : > { %v164_v12 = vadd.f32 %v161_v52, %v151_v59  ;;  %v202_v13 = vadd.f32 %v6001_v58, %v198_v60  ;;  %v152_v18 = vadd.f32 %v150_v49, %v146_v3  ;;  %v225_v22 = vmul.f32 %v5899_v11, %v6024_v17  ;;  %s6208_s1 = sld [smem:[#allocation3 + $0x23]]  ;;  %s6514_s27 = sld [smem:[#allocation3]] }
  0x4a   : > { %v216_v20 = vrot.slane %v212_v7, 1  ;;  %v6029_v23 = vstv %s5969_s28  ;;  %v217_v27 = vrot.slane %v6021_v15, 1  ;;  %v6035_v33 = vstv %s5976_s29  ;;  %s6516_s28 = sld [smem:[#allocation5]]  ;;  %s6523_s29 = sld [smem:[#allocation3 + $0x1]] }
  0x4b   : > { %v170_v25 = vadd.f32 %v168_v38, %v164_v12  ;;  %v208_v26 = vadd.f32 %v206_v4, %v202_v13  ;;  %v231_v28 = vmul.f32 %v5923_v21, %v6029_v23  ;;  %v165_v32 = vadd.f32 %v160_v43, %v152_v18  ;;  %s73_s4 = sadd.s32 1, %s5800_s4  }
  0x4c   : > { %v6038_v37 = vstv %s5989_s30  ;;  %v6041_v41 = vstv %s5991_s6  ;;  %v218_v44 = vsel %vm133_vm0, %v216_v20, %v217_v27  ;;  %v237_v38 = vmul.f32 %v5899_v11, %v6035_v33  ;;  %s6529_s30 = sld [smem:[#allocation3 + $0x2]]  ;;  %s6531_s6 = sld [smem:[#allocation3 + $0x3]] }
  0x4d   : > { %v176_v42 = vadd.f32 %v174_v39, %v170_v25  ;;  %v6050_v46 = vmul.f32 %v5908_v16, %v6035_v33  ;;  %v171_v43 = vadd.f32 %v169_v50, %v165_v32  ;;  %v221_v48 = vadd.f32 %v218_v44, %v208_v26  ;;  %p70_p6 = scmp.ge.s32.totalorder %s73_s4, 13  }
  0x4e   : > { %v250_v49 = vmul.f32 %v5941_v30, %v6038_v37  ;;  %v256_v39 = vmul.f32 %v5944_v31, %v6041_v41  ;;  %v241_v52 = vrot.slane %v237_v38, 1  ;;  %v6064_v56 = vstv %s6011_s7  ;;  %s6550_s7 = sld [smem:[#allocation3 + $0x4]] }
  0x4f   : > { %v189_v51 = vadd.f32 %v186_v63, %v176_v42  ;;  %v242_v53 = vrot.slane %v6050_v46, 1  ;;  %v177_v59 = vadd.f32 %v175_v54, %v171_v43  ;;  %v227_v50 = vadd.f32 %v225_v22, %v221_v48 }
  0x50   : > { %v262_v60 = vmul.f32 %v5941_v30, %v6064_v56  ;;  %v6072_v3 = vmul.f32 %v5959_v36, %v6064_v56  ;;  %v199_v7 = vmul.f32 %v5998_v57, %v5870_v1  ;;  %v207_v54 = vmul.f32 %v5885_v6, %v6006_v61 }
  0x51   : > { %v191_v63 = vmax.f32 %v189_v51, 0.0  ;;  %v243_v4 = vsel %vm133_vm0, %v241_v52, %v242_v53  ;;  %v190_v12 = vadd.f32 %v185_v55, %v177_v59  ;;  %v233_v13 = vadd.f32 %v231_v28, %v227_v50 }
  0x52   : > { %v266_v15 = vrot.slane %v262_v60, 1  ;;  %v10124_v18 = vrot.slane %v6072_v3, 1  ;;  %v203_v20 = vadd.f32 %v6001_v58, %v199_v7  ;;  %v226_v55 = vmul.f32 %v5908_v16, %v6024_v17 }
  0x53   : > { %194 = vst [vmem:[%s6090_s16] sm:$0xff] %v191_v63  ;;  %v232_v22 = vmul.f32 %v5974_v45, %v6029_v23  ;;  %v251_v25 = vmul.f32 %v5959_v36, %v6038_v37  ;;  %v192_v26 = vmax.f32 %v190_v12, 0.0  ;;  %v246_v28 = vadd.f32 %v243_v4, %v233_v13 }
  0x54   : > { %v268_v32 = vsel %vm133_vm0, %v266_v15, %v10124_v18  ;;  %v257_v42 = vmul.f32 %v5983_v47, %v6041_v41  ;;  %v209_v44 = vadd.f32 %v207_v54, %v203_v20  ;;  %v6108_v38 = vstv %s6043_s8  ;;  %s6561_s8 = sld [smem:[#allocation3 + $0x5]] }
  0x55   : > { %10195 = vst [vmem:[#allocation13_spill] sm:$0xff] %v6108_v38  ;;  %v6111_v43 = vstv %s6052_s9  ;;  %v6114_v48 = vstv %s6054_s10  ;;  %195 = vst [vmem:[%s6090_s16 + $0x8] sm:$0x1f] %v192_v26  ;;  %v252_v51 = vadd.f32 %v250_v49, %v246_v28  ;;  %v282_v52 = vmul.f32 %v6108_v38, %v5867_v0  ;;  %s6563_s9 = sld [smem:[#allocation3 + $0x6]]  ;;  %s6582_s10 = sld [smem:[#allocation3 + $0x7]] }
  0x56   : > { %10196 = vst [vmem:[#allocation14_spill] sm:$0xff] %v6111_v43  ;;  %10197 = vst [vmem:[#allocation15_spill] sm:$0xff] %v6114_v48  ;;  %v290_v59 = vmul.f32 %v5873_v2, %v6114_v48  ;;  %v6122_v50 = vstv %s6060_s3  ;;  %v222_v60 = vadd.f32 %v217_v27, %v209_v44  ;;  %v6133_v49 = vstv %s6066_s11  ;;  %s6584_s3 = sld [smem:[#allocation3 + $0x8]]  ;;  %s6628_s11 = sld [smem:[#allocation3 + $0x9]] }
  0x57   : > { %10198 = vst [vmem:[#allocation16_spill] sm:$0xff] %v6122_v50  ;;  %v296_v63 = vmul.f32 %v6122_v50, %v5867_v0  ;;  %v6130_v4 = vmul.f32 %v6122_v50, %v5870_v1  ;;  %10199 = vst [vmem:[#allocation17_spill] sm:$0xff] %v6133_v49  ;;  %v258_v7 = vadd.f32 %v256_v39, %v252_v51  ;;  %v6139_v13 = vstv %s6074_s12  ;;  %s6640_s12 = sld [smem:[#allocation5 + $0x1]] }
  0x58   : > { %v286_v54 = vadd.f32 %v6111_v43, %v282_v52  ;;  %v309_v12 = vmul.f32 %v5899_v11, %v6133_v49  ;;  %10200 = vst [vmem:[#allocation18_spill] sm:$0xff] %v6139_v13  ;;  %v228_v15 = vadd.f32 %v226_v55, %v222_v60  ;;  %v315_v26 = vmul.f32 %v5923_v21, %v6139_v13 }
  0x59   : > { %v300_v20 = vrot.slane %v296_v63, 1  ;;  %v301_v27 = vrot.slane %v6130_v4, 1  ;;  %v271_v28 = vadd.f32 %v268_v32, %v258_v7  ;;  %v6145_v18 = vstv %s6084_s14  ;;  %s6642_s14 = sld [smem:[#allocation3 + $0xa]] }
  0x5a   : > { %v292_v44 = vadd.f32 %v290_v59, %v286_v54  ;;  %10201 = vst [vmem:[#allocation19_spill] sm:$0xff] %v6145_v18  ;;  %v6148_v39 = vstv %s6086_s15  ;;  %v234_v51 = vadd.f32 %v232_v22, %v228_v15  ;;  %v321_v55 = vmul.f32 %v5899_v11, %v6145_v18  ;;  %s6651_s15 = sld [smem:[#allocation3 + $0xb]] }
  0x5b   : > { %10202 = vst [vmem:[#allocation20_spill] sm:$0xff] %v6148_v39  ;;  %v302_v52 = vsel %vm133_vm0, %v300_v20, %v301_v27  ;;  %v6157_v60 = vmul.f32 %v5908_v16, %v6145_v18  ;;  %v273_v32 = vmax.f32 %v271_v28, 0.0  ;;  %v334_v63 = vmul.f32 %v5941_v30, %v6148_v39 }
  0x5c   : > { %v305_v59 = vadd.f32 %v302_v52, %v292_v44  ;;  %v6164_v4 = vstv %s6105_s13  ;;  %v247_v22 = vadd.f32 %v242_v53, %v234_v51  ;;  %v325_v7 = vrot.slane %v321_v55, 1  ;;  %s6653_s13 = sld [smem:[#allocation3 + $0xc]] }
  0x5d   : > { %10203 = vst [vmem:[#allocation21_spill] sm:$0xff] %v6164_v4  ;;  %v326_v54 = vrot.slane %v6157_v60, 1  ;;  %v340_v15 = vmul.f32 %v5944_v31, %v6164_v4  ;;  %5091 = vst [vmem:[%s6090_s16 + $0xd0] sm:$0xff] %v273_v32  ;;  %v6177_v28 = vstv %s6124_s18  ;;  %v283_v44 = vmul.f32 %v6108_v38, %v5870_v1  ;;  %s6683_s18 = sld [smem:[#allocation3 + $0xd]] }
  0x5e   : > { %v311_v20 = vadd.f32 %v309_v12, %v305_v59  ;;  %10204 = vst [vmem:[#allocation22_spill] sm:$0xff] %v6177_v28  ;;  %v291_v52 = vmul.f32 %v5885_v6, %v6114_v48  ;;  %v253_v46 = vadd.f32 %v251_v25, %v247_v22  ;;  %v346_v51 = vmul.f32 %v5941_v30, %v6177_v28 }
  0x5f   : > { %v327_v53 = vsel %vm133_vm0, %v325_v7, %v326_v54  ;;  %v6190_v55 = vmul.f32 %v5959_v36, %v6177_v28  ;;  %v287_v60 = vadd.f32 %v6111_v43, %v283_v44  ;;  %v310_v32 = vmul.f32 %v5908_v16, %v6133_v49 }
  0x60   : > { %v317_v12 = vadd.f32 %v315_v26, %v311_v20  ;;  %v316_v25 = vmul.f32 %v5974_v45, %v6139_v13  ;;  %v259_v59 = vadd.f32 %v257_v42, %v253_v46  ;;  %v350_v22 = vrot.slane %v346_v51, 1 }
  0x61   : > { %v351_v7 = vrot.slane %v6190_v55, 1  ;;  %v335_v26 = vmul.f32 %v5959_v36, %v6148_v39  ;;  %v293_v44 = vadd.f32 %v291_v52, %v287_v60  ;;  %v341_v28 = vmul.f32 %v5983_v47, %v6164_v4 }
  0x62   : > { %v330_v20 = vadd.f32 %v327_v53, %v317_v12  ;;  %v6213_v18 = vstv %s6150_s19  ;;  %v10205_v42 = vrot.slane %v6072_v3, 1  ;;  %v6221_v39 = vstv %s6159_s20  ;;  %s6685_s19 = sld [smem:[#allocation3 + $0xe]]  ;;  %s6706_s20 = sld [smem:[#allocation3 + $0xf]] }
  0x63   : > { %v352_v51 = vsel %vm133_vm0, %v350_v22, %v351_v7  ;;  %v366_v55 = vmul.f32 %v6213_v18, %v5867_v0  ;;  %v306_v52 = vadd.f32 %v301_v27, %v293_v44  ;;  %v6224_v53 = vstv %s6166_s21  ;;  %s6716_s21 = sld [smem:[#allocation3 + $0x10]] }
  0x64   : > { %v272_v46 = vadd.f32 %v10205_v42, %v259_v59  ;;  %v336_v13 = vadd.f32 %v334_v63, %v330_v20  ;;  %v6227_v12 = vstv %s6168_s22  ;;  %v374_v59 = vmul.f32 %v5873_v2, %v6224_v53  ;;  %s6737_s22 = sld [smem:[#allocation3 + $0x11]] }
  0x65   : > { %10206 = vst [vmem:[#allocation23_spill] sm:$0xff] %v6227_v12  ;;  %v370_v3 = vadd.f32 %v6221_v39, %v366_v55  ;;  %v380_v22 = vmul.f32 %v6227_v12, %v5867_v0  ;;  %v312_v63 = vadd.f32 %v310_v32, %v306_v52  ;;  %v381_v27 = vmul.f32 %v6227_v12, %v5870_v1 }
  0x66   : > { %v274_v60 = vmax.f32 %v272_v46, 0.0  ;;  %v342_v42 = vadd.f32 %v340_v15, %v336_v13  ;;  %v6237_v20 = vstv %s6183_s23  ;;  %v6243_v4 = vstv %s6192_s24  ;;  %s6775_s23 = sld [smem:[#allocation3 + $0x12]] }
  0x67   : > { %v376_v44 = vadd.f32 %v374_v59, %v370_v3  ;;  %v384_v46 = vrot.slane %v380_v22, 1  ;;  %v393_v55 = vmul.f32 %v5899_v11, %v6237_v20  ;;  %10207 = vst [vmem:[#allocation24_spill] sm:$0xff] %v6243_v4  ;;  %v318_v43 = vadd.f32 %v316_v25, %v312_v63  ;;  %s6777_s24 = sld [smem:[#allocation5 + $0x2]] }
  0x68   : > { %5092 = vst [vmem:[%s6090_s16 + $0xd8] sm:$0x1f] %v274_v60  ;;  %v355_v49 = vadd.f32 %v352_v51, %v342_v42  ;;  %v385_v50 = vrot.slane %v381_v27, 1  ;;  %v399_v13 = vmul.f32 %v5923_v21, %v6243_v4  ;;  %v6248_v15 = vstv %s6199_s25  ;;  %s6787_s25 = sld [smem:[#allocation3 + $0x13]] }
  0x69   : > { %10208 = vst [vmem:[#allocation25_spill] sm:$0xff] %v6248_v15  ;;  %v6251_v32 = vstv %s6201_s26  ;;  %v6254_v52 = vstv %s6206_s2  ;;  %v6257_v60 = vstv %s6208_s1  ;;  %v331_v59 = vadd.f32 %v326_v54, %v318_v43  ;;  %s6789_s26 = sld [smem:[#allocation3 + $0x14]]  ;;  %s6792_s2 = sld [smem:[#allocation3 + $0x15]] }
  0x6a   : > { %10209 = vst [vmem:[#allocation26_spill] sm:$0xff] %v6251_v32  ;;  %10210 = vst [vmem:[#allocation27_spill] sm:$0xff] %v6254_v52  ;;  %v357_v3 = vmax.f32 %v355_v49, 0.0  ;;  %v386_v22 = vsel %vm133_vm0, %v384_v46, %v385_v50  ;;  %v405_v51 = vmul.f32 %v5899_v11, %v6248_v15  ;;  %v406_v42 = vmul.f32 %v5908_v16, %v6248_v15  ;;  %s6809_s1 = sld [smem:[#allocation3 + $0x16]] }
  0x6b   : > { %10211 = vst [vmem:[#allocation28_spill] sm:$0xff] %v6257_v60  ;;  %v389_v25 = vadd.f32 %v386_v22, %v376_v44  ;;  %v418_v63 = vmul.f32 %v5941_v30, %v6251_v32  ;;  %v424_v27 = vmul.f32 %v5944_v31, %v6254_v52  ;;  %v337_v12 = vadd.f32 %v335_v26, %v331_v59 }
  0x6c   : > { %5104 = vst [vmem:[%s6090_s16 + $0x1a0] sm:$0xff] %v357_v3  ;;  %v409_v48 = vrot.slane %v405_v51, 1  ;;  %v430_v43 = vmul.f32 %v5941_v30, %v6257_v60  ;;  %v6273_v49 = vmul.f32 %v5959_v36, %v6257_v60  ;;  %v410_v44 = vrot.slane %v406_v42, 1 }
  0x6d   : > { %v395_v54 = vadd.f32 %v393_v55, %v389_v25  ;;  %v367_v46 = vmul.f32 %v6213_v18, %v5870_v1  ;;  %v375_v22 = vmul.f32 %v5885_v6, %v6224_v53  ;;  %v343_v15 = vadd.f32 %v341_v28, %v337_v12 }
  0x6e   : > { %v434_v38 = vrot.slane %v430_v43, 1  ;;  %v10151_v26 = vrot.slane %v6273_v49, 1  ;;  %v394_v3 = vmul.f32 %v5908_v16, %v6237_v20  ;;  %v411_v51 = vsel %vm133_vm0, %v409_v48, %v410_v44 }
  0x6f   : > { %v401_v59 = vadd.f32 %v399_v13, %v395_v54  ;;  %v371_v60 = vadd.f32 %v6221_v39, %v367_v46  ;;  %v400_v55 = vmul.f32 %v5974_v45, %v6243_v4  ;;  %v356_v25 = vadd.f32 %v351_v7, %v343_v15 }
  0x70   : > { %v436_v28 = vsel %vm133_vm0, %v434_v38, %v10151_v26  ;;  %v419_v12 = vmul.f32 %v5959_v36, %v6251_v32  ;;  %v425_v42 = vmul.f32 %v5983_v47, %v6254_v52  ;;  %v454_v48 = vadd.f32 %v5893_v9, %v5878_v5 }
  0x71   : > { %v414_v13 = vadd.f32 %v411_v51, %v401_v59  ;;  %v377_v43 = vadd.f32 %v375_v22, %v371_v60  ;;  %v458_v54 = vmul.f32 %v5888_v8, %v5867_v0  ;;  %v358_v7 = vmax.f32 %v356_v25, 0.0 }
  0x72   : > { %v459_v15 = vmul.f32 %v5888_v8, %v5870_v1  ;;  %v471_v38 = vmul.f32 %v5873_v2, %v5904_v14  ;;  %v472_v46 = vmul.f32 %v5885_v6, %v5904_v14  ;;  %v484_v60 = vmul.f32 %v5923_v21, %v5914_v19 }
  0x73   : > { %v420_v26 = vadd.f32 %v418_v63, %v414_v13  ;;  %v390_v52 = vadd.f32 %v385_v50, %v377_v43  ;;  %v462_v59 = vrot.slane %v458_v54, 1  ;;  %5105 = vst [vmem:[%s6090_s16 + $0x1a8] sm:$0x1f] %v358_v7  ;;  %v490_v25 = vmul.f32 %v5899_v11, %v5927_v24 }
  0x74   : > { %v463_v9 = vrot.slane %v459_v15, 1  ;;  %v475_v22 = vrot.slane %v471_v38, 1  ;;  %v476_v51 = vrot.slane %v472_v46, 1  ;;  %v491_v4 = vmul.f32 %v5908_v16, %v5927_v24 }
  0x75   : > { %v426_v8 = vadd.f32 %v424_v27, %v420_v26  ;;  %v396_v32 = vadd.f32 %v394_v3, %v390_v52  ;;  %v503_v14 = vmul.f32 %v5923_v21, %v5938_v29  ;;  %v494_v13 = vrot.slane %v490_v25, 1 }
  0x76   : > { %v464_v50 = vsel %vm133_vm0, %v462_v59, %v463_v9  ;;  %v477_v63 = vsel %vm133_vm0, %v475_v22, %v476_v51  ;;  %v504_v43 = vmul.f32 %v5974_v45, %v5938_v29  ;;  %v495_v27 = vrot.slane %v491_v4, 1 }
  0x77   : > { %v439_v54 = vadd.f32 %v436_v28, %v426_v8  ;;  %v402_v7 = vadd.f32 %v400_v55, %v396_v32  ;;  %v467_v15 = vadd.f32 %v464_v50, %v454_v48  ;;  %v507_v52 = vrot.slane %v503_v14, 1 }
  0x78   : > { %v508_v26 = vrot.slane %v504_v43, 1  ;;  %v516_v24 = vmul.f32 %v5944_v31, %v5951_v34  ;;  %v522_v3 = vmul.f32 %v5941_v30, %v5954_v35  ;;  %v496_v22 = vsel %vm133_vm0, %v494_v13, %v495_v27 }
  0x79   : > { %v441_v38 = vmax.f32 %v439_v54, 0.0  ;;  %v415_v46 = vadd.f32 %v410_v44, %v402_v7  ;;  %v480_v59 = vadd.f32 %v477_v63, %v467_v15  ;;  %v6324_v32 = vmul.f32 %v5959_v36, %v5954_v35 }
  0x7a   : > { %v509_v29 = vsel %vm133_vm0, %v507_v52, %v508_v26  ;;  %v526_v4 = vrot.slane %v522_v3, 1  ;;  %v535_v55 = vmul.f32 %v5944_v31, %v5967_v40  ;;  %v6331_v25 = vmul.f32 %v5983_v47, %v5967_v40 }
  0x7b   : > { %5117 = vst [vmem:[%s6090_s16 + $0x270] sm:$0xff] %v441_v38  ;;  %v421_v28 = vadd.f32 %v419_v12, %v415_v46  ;;  %v486_v48 = vadd.f32 %v484_v60, %v480_v59  ;;  %v455_v44 = vadd.f32 %v5896_v10, %v5878_v5  ;;  %v527_v8 = vrot.slane %v6324_v32, 1 }
  0x7c   : > { %v539_v14 = vrot.slane %v535_v55, 1  ;;  %v485_v35 = vmul.f32 %v5974_v45, %v5914_v19  ;;  %v517_v50 = vmul.f32 %v5983_v47, %v5951_v34  ;;  %v540_v12 = vrot.slane %v6331_v25, 1 }
  0x7d   : > { %v427_v63 = vadd.f32 %v425_v42, %v421_v28  ;;  %v499_v13 = vadd.f32 %v496_v22, %v486_v48  ;;  %v468_v60 = vadd.f32 %v463_v9, %v455_v44  ;;  %v528_v40 = vsel %vm133_vm0, %v526_v4, %v527_v8 }
  0x7e   : > { %v555_v43 = vmul.f32 %v5873_v2, %v5998_v57  ;;  %v563_v5 = vmul.f32 %v6006_v61, %v5867_v0  ;;  %v6348_v10 = vmul.f32 %v6006_v61, %v5870_v1  ;;  %v10212_v19 = vrot.slane %v6273_v49, 1 }
  0x7f   : > { %v512_v42 = vadd.f32 %v509_v29, %v499_v13  ;;  %v541_v54 = vsel %vm133_vm0, %v539_v14, %v540_v12  ;;  %v481_v9 = vadd.f32 %v476_v51, %v468_v60  ;;  %v576_v3 = vmul.f32 %v5873_v2, %v6009_v62 }
  0x80   : > { %v440_v34 = vadd.f32 %v10212_v19, %v427_v63  ;;  %v559_v7 = vadd.f32 %v555_v43, %v6001_v58  ;;  %v567_v15 = vrot.slane %v563_v5, 1  ;;  %v568_v52 = vrot.slane %v6348_v10, 1 }
  0x81   : > { %v518_v46 = vadd.f32 %v516_v24, %v512_v42  ;;  %v487_v61 = vadd.f32 %v485_v35, %v481_v9  ;;  %v577_v49 = vmul.f32 %v5885_v6, %v6009_v62  ;;  %v580_v22 = vrot.slane %v576_v3, 1 }
  0x82   : > { %v442_v38 = vmax.f32 %v440_v34, 0.0  ;;  %v569_v59 = vsel %vm133_vm0, %v567_v15, %v568_v52  ;;  %v589_v51 = vmul.f32 %v5923_v21, %v6024_v17  ;;  %v595_v29 = vmul.f32 %v5899_v11, %v6029_v23 }
  0x83   : > { %v531_v32 = vadd.f32 %v528_v40, %v518_v46  ;;  %v500_v4 = vadd.f32 %v495_v27, %v487_v61  ;;  %v572_v55 = vadd.f32 %v569_v59, %v559_v7  ;;  %v581_v28 = vrot.slane %v577_v49, 1  ;;  %v10213_v59 = vld [vmem:[#allocation13_spill] sm:$0xff] }
  0x84   : > { %5118 = vst [vmem:[%s6090_s16 + $0x278] sm:$0x1f] %v442_v38  ;;  %v6367_v24 = vmul.f32 %v5908_v16, %v6029_v23  ;;  %v599_v48 = vrot.slane %v595_v29, 1  ;;  %v608_v62 = vmul.f32 %v5923_v21, %v6035_v33  ;;  %v6373_v25 = vmul.f32 %v5974_v45, %v6035_v33 }
  0x85   : > { %v544_v44 = vadd.f32 %v541_v54, %v531_v32  ;;  %v513_v14 = vadd.f32 %v508_v26, %v500_v4  ;;  %v582_v35 = vsel %vm133_vm0, %v580_v22, %v581_v28  ;;  %v621_v27 = vmul.f32 %v5944_v31, %v6038_v37  ;;  %v10214_v22 = vld [vmem:[#allocation15_spill] sm:$0xff]  ;;  %v10215_v32 = vld [vmem:[#allocation16_spill] sm:$0xff] }
  0x86   : > { %v585_v63 = vadd.f32 %v582_v35, %v572_v55  ;;  %v600_v23 = vrot.slane %v6367_v24, 1  ;;  %v612_v13 = vrot.slane %v608_v62, 1  ;;  %v613_v60 = vrot.slane %v6373_v25, 1  ;;  %v10217_v35 = vld [vmem:[#allocation17_spill] sm:$0xff] }
  0x87   : > { %v546_v40 = vmax.f32 %v544_v44, 0.0  ;;  %v519_v43 = vadd.f32 %v517_v50, %v513_v14  ;;  %v627_v33 = vmul.f32 %v5941_v30, %v6041_v41  ;;  %v6384_v5 = vmul.f32 %v5959_v36, %v6041_v41 }
  0x88   : > { %v591_v26 = vadd.f32 %v589_v51, %v585_v63  ;;  %v601_v10 = vsel %vm133_vm0, %v599_v48, %v600_v23  ;;  %v614_v19 = vsel %vm133_vm0, %v612_v13, %v613_v60  ;;  %v640_v34 = vmul.f32 %v5944_v31, %v6064_v56 }
  0x89   : > { %5128 = vst [vmem:[%s6090_s16 + $0x340] sm:$0xff] %v546_v40  ;;  %v532_v42 = vadd.f32 %v527_v8, %v519_v43  ;;  %v631_v50 = vrot.slane %v627_v33, 1  ;;  %v632_v54 = vrot.slane %v6384_v5, 1  ;;  %v6396_v9 = vmul.f32 %v5983_v47, %v6064_v56  ;;  %v10218_v43 = vld [vmem:[#allocation18_spill] sm:$0xff] }
  0x8a   : > { %v604_v41 = vadd.f32 %v601_v10, %v591_v26  ;;  %v644_v7 = vrot.slane %v640_v34, 1  ;;  %v556_v15 = vmul.f32 %v5885_v6, %v5998_v57  ;;  %v590_v3 = vmul.f32 %v5974_v45, %v6024_v17  ;;  %v10219_v10 = vld [vmem:[#allocation19_spill] sm:$0xff] }
  0x8b   : > { %v545_v38 = vadd.f32 %v540_v12, %v532_v42  ;;  %v633_v8 = vsel %vm133_vm0, %v631_v50, %v632_v54  ;;  %v645_v46 = vrot.slane %v6396_v9, 1  ;;  %v622_v56 = vmul.f32 %v5983_v47, %v6038_v37  ;;  %v10224_v9 = vld [vmem:[#allocation24_spill] sm:$0xff] }
  0x8c   : > { %v617_v61 = vadd.f32 %v614_v19, %v604_v41  ;;  %v560_v49 = vadd.f32 %v556_v15, %v6001_v58  ;;  %v660_v57 = vmul.f32 %v5873_v2, %v10213_v59  ;;  %v668_v17 = vmul.f32 %v10214_v22, %v5867_v0  ;;  %v10216_v58 = vld [vmem:[#allocation14_spill] sm:$0xff] }
  0x8d   : > { %v547_v12 = vmax.f32 %v545_v38, 0.0  ;;  %v646_v51 = vsel %vm133_vm0, %v644_v7, %v645_v46  ;;  %v669_v29 = vmul.f32 %v10214_v22, %v5870_v1  ;;  %v681_v37 = vmul.f32 %v5873_v2, %v10215_v32  ;;  %v10220_v22 = vld [vmem:[#allocation20_spill] sm:$0xff] }
  0x8e   : > { %v623_v4 = vadd.f32 %v621_v27, %v617_v61  ;;  %v573_v55 = vadd.f32 %v568_v52, %v560_v49  ;;  %v664_v24 = vadd.f32 %v660_v57, %v10216_v58  ;;  %v672_v48 = vrot.slane %v668_v17, 1 }
  0x8f   : > { %5129 = vst [vmem:[%s6090_s16 + $0x348] sm:$0x1f] %v547_v12  ;;  %v673_v62 = vrot.slane %v669_v29, 1  ;;  %v682_v44 = vmul.f32 %v5885_v6, %v10215_v32  ;;  %v685_v14 = vrot.slane %v681_v37, 1  ;;  %v694_v63 = vmul.f32 %v5923_v21, %v10217_v35 }
  0x90   : > { %v636_v13 = vadd.f32 %v633_v8, %v623_v4  ;;  %v586_v40 = vadd.f32 %v581_v28, %v573_v55  ;;  %v700_v33 = vmul.f32 %v5899_v11, %v10218_v43  ;;  %v6430_v52 = vmul.f32 %v5908_v16, %v10218_v43  ;;  %v10222_v4 = vld [vmem:[#allocation22_spill] sm:$0xff] }
  0x91   : > { %v674_v27 = vsel %vm133_vm0, %v672_v48, %v673_v62  ;;  %v686_v26 = vrot.slane %v682_v44, 1  ;;  %v713_v19 = vmul.f32 %v5923_v21, %v10219_v10  ;;  %v6437_v34 = vmul.f32 %v5974_v45, %v10219_v10 }
  0x92   : > { %v649_v42 = vadd.f32 %v646_v51, %v636_v13  ;;  %v592_v28 = vadd.f32 %v590_v3, %v586_v40  ;;  %v677_v50 = vadd.f32 %v674_v27, %v664_v24  ;;  %v704_v41 = vrot.slane %v700_v33, 1  ;;  %v10221_v51 = vld [vmem:[#allocation21_spill] sm:$0xff] }
  0x93   : > { %v687_v7 = vsel %vm133_vm0, %v685_v14, %v686_v26  ;;  %v705_v15 = vrot.slane %v6430_v52, 1  ;;  %v717_v38 = vrot.slane %v713_v19, 1  ;;  %v718_v8 = vrot.slane %v6437_v34, 1 }
  0x94   : > { %v651_v61 = vmax.f32 %v649_v42, 0.0  ;;  %v605_v49 = vadd.f32 %v600_v23, %v592_v28  ;;  %v690_v57 = vadd.f32 %v687_v7, %v677_v50  ;;  %v726_v17 = vmul.f32 %v5944_v31, %v10220_v22  ;;  %v10223_v28 = vld [vmem:[#allocation23_spill] sm:$0xff] }
  0x95   : > { %v706_v12 = vsel %vm133_vm0, %v704_v41, %v705_v15  ;;  %v719_v3 = vsel %vm133_vm0, %v717_v38, %v718_v8  ;;  %v732_v29 = vmul.f32 %v5941_v30, %v10221_v51  ;;  %v6452_v32 = vmul.f32 %v5959_v36, %v10221_v51 }
  0x96   : > { %5141 = vst [vmem:[%s6090_s16 + $0x410] sm:$0xff] %v651_v61  ;;  %v618_v23 = vadd.f32 %v613_v60, %v605_v49  ;;  %v696_v37 = vadd.f32 %v694_v63, %v690_v57  ;;  %v745_v55 = vmul.f32 %v5944_v31, %v10222_v4  ;;  %v6461_v24 = vmul.f32 %v5983_v47, %v10222_v4 }
  0x97   : > { %v736_v48 = vrot.slane %v732_v29, 1  ;;  %v737_v44 = vrot.slane %v6452_v32, 1  ;;  %v661_v14 = vmul.f32 %v5885_v6, %v10213_v59  ;;  %v695_v13 = vmul.f32 %v5974_v45, %v10217_v35 }
  0x98   : > { %v624_v40 = vadd.f32 %v622_v56, %v618_v23  ;;  %v709_v25 = vadd.f32 %v706_v12, %v696_v37  ;;  %v749_v60 = vrot.slane %v745_v55, 1  ;;  %v750_v63 = vrot.slane %v6461_v24, 1 }
  0x99   : > { %v738_v43 = vsel %vm133_vm0, %v736_v48, %v737_v44  ;;  %v665_v33 = vadd.f32 %v661_v14, %v10216_v58  ;;  %v727_v52 = vmul.f32 %v5983_v47, %v10220_v22  ;;  %v765_v59 = vmul.f32 %v5873_v2, %v6213_v18 }
  0x9a   : > { %v637_v35 = vadd.f32 %v632_v54, %v624_v40  ;;  %v722_v56 = vadd.f32 %v719_v3, %v709_v25  ;;  %v751_v27 = vsel %vm133_vm0, %v749_v60, %v750_v63  ;;  %v773_v10 = vmul.f32 %v6224_v53, %v5867_v0  ;;  %v10227_v25 = vld [vmem:[#allocation27_spill] sm:$0xff] }
  0x9b   : > { %v678_v19 = vadd.f32 %v673_v62, %v665_v33  ;;  %v769_v58 = vadd.f32 %v765_v59, %v6221_v39  ;;  %v6487_v42 = vmul.f32 %v6224_v53, %v5870_v1  ;;  %v786_v50 = vmul.f32 %v5873_v2, %v10223_v28 }
  0x9c   : > { %v650_v5 = vadd.f32 %v645_v46, %v637_v35  ;;  %v728_v54 = vadd.f32 %v726_v17, %v722_v56  ;;  %v777_v41 = vrot.slane %v773_v10, 1  ;;  %v6495_v7 = vmul.f32 %v5885_v6, %v10223_v28 }
  0x9d   : > { %v691_v0 = vadd.f32 %v686_v26, %v678_v19  ;;  %v778_v62 = vrot.slane %v6487_v42, 1  ;;  %v790_v38 = vrot.slane %v786_v50, 1  ;;  %v799_v1 = vmul.f32 %v5923_v21, %v6237_v20  ;;  %v10225_v26 = vld [vmem:[#allocation25_spill] sm:$0xff] }
  0x9e   : > { %v652_v53 = vmax.f32 %v650_v5, 0.0  ;;  %v741_v61 = vadd.f32 %v738_v43, %v728_v54  ;;  %v791_v2 = vrot.slane %v6495_v7, 1  ;;  %v805_v46 = vmul.f32 %v5899_v11, %v10224_v9 }
  0x9f   : > { %v697_v49 = vadd.f32 %v695_v13, %v691_v0  ;;  %v779_v57 = vsel %vm133_vm0, %v777_v41, %v778_v62  ;;  %v6506_v22 = vmul.f32 %v5908_v16, %v10224_v9  ;;  %v818_v17 = vmul.f32 %v5923_v21, %v10225_v26  ;;  %v10226_v13 = vld [vmem:[#allocation26_spill] sm:$0xff] }
  0xa0   : > { %5142 = vst [vmem:[%s6090_s16 + $0x418] sm:$0x1f] %v652_v53  ;;  %v754_v12 = vadd.f32 %v751_v27, %v741_v61  ;;  %v782_v3 = vadd.f32 %v779_v57, %v769_v58  ;;  %v792_v51 = vsel %vm133_vm0, %v790_v38, %v791_v2  ;;  %v809_v29 = vrot.slane %v805_v46, 1  ;;  %v10228_v27 = vld [vmem:[#allocation28_spill] sm:$0xff] }
  0xa1   : > { %v710_v23 = vadd.f32 %v705_v15, %v697_v49  ;;  %v810_v37 = vrot.slane %v6506_v22, 1  ;;  %v6521_v4 = vmul.f32 %v5974_v45, %v10225_v26  ;;  %v822_v55 = vrot.slane %v818_v17, 1  ;;  %v6607_v26 = vld [vmem:[%s5864_s17 + $0x1d0] sm:$0xff] }
  0xa2   : > { %v756_v48 = vmax.f32 %v754_v12, 0.0  ;;  %v795_v14 = vadd.f32 %v792_v51, %v782_v3  ;;  %v831_v40 = vmul.f32 %v5944_v31, %v10226_v13  ;;  %v837_v60 = vmul.f32 %v5941_v30, %v10227_v25 }
  0xa3   : > { %v723_v15 = vadd.f32 %v718_v8, %v710_v23  ;;  %v811_v43 = vsel %vm133_vm0, %v809_v29, %v810_v37  ;;  %v823_v33 = vrot.slane %v6521_v4, 1  ;;  %v6541_v59 = vmul.f32 %v5959_v36, %v10227_v25  ;;  %v6661_v25 = vld [vmem:[%s5864_s17 + $0x2b0] sm:$0xff] }
  0xa4   : > { %5154 = vst [vmem:[%s6090_s16 + $0x4e0] sm:$0xff] %v756_v48  ;;  %v801_v35 = vadd.f32 %v799_v1, %v795_v14  ;;  %v841_v56 = vrot.slane %v837_v60, 1  ;;  %v850_v10 = vmul.f32 %v5944_v31, %v10228_v27  ;;  %v6548_v34 = vmul.f32 %v5983_v47, %v10228_v27 }
  0xa5   : > { %v729_v8 = vadd.f32 %v727_v52, %v723_v15  ;;  %v824_v19 = vsel %vm133_vm0, %v822_v55, %v823_v33  ;;  %v842_v58 = vrot.slane %v6541_v59, 1  ;;  %v766_v42 = vmul.f32 %v5885_v6, %v6213_v18 }
  0xa6   : > { %v814_v28 = vadd.f32 %v811_v43, %v801_v35  ;;  %v854_v50 = vrot.slane %v850_v10, 1  ;;  %v855_v5 = vrot.slane %v6548_v34, 1  ;;  %v800_v54 = vmul.f32 %v5974_v45, %v6237_v20 }
  0xa7   : > { %v742_v52 = vadd.f32 %v737_v44, %v729_v8  ;;  %v843_v6 = vsel %vm133_vm0, %v841_v56, %v842_v58  ;;  %v770_v18 = vadd.f32 %v766_v42, %v6221_v39  ;;  %v832_v41 = vmul.f32 %v5983_v47, %v10226_v13 }
  0xa8   : > { %v827_v20 = vadd.f32 %v824_v19, %v814_v28  ;;  %v856_v0 = vsel %vm133_vm0, %v854_v50, %v855_v5  ;;  %v6577_v38 = vstv %s6514_s27  ;;  %v6580_v32 = vstv %s6516_s28  ;;  %s6811_s27 = sld [smem:[#allocation3 + $0x17]]  ;;  %s6832_s28 = sld [smem:[#allocation3 + $0x19]] }
  0xa9   : > { %v755_v39 = vadd.f32 %v750_v63, %v742_v52  ;;  %v783_v44 = vadd.f32 %v778_v62, %v770_v18  ;;  %v870_v47 = vmul.f32 %v5899_v11, %v6577_v38  ;;  %v6591_v1 = vstv %s6523_s29  ;;  %v6690_v52 = vld [vmem:[%s5864_s17 + $0x18] sm:$0x3f]  ;;  %s6848_s29 = sld [smem:[#allocation3 + $0x1a]] }
  0xaa   : > { %v833_v53 = vadd.f32 %v831_v40, %v827_v20  ;;  %v878_v61 = vmul.f32 %v5923_v21, %v6591_v1  ;;  %v6596_v9 = vstv %s6529_s30  ;;  %v6599_v46 = vstv %s6531_s6  ;;  %v6700_v20 = vld [vmem:[%s5864_s17 + $0xf8] sm:$0x3f]  ;;  %s6883_s30 = sld [smem:[#allocation3 + $0x1b]] }
  0xab   : > { %v757_v49 = vmax.f32 %v755_v39, 0.0  ;;  %v796_v24 = vadd.f32 %v791_v2, %v783_v44  ;;  %v874_v63 = vadd.f32 %v6580_v32, %v870_v47  ;;  %v884_v62 = vmul.f32 %v5899_v11, %v6596_v9  ;;  %s6885_s6 = sld [smem:[#allocation5 + $0x3]] }
  0xac   : > { %v846_v57 = vadd.f32 %v843_v6, %v833_v53  ;;  %v6611_v21 = vmul.f32 %v5908_v16, %v6596_v9  ;;  %v897_v17 = vmul.f32 %v5941_v30, %v6599_v46  ;;  %v6616_v12 = vstv %s6550_s7  ;;  %s6894_s7 = sld [smem:[#allocation3 + $0x1c]] }
  0xad   : > { %5155 = vst [vmem:[%s6090_s16 + $0x4e8] sm:$0x1f] %v757_v49  ;;  %v802_v7 = vadd.f32 %v800_v54, %v796_v24  ;;  %v880_v2 = vadd.f32 %v878_v61, %v874_v63  ;;  %v888_v3 = vrot.slane %v884_v62, 1  ;;  %v903_v11 = vmul.f32 %v5944_v31, %v6616_v12  ;;  %v6721_v49 = vld [vmem:[%s5864_s17 + $0x1c0] sm:$0xff] }
  0xae   : > { %v859_v51 = vadd.f32 %v856_v0, %v846_v57  ;;  %v889_v29 = vrot.slane %v6611_v21, 1  ;;  %v6623_v23 = vstv %s6561_s8  ;;  %v6626_v16 = vstv %s6563_s9  ;;  %s6896_s8 = sld [smem:[#allocation3 + $0x1d]]  ;;  %s6899_s9 = sld [smem:[#allocation3 + $0x1e]] }
  0xaf   : > { %v815_v55 = vadd.f32 %v810_v37, %v802_v7  ;;  %v909_v48 = vmul.f32 %v5941_v30, %v6623_v23  ;;  %v6636_v31 = vmul.f32 %v5959_v36, %v6623_v23  ;;  %v922_v14 = vmul.f32 %v6607_v26, %v6626_v16  ;;  %v6658_v36 = vld [vmem:[%s5864_s17 + $0x1d8] sm:$0x3f] }
  0xb0   : > { %v861_v13 = vmax.f32 %v859_v51, 0.0  ;;  %v890_v22 = vsel %vm133_vm0, %v888_v3, %v889_v29  ;;  %v6646_v37 = vstv %s6582_s10  ;;  %v6649_v40 = vstv %s6584_s3  ;;  %s6918_s10 = sld [smem:[#allocation3 + $0x1f]]  ;;  %s6920_s3 = sld [smem:[#allocation3 + $0x20]] }
  0xb1   : > { %v828_v30 = vadd.f32 %v823_v33, %v815_v55  ;;  %v893_v60 = vadd.f32 %v890_v22, %v880_v2  ;;  %v913_v15 = vrot.slane %v909_v48, 1  ;;  %v914_v43 = vrot.slane %v6636_v31, 1  ;;  %v6674_v33 = vld [vmem:[%s5864_s17 + $0x1c8] sm:$0x3f]  ;;  %v6741_v2 = vld [vmem:[%s5864_s17 + $0x2a0] sm:$0xff]  ;;  %v6750_v55 = vld [vmem:[%s5864_s17 + $0x10] sm:$0xff] }
  0xb2   : > { %5167 = vst [vmem:[%s6090_s16 + $0x5b0] sm:$0xff] %v861_v13  ;;  %v928_v35 = vmul.f32 %v6661_v25, %v6646_v37  ;;  %v934_v56 = vmul.f32 %v6607_v26, %v6649_v40  ;;  %v6671_v4 = vmul.f32 %v6658_v36, %v6649_v40  ;;  %v871_v27 = vmul.f32 %v6674_v33, %v6577_v38 }
  0xb3   : > { %v834_v10 = vadd.f32 %v832_v41, %v828_v30  ;;  %v899_v8 = vadd.f32 %v897_v17, %v893_v60  ;;  %v915_v19 = vsel %vm133_vm0, %v913_v15, %v914_v43  ;;  %v879_v42 = vmul.f32 %v5974_v45, %v6591_v1  ;;  %v6697_v41 = vld [vmem:[%s5864_s17 + $0x2b8] sm:$0x3f] }
  0xb4   : > { %v938_v28 = vrot.slane %v934_v56, 1  ;;  %v939_v50 = vrot.slane %v6671_v4, 1  ;;  %v875_v54 = vadd.f32 %v6580_v32, %v871_v27  ;;  %v898_v6 = vmul.f32 %v6690_v52, %v6599_v46  ;;  %v6762_v27 = vld [vmem:[%s5864_s17 + $0xf0] sm:$0xff] }
  0xb5   : > { %v847_v18 = vadd.f32 %v842_v58, %v834_v10  ;;  %v905_v45 = vadd.f32 %v903_v11, %v899_v8  ;;  %v904_v0 = vmul.f32 %v6700_v20, %v6616_v12  ;;  %v923_v39 = vmul.f32 %v6658_v36, %v6626_v16 }
  0xb6   : > { %v940_v59 = vsel %vm133_vm0, %v938_v28, %v939_v50  ;;  %v881_v58 = vadd.f32 %v879_v42, %v875_v54  ;;  %v929_v44 = vmul.f32 %v6697_v41, %v6646_v37  ;;  %v6714_v47 = vstv %s6628_s11  ;;  %s6938_s11 = sld [smem:[#allocation3 + $0x21]] }
  0xb7   : > { %v860_v53 = vadd.f32 %v855_v5, %v847_v18  ;;  %v918_v61 = vadd.f32 %v915_v19, %v905_v45  ;;  %v954_v24 = vmul.f32 %v6721_v49, %v6714_v47  ;;  %v6726_v63 = vstv %s6640_s12  ;;  %s6940_s12 = sld [smem:[#allocation3 + $0x22]] }
  0xb8   : > { %v894_v62 = vadd.f32 %v889_v29, %v881_v58  ;;  %v6729_v57 = vstv %s6642_s14  ;;  %v6732_v21 = vstv %s6651_s15  ;;  %v6735_v17 = vstv %s6653_s13  ;;  %s6956_s14 = sld [smem:[#allocation3 + $0x23]] }
  0xb9   : > { %v862_v34 = vmax.f32 %v860_v53, 0.0  ;;  %v924_v5 = vadd.f32 %v922_v14, %v918_v61  ;;  %v958_v7 = vadd.f32 %v6726_v63, %v954_v24  ;;  %v962_v3 = vmul.f32 %v6741_v2, %v6729_v57 }
  0xba   : > { %v900_v11 = vadd.f32 %v898_v6, %v894_v62  ;;  %v968_v51 = vmul.f32 %v6721_v49, %v6732_v21  ;;  %v969_v29 = vmul.f32 %v6674_v33, %v6732_v21  ;;  %v981_v48 = vmul.f32 %v6750_v55, %v6735_v17 }
  0xbb   : > { %5168 = vst [vmem:[%s6090_s16 + $0x5b8] sm:$0x1f] %v862_v34  ;;  %v930_v14 = vadd.f32 %v928_v35, %v924_v5  ;;  %v964_v13 = vadd.f32 %v962_v3, %v958_v7  ;;  %v6756_v22 = vstv %s6683_s18  ;;  %v6759_v30 = vstv %s6685_s19  ;;  %v6815_v3 = vld [vmem:[%s5864_s17 + $0x2a8] sm:$0x3f]  ;;  %s6830_s17 = sld [smem:[#allocation3 + $0x18]] }
  0xbc   : > { %v906_v60 = vadd.f32 %v904_v0, %v900_v11  ;;  %v972_v15 = vrot.slane %v968_v51, 1  ;;  %v973_v56 = vrot.slane %v969_v29, 1  ;;  %v987_v10 = vmul.f32 %v6762_v27, %v6756_v22 }
  0xbd   : > { %v943_v8 = vadd.f32 %v940_v59, %v930_v14  ;;  %v993_v19 = vmul.f32 %v6750_v55, %v6759_v30  ;;  %v6770_v35 = vmul.f32 %v6690_v52, %v6759_v30  ;;  %v6773_v42 = vstv %s6706_s20  ;;  %s7282_s20 = smov (%p70_p6), 0  }
  0xbe   : > { %v919_v28 = vadd.f32 %v914_v43, %v906_v60  ;;  %v974_v54 = vsel %vm133_vm0, %v972_v15, %v973_v56  ;;  %v1006_v6 = vmul.f32 %v6607_v26, %v6773_v42  ;;  %v6785_v18 = vstv %s6716_s21 }
  0xbf   : > { %v945_v45 = vmax.f32 %v943_v8, 0.0  ;;  %v977_v0 = vadd.f32 %v974_v54, %v964_v13  ;;  %v997_v59 = vrot.slane %v993_v19, 1  ;;  %v998_v58 = vrot.slane %v6770_v35, 1 }
  0xc0   : > { %v925_v31 = vadd.f32 %v923_v39, %v919_v28  ;;  %v1012_v43 = vmul.f32 %v6661_v25, %v6785_v18  ;;  %v6797_v53 = vstv %s6737_s22  ;;  %v955_v61 = vmul.f32 %v6674_v33, %v6714_v47 }
  0xc1   : > { %5178 = vst [vmem:[%s6090_s16 + $0x680] sm:$0xff] %v945_v45  ;;  %v983_v24 = vadd.f32 %v981_v48, %v977_v0  ;;  %v999_v62 = vsel %vm133_vm0, %v997_v59, %v998_v58  ;;  %v1018_v34 = vmul.f32 %v6607_v26, %v6797_v53  ;;  %v6807_v5 = vmul.f32 %v6658_v36, %v6797_v53 }
  0xc2   : > { %v931_v39 = vadd.f32 %v929_v44, %v925_v31  ;;  %v959_v7 = vadd.f32 %v6726_v63, %v955_v61  ;;  %v963_v11 = vmul.f32 %v6815_v3, %v6729_v57  ;;  %v982_v51 = vmul.f32 %v6690_v52, %v6735_v17 }
  0xc3   : > { %v989_v29 = vadd.f32 %v987_v10, %v983_v24  ;;  %v1022_v48 = vrot.slane %v1018_v34, 1  ;;  %v1023_v14 = vrot.slane %v6807_v5, 1  ;;  %v988_v44 = vmul.f32 %v6700_v20, %v6756_v22 }
  0xc4   : > { %v944_v13 = vadd.f32 %v939_v50, %v931_v39  ;;  %v965_v60 = vadd.f32 %v963_v11, %v959_v7  ;;  %v1007_v15 = vmul.f32 %v6658_v36, %v6773_v42  ;;  %v1013_v8 = vmul.f32 %v6697_v41, %v6785_v18 }
  0xc5   : > { %v1002_v10 = vadd.f32 %v999_v62, %v989_v29  ;;  %v1024_v4 = vsel %vm133_vm0, %v1022_v48, %v1023_v14  ;;  %v6838_v50 = vstv %s6775_s23  ;;  %v6841_v19 = vstv %s6777_s24 }
  0xc6   : > { %10229 = vst [vmem:[#allocation13_spill] sm:$0xff] %v6841_v19  ;;  %v946_v35 = vmax.f32 %v944_v13, 0.0  ;;  %v978_v28 = vadd.f32 %v973_v56, %v965_v60  ;;  %v1038_v54 = vmul.f32 %v6721_v49, %v6838_v50  ;;  %v6846_v45 = vstv %s6787_s25 }
  0xc7   : > { %10230 = vst [vmem:[#allocation15_spill] sm:$0xff] %v6846_v45  ;;  %v1008_v0 = vadd.f32 %v1006_v6, %v1002_v10  ;;  %v1046_v59 = vmul.f32 %v6741_v2, %v6846_v45  ;;  %v6853_v31 = vstv %s6789_s26  ;;  %v6856_v61 = vstv %s6792_s2 }
  0xc8   : > { %10231 = vst [vmem:[#allocation16_spill] sm:$0xff] %v6853_v31  ;;  %10232 = vst [vmem:[#allocation14_spill] sm:$0xff] %v6856_v61  ;;  %v984_v24 = vadd.f32 %v982_v51, %v978_v28  ;;  %v1042_v56 = vadd.f32 %v6841_v19, %v1038_v54  ;;  %v1052_v62 = vmul.f32 %v6721_v49, %v6853_v31  ;;  %v6869_v7 = vstv %s6809_s1 }
  0xc9   : > { %5179 = vst [vmem:[%s6090_s16 + $0x688] sm:$0x1f] %v946_v35  ;;  %v6864_v34 = vmul.f32 %v6674_v33, %v6853_v31  ;;  %v1014_v39 = vadd.f32 %v1012_v43, %v1008_v0  ;;  %v1065_v6 = vmul.f32 %v6750_v55, %v6856_v61  ;;  %10233 = vst [vmem:[#allocation17_spill] sm:$0xff] %v6869_v7  ;;  %v6872_v11 = vstv %s6811_s27 }
  0xca   : > { %10234 = vst [vmem:[#allocation18_spill] sm:$0xff] %v6872_v11  ;;  %v990_v51 = vadd.f32 %v988_v44, %v984_v24  ;;  %v1048_v29 = vadd.f32 %v1046_v59, %v1042_v56  ;;  %v1056_v48 = vrot.slane %v1052_v62, 1  ;;  %v1071_v10 = vmul.f32 %v6762_v27, %v6869_v7 }
  0xcb   : > { %v1057_v13 = vrot.slane %v6864_v34, 1  ;;  %v1027_v60 = vadd.f32 %v1024_v4, %v1014_v39  ;;  %v1077_v43 = vmul.f32 %v6750_v55, %v6872_v11  ;;  %v6881_v35 = vmul.f32 %v6690_v52, %v6872_v11 }
  0xcc   : > { %v1003_v44 = vadd.f32 %v998_v58, %v990_v51  ;;  %v6889_v4 = vstv %s6830_s17  ;;  %v6892_v54 = vstv %s6832_s28  ;;  %v6906_v39 = vstv %s6848_s29 }
  0xcd   : > { %v1058_v28 = vsel %vm133_vm0, %v1056_v48, %v1057_v13  ;;  %10235 = vst [vmem:[#allocation19_spill] sm:$0xff] %v6889_v4  ;;  %10236 = vst [vmem:[#allocation20_spill] sm:$0xff] %v6892_v54  ;;  %v1029_v0 = vmax.f32 %v1027_v60, 0.0  ;;  %v1081_v24 = vrot.slane %v1077_v43, 1  ;;  %v10158_v56 = vrot.slane %v6881_v35, 1 }
  0xce   : > { %v1061_v59 = vadd.f32 %v1058_v28, %v1048_v29  ;;  %v1009_v62 = vadd.f32 %v1007_v15, %v1003_v44  ;;  %v1090_v58 = vmul.f32 %v6607_v26, %v6889_v4  ;;  %v1096_v34 = vmul.f32 %v6661_v25, %v6892_v54  ;;  %10237 = vst [vmem:[#allocation21_spill] sm:$0xff] %v6906_v39 }
  0xcf   : > { %5191 = vst [vmem:[%s6090_s16 + $0x750] sm:$0xff] %v1029_v0  ;;  %v1083_v29 = vsel %vm133_vm0, %v1081_v24, %v10158_v56  ;;  %v1102_v48 = vmul.f32 %v6607_v26, %v6906_v39  ;;  %v6916_v15 = vmul.f32 %v6658_v36, %v6906_v39  ;;  %v1047_v43 = vmul.f32 %v6815_v3, %v6846_v45 }
  0xd0   : > { %v1067_v51 = vadd.f32 %v1065_v6, %v1061_v59  ;;  %v1015_v60 = vadd.f32 %v1013_v8, %v1009_v62  ;;  %v1039_v6 = vmul.f32 %v6674_v33, %v6838_v50  ;;  %v1066_v44 = vmul.f32 %v6690_v52, %v6856_v61 }
  0xd1   : > { %v1106_v0 = vrot.slane %v1102_v48, 1  ;;  %v10163_v59 = vrot.slane %v6916_v15, 1  ;;  %v1072_v24 = vmul.f32 %v6700_v20, %v6869_v7  ;;  %v1091_v56 = vmul.f32 %v6658_v36, %v6889_v4 }
  0xd2   : > { %v1073_v28 = vadd.f32 %v1071_v10, %v1067_v51  ;;  %v1028_v8 = vadd.f32 %v1023_v14, %v1015_v60  ;;  %v1043_v62 = vadd.f32 %v6841_v19, %v1039_v6  ;;  %v1097_v10 = vmul.f32 %v6697_v41, %v6892_v54 }
  0xd3   : > { %v1108_v5 = vsel %vm133_vm0, %v1106_v0, %v10163_v59  ;;  %v6946_v14 = vstv %s6883_s30  ;;  %v6949_v48 = vstv %s6885_s6  ;;  %v6954_v54 = vstv %s6894_s7 }
  0xd4   : > { %v1086_v51 = vadd.f32 %v1083_v29, %v1073_v28  ;;  %10238 = vst [vmem:[#allocation22_spill] sm:$0xff] %v6949_v48  ;;  %v1030_v60 = vmax.f32 %v1028_v8, 0.0  ;;  %v1049_v6 = vadd.f32 %v1047_v43, %v1043_v62  ;;  %v1122_v39 = vmul.f32 %v6721_v49, %v6946_v14 }
  0xd5   : > { %v1130_v28 = vmul.f32 %v6741_v2, %v6954_v54  ;;  %v6961_v0 = vstv %s6896_s8  ;;  %v6964_v59 = vstv %s6899_s9  ;;  %v6975_v11 = vstv %s6918_s10 }
  0xd6   : > { %v1092_v29 = vadd.f32 %v1090_v58, %v1086_v51  ;;  %10239 = vst [vmem:[#allocation23_spill] sm:$0xff] %v6961_v0  ;;  %10240 = vst [vmem:[#allocation24_spill] sm:$0xff] %v6964_v59  ;;  %v1062_v8 = vadd.f32 %v1057_v13, %v1049_v6  ;;  %v1126_v43 = vadd.f32 %v6949_v48, %v1122_v39  ;;  %v6978_v7 = vstv %s6920_s3 }
  0xd7   : > { %5192 = vst [vmem:[%s6090_s16 + $0x758] sm:$0x1f] %v1030_v60  ;;  %v1136_v62 = vmul.f32 %v6721_v49, %v6961_v0  ;;  %v1137_v4 = vmul.f32 %v6674_v33, %v6961_v0  ;;  %v1149_v51 = vmul.f32 %v6750_v55, %v6964_v59  ;;  %10241 = vst [vmem:[#allocation25_spill] sm:$0xff] %v6975_v11 }
  0xd8   : > { %v1098_v58 = vadd.f32 %v1096_v34, %v1092_v29  ;;  %10242 = vst [vmem:[#allocation26_spill] sm:$0xff] %v6978_v7  ;;  %v1068_v60 = vadd.f32 %v1066_v44, %v1062_v8  ;;  %v1132_v13 = vadd.f32 %v1130_v28, %v1126_v43  ;;  %v1155_v19 = vmul.f32 %v6762_v27, %v6975_v11 }
  0xd9   : > { %v1140_v6 = vrot.slane %v1136_v62, 1  ;;  %v1141_v39 = vrot.slane %v1137_v4, 1  ;;  %v1161_v34 = vmul.f32 %v6750_v55, %v6978_v7  ;;  %v6986_v29 = vmul.f32 %v6690_v52, %v6978_v7 }
  0xda   : > { %v1111_v61 = vadd.f32 %v1108_v5, %v1098_v58  ;;  %v1074_v0 = vadd.f32 %v1072_v24, %v1068_v60  ;;  %v6990_v44 = vstv %s6938_s11  ;;  %v6993_v28 = vstv %s6940_s12 }
  0xdb   : > { %v1142_v31 = vsel %vm133_vm0, %v1140_v6, %v1141_v39  ;;  %10243 = vst [vmem:[#allocation27_spill] sm:$0xff] %v6990_v44  ;;  %10244 = vst [vmem:[#allocation28_spill] sm:$0xff] %v6993_v28  ;;  %v1165_v8 = vrot.slane %v1161_v34, 1  ;;  %v1166_v43 = vrot.slane %v6986_v29, 1  ;;  %v10245_v62 = vrot.slane %v6881_v35, 1 }
  0xdc   : > { %v1113_v4 = vmax.f32 %v1111_v61, 0.0  ;;  %v1145_v5 = vadd.f32 %v1142_v31, %v1132_v13  ;;  %v1174_v45 = vmul.f32 %v6607_v26, %v6990_v44  ;;  %v1180_v24 = vmul.f32 %v6661_v25, %v6993_v28 }
  0xdd   : > { %v1087_v58 = vadd.f32 %v10245_v62, %v1074_v0  ;;  %v7003_v60 = vstv %s6956_s14  ;;  %v1167_v7 = vsel %vm133_vm0, %v1165_v8, %v1166_v43  ;;  %v1123_v0 = vmul.f32 %v6674_v33, %v6946_v14 }
  0xde   : > { %10246 = vst [vmem:[#allocation29_spill] sm:$0xff] %v7003_v60  ;;  %5204 = vst [vmem:[%s6090_s16 + $0x820] sm:$0xff] %v1113_v4  ;;  %v1151_v6 = vadd.f32 %v1149_v51, %v1145_v5  ;;  %v1186_v31 = vmul.f32 %v6607_v26, %v7003_v60  ;;  %v7011_v61 = vmul.f32 %v6658_v36, %v7003_v60 }
  0xdf   : > { %v1093_v35 = vadd.f32 %v1091_v56, %v1087_v58  ;;  %v1131_v13 = vmul.f32 %v6815_v3, %v6954_v54  ;;  %v1150_v34 = vmul.f32 %v6690_v52, %v6964_v59  ;;  %v1156_v5 = vmul.f32 %v6700_v20, %v6975_v11 }
  0xe0   : > { %v1157_v51 = vadd.f32 %v1155_v19, %v1151_v6  ;;  %v1190_v29 = vrot.slane %v1186_v31, 1  ;;  %v10186_v4 = vrot.slane %v7011_v61, 1  ;;  %v1127_v62 = vadd.f32 %v6949_v48, %v1123_v0 }
  0xe1   : > { %v1099_v8 = vadd.f32 %v1097_v10, %v1093_v35  ;;  %v1175_v56 = vmul.f32 %v6658_v36, %v6990_v44  ;;  %v1181_v58 = vmul.f32 %v6697_v41, %v6993_v28  ;;  %v1206_v6 = vmul.f32 %v6741_v2, %v6577_v38 }
  0xe2   : > { %v1170_v60 = vadd.f32 %v1167_v7, %v1157_v51  ;;  %v1192_v19 = vsel %vm133_vm0, %v1190_v29, %v10186_v4  ;;  %v1214_v31 = vmul.f32 %v6721_v49, %v6591_v1  ;;  %v10247_v10 = vrot.slane %v6916_v15, 1 }
  0xe3   : > { %v1133_v0 = vadd.f32 %v1131_v13, %v1127_v62  ;;  %v1215_v44 = vmul.f32 %v6674_v33, %v6591_v1  ;;  %v1227_v7 = vmul.f32 %v6741_v2, %v6596_v9  ;;  %v1210_v29 = vadd.f32 %v1206_v6, %v6580_v32 }
  0xe4   : > { %v1112_v35 = vadd.f32 %v10247_v10, %v1099_v8  ;;  %v1176_v51 = vadd.f32 %v1174_v45, %v1170_v60  ;;  %v1218_v4 = vrot.slane %v1214_v31, 1  ;;  %v1228_v28 = vmul.f32 %v6815_v3, %v6596_v9 }
  0xe5   : > { %v1146_v59 = vadd.f32 %v1141_v39, %v1133_v0  ;;  %v1219_v48 = vrot.slane %v1215_v44, 1  ;;  %v1231_v15 = vrot.slane %v1227_v7, 1  ;;  %v1240_v13 = vmul.f32 %v6762_v27, %v6599_v46 }
  0xe6   : > { %v1114_v11 = vmax.f32 %v1112_v35, 0.0  ;;  %v1182_v8 = vadd.f32 %v1180_v24, %v1176_v51  ;;  %v1232_v10 = vrot.slane %v1228_v28, 1  ;;  %v1246_v1 = vmul.f32 %v6750_v55, %v6616_v12 }
  0xe7   : > { %v1152_v45 = vadd.f32 %v1150_v34, %v1146_v59  ;;  %v1220_v60 = vsel %vm133_vm0, %v1218_v4, %v1219_v48  ;;  %v7051_v62 = vmul.f32 %v6690_v52, %v6616_v12  ;;  %v1259_v9 = vmul.f32 %v6762_v27, %v6623_v23 }
  0xe8   : > { %5205 = vst [vmem:[%s6090_s16 + $0x828] sm:$0x1f] %v1114_v11  ;;  %v1195_v39 = vadd.f32 %v1192_v19, %v1182_v8  ;;  %v1223_v44 = vadd.f32 %v1220_v60, %v1210_v29  ;;  %v1233_v28 = vsel %vm133_vm0, %v1231_v15, %v1232_v10  ;;  %v1250_v24 = vrot.slane %v1246_v1, 1 }
  0xe9   : > { %v1158_v6 = vadd.f32 %v1156_v5, %v1152_v45  ;;  %v1251_v31 = vrot.slane %v7051_v62, 1  ;;  %v7059_v11 = vmul.f32 %v6700_v20, %v6623_v23  ;;  %v1263_v59 = vrot.slane %v1259_v9, 1 }
  0xea   : > { %v1197_v34 = vmax.f32 %v1195_v39, 0.0  ;;  %v1236_v12 = vadd.f32 %v1233_v28, %v1223_v44  ;;  %v1272_v4 = vmul.f32 %v6661_v25, %v6626_v16  ;;  %v1278_v19 = vmul.f32 %v6607_v26, %v6646_v37 }
  0xeb   : > { %v1171_v35 = vadd.f32 %v1166_v43, %v1158_v6  ;;  %v1252_v0 = vsel %vm133_vm0, %v1250_v24, %v1251_v31  ;;  %v1264_v5 = vrot.slane %v7059_v11, 1  ;;  %v7069_v7 = vmul.f32 %v6658_v36, %v6646_v37 }
  0xec   : > { %5217 = vst [vmem:[%s6090_s16 + $0x8f0] sm:$0xff] %v1197_v34  ;;  %v1242_v23 = vadd.f32 %v1240_v13, %v1236_v12  ;;  %v1282_v51 = vrot.slane %v1278_v19, 1  ;;  %v1291_v29 = vmul.f32 %v6661_v25, %v6649_v40  ;;  %v7076_v15 = vmul.f32 %v6697_v41, %v6649_v40 }
  0xed   : > { %v1177_v8 = vadd.f32 %v1175_v56, %v1171_v35  ;;  %v1265_v43 = vsel %vm133_vm0, %v1263_v59, %v1264_v5  ;;  %v1283_v1 = vrot.slane %v7069_v7, 1  ;;  %v1207_v45 = vmul.f32 %v6815_v3, %v6577_v38 }
  0xee   : > { %v1255_v37 = vadd.f32 %v1252_v0, %v1242_v23  ;;  %v1295_v60 = vrot.slane %v1291_v29, 1  ;;  %v1296_v13 = vrot.slane %v7076_v15, 1  ;;  %v1241_v62 = vmul.f32 %v6700_v20, %v6599_v46 }
  0xef   : > { %v1183_v9 = vadd.f32 %v1181_v58, %v1177_v8  ;;  %v1284_v40 = vsel %vm133_vm0, %v1282_v51, %v1283_v1  ;;  %v1211_v56 = vadd.f32 %v1207_v45, %v6580_v32  ;;  %v1273_v39 = vmul.f32 %v6697_v41, %v6626_v16 }
  0xf0   : > { %v1268_v44 = vadd.f32 %v1265_v43, %v1255_v37  ;;  %v1297_v38 = vsel %vm133_vm0, %v1295_v60, %v1296_v13  ;;  %v1311_v28 = vmul.f32 %v6741_v2, %v6714_v47  ;;  %v1319_v46 = vmul.f32 %v6721_v49, %v6729_v57 }
  0xf1   : > { %v10248_v58 = vrot.slane %v7011_v61, 1  ;;  %v1224_v6 = vadd.f32 %v1219_v48, %v1211_v56  ;;  %v1320_v32 = vmul.f32 %v6674_v33, %v6729_v57  ;;  %v1332_v16 = vmul.f32 %v6741_v2, %v6732_v21 }
  0xf2   : > { %v1274_v11 = vadd.f32 %v1272_v4, %v1268_v44  ;;  %v1315_v59 = vadd.f32 %v1311_v28, %v6726_v63  ;;  %v1323_v34 = vrot.slane %v1319_v46, 1  ;;  %v1333_v12 = vmul.f32 %v6815_v3, %v6732_v21 }
  0xf3   : > { %v1196_v24 = vadd.f32 %v10248_v58, %v1183_v9  ;;  %v1237_v35 = vadd.f32 %v1232_v10, %v1224_v6  ;;  %v1324_v0 = vrot.slane %v1320_v32, 1  ;;  %v1336_v61 = vrot.slane %v1332_v16, 1 }
  0xf4   : > { %v1287_v23 = vadd.f32 %v1284_v40, %v1274_v11  ;;  %v1337_v51 = vrot.slane %v1333_v12, 1  ;;  %v1345_v48 = vmul.f32 %v6762_v27, %v6735_v17  ;;  %v1351_v57 = vmul.f32 %v6750_v55, %v6756_v22 }
  0xf5   : > { %v1198_v19 = vmax.f32 %v1196_v24, 0.0  ;;  %v1243_v4 = vadd.f32 %v1241_v62, %v1237_v35  ;;  %v1325_v29 = vsel %vm133_vm0, %v1323_v34, %v1324_v0  ;;  %v7115_v8 = vmul.f32 %v6690_v52, %v6756_v22 }
  0xf6   : > { %v1364_v21 = vmul.f32 %v6762_v27, %v6759_v30  ;;  %v1300_v10 = vadd.f32 %v1297_v38, %v1287_v23  ;;  %v1328_v43 = vadd.f32 %v1325_v29, %v1315_v59  ;;  %v1338_v45 = vsel %vm133_vm0, %v1336_v61, %v1337_v51 }
  0xf7   : > { %5218 = vst [vmem:[%s6090_s16 + $0x8f8] sm:$0x1f] %v1198_v19  ;;  %v1355_v37 = vrot.slane %v1351_v57, 1  ;;  %v1256_v60 = vadd.f32 %v1251_v31, %v1243_v4  ;;  %v1356_v9 = vrot.slane %v7115_v8, 1  ;;  %v7123_v62 = vmul.f32 %v6700_v20, %v6759_v30  ;;  %v10251_v8 = vld [vmem:[#allocation13_spill] sm:$0xff] }
  0xf8   : > { %v1368_v40 = vrot.slane %v1364_v21, 1  ;;  %v1302_v56 = vmax.f32 %v1300_v10, 0.0  ;;  %v1341_v22 = vadd.f32 %v1338_v45, %v1328_v43  ;;  %v1377_v44 = vmul.f32 %v6661_v25, %v6773_v42 }
  0xf9   : > { %v1383_v38 = vmul.f32 %v6607_v26, %v6785_v18  ;;  %v1269_v28 = vadd.f32 %v1264_v5, %v1256_v60  ;;  %v1357_v46 = vsel %vm133_vm0, %v1355_v37, %v1356_v9  ;;  %v1369_v31 = vrot.slane %v7123_v62, 1 }
  0xfa   : > { %v7133_v58 = vmul.f32 %v6658_v36, %v6785_v18  ;;  %5228 = vst [vmem:[%s6090_s16 + $0x9c0] sm:$0xff] %v1302_v56  ;;  %v1347_v30 = vadd.f32 %v1345_v48, %v1341_v22  ;;  %v1396_v6 = vmul.f32 %v6661_v25, %v6797_v53  ;;  %v7140_v32 = vmul.f32 %v6697_v41, %v6797_v53  ;;  %v10249_v48 = vld [vmem:[#allocation15_spill] sm:$0xff]  ;;  %v10253_v56 = vld [vmem:[#allocation17_spill] sm:$0xff] }
  0xfb   : > { %v1387_v24 = vrot.slane %v1383_v38, 1  ;;  %v1275_v16 = vadd.f32 %v1273_v39, %v1269_v28  ;;  %v1370_v5 = vsel %vm133_vm0, %v1368_v40, %v1369_v31  ;;  %v1312_v59 = vmul.f32 %v6815_v3, %v6714_v47 }
  0xfc   : > { %v1388_v11 = vrot.slane %v7133_v58, 1  ;;  %v1360_v18 = vadd.f32 %v1357_v46, %v1347_v30  ;;  %v1400_v34 = vrot.slane %v1396_v6, 1  ;;  %v1401_v12 = vrot.slane %v7140_v32, 1  ;;  %v10254_v46 = vld [vmem:[#allocation18_spill] sm:$0xff] }
  0xfd   : > { %v1346_v19 = vmul.f32 %v6700_v20, %v6735_v17  ;;  %v1288_v35 = vadd.f32 %v1283_v1, %v1275_v16  ;;  %v1316_v39 = vadd.f32 %v1312_v59, %v6726_v63  ;;  %v1378_v61 = vmul.f32 %v6697_v41, %v6773_v42  ;;  %v10250_v42 = vld [vmem:[#allocation16_spill] sm:$0xff] }
  0xfe   : > { %v1389_v53 = vsel %vm133_vm0, %v1387_v24, %v1388_v11  ;;  %v1373_v47 = vadd.f32 %v1370_v5, %v1360_v18  ;;  %v1402_v23 = vsel %vm133_vm0, %v1400_v34, %v1401_v12  ;;  %v1416_v17 = vmul.f32 %v6741_v2, %v6838_v50 }
  0xff   : > { %v1424_v7 = vmul.f32 %v6721_v49, %v10249_v48  ;;  %v1301_v1 = vadd.f32 %v1296_v13, %v1288_v35  ;;  %v1329_v57 = vadd.f32 %v1324_v0, %v1316_v39  ;;  %v1425_v63 = vmul.f32 %v6674_v33, %v10249_v48  ;;  %v10252_v0 = vld [vmem:[#allocation14_spill] sm:$0xff] }
 0x100   : > { %v1437_v4 = vmul.f32 %v6741_v2, %v10250_v42  ;;  %v1379_v29 = vadd.f32 %v1377_v44, %v1373_v47  ;;  %v1420_v21 = vadd.f32 %v1416_v17, %v10251_v8  ;;  %v1438_v43 = vmul.f32 %v6815_v3, %v10250_v42  ;;  %v10256_v47 = vld [vmem:[#allocation20_spill] sm:$0xff] }
 0x101   : > { %v1428_v10 = vrot.slane %v1424_v7, 1  ;;  %v1303_v45 = vmax.f32 %v1301_v1, 0.0  ;;  %v1342_v37 = vadd.f32 %v1337_v51, %v1329_v57  ;;  %v1429_v60 = vrot.slane %v1425_v63, 1  ;;  %v10257_v63 = vld [vmem:[#allocation21_spill] sm:$0xff] }
 0x102   : > { %v1441_v15 = vrot.slane %v1437_v4, 1  ;;  %v1392_v13 = vadd.f32 %v1389_v53, %v1379_v29  ;;  %v1442_v62 = vrot.slane %v1438_v43, 1  ;;  %v1450_v40 = vmul.f32 %v6762_v27, %v10252_v0  ;;  %v10255_v53 = vld [vmem:[#allocation19_spill] sm:$0xff] }
 0x103   : > { %v1456_v22 = vmul.f32 %v6750_v55, %v10253_v56  ;;  %5229 = vst [vmem:[%s6090_s16 + $0x9c8] sm:$0x1f] %v1303_v45  ;;  %v1348_v44 = vadd.f32 %v1346_v19, %v1342_v37  ;;  %v1430_v38 = vsel %vm133_vm0, %v1428_v10, %v1429_v60  ;;  %v7181_v28 = vmul.f32 %v6690_v52, %v10253_v56 }
 0x104   : > { %v1469_v51 = vmul.f32 %v6762_v27, %v10254_v46  ;;  %v1405_v30 = vadd.f32 %v1402_v23, %v1392_v13  ;;  %v1433_v24 = vadd.f32 %v1430_v38, %v1420_v21  ;;  %v1443_v6 = vsel %vm133_vm0, %v1441_v15, %v1442_v62 }
 0x105   : > { %v1460_v16 = vrot.slane %v1456_v22, 1  ;;  %v1361_v5 = vadd.f32 %v1356_v9, %v1348_v44  ;;  %v1461_v59 = vrot.slane %v7181_v28, 1  ;;  %v7189_v18 = vmul.f32 %v6700_v20, %v10254_v46 }
 0x106   : > { %v1473_v34 = vrot.slane %v1469_v51, 1  ;;  %v1407_v19 = vmax.f32 %v1405_v30, 0.0  ;;  %v1446_v35 = vadd.f32 %v1443_v6, %v1433_v24  ;;  %v1482_v39 = vmul.f32 %v6661_v25, %v10255_v53  ;;  %v10259_v51 = vld [vmem:[#allocation22_spill] sm:$0xff] }
 0x107   : > { %v1488_v23 = vmul.f32 %v6607_v26, %v10256_v47  ;;  %v1374_v17 = vadd.f32 %v1369_v31, %v1361_v5  ;;  %v1462_v48 = vsel %vm133_vm0, %v1460_v16, %v1461_v59  ;;  %v1474_v9 = vrot.slane %v7189_v18, 1 }
 0x108   : > { %v7199_v7 = vmul.f32 %v6658_v36, %v10256_v47  ;;  %5241 = vst [vmem:[%s6090_s16 + $0xa90] sm:$0xff] %v1407_v19  ;;  %v1452_v1 = vadd.f32 %v1450_v40, %v1446_v35  ;;  %v1501_v42 = vmul.f32 %v6661_v25, %v10257_v63  ;;  %v7206_v4 = vmul.f32 %v6697_v41, %v10257_v63 }
 0x109   : > { %v1492_v57 = vrot.slane %v1488_v23, 1  ;;  %v1380_v29 = vadd.f32 %v1378_v61, %v1374_v17  ;;  %v1475_v31 = vsel %vm133_vm0, %v1473_v34, %v1474_v9  ;;  %v1417_v10 = vmul.f32 %v6815_v3, %v6838_v50 }
 0x10a   : > { %v1493_v21 = vrot.slane %v7199_v7, 1  ;;  %v1465_v43 = vadd.f32 %v1462_v48, %v1452_v1  ;;  %v1505_v45 = vrot.slane %v1501_v42, 1  ;;  %v1506_v37 = vrot.slane %v7206_v4, 1  ;;  %v10263_v42 = vld [vmem:[#allocation28_spill] sm:$0xff] }
 0x10b   : > { %v1451_v15 = vmul.f32 %v6700_v20, %v10252_v0  ;;  %v1393_v13 = vadd.f32 %v1388_v11, %v1380_v29  ;;  %v1421_v61 = vadd.f32 %v1417_v10, %v10251_v8  ;;  %v1483_v56 = vmul.f32 %v6697_v41, %v10255_v53  ;;  %v10258_v0 = vld [vmem:[#allocation23_spill] sm:$0xff]  ;;  %v10262_v53 = vld [vmem:[#allocation26_spill] sm:$0xff] }
 0x10c   : > { %v1494_v40 = vsel %vm133_vm0, %v1492_v57, %v1493_v21  ;;  %v1478_v22 = vadd.f32 %v1475_v31, %v1465_v43  ;;  %v1507_v50 = vsel %vm133_vm0, %v1505_v45, %v1506_v37  ;;  %v1521_v44 = vmul.f32 %v6741_v2, %v6946_v14  ;;  %v10264_v43 = vld [vmem:[#allocation29_spill] sm:$0xff] }
 0x10d   : > { %v1529_v38 = vmul.f32 %v6721_v49, %v6954_v54  ;;  %v1406_v58 = vadd.f32 %v1401_v12, %v1393_v13  ;;  %v1434_v11 = vadd.f32 %v1429_v60, %v1421_v61  ;;  %v1530_v8 = vmul.f32 %v6674_v33, %v6954_v54  ;;  %v10260_v60 = vld [vmem:[#allocation24_spill] sm:$0xff]  ;;  %v10261_v33 = vld [vmem:[#allocation25_spill] sm:$0xff] }
 0x10e   : > { %v1542_v28 = vmul.f32 %v6741_v2, %v10258_v0  ;;  %v1484_v46 = vadd.f32 %v1482_v39, %v1478_v22  ;;  %v1525_v30 = vadd.f32 %v1521_v44, %v10259_v51  ;;  %v1543_v6 = vmul.f32 %v6815_v3, %v10258_v0  ;;  %v10265_v22 = vld [vmem:[#allocation27_spill] sm:$0xff] }
 0x10f   : > { %v1533_v24 = vrot.slane %v1529_v38, 1  ;;  %v1408_v16 = vmax.f32 %v1406_v58, 0.0  ;;  %v1447_v49 = vadd.f32 %v1442_v62, %v1434_v11  ;;  %v1534_v5 = vrot.slane %v1530_v8, 1 }
 0x110   : > { %v1546_v32 = vrot.slane %v1542_v28, 1  ;;  %v1497_v12 = vadd.f32 %v1494_v40, %v1484_v46  ;;  %v1547_v18 = vrot.slane %v1543_v6, 1  ;;  %v1555_v34 = vmul.f32 %v6762_v27, %v10260_v60 }
 0x111   : > { %v1561_v54 = vmul.f32 %v6750_v55, %v10261_v33  ;;  %5242 = vst [vmem:[%s6090_s16 + $0xa98] sm:$0x1f] %v1408_v16  ;;  %v1453_v2 = vadd.f32 %v1451_v15, %v1447_v49  ;;  %v1535_v19 = vsel %vm133_vm0, %v1533_v24, %v1534_v5  ;;  %v1562_v35 = vmul.f32 %v6690_v52, %v10261_v33 }
 0x112   : > { %v1574_v62 = vmul.f32 %v6762_v27, %v10262_v53  ;;  %v1510_v39 = vadd.f32 %v1507_v50, %v1497_v12  ;;  %v1538_v47 = vadd.f32 %v1535_v19, %v1525_v30  ;;  %v1548_v23 = vsel %vm133_vm0, %v1546_v32, %v1547_v18 }
 0x113   : > { %v1565_v17 = vrot.slane %v1561_v54, 1  ;;  %v1466_v48 = vadd.f32 %v1461_v59, %v1453_v2  ;;  %v1566_v7 = vrot.slane %v1562_v35, 1  ;;  %v1575_v55 = vmul.f32 %v6700_v20, %v10262_v53 }
 0x114   : > { %v1578_v1 = vrot.slane %v1574_v62, 1  ;;  %v1512_v57 = vmax.f32 %v1510_v39, 0.0  ;;  %v1551_v63 = vadd.f32 %v1548_v23, %v1538_v47  ;;  %v1593_v52 = vmul.f32 %v6607_v26, %v10263_v42 }
 0x115   : > { %v1479_v4 = vadd.f32 %v1474_v9, %v1466_v48  ;;  %v1567_v27 = vsel %vm133_vm0, %v1565_v17, %v1566_v7  ;;  %v1579_v29 = vrot.slane %v1575_v55, 1  ;;  %v1594_v31 = vmul.f32 %v6658_v36, %v10263_v42 }
 0x116   : > { %5254 = vst [vmem:[%s6090_s16 + $0xb60] sm:$0xff] %v1512_v57  ;;  %v1557_v10 = vadd.f32 %v1555_v34, %v1551_v63  ;;  %v1597_v59 = vrot.slane %v1593_v52, 1  ;;  %v1606_v45 = vmul.f32 %v6661_v25, %v10264_v43  ;;  %v1607_v15 = vmul.f32 %v6697_v41, %v10264_v43 }
 0x117   : > { %v1485_v13 = vadd.f32 %v1483_v56, %v1479_v4  ;;  %v1580_v40 = vsel %vm133_vm0, %v1578_v1, %v1579_v29  ;;  %v1598_v26 = vrot.slane %v1594_v31, 1  ;;  %v1522_v9 = vmul.f32 %v6815_v3, %v6946_v14 }
 0x118   : > { %v1570_v61 = vadd.f32 %v1567_v27, %v1557_v10  ;;  %v1587_v36 = vmul.f32 %v6661_v25, %v10265_v22  ;;  %v1610_v44 = vrot.slane %v1606_v45, 1  ;;  %v1611_v38 = vrot.slane %v1607_v15, 1 }
 0x119   : > { %v1498_v50 = vadd.f32 %v1493_v21, %v1485_v13  ;;  %v1526_v58 = vadd.f32 %v1522_v9, %v10259_v51  ;;  %v1599_v56 = vsel %vm133_vm0, %v1597_v59, %v1598_v26  ;;  %v1556_v28 = vmul.f32 %v6700_v20, %v10260_v60 }
 0x11a   : > { %v1583_v11 = vadd.f32 %v1580_v40, %v1570_v61  ;;  %v1612_v46 = vsel %vm133_vm0, %v1610_v44, %v1611_v38  ;;  %v5810_v12 = vmov (%p70_p6), 0.0  }
 0x11b   : > { %v1511_v8 = vadd.f32 %v1506_v37, %v1498_v50  ;;  %v1539_v0 = vadd.f32 %v1534_v5, %v1526_v58  ;;  %v1588_v37 = vmul.f32 %v6697_v41, %v10265_v22  ;;  %1624 = vst [vmem:[%s10123_s5] sm:$0xff] (%p70_p6), %v5810_v12  ;;  %1625 = vst [vmem:[%s10123_s5 + $0x8] sm:$0x3] (%p70_p6), %v5810_v12 }
 0x11c   : > { %v1589_v3 = vadd.f32 %v1587_v36, %v1583_v11 }
 0x11d   : > { %v1513_v14 = vmax.f32 %v1511_v8, 0.0  ;;  %v1552_v25 = vadd.f32 %v1547_v18, %v1539_v0 }
 0x11e   : > { %v1602_v21 = vadd.f32 %v1599_v56, %v1589_v3 }
 0x11f   : > { %5255 = vst [vmem:[%s6090_s16 + $0xb68] sm:$0x1f] %v1513_v14  ;;  %v1558_v30 = vadd.f32 %v1556_v28, %v1552_v25 }
 0x120   : > { %v1615_v24 = vadd.f32 %v1612_v46, %v1602_v21 }
 0x121   : > { %v1571_v51 = vadd.f32 %v1566_v7, %v1558_v30 }
 0x122   : > { %v1617_v6 = vmax.f32 %v1615_v24, 0.0 }
 0x123   : > { %v1584_v16 = vadd.f32 %v1579_v29, %v1571_v51 }
 0x124   : > { %5267 = vst [vmem:[%s6090_s16 + $0xc30] sm:$0xff] %v1617_v6 }
 0x125   : > { %v1590_v49 = vadd.f32 %v1588_v37, %v1584_v16 }
 0x127   : > { %v1603_v5 = vadd.f32 %v1598_v26, %v1590_v49  ;;  %72 = sbr.rel (!%p70_p6) target bundleno = 52 (0x34), region = 118 }
 0x129   : > { %v1616_v20 = vadd.f32 %v1611_v38, %v1603_v5 }
 0x12b   : > { %v1618_v32 = vmax.f32 %v1616_v20, 0.0 }
 0x12d   : > { %5268 = vst [vmem:[%s6090_s16 + $0xc38] sm:$0x1f] %v1618_v32 }
 0x12e LB: > { %s1641_s16 = sld [smem:[#allocation7]]  ;;  %s5273_s4 = sld [smem:[#allocation7 + $0x1]]  ;;  %vm4774_vm1 = vcmask 1043456   ;;  %vm4875_vm2 = vcmask 1040384   ;;  %vm4877_vm3 = vcmask 1041408   ;;  %vm4879_vm4 = vcmask 1042432   ;;  %s5804_s20 = sphi %s7282_s20, %s1631_s20  }
 0x12f   : > { %s5269_s21 = sshll.u32 %s5804_s20, 4  ;;  %s5274_s0 = sld [smem:[#allocation7 + $0x2]]  ;;  %vm4882_vm5 = vcmask 1044480   ;;  %vm4884_vm6 = vcmask 1045504  }
 0x130   : > { %s7288_s22 = sld [smem:[#allocation8]]  ;;  %s7290_s23 = scalar_lea.vmem [#allocation2], %s5269_s21 }
 0x131   : > { %s5275_s24 = sld [smem:[#allocation7 + $0x24]]  ;;  %s7304_s25 = sld [smem:[#allocation7 + $0x25]] }
 0x132   : > { %s7306_s26 = sld [smem:[#allocation7 + $0x26]]  ;;  %s7308_s2 = sld [smem:[#allocation8 + $0x1]] }
 0x133   : > { %s7310_s1 = sld [smem:[#allocation7 + $0x48]]  ;;  %s7316_s27 = sld [smem:[#allocation7 + $0x49]] }
 0x134   : > { %v7293_v41 = vld [vmem:[%s7290_s23] sm:$0xff]  ;;  %v7296_v18 = vld [vmem:[%s7290_s23 + $0x8] sm:$0x1f]  ;;  %v1642_v33 = vstv %s1641_s16  ;;  %v1646_v19 = vstv %s5273_s4  ;;  %s7320_s17 = sld [smem:[#allocation7 + $0x4a]]  ;;  %s7324_s28 = sld [smem:[#allocation7 + $0x6c]] }
 0x135   : > { %v7299_v60 = vld [vmem:[%s7290_s23 + $0x340] sm:$0xff]  ;;  %v7302_v34 = vld [vmem:[%s7290_s23 + $0x348] sm:$0x1f]  ;;  %v1643_v54 = vmul.f32 %v1642_v33, %v7293_v41  ;;  %v1644_v2 = vmul.f32 %v1642_v33, %v7296_v18  ;;  %v1652_v62 = vstv %s5274_s0  ;;  %s7330_s29 = sld [smem:[#allocation8 + $0x2]]  ;;  %s7335_s30 = sld [smem:[#allocation7 + $0x6d]] }
 0x136   : > { %v1647_v35 = vmul.f32 %v7299_v60, %v1646_v19  ;;  %v1648_v53 = vmul.f32 %v7302_v34, %v1646_v19  ;;  %v1653_v39 = vmul.f32 %v1652_v62, %v7293_v41  ;;  %v1654_v47 = vmul.f32 %v1652_v62, %v7296_v18  ;;  %s7337_s6 = sld [smem:[#allocation7 + $0x6e]]  ;;  %s7347_s7 = sld [smem:[#allocation8 + $0x3]] }
 0x137   : > { %v1670_v48 = vstv %s5275_s24  ;;  %v1666_v63 = vstv %s7288_s22  ;;  %v1674_v42 = vstv %s7304_s25  ;;  %s7349_s8 = sld [smem:[#allocation7 + $0x90]]  ;;  %s7359_s9 = sld [smem:[#allocation7 + $0x91]] }
 0x138   : > { %v1649_v23 = vadd.f32 %v1647_v35, %v1643_v54  ;;  %v1650_v17 = vadd.f32 %v1648_v53, %v1644_v2  ;;  %v1658_v7 = vrot.slane %v1653_v39, 1  ;;  %v1659_v55 = vrot.slane %v1654_v47, 1  ;;  %s7361_s10 = sld [smem:[#allocation7 + $0x92]]  ;;  %s7366_s3 = sld [smem:[#allocation7 + $0xb4]] }
 0x139   : > { %v1671_v1 = vmul.f32 %v1670_v48, %v7293_v41  ;;  %v1672_v57 = vmul.f32 %v1670_v48, %v7296_v18  ;;  %v1680_v52 = vstv %s7306_s26  ;;  %v1697_v4 = vstv %s7310_s1  ;;  %s7373_s11 = sld [smem:[#allocation8 + $0x4]]  ;;  %s7378_s12 = sld [smem:[#allocation7 + $0xb5]] }
 0x13a   : > { %v1660_v27 = vsel %vm133_vm0, %v1658_v7, %v1659_v55  ;;  %v1664_v29 = vadd.f32 %v1659_v55, %v1650_v17  ;;  %v1675_v31 = vmul.f32 %v7299_v60, %v1674_v42  ;;  %v1676_v10 = vmul.f32 %v7302_v34, %v1674_v42  ;;  %s7384_s14 = sld [smem:[#allocation7 + $0xb6]]  ;;  %s7386_s15 = sld [smem:[#allocation7 + $0xd8]] }
 0x13b   : > { %v1663_v59 = vadd.f32 %v1660_v27, %v1649_v23  ;;  %v1681_v43 = vmul.f32 %v1680_v52, %v7293_v41  ;;  %v1682_v45 = vmul.f32 %v1680_v52, %v7296_v18  ;;  %v1693_v15 = vstv %s7308_s2  ;;  %s7393_s13 = sld [smem:[#allocation8 + $0x5]]  ;;  %s7403_s18 = sld [smem:[#allocation7 + $0xd9]] }
 0x13c   : > { %v1677_v13 = vadd.f32 %v1675_v31, %v1671_v1  ;;  %v1678_v40 = vadd.f32 %v1676_v10, %v1672_v57  ;;  %v1698_v26 = vmul.f32 %v1697_v4, %v7293_v41  ;;  %v1699_v9 = vmul.f32 %v1697_v4, %v7296_v18  ;;  %s7408_s19 = sld [smem:[#allocation7 + $0xda]]  ;;  %s7415_s16 = sld [smem:[#allocation7 + $0xfc]] }
 0x13d   : > { %v7344_v61 = vadd.f32 %v1666_v63, %v1664_v29  ;;  %v1685_v22 = vrot.slane %v1681_v43, 1  ;;  %v1686_v36 = vrot.slane %v1682_v45, 1  ;;  %v1701_v50 = vstv %s7316_s27  ;;  %s7422_s4 = sld [smem:[#allocation8 + $0x6]]  ;;  %s7427_s21 = sld [smem:[#allocation7 + $0xfd]] }
 0x13e   : > { %v7351_v44 = vadd.f32 %v1666_v63, %v1663_v59  ;;  %v1702_v38 = vmul.f32 %v7299_v60, %v1701_v50  ;;  %v1703_v58 = vmul.f32 %v7302_v34, %v1701_v50  ;;  %v1707_v11 = vstv %s7320_s17  ;;  %s7429_s0 = sld [smem:[#allocation7 + $0xfe]]  ;;  %s7439_s22 = sld [smem:[#allocation8 + $0x7]] }
 0x13f   : > { %v1687_v8 = vsel %vm133_vm0, %v1685_v22, %v1686_v36  ;;  %v1691_v56 = vadd.f32 %v1686_v36, %v1678_v40  ;;  %v1708_v0 = vmul.f32 %v1707_v11, %v7293_v41  ;;  %v1709_v28 = vmul.f32 %v1707_v11, %v7296_v18  ;;  %s7441_s24 = sld [smem:[#allocation7 + $0x120]]  ;;  %s7451_s25 = sld [smem:[#allocation7 + $0x121]] }
 0x140   : > { %v1690_v3 = vadd.f32 %v1687_v8, %v1677_v13  ;;  %v1704_v14 = vadd.f32 %v1702_v38, %v1698_v26  ;;  %v1705_v46 = vadd.f32 %v1703_v58, %v1699_v9  ;;  %v1724_v25 = vstv %s7324_s28  ;;  %s7453_s26 = sld [smem:[#allocation7 + $0x122]]  ;;  %s7458_s2 = sld [smem:[#allocation7 + $0x144]] }
 0x141   : > { %v1712_v21 = vrot.slane %v1708_v0, 1  ;;  %v1713_v30 = vrot.slane %v1709_v28, 1  ;;  %v1720_v24 = vstv %s7330_s29  ;;  %v1725_v51 = vmul.f32 %v1724_v25, %v7293_v41  ;;  %s7465_s1 = sld [smem:[#allocation8 + $0x8]]  ;;  %s7470_s27 = sld [smem:[#allocation7 + $0x145]] }
 0x142   : > { %v7368_v37 = vadd.f32 %v1693_v15, %v1691_v56  ;;  %v1726_v6 = vmul.f32 %v1724_v25, %v7296_v18  ;;  %v1728_v16 = vstv %s7335_s30  ;;  %v1734_v49 = vstv %s7337_s6  ;;  %s7476_s17 = sld [smem:[#allocation7 + $0x146]]  ;;  %s7478_s28 = sld [smem:[#allocation7 + $0x3]] }
 0x143   : > { %v1714_v5 = vsel %vm133_vm0, %v1712_v21, %v1713_v30  ;;  %v1718_v20 = vadd.f32 %v1713_v30, %v1705_v46  ;;  %v1729_v32 = vmul.f32 %v7299_v60, %v1728_v16  ;;  %v1730_v12 = vmul.f32 %v7302_v34, %v1728_v16  ;;  %s7485_s29 = sld [smem:[#allocation8 + $0x9]]  ;;  %s7495_s30 = sld [smem:[#allocation7 + $0x4]] }
 0x144   : > { %v7380_v33 = vadd.f32 %v1693_v15, %v1690_v3  ;;  %v1717_v54 = vadd.f32 %v1714_v5, %v1704_v14  ;;  %v1735_v2 = vmul.f32 %v1734_v49, %v7293_v41  ;;  %v1736_v19 = vmul.f32 %v1734_v49, %v7296_v18  ;;  %s7500_s6 = sld [smem:[#allocation7 + $0x5]]  ;;  %s1631_s20 = sadd.s32 1, %s5804_s20  }
 0x145   : > { %v1731_v35 = vadd.f32 %v1729_v32, %v1725_v51  ;;  %v1732_v53 = vadd.f32 %v1730_v12, %v1726_v6  ;;  %v1747_v62 = vstv %s7347_s7  ;;  %v1751_v39 = vstv %s7349_s8  ;;  %s7502_s7 = sld [smem:[#allocation7 + $0x27]]  ;;  %s7520_s8 = sld [smem:[#allocation7 + $0x28]] }
 0x146   : > { %v7390_v47 = vadd.f32 %v1720_v24, %v1718_v20  ;;  %v1739_v23 = vrot.slane %v1735_v2, 1  ;;  %v1740_v17 = vrot.slane %v1736_v19, 1  ;;  %v1752_v48 = vmul.f32 %v1751_v39, %v7293_v41  ;;  %p1628_p7 = scmp.ge.s32.totalorder %s1631_s20, 12  }
 0x147   : > { %v7395_v7 = vadd.f32 %v1720_v24, %v1717_v54  ;;  %v1753_v55 = vmul.f32 %v1751_v39, %v7296_v18  ;;  %v1755_v1 = vstv %s7359_s9  ;;  %v1761_v57 = vstv %s7361_s10  ;;  %s7525_s9 = sld [smem:[#allocation7 + $0x29]]  ;;  %s7527_s10 = sld [smem:[#allocation7 + $0x4b]] }
 0x148   : > { %v1741_v63 = vsel %vm133_vm0, %v1739_v23, %v1740_v17  ;;  %v1745_v42 = vadd.f32 %v1740_v17, %v1732_v53  ;;  %v1756_v52 = vmul.f32 %v7299_v60, %v1755_v1  ;;  %v1757_v4 = vmul.f32 %v7302_v34, %v1755_v1 }
 0x149   : > { %v1744_v27 = vadd.f32 %v1741_v63, %v1731_v35  ;;  %v1762_v29 = vmul.f32 %v1761_v57, %v7293_v41  ;;  %v1763_v31 = vmul.f32 %v1761_v57, %v7296_v18  ;;  %v1778_v10 = vstv %s7366_s3  ;;  %s7547_s3 = sld [smem:[#allocation7 + $0x4c]] }
 0x14a   : > { %v7410_v59 = vadd.f32 %v1747_v62, %v1745_v42  ;;  %v1758_v43 = vadd.f32 %v1756_v52, %v1752_v48  ;;  %v1759_v45 = vadd.f32 %v1757_v4, %v1753_v55  ;;  %v1774_v15 = vstv %s7373_s11  ;;  %s7552_s11 = sld [smem:[#allocation7 + $0x4d]] }
 0x14b   : > { %v1766_v13 = vrot.slane %v1762_v29, 1  ;;  %v1767_v40 = vrot.slane %v1763_v31, 1  ;;  %v1779_v26 = vmul.f32 %v1778_v10, %v7293_v41  ;;  %v1780_v9 = vmul.f32 %v1778_v10, %v7296_v18 }
 0x14c   : > { %v7417_v22 = vadd.f32 %v1747_v62, %v1744_v27  ;;  %v1782_v36 = vstv %s7378_s12  ;;  %v1788_v50 = vstv %s7384_s14  ;;  %v1805_v38 = vstv %s7386_s15  ;;  %s7554_s12 = sld [smem:[#allocation7 + $0x6f]]  ;;  %s7565_s14 = sld [smem:[#allocation7 + $0x70]] }
 0x14d   : > { %v1768_v58 = vsel %vm133_vm0, %v1766_v13, %v1767_v40  ;;  %v1772_v11 = vadd.f32 %v1767_v40, %v1759_v45  ;;  %v1783_v8 = vmul.f32 %v7299_v60, %v1782_v36  ;;  %v1784_v56 = vmul.f32 %v7302_v34, %v1782_v36  ;;  %s7570_s15 = sld [smem:[#allocation7 + $0x71]] }
 0x14e   : > { %v1771_v0 = vadd.f32 %v1768_v58, %v1758_v43  ;;  %v1789_v28 = vmul.f32 %v1788_v50, %v7293_v41  ;;  %v1790_v3 = vmul.f32 %v1788_v50, %v7296_v18  ;;  %v1801_v14 = vstv %s7393_s13  ;;  %s7572_s13 = sld [smem:[#allocation7 + $0x93]] }
 0x14f   : > { %v1785_v46 = vadd.f32 %v1783_v8, %v1779_v26  ;;  %v1786_v25 = vadd.f32 %v1784_v56, %v1780_v9  ;;  %v1806_v21 = vmul.f32 %v1805_v38, %v7293_v41  ;;  %v1807_v30 = vmul.f32 %v1805_v38, %v7296_v18 }
 0x150   : > { %v7436_v24 = vadd.f32 %v1774_v15, %v1772_v11  ;;  %v1793_v51 = vrot.slane %v1789_v28, 1  ;;  %v1794_v6 = vrot.slane %v1790_v3, 1  ;;  %v1809_v16 = vstv %s7403_s18  ;;  %s7588_s18 = sld [smem:[#allocation7 + $0x94]] }
 0x151   : > { %v7443_v49 = vadd.f32 %v1774_v15, %v1771_v0  ;;  %v1810_v5 = vmul.f32 %v7299_v60, %v1809_v16  ;;  %v1811_v20 = vmul.f32 %v7302_v34, %v1809_v16  ;;  %v1815_v32 = vstv %s7408_s19  ;;  %s7593_s19 = sld [smem:[#allocation7 + $0x95]] }
 0x152   : > { %v1795_v12 = vsel %vm133_vm0, %v1793_v51, %v1794_v6  ;;  %v1799_v54 = vadd.f32 %v1794_v6, %v1786_v25  ;;  %v1816_v2 = vmul.f32 %v1815_v32, %v7293_v41  ;;  %v1817_v19 = vmul.f32 %v1815_v32, %v7296_v18 }
 0x153   : > { %v1798_v35 = vadd.f32 %v1795_v12, %v1785_v46  ;;  %v1812_v53 = vadd.f32 %v1810_v5, %v1806_v21  ;;  %v1813_v62 = vadd.f32 %v1811_v20, %v1807_v30  ;;  %v1832_v39 = vstv %s7415_s16  ;;  %s7595_s16 = sld [smem:[#allocation7 + $0xb7]] }
 0x154   : > { %v1820_v23 = vrot.slane %v1816_v2, 1  ;;  %v1821_v17 = vrot.slane %v1817_v19, 1  ;;  %v1828_v48 = vstv %s7422_s4  ;;  %v1833_v55 = vmul.f32 %v1832_v39, %v7293_v41  ;;  %v7510_v2 = vld [vmem:[%s7290_s23 + $0x680] sm:$0xff]  ;;  %s7608_s4 = sld [smem:[#allocation7 + $0xb8]] }
 0x155   : > { %v7460_v1 = vadd.f32 %v1801_v14, %v1799_v54  ;;  %v1834_v57 = vmul.f32 %v1832_v39, %v7296_v18  ;;  %v1836_v63 = vstv %s7427_s21  ;;  %v1842_v42 = vstv %s7429_s0  ;;  %s7613_s21 = sld [smem:[#allocation7 + $0xb9]]  ;;  %s7615_s0 = sld [smem:[#allocation7 + $0xdb]] }
 0x156   : > { %v1822_v52 = vsel %vm133_vm0, %v1820_v23, %v1821_v17  ;;  %v1826_v4 = vadd.f32 %v1821_v17, %v1813_v62  ;;  %v1837_v27 = vmul.f32 %v7299_v60, %v1836_v63  ;;  %v1838_v29 = vmul.f32 %v7302_v34, %v1836_v63  ;;  %v7517_v62 = vld [vmem:[%s7290_s23 + $0x688] sm:$0x1f] }
 0x157   : > { %v7472_v31 = vadd.f32 %v1801_v14, %v1798_v35  ;;  %v1825_v10 = vadd.f32 %v1822_v52, %v1812_v53  ;;  %v1843_v43 = vmul.f32 %v1842_v42, %v7293_v41  ;;  %v1844_v45 = vmul.f32 %v1842_v42, %v7296_v18 }
 0x158   : > { %v1839_v15 = vadd.f32 %v1837_v27, %v1833_v55  ;;  %v1840_v13 = vadd.f32 %v1838_v29, %v1834_v57  ;;  %v1855_v40 = vstv %s7439_s22  ;;  %v1859_v26 = vstv %s7441_s24  ;;  %v7536_v27 = vld [vmem:[%s7290_s23 + $0x9c8] sm:$0x1f]  ;;  %s7632_s22 = sld [smem:[#allocation7 + $0xdc]]  ;;  %s7637_s24 = sld [smem:[#allocation7 + $0xdd]] }
 0x159   : > { %v7482_v9 = vadd.f32 %v1828_v48, %v1826_v4  ;;  %v1847_v36 = vrot.slane %v1843_v43, 1  ;;  %v1848_v50 = vrot.slane %v1844_v45, 1  ;;  %v1860_v38 = vmul.f32 %v1859_v26, %v7293_v41  ;;  %v7533_v4 = vld [vmem:[%s7290_s23 + $0x9c0] sm:$0xff] }
 0x15a   : > { %v7487_v58 = vadd.f32 %v1828_v48, %v1825_v10  ;;  %v1861_v11 = vmul.f32 %v1859_v26, %v7296_v18  ;;  %v1863_v8 = vstv %s7451_s25  ;;  %v1869_v56 = vstv %s7453_s26  ;;  %s7639_s25 = sld [smem:[#allocation7 + $0xff]]  ;;  %s7652_s26 = sld [smem:[#allocation7 + $0x100]] }
 0x15b   : > { %v1849_v0 = vsel %vm133_vm0, %v1847_v36, %v1848_v50  ;;  %v1853_v28 = vadd.f32 %v1848_v50, %v1840_v13  ;;  %v1864_v3 = vmul.f32 %v7299_v60, %v1863_v8  ;;  %v1865_v14 = vmul.f32 %v7302_v34, %v1863_v8 }
 0x15c   : > { %v1852_v46 = vadd.f32 %v1849_v0, %v1839_v15  ;;  %v1870_v25 = vmul.f32 %v1869_v56, %v7293_v41  ;;  %v1871_v21 = vmul.f32 %v1869_v56, %v7296_v18  ;;  %v1886_v30 = vstv %s7458_s2  ;;  %s7657_s2 = sld [smem:[#allocation7 + $0x101]] }
 0x15d   : > { %v7504_v51 = vadd.f32 %v1855_v40, %v1853_v28  ;;  %v1866_v6 = vadd.f32 %v1864_v3, %v1860_v38  ;;  %v1867_v16 = vadd.f32 %v1865_v14, %v1861_v11  ;;  %v1882_v5 = vstv %s7465_s1  ;;  %s7659_s1 = sld [smem:[#allocation7 + $0x123]] }
 0x15e   : > { %v1874_v20 = vrot.slane %v1870_v25, 1  ;;  %v1875_v32 = vrot.slane %v1871_v21, 1  ;;  %v1887_v12 = vmul.f32 %v1886_v30, %v7293_v41  ;;  %v1888_v54 = vmul.f32 %v1886_v30, %v7296_v18 }
 0x15f   : > { %v7512_v19 = vadd.f32 %v1855_v40, %v1852_v46  ;;  %v1890_v35 = vstv %s7470_s27  ;;  %v1896_v53 = vstv %s7476_s17  ;;  %v1923_v39 = vstv %s7478_s28  ;;  %s7676_s27 = sld [smem:[#allocation7 + $0x124]]  ;;  %s7681_s17 = sld [smem:[#allocation7 + $0x125]] }
 0x160   : > { %v1876_v23 = vsel %vm133_vm0, %v1874_v20, %v1875_v32  ;;  %v1880_v17 = vadd.f32 %v1875_v32, %v1867_v16  ;;  %v1891_v48 = vmul.f32 %v7299_v60, %v1890_v35  ;;  %v1892_v55 = vmul.f32 %v7302_v34, %v1890_v35  ;;  %s7683_s28 = sld [smem:[#allocation7 + $0x147]] }
 0x161   : > { %v1879_v57 = vadd.f32 %v1876_v23, %v1866_v6  ;;  %v1897_v63 = vmul.f32 %v1896_v53, %v7293_v41  ;;  %v1898_v42 = vmul.f32 %v1896_v53, %v7296_v18  ;;  %v1909_v52 = vstv %s7485_s29  ;;  %s7696_s29 = sld [smem:[#allocation7 + $0x148]] }
 0x162   : > { %v1893_v60 = vadd.f32 %v1891_v48, %v1887_v12  ;;  %v1894_v29 = vadd.f32 %v1892_v55, %v1888_v54  ;;  %v1924_v34 = vmul.f32 %v7510_v2, %v1923_v39  ;;  %v1925_v10 = vmul.f32 %v7517_v62, %v1923_v39 }
 0x163   : > { %v7540_v43 = vadd.f32 %v1882_v5, %v1880_v17  ;;  %v1901_v45 = vrot.slane %v1897_v63, 1  ;;  %v1902_v15 = vrot.slane %v1898_v42, 1  ;;  %v1927_v13 = vstv %s7495_s30  ;;  %s7701_s30 = sld [smem:[#allocation7 + $0x149]] }
 0x164   : > { %v1928_v41 = vmul.f32 %v7533_v4, %v1927_v13  ;;  %v1929_v18 = vmul.f32 %v7536_v27, %v1927_v13  ;;  %v1933_v40 = vstv %s7500_s6  ;;  %v1948_v26 = vstv %s7502_s7  ;;  %s7703_s6 = sld [smem:[#allocation7 + $0x6]]  ;;  %s7720_s7 = sld [smem:[#allocation7 + $0x7]] }
 0x165   : > { %v1903_v36 = vsel %vm133_vm0, %v1901_v45, %v1902_v15  ;;  %v1907_v50 = vadd.f32 %v1902_v15, %v1894_v29  ;;  %v1934_v38 = vmul.f32 %v7510_v2, %v1933_v40  ;;  %v1935_v11 = vmul.f32 %v7517_v62, %v1933_v40 }
 0x166   : > { %v7556_v8 = vadd.f32 %v1882_v5, %v1879_v57  ;;  %v1906_v56 = vadd.f32 %v1903_v36, %v1893_v60  ;;  %v1930_v0 = vadd.f32 %v1928_v41, %v1924_v34  ;;  %v1931_v28 = vadd.f32 %v1929_v18, %v1925_v10 }
 0x167   : > { %v1938_v3 = vrot.slane %v1934_v38, 1  ;;  %v1939_v14 = vrot.slane %v1935_v11, 1  ;;  %v1949_v46 = vmul.f32 %v7510_v2, %v1948_v26  ;;  %v1950_v25 = vmul.f32 %v7517_v62, %v1948_v26 }
 0x168   : > { %v7560_v21 = vadd.f32 %v1909_v52, %v1907_v50  ;;  %v1952_v30 = vstv %s7520_s8  ;;  %v1958_v6 = vstv %s7525_s9  ;;  %v1973_v16 = vstv %s7527_s10  ;;  %s7725_s8 = sld [smem:[#allocation7 + $0x8]]  ;;  %s7727_s9 = sld [smem:[#allocation7 + $0x2a]] }
 0x169   : > { %v1940_v20 = vsel %vm133_vm0, %v1938_v3, %v1939_v14  ;;  %v1944_v5 = vadd.f32 %v1939_v14, %v1931_v28  ;;  %v1953_v32 = vmul.f32 %v7533_v4, %v1952_v30  ;;  %v1954_v12 = vmul.f32 %v7536_v27, %v1952_v30  ;;  %s7746_s10 = sld [smem:[#allocation7 + $0x2b]] }
 0x16a   : > { %v7574_v54 = vadd.f32 %v1909_v52, %v1906_v56  ;;  %v1943_v35 = vadd.f32 %v1940_v20, %v1930_v0  ;;  %v1959_v53 = vmul.f32 %v7510_v2, %v1958_v6  ;;  %v1960_v39 = vmul.f32 %v7517_v62, %v1958_v6 }
 0x16b   : > { %v1955_v23 = vadd.f32 %v1953_v32, %v1949_v46  ;;  %v1956_v17 = vadd.f32 %v1954_v12, %v1950_v25  ;;  %v1974_v48 = vmul.f32 %v7510_v2, %v1973_v16  ;;  %v1975_v55 = vmul.f32 %v7517_v62, %v1973_v16 }
 0x16c   : > { %v7581_v57 = vadd.f32 %v1944_v5, %v7344_v61  ;;  %v1963_v63 = vrot.slane %v1959_v53, 1  ;;  %v1964_v42 = vrot.slane %v1960_v39, 1  ;;  %v1977_v60 = vstv %s7547_s3  ;;  %s7751_s3 = sld [smem:[#allocation7 + $0x2c]] }
 0x16d   : > { %v1978_v52 = vmul.f32 %v7533_v4, %v1977_v60  ;;  %v1979_v29 = vmul.f32 %v7536_v27, %v1977_v60  ;;  %v1983_v34 = vstv %s7552_s11  ;;  %v1998_v10 = vstv %s7554_s12  ;;  %s7753_s11 = sld [smem:[#allocation7 + $0x4e]]  ;;  %s7776_s12 = sld [smem:[#allocation7 + $0x4f]] }
 0x16e   : > { %v1965_v45 = vsel %vm133_vm0, %v1963_v63, %v1964_v42  ;;  %v1969_v15 = vadd.f32 %v1964_v42, %v1956_v17  ;;  %v1984_v61 = vmul.f32 %v7510_v2, %v1983_v34  ;;  %v1985_v13 = vmul.f32 %v7517_v62, %v1983_v34 }
 0x16f   : > { %v7598_v41 = vadd.f32 %v1943_v35, %v7351_v44  ;;  %v1968_v18 = vadd.f32 %v1965_v45, %v1955_v23  ;;  %v1980_v40 = vadd.f32 %v1978_v52, %v1974_v48  ;;  %v1981_v26 = vadd.f32 %v1979_v29, %v1975_v55 }
 0x170   : > { %v1988_v36 = vrot.slane %v1984_v61, 1  ;;  %v1989_v50 = vrot.slane %v1985_v13, 1  ;;  %v1999_v38 = vmul.f32 %v7510_v2, %v1998_v10  ;;  %v2000_v11 = vmul.f32 %v7517_v62, %v1998_v10 }
 0x171   : > { %v7603_v56 = vadd.f32 %v1969_v15, %v7368_v37  ;;  %v2002_v0 = vstv %s7565_s14  ;;  %v2008_v28 = vstv %s7570_s15  ;;  %v2023_v3 = vstv %s7572_s13  ;;  %s7781_s14 = sld [smem:[#allocation7 + $0x50]]  ;;  %s7783_s15 = sld [smem:[#allocation7 + $0x72]] }
 0x172   : > { %v1990_v44 = vsel %vm133_vm0, %v1988_v36, %v1989_v50  ;;  %v1994_v14 = vadd.f32 %v1989_v50, %v1981_v26  ;;  %v2003_v46 = vmul.f32 %v7533_v4, %v2002_v0  ;;  %v2004_v25 = vmul.f32 %v7536_v27, %v2002_v0  ;;  %s7796_s13 = sld [smem:[#allocation7 + $0x73]] }
 0x173   : > { %v7618_v37 = vadd.f32 %v1968_v18, %v7380_v33  ;;  %v1993_v30 = vadd.f32 %v1990_v44, %v1980_v40  ;;  %v2009_v6 = vmul.f32 %v7510_v2, %v2008_v28  ;;  %v2010_v16 = vmul.f32 %v7517_v62, %v2008_v28 }
 0x174   : > { %v2005_v20 = vadd.f32 %v2003_v46, %v1999_v38  ;;  %v2006_v5 = vadd.f32 %v2004_v25, %v2000_v11  ;;  %v2024_v32 = vmul.f32 %v7510_v2, %v2023_v3  ;;  %v2025_v12 = vmul.f32 %v7517_v62, %v2023_v3 }
 0x175   : > { %v7625_v35 = vadd.f32 %v1994_v14, %v7390_v47  ;;  %v2013_v53 = vrot.slane %v2009_v6, 1  ;;  %v2014_v39 = vrot.slane %v2010_v16, 1  ;;  %v2027_v23 = vstv %s7588_s18  ;;  %s7801_s18 = sld [smem:[#allocation7 + $0x74]] }
 0x176   : > { %v2028_v33 = vmul.f32 %v7533_v4, %v2027_v23  ;;  %v2029_v17 = vmul.f32 %v7536_v27, %v2027_v23  ;;  %v2033_v48 = vstv %s7593_s19  ;;  %v2048_v55 = vstv %s7595_s16  ;;  %s7803_s19 = sld [smem:[#allocation7 + $0x96]]  ;;  %s7820_s16 = sld [smem:[#allocation7 + $0x97]] }
 0x177   : > { %v2015_v63 = vsel %vm133_vm0, %v2013_v53, %v2014_v39  ;;  %v2019_v42 = vadd.f32 %v2014_v39, %v2006_v5  ;;  %v2034_v47 = vmul.f32 %v7510_v2, %v2033_v48  ;;  %v2035_v60 = vmul.f32 %v7517_v62, %v2033_v48 }
 0x178   : > { %v7642_v52 = vadd.f32 %v1993_v30, %v7395_v7  ;;  %v2018_v29 = vadd.f32 %v2015_v63, %v2005_v20  ;;  %v2030_v34 = vadd.f32 %v2028_v33, %v2024_v32  ;;  %v2031_v10 = vadd.f32 %v2029_v17, %v2025_v12 }
 0x179   : > { %v2038_v45 = vrot.slane %v2034_v47, 1  ;;  %v2039_v15 = vrot.slane %v2035_v60, 1  ;;  %v2049_v61 = vmul.f32 %v7510_v2, %v2048_v55  ;;  %v2050_v13 = vmul.f32 %v7517_v62, %v2048_v55 }
 0x17a   : > { %v7647_v18 = vadd.f32 %v2019_v42, %v7410_v59  ;;  %v2052_v40 = vstv %s7608_s4  ;;  %v2058_v26 = vstv %s7613_s21  ;;  %v2073_v36 = vstv %s7615_s0  ;;  %s7825_s4 = sld [smem:[#allocation7 + $0x98]]  ;;  %s7827_s21 = sld [smem:[#allocation7 + $0xba]] }
 0x17b   : > { %v2040_v7 = vsel %vm133_vm0, %v2038_v45, %v2039_v15  ;;  %v2044_v50 = vadd.f32 %v2039_v15, %v2031_v10  ;;  %v2053_v38 = vmul.f32 %v7533_v4, %v2052_v40  ;;  %v2054_v11 = vmul.f32 %v7536_v27, %v2052_v40  ;;  %s7840_s0 = sld [smem:[#allocation7 + $0xbb]] }
 0x17c   : > { %v7662_v59 = vadd.f32 %v2018_v29, %v7417_v22  ;;  %v2043_v0 = vadd.f32 %v2040_v7, %v2030_v34  ;;  %v2059_v28 = vmul.f32 %v7510_v2, %v2058_v26  ;;  %v2060_v3 = vmul.f32 %v7517_v62, %v2058_v26 }
 0x17d   : > { %v2055_v44 = vadd.f32 %v2053_v38, %v2049_v61  ;;  %v2056_v14 = vadd.f32 %v2054_v11, %v2050_v13  ;;  %v2074_v46 = vmul.f32 %v7510_v2, %v2073_v36  ;;  %v2075_v25 = vmul.f32 %v7517_v62, %v2073_v36 }
 0x17e   : > { %v7669_v30 = vadd.f32 %v2044_v50, %v7436_v24  ;;  %v2063_v6 = vrot.slane %v2059_v28, 1  ;;  %v2064_v16 = vrot.slane %v2060_v3, 1  ;;  %v2077_v20 = vstv %s7632_s22  ;;  %s7845_s22 = sld [smem:[#allocation7 + $0xbc]] }
 0x17f   : > { %v2078_v22 = vmul.f32 %v7533_v4, %v2077_v20  ;;  %v2079_v5 = vmul.f32 %v7536_v27, %v2077_v20  ;;  %v2083_v32 = vstv %s7637_s24  ;;  %v2098_v12 = vstv %s7639_s25  ;;  %s7847_s24 = sld [smem:[#allocation7 + $0xde]]  ;;  %s7864_s25 = sld [smem:[#allocation7 + $0xdf]] }
 0x180   : > { %v2065_v53 = vsel %vm133_vm0, %v2063_v6, %v2064_v16  ;;  %v2069_v39 = vadd.f32 %v2064_v16, %v2056_v14  ;;  %v2084_v24 = vmul.f32 %v7510_v2, %v2083_v32  ;;  %v2085_v23 = vmul.f32 %v7517_v62, %v2083_v32 }
 0x181   : > { %v7686_v33 = vadd.f32 %v2043_v0, %v7443_v49  ;;  %v2068_v17 = vadd.f32 %v2065_v53, %v2055_v44  ;;  %v2080_v48 = vadd.f32 %v2078_v22, %v2074_v46  ;;  %v2081_v55 = vadd.f32 %v2079_v5, %v2075_v25 }
 0x182   : > { %v2088_v63 = vrot.slane %v2084_v24, 1  ;;  %v2089_v42 = vrot.slane %v2085_v23, 1  ;;  %v2099_v47 = vmul.f32 %v7510_v2, %v2098_v12  ;;  %v2100_v60 = vmul.f32 %v7517_v62, %v2098_v12 }
 0x183   : > { %v7691_v29 = vadd.f32 %v2069_v39, %v7460_v1  ;;  %v2102_v34 = vstv %s7652_s26  ;;  %v2108_v10 = vstv %s7657_s2  ;;  %v2123_v45 = vstv %s7659_s1  ;;  %s7869_s26 = sld [smem:[#allocation7 + $0xe0]]  ;;  %s7871_s2 = sld [smem:[#allocation7 + $0x102]] }
 0x184   : > { %v2090_v49 = vsel %vm133_vm0, %v2088_v63, %v2089_v42  ;;  %v2094_v15 = vadd.f32 %v2089_v42, %v2081_v55  ;;  %v2103_v61 = vmul.f32 %v7533_v4, %v2102_v34  ;;  %v2104_v13 = vmul.f32 %v7536_v27, %v2102_v34  ;;  %s7884_s1 = sld [smem:[#allocation7 + $0x103]] }
 0x185   : > { %v7706_v1 = vadd.f32 %v2068_v17, %v7472_v31  ;;  %v2093_v40 = vadd.f32 %v2090_v49, %v2080_v48  ;;  %v2109_v26 = vmul.f32 %v7510_v2, %v2108_v10  ;;  %v2110_v36 = vmul.f32 %v7517_v62, %v2108_v10  ;;  %v7735_v17 = vld [vmem:[%s7290_s23 + $0x10] sm:$0xff] }
 0x186   : > { %v2105_v7 = vadd.f32 %v2103_v61, %v2099_v47  ;;  %v2106_v50 = vadd.f32 %v2104_v13, %v2100_v60  ;;  %v2124_v38 = vmul.f32 %v7510_v2, %v2123_v45  ;;  %v2125_v11 = vmul.f32 %v7517_v62, %v2123_v45  ;;  %v7761_v61 = vld [vmem:[%s7290_s23 + $0x350] sm:$0xff] }
 0x187   : > { %v7713_v0 = vadd.f32 %v2094_v15, %v7482_v9  ;;  %v2113_v28 = vrot.slane %v2109_v26, 1  ;;  %v2114_v3 = vrot.slane %v2110_v36, 1  ;;  %v2127_v44 = vstv %s7676_s27  ;;  %s7889_s27 = sld [smem:[#allocation7 + $0x104]] }
 0x188   : > { %v2128_v31 = vmul.f32 %v7533_v4, %v2127_v44  ;;  %v2129_v14 = vmul.f32 %v7536_v27, %v2127_v44  ;;  %v2133_v46 = vstv %s7681_s17  ;;  %v2148_v25 = vstv %s7683_s28  ;;  %s7891_s17 = sld [smem:[#allocation7 + $0x126]]  ;;  %s7908_s28 = sld [smem:[#allocation7 + $0x127]] }
 0x189   : > { %v2115_v6 = vsel %vm133_vm0, %v2113_v28, %v2114_v3  ;;  %v2119_v16 = vadd.f32 %v2114_v3, %v2106_v50  ;;  %v2134_v9 = vmul.f32 %v7510_v2, %v2133_v46  ;;  %v2135_v20 = vmul.f32 %v7517_v62, %v2133_v46 }
 0x18a   : > { %v7730_v22 = vadd.f32 %v2093_v40, %v7487_v58  ;;  %v2118_v5 = vadd.f32 %v2115_v6, %v2105_v7  ;;  %v2130_v32 = vadd.f32 %v2128_v31, %v2124_v38  ;;  %v2131_v12 = vadd.f32 %v2129_v14, %v2125_v11  ;;  %v7743_v58 = vld [vmem:[%s7290_s23 + $0x18] sm:$0x1f] }
 0x18b   : > { %v2138_v53 = vrot.slane %v2134_v9, 1  ;;  %v2139_v39 = vrot.slane %v2135_v20, 1  ;;  %v2149_v24 = vmul.f32 %v7510_v2, %v2148_v25  ;;  %v2150_v23 = vmul.f32 %v7517_v62, %v2148_v25 }
 0x18c   : > { %v7738_v48 = vadd.f32 %v2119_v16, %v7504_v51  ;;  %v2152_v55 = vstv %s7696_s29  ;;  %v2158_v63 = vstv %s7701_s30  ;;  %v2183_v42 = vstv %s7703_s6  ;;  %s7913_s29 = sld [smem:[#allocation7 + $0x128]]  ;;  %s7915_s30 = sld [smem:[#allocation7 + $0x14a]] }
 0x18d   : > { %v2140_v47 = vsel %vm133_vm0, %v2138_v53, %v2139_v39  ;;  %v2144_v60 = vadd.f32 %v2139_v39, %v2131_v12  ;;  %v2153_v34 = vmul.f32 %v7533_v4, %v2152_v55  ;;  %v2154_v10 = vmul.f32 %v7536_v27, %v2152_v55  ;;  %v7764_v4 = vld [vmem:[%s7290_s23 + $0x358] sm:$0x1f]  ;;  %s7928_s6 = sld [smem:[#allocation7 + $0x14b]] }
 0x18e   : > { %v7756_v51 = vadd.f32 %v2118_v5, %v7512_v19  ;;  %v2143_v45 = vadd.f32 %v2140_v47, %v2130_v32  ;;  %v2159_v49 = vmul.f32 %v7510_v2, %v2158_v63  ;;  %v2160_v15 = vmul.f32 %v7517_v62, %v2158_v63 }
 0x18f   : > { %v2155_v27 = vadd.f32 %v2153_v34, %v2149_v24  ;;  %v2156_v13 = vadd.f32 %v2154_v10, %v2150_v23  ;;  %v2184_v40 = vmul.f32 %v7735_v17, %v2183_v42  ;;  %v2185_v26 = vmul.f32 %v7743_v58, %v2183_v42 }
 0x190   : > { %v7769_v19 = vadd.f32 %v2144_v60, %v7540_v43  ;;  %v2163_v36 = vrot.slane %v2159_v49, 1  ;;  %v2164_v7 = vrot.slane %v2160_v15, 1  ;;  %v2187_v50 = vstv %s7720_s7  ;;  %s7933_s7 = sld [smem:[#allocation7 + $0x14c]] }
 0x191   : > { %v2188_v2 = vmul.f32 %v7761_v61, %v2187_v50  ;;  %v2189_v62 = vmul.f32 %v7764_v4, %v2187_v50  ;;  %v2193_v38 = vstv %s7725_s8  ;;  %v2208_v11 = vstv %s7727_s9  ;;  %s7935_s8 = sld [smem:[#allocation7 + $0x9]]  ;;  %s7952_s9 = sld [smem:[#allocation7 + $0xa]] }
 0x192   : > { %v2165_v28 = vsel %vm133_vm0, %v2163_v36, %v2164_v7  ;;  %v2169_v3 = vadd.f32 %v2164_v7, %v2156_v13  ;;  %v2194_v43 = vmul.f32 %v7735_v17, %v2193_v38  ;;  %v2195_v44 = vmul.f32 %v7743_v58, %v2193_v38 }
 0x193   : > { %v7786_v31 = vadd.f32 %v2143_v45, %v7556_v8  ;;  %v2168_v14 = vadd.f32 %v2165_v28, %v2155_v27  ;;  %v2190_v46 = vadd.f32 %v2188_v2, %v2184_v40  ;;  %v2191_v25 = vadd.f32 %v2189_v62, %v2185_v26 }
 0x194   : > { %v2198_v6 = vrot.slane %v2194_v43, 1  ;;  %v2199_v16 = vrot.slane %v2195_v44, 1  ;;  %v2209_v9 = vmul.f32 %v7735_v17, %v2208_v11  ;;  %v2210_v20 = vmul.f32 %v7743_v58, %v2208_v11 }
 0x195   : > { %v7791_v5 = vadd.f32 %v2169_v3, %v7560_v21  ;;  %v2212_v32 = vstv %s7746_s10  ;;  %v2218_v12 = vstv %s7751_s3  ;;  %v2233_v53 = vstv %s7753_s11  ;;  %s7957_s10 = sld [smem:[#allocation7 + $0xb]]  ;;  %s7959_s3 = sld [smem:[#allocation7 + $0x2d]] }
 0x196   : > { %v2200_v8 = vsel %vm133_vm0, %v2198_v6, %v2199_v16  ;;  %v2204_v39 = vadd.f32 %v2199_v16, %v2191_v25  ;;  %v2213_v24 = vmul.f32 %v7761_v61, %v2212_v32  ;;  %v2214_v23 = vmul.f32 %v7764_v4, %v2212_v32  ;;  %s7978_s11 = sld [smem:[#allocation7 + $0x2e]] }
 0x197   : > { %v7806_v21 = vadd.f32 %v2168_v14, %v7574_v54  ;;  %v2203_v55 = vadd.f32 %v2200_v8, %v2190_v46  ;;  %v2219_v63 = vmul.f32 %v7735_v17, %v2218_v12  ;;  %v2220_v42 = vmul.f32 %v7743_v58, %v2218_v12 }
 0x198   : > { %v2215_v47 = vadd.f32 %v2213_v24, %v2209_v9  ;;  %v2216_v60 = vadd.f32 %v2214_v23, %v2210_v20  ;;  %v2234_v34 = vmul.f32 %v7735_v17, %v2233_v53  ;;  %v2235_v10 = vmul.f32 %v7743_v58, %v2233_v53 }
 0x199   : > { %v7813_v45 = vadd.f32 %v2204_v39, %v7581_v57  ;;  %v2223_v49 = vrot.slane %v2219_v63, 1  ;;  %v2224_v15 = vrot.slane %v2220_v42, 1  ;;  %v2237_v27 = vstv %s7776_s12  ;;  %s7983_s12 = sld [smem:[#allocation7 + $0x2f]] }
 0x19a   : > { %v2238_v54 = vmul.f32 %v7761_v61, %v2237_v27  ;;  %v2239_v13 = vmul.f32 %v7764_v4, %v2237_v27  ;;  %v2243_v40 = vstv %s7781_s14  ;;  %v2258_v26 = vstv %s7783_s15  ;;  %s7985_s14 = sld [smem:[#allocation7 + $0x51]]  ;;  %s8008_s15 = sld [smem:[#allocation7 + $0x52]] }
 0x19b   : > { %v2225_v36 = vsel %vm133_vm0, %v2223_v49, %v2224_v15  ;;  %v2229_v7 = vadd.f32 %v2224_v15, %v2216_v60  ;;  %v2244_v57 = vmul.f32 %v7735_v17, %v2243_v40  ;;  %v2245_v50 = vmul.f32 %v7743_v58, %v2243_v40 }
 0x19c   : > { %v7830_v2 = vadd.f32 %v2203_v55, %v7598_v41  ;;  %v2228_v62 = vadd.f32 %v2225_v36, %v2215_v47  ;;  %v2240_v38 = vadd.f32 %v2238_v54, %v2234_v34  ;;  %v2241_v11 = vadd.f32 %v2239_v13, %v2235_v10 }
 0x19d   : > { %v2248_v28 = vrot.slane %v2244_v57, 1  ;;  %v2249_v3 = vrot.slane %v2245_v50, 1  ;;  %v2259_v43 = vmul.f32 %v7735_v17, %v2258_v26  ;;  %v2260_v44 = vmul.f32 %v7743_v58, %v2258_v26 }
 0x19e   : > { %v7835_v14 = vadd.f32 %v2229_v7, %v7603_v56  ;;  %v2262_v46 = vstv %s7796_s13  ;;  %v2268_v25 = vstv %s7801_s18  ;;  %v2283_v6 = vstv %s7803_s19  ;;  %s8013_s13 = sld [smem:[#allocation7 + $0x53]]  ;;  %s8015_s18 = sld [smem:[#allocation7 + $0x75]] }
 0x19f   : > { %v2250_v41 = vsel %vm133_vm0, %v2248_v28, %v2249_v3  ;;  %v2254_v16 = vadd.f32 %v2249_v3, %v2241_v11  ;;  %v2263_v9 = vmul.f32 %v7761_v61, %v2262_v46  ;;  %v2264_v20 = vmul.f32 %v7764_v4, %v2262_v46  ;;  %s8028_s19 = sld [smem:[#allocation7 + $0x76]] }
 0x1a0   : > { %v7850_v56 = vadd.f32 %v2228_v62, %v7618_v37  ;;  %v2253_v32 = vadd.f32 %v2250_v41, %v2240_v38  ;;  %v2269_v12 = vmul.f32 %v7735_v17, %v2268_v25  ;;  %v2270_v53 = vmul.f32 %v7743_v58, %v2268_v25 }
 0x1a1   : > { %v2265_v8 = vadd.f32 %v2263_v9, %v2259_v43  ;;  %v2266_v39 = vadd.f32 %v2264_v20, %v2260_v44  ;;  %v2284_v24 = vmul.f32 %v7735_v17, %v2283_v6  ;;  %v2285_v23 = vmul.f32 %v7743_v58, %v2283_v6 }
 0x1a2   : > { %v7857_v55 = vadd.f32 %v2254_v16, %v7625_v35  ;;  %v2273_v63 = vrot.slane %v2269_v12, 1  ;;  %v2274_v42 = vrot.slane %v2270_v53, 1  ;;  %v2287_v47 = vstv %s7820_s16  ;;  %s8033_s16 = sld [smem:[#allocation7 + $0x77]] }
 0x1a3   : > { %v2288_v37 = vmul.f32 %v7761_v61, %v2287_v47  ;;  %v2289_v60 = vmul.f32 %v7764_v4, %v2287_v47  ;;  %v2293_v34 = vstv %s7825_s4  ;;  %v2308_v10 = vstv %s7827_s21  ;;  %s8035_s4 = sld [smem:[#allocation7 + $0x99]]  ;;  %s8052_s21 = sld [smem:[#allocation7 + $0x9a]] }
 0x1a4   : > { %v2275_v49 = vsel %vm133_vm0, %v2273_v63, %v2274_v42  ;;  %v2279_v15 = vadd.f32 %v2274_v42, %v2266_v39  ;;  %v2294_v35 = vmul.f32 %v7735_v17, %v2293_v34  ;;  %v2295_v27 = vmul.f32 %v7743_v58, %v2293_v34 }
 0x1a5   : > { %v7874_v54 = vadd.f32 %v2253_v32, %v7642_v52  ;;  %v2278_v13 = vadd.f32 %v2275_v49, %v2265_v8  ;;  %v2290_v40 = vadd.f32 %v2288_v37, %v2284_v24  ;;  %v2291_v26 = vadd.f32 %v2289_v60, %v2285_v23 }
 0x1a6   : > { %v2298_v36 = vrot.slane %v2294_v35, 1  ;;  %v2299_v7 = vrot.slane %v2295_v27, 1  ;;  %v2309_v57 = vmul.f32 %v7735_v17, %v2308_v10  ;;  %v2310_v50 = vmul.f32 %v7743_v58, %v2308_v10 }
 0x1a7   : > { %v7879_v62 = vadd.f32 %v2279_v15, %v7647_v18  ;;  %v2312_v38 = vstv %s7840_s0  ;;  %v2318_v11 = vstv %s7845_s22  ;;  %v2333_v28 = vstv %s7847_s24  ;;  %s8057_s0 = sld [smem:[#allocation7 + $0x9b]]  ;;  %s8059_s22 = sld [smem:[#allocation7 + $0xbd]] }
 0x1a8   : > { %v2300_v52 = vsel %vm133_vm0, %v2298_v36, %v2299_v7  ;;  %v2304_v3 = vadd.f32 %v2299_v7, %v2291_v26  ;;  %v2313_v43 = vmul.f32 %v7761_v61, %v2312_v38  ;;  %v2314_v44 = vmul.f32 %v7764_v4, %v2312_v38  ;;  %s8072_s24 = sld [smem:[#allocation7 + $0xbe]] }
 0x1a9   : > { %v7894_v18 = vadd.f32 %v2278_v13, %v7662_v59  ;;  %v2303_v46 = vadd.f32 %v2300_v52, %v2290_v40  ;;  %v2319_v25 = vmul.f32 %v7735_v17, %v2318_v11  ;;  %v2320_v6 = vmul.f32 %v7743_v58, %v2318_v11 }
 0x1aa   : > { %v2315_v41 = vadd.f32 %v2313_v43, %v2309_v57  ;;  %v2316_v16 = vadd.f32 %v2314_v44, %v2310_v50  ;;  %v2334_v9 = vmul.f32 %v7735_v17, %v2333_v28  ;;  %v2335_v20 = vmul.f32 %v7743_v58, %v2333_v28 }
 0x1ab   : > { %v7901_v32 = vadd.f32 %v2304_v3, %v7669_v30  ;;  %v2323_v12 = vrot.slane %v2319_v25, 1  ;;  %v2324_v53 = vrot.slane %v2320_v6, 1  ;;  %v2337_v8 = vstv %s7864_s25  ;;  %s8077_s25 = sld [smem:[#allocation7 + $0xbf]] }
 0x1ac   : > { %v2338_v59 = vmul.f32 %v7761_v61, %v2337_v8  ;;  %v2339_v39 = vmul.f32 %v7764_v4, %v2337_v8  ;;  %v2343_v24 = vstv %s7869_s26  ;;  %v2358_v23 = vstv %s7871_s2  ;;  %s8079_s26 = sld [smem:[#allocation7 + $0xe1]]  ;;  %s8096_s2 = sld [smem:[#allocation7 + $0xe2]] }
 0x1ad   : > { %v2325_v63 = vsel %vm133_vm0, %v2323_v12, %v2324_v53  ;;  %v2329_v42 = vadd.f32 %v2324_v53, %v2316_v16  ;;  %v2344_v30 = vmul.f32 %v7735_v17, %v2343_v24  ;;  %v2345_v47 = vmul.f32 %v7743_v58, %v2343_v24 }
 0x1ae   : > { %v7918_v37 = vadd.f32 %v2303_v46, %v7686_v33  ;;  %v2328_v60 = vadd.f32 %v2325_v63, %v2315_v41  ;;  %v2340_v34 = vadd.f32 %v2338_v59, %v2334_v9  ;;  %v2341_v10 = vadd.f32 %v2339_v39, %v2335_v20 }
 0x1af   : > { %v2348_v49 = vrot.slane %v2344_v30, 1  ;;  %v2349_v15 = vrot.slane %v2345_v47, 1  ;;  %v2359_v35 = vmul.f32 %v7735_v17, %v2358_v23  ;;  %v2360_v27 = vmul.f32 %v7743_v58, %v2358_v23 }
 0x1b0   : > { %v7923_v13 = vadd.f32 %v2329_v42, %v7691_v29  ;;  %v2362_v40 = vstv %s7884_s1  ;;  %v2368_v26 = vstv %s7889_s27  ;;  %v2383_v36 = vstv %s7891_s17  ;;  %s8101_s1 = sld [smem:[#allocation7 + $0xe3]]  ;;  %s8103_s27 = sld [smem:[#allocation7 + $0x105]] }
 0x1b1   : > { %v2350_v33 = vsel %vm133_vm0, %v2348_v49, %v2349_v15  ;;  %v2354_v7 = vadd.f32 %v2349_v15, %v2341_v10  ;;  %v2363_v57 = vmul.f32 %v7761_v61, %v2362_v40  ;;  %v2364_v50 = vmul.f32 %v7764_v4, %v2362_v40  ;;  %s8116_s17 = sld [smem:[#allocation7 + $0x106]] }
 0x1b2   : > { %v7938_v29 = vadd.f32 %v2328_v60, %v7706_v1  ;;  %v2353_v38 = vadd.f32 %v2350_v33, %v2340_v34  ;;  %v2369_v11 = vmul.f32 %v7735_v17, %v2368_v26  ;;  %v2370_v28 = vmul.f32 %v7743_v58, %v2368_v26  ;;  %v7967_v60 = vld [vmem:[%s7290_s23 + $0xd0] sm:$0xff] }
 0x1b3   : > { %v2365_v52 = vadd.f32 %v2363_v57, %v2359_v35  ;;  %v2366_v3 = vadd.f32 %v2364_v50, %v2360_v27  ;;  %v2384_v43 = vmul.f32 %v7735_v17, %v2383_v36  ;;  %v2385_v44 = vmul.f32 %v7743_v58, %v2383_v36  ;;  %v7993_v57 = vld [vmem:[%s7290_s23 + $0x410] sm:$0xff] }
 0x1b4   : > { %v7945_v46 = vadd.f32 %v2354_v7, %v7713_v0  ;;  %v2373_v25 = vrot.slane %v2369_v11, 1  ;;  %v2374_v6 = vrot.slane %v2370_v28, 1  ;;  %v2387_v41 = vstv %s7908_s28  ;;  %s8121_s28 = sld [smem:[#allocation7 + $0x107]] }
 0x1b5   : > { %v2388_v1 = vmul.f32 %v7761_v61, %v2387_v41  ;;  %v2389_v16 = vmul.f32 %v7764_v4, %v2387_v41  ;;  %v2393_v9 = vstv %s7913_s29  ;;  %v2408_v20 = vstv %s7915_s30  ;;  %s8123_s29 = sld [smem:[#allocation7 + $0x129]]  ;;  %s8140_s30 = sld [smem:[#allocation7 + $0x12a]] }
 0x1b6   : > { %v2375_v12 = vsel %vm133_vm0, %v2373_v25, %v2374_v6  ;;  %v2379_v53 = vadd.f32 %v2374_v6, %v2366_v3  ;;  %v2394_v0 = vmul.f32 %v7735_v17, %v2393_v9  ;;  %v2395_v8 = vmul.f32 %v7743_v58, %v2393_v9 }
 0x1b7   : > { %v7962_v59 = vadd.f32 %v2353_v38, %v7730_v22  ;;  %v2378_v39 = vadd.f32 %v2375_v12, %v2365_v52  ;;  %v2390_v24 = vadd.f32 %v2388_v1, %v2384_v43  ;;  %v2391_v23 = vadd.f32 %v2389_v16, %v2385_v44  ;;  %v7975_v22 = vld [vmem:[%s7290_s23 + $0xd8] sm:$0x1f] }
 0x1b8   : > { %v2398_v63 = vrot.slane %v2394_v0, 1  ;;  %v2399_v42 = vrot.slane %v2395_v8, 1  ;;  %v2409_v30 = vmul.f32 %v7735_v17, %v2408_v20  ;;  %v2410_v47 = vmul.f32 %v7743_v58, %v2408_v20 }
 0x1b9   : > { %v7970_v34 = vadd.f32 %v2379_v53, %v7738_v48  ;;  %v2412_v10 = vstv %s7928_s6  ;;  %v2418_v49 = vstv %s7933_s7  ;;  %v2443_v15 = vstv %s7935_s8  ;;  %s8145_s6 = sld [smem:[#allocation7 + $0x12b]]  ;;  %s8147_s7 = sld [smem:[#allocation7 + $0x14d]] }
 0x1ba   : > { %v2400_v35 = vsel %vm133_vm0, %v2398_v63, %v2399_v42  ;;  %v2404_v27 = vadd.f32 %v2399_v42, %v2391_v23  ;;  %v2413_v40 = vmul.f32 %v7761_v61, %v2412_v10  ;;  %v2414_v26 = vmul.f32 %v7764_v4, %v2412_v10  ;;  %v7996_v61 = vld [vmem:[%s7290_s23 + $0x418] sm:$0x1f]  ;;  %s8160_s8 = sld [smem:[#allocation7 + $0x14e]] }
 0x1bb   : > { %v7988_v48 = vadd.f32 %v2378_v39, %v7756_v51  ;;  %v2403_v36 = vadd.f32 %v2400_v35, %v2390_v24  ;;  %v2419_v33 = vmul.f32 %v7735_v17, %v2418_v49  ;;  %v2420_v7 = vmul.f32 %v7743_v58, %v2418_v49 }
 0x1bc   : > { %v2415_v4 = vadd.f32 %v2413_v40, %v2409_v30  ;;  %v2416_v50 = vadd.f32 %v2414_v26, %v2410_v47  ;;  %v2444_v38 = vmul.f32 %v7967_v60, %v2443_v15  ;;  %v2445_v11 = vmul.f32 %v7975_v22, %v2443_v15 }
 0x1bd   : > { %v8001_v51 = vadd.f32 %v2404_v27, %v7769_v19  ;;  %v2423_v28 = vrot.slane %v2419_v33, 1  ;;  %v2424_v52 = vrot.slane %v2420_v7, 1  ;;  %v2447_v3 = vstv %s7952_s9  ;;  %s8165_s9 = sld [smem:[#allocation7 + $0x14f]] }
 0x1be   : > { %v2448_v17 = vmul.f32 %v7993_v57, %v2447_v3  ;;  %v2449_v58 = vmul.f32 %v7996_v61, %v2447_v3  ;;  %v2453_v43 = vstv %s7957_s10  ;;  %v2468_v44 = vstv %s7959_s3  ;;  %s8167_s10 = sld [smem:[#allocation7 + $0xc]]  ;;  %s8184_s3 = sld [smem:[#allocation7 + $0xd]] }
 0x1bf   : > { %v2425_v25 = vsel %vm133_vm0, %v2423_v28, %v2424_v52  ;;  %v2429_v6 = vadd.f32 %v2424_v52, %v2416_v50  ;;  %v2454_v19 = vmul.f32 %v7967_v60, %v2453_v43  ;;  %v2455_v41 = vmul.f32 %v7975_v22, %v2453_v43 }
 0x1c0   : > { %v8018_v1 = vadd.f32 %v2403_v36, %v7786_v31  ;;  %v2428_v16 = vadd.f32 %v2425_v25, %v2415_v4  ;;  %v2450_v9 = vadd.f32 %v2448_v17, %v2444_v38  ;;  %v2451_v20 = vadd.f32 %v2449_v58, %v2445_v11 }
 0x1c1   : > { %v2458_v12 = vrot.slane %v2454_v19, 1  ;;  %v2459_v53 = vrot.slane %v2455_v41, 1  ;;  %v2469_v0 = vmul.f32 %v7967_v60, %v2468_v44  ;;  %v2470_v8 = vmul.f32 %v7975_v22, %v2468_v44 }
 0x1c2   : > { %v8023_v39 = vadd.f32 %v2429_v6, %v7791_v5  ;;  %v2472_v24 = vstv %s7978_s11  ;;  %v2478_v23 = vstv %s7983_s12  ;;  %v2493_v63 = vstv %s7985_s14  ;;  %s8189_s11 = sld [smem:[#allocation7 + $0xe]]  ;;  %s8191_s12 = sld [smem:[#allocation7 + $0x30]] }
 0x1c3   : > { %v2460_v31 = vsel %vm133_vm0, %v2458_v12, %v2459_v53  ;;  %v2464_v42 = vadd.f32 %v2459_v53, %v2451_v20  ;;  %v2473_v30 = vmul.f32 %v7993_v57, %v2472_v24  ;;  %v2474_v47 = vmul.f32 %v7996_v61, %v2472_v24  ;;  %s8210_s14 = sld [smem:[#allocation7 + $0x31]] }
 0x1c4   : > { %v8038_v5 = vadd.f32 %v2428_v16, %v7806_v21  ;;  %v2463_v10 = vadd.f32 %v2460_v31, %v2450_v9  ;;  %v2479_v49 = vmul.f32 %v7967_v60, %v2478_v23  ;;  %v2480_v15 = vmul.f32 %v7975_v22, %v2478_v23 }
 0x1c5   : > { %v2475_v35 = vadd.f32 %v2473_v30, %v2469_v0  ;;  %v2476_v27 = vadd.f32 %v2474_v47, %v2470_v8  ;;  %v2494_v40 = vmul.f32 %v7967_v60, %v2493_v63  ;;  %v2495_v26 = vmul.f32 %v7975_v22, %v2493_v63 }
 0x1c6   : > { %v8045_v36 = vadd.f32 %v2464_v42, %v7813_v45  ;;  %v2483_v33 = vrot.slane %v2479_v49, 1  ;;  %v2484_v7 = vrot.slane %v2480_v15, 1  ;;  %v2497_v4 = vstv %s8008_s15  ;;  %s8215_s15 = sld [smem:[#allocation7 + $0x32]] }
 0x1c7   : > { %v2498_v21 = vmul.f32 %v7993_v57, %v2497_v4  ;;  %v2499_v50 = vmul.f32 %v7996_v61, %v2497_v4  ;;  %v2503_v38 = vstv %s8013_s13  ;;  %v2518_v11 = vstv %s8015_s18  ;;  %s8217_s13 = sld [smem:[#allocation7 + $0x54]]  ;;  %s8240_s18 = sld [smem:[#allocation7 + $0x55]] }
 0x1c8   : > { %v2485_v28 = vsel %vm133_vm0, %v2483_v33, %v2484_v7  ;;  %v2489_v52 = vadd.f32 %v2484_v7, %v2476_v27  ;;  %v2504_v45 = vmul.f32 %v7967_v60, %v2503_v38  ;;  %v2505_v3 = vmul.f32 %v7975_v22, %v2503_v38 }
 0x1c9   : > { %v8062_v17 = vadd.f32 %v2463_v10, %v7830_v2  ;;  %v2488_v58 = vadd.f32 %v2485_v28, %v2475_v35  ;;  %v2500_v43 = vadd.f32 %v2498_v21, %v2494_v40  ;;  %v2501_v44 = vadd.f32 %v2499_v50, %v2495_v26 }
 0x1ca   : > { %v2508_v25 = vrot.slane %v2504_v45, 1  ;;  %v2509_v6 = vrot.slane %v2505_v3, 1  ;;  %v2519_v19 = vmul.f32 %v7967_v60, %v2518_v11  ;;  %v2520_v41 = vmul.f32 %v7975_v22, %v2518_v11 }
 0x1cb   : > { %v8067_v16 = vadd.f32 %v2489_v52, %v7835_v14  ;;  %v2522_v9 = vstv %s8028_s19  ;;  %v2528_v20 = vstv %s8033_s16  ;;  %v2543_v12 = vstv %s8035_s4  ;;  %s8245_s19 = sld [smem:[#allocation7 + $0x56]]  ;;  %s8247_s16 = sld [smem:[#allocation7 + $0x78]] }
 0x1cc   : > { %v2510_v2 = vsel %vm133_vm0, %v2508_v25, %v2509_v6  ;;  %v2514_v53 = vadd.f32 %v2509_v6, %v2501_v44  ;;  %v2523_v0 = vmul.f32 %v7993_v57, %v2522_v9  ;;  %v2524_v8 = vmul.f32 %v7996_v61, %v2522_v9  ;;  %s8260_s4 = sld [smem:[#allocation7 + $0x79]] }
 0x1cd   : > { %v8082_v14 = vadd.f32 %v2488_v58, %v7850_v56  ;;  %v2513_v24 = vadd.f32 %v2510_v2, %v2500_v43  ;;  %v2529_v23 = vmul.f32 %v7967_v60, %v2528_v20  ;;  %v2530_v63 = vmul.f32 %v7975_v22, %v2528_v20 }
 0x1ce   : > { %v2525_v31 = vadd.f32 %v2523_v0, %v2519_v19  ;;  %v2526_v42 = vadd.f32 %v2524_v8, %v2520_v41  ;;  %v2544_v30 = vmul.f32 %v7967_v60, %v2543_v12  ;;  %v2545_v47 = vmul.f32 %v7975_v22, %v2543_v12 }
 0x1cf   : > { %v8089_v10 = vadd.f32 %v2514_v53, %v7857_v55  ;;  %v2533_v49 = vrot.slane %v2529_v23, 1  ;;  %v2534_v15 = vrot.slane %v2530_v63, 1  ;;  %v2547_v35 = vstv %s8052_s21  ;;  %s8265_s21 = sld [smem:[#allocation7 + $0x7a]] }
 0x1d0   : > { %v2548_v56 = vmul.f32 %v7993_v57, %v2547_v35  ;;  %v2549_v27 = vmul.f32 %v7996_v61, %v2547_v35  ;;  %v2553_v40 = vstv %s8057_s0  ;;  %v2568_v26 = vstv %s8059_s22  ;;  %s8267_s0 = sld [smem:[#allocation7 + $0x9c]]  ;;  %s8284_s22 = sld [smem:[#allocation7 + $0x9d]] }
 0x1d1   : > { %v2535_v33 = vsel %vm133_vm0, %v2533_v49, %v2534_v15  ;;  %v2539_v7 = vadd.f32 %v2534_v15, %v2526_v42  ;;  %v2554_v55 = vmul.f32 %v7967_v60, %v2553_v40  ;;  %v2555_v4 = vmul.f32 %v7975_v22, %v2553_v40 }
 0x1d2   : > { %v8106_v21 = vadd.f32 %v2513_v24, %v7874_v54  ;;  %v2538_v50 = vadd.f32 %v2535_v33, %v2525_v31  ;;  %v2550_v38 = vadd.f32 %v2548_v56, %v2544_v30  ;;  %v2551_v11 = vadd.f32 %v2549_v27, %v2545_v47 }
 0x1d3   : > { %v2558_v28 = vrot.slane %v2554_v55, 1  ;;  %v2559_v52 = vrot.slane %v2555_v4, 1  ;;  %v2569_v45 = vmul.f32 %v7967_v60, %v2568_v26  ;;  %v2570_v3 = vmul.f32 %v7975_v22, %v2568_v26 }
 0x1d4   : > { %v8111_v58 = vadd.f32 %v2539_v7, %v7879_v62  ;;  %v2572_v43 = vstv %s8072_s24  ;;  %v2578_v44 = vstv %s8077_s25  ;;  %v2593_v25 = vstv %s8079_s26  ;;  %s8289_s24 = sld [smem:[#allocation7 + $0x9e]]  ;;  %s8291_s25 = sld [smem:[#allocation7 + $0xc0]] }
 0x1d5   : > { %v2560_v54 = vsel %vm133_vm0, %v2558_v28, %v2559_v52  ;;  %v2564_v6 = vadd.f32 %v2559_v52, %v2551_v11  ;;  %v2573_v19 = vmul.f32 %v7993_v57, %v2572_v43  ;;  %v2574_v41 = vmul.f32 %v7996_v61, %v2572_v43  ;;  %s8304_s26 = sld [smem:[#allocation7 + $0xc1]] }
 0x1d6   : > { %v8126_v62 = vadd.f32 %v2538_v50, %v7894_v18  ;;  %v2563_v9 = vadd.f32 %v2560_v54, %v2550_v38  ;;  %v2579_v20 = vmul.f32 %v7967_v60, %v2578_v44  ;;  %v2580_v12 = vmul.f32 %v7975_v22, %v2578_v44 }
 0x1d7   : > { %v2575_v2 = vadd.f32 %v2573_v19, %v2569_v45  ;;  %v2576_v53 = vadd.f32 %v2574_v41, %v2570_v3  ;;  %v2594_v0 = vmul.f32 %v7967_v60, %v2593_v25  ;;  %v2595_v8 = vmul.f32 %v7975_v22, %v2593_v25 }
 0x1d8   : > { %v8133_v24 = vadd.f32 %v2564_v6, %v7901_v32  ;;  %v2583_v23 = vrot.slane %v2579_v20, 1  ;;  %v2584_v63 = vrot.slane %v2580_v12, 1  ;;  %v2597_v31 = vstv %s8096_s2  ;;  %s8309_s2 = sld [smem:[#allocation7 + $0xc2]] }
 0x1d9   : > { %v2598_v18 = vmul.f32 %v7993_v57, %v2597_v31  ;;  %v2599_v42 = vmul.f32 %v7996_v61, %v2597_v31  ;;  %v2603_v30 = vstv %s8101_s1  ;;  %v2618_v47 = vstv %s8103_s27  ;;  %s8311_s1 = sld [smem:[#allocation7 + $0xe4]]  ;;  %s8328_s27 = sld [smem:[#allocation7 + $0xe5]] }
 0x1da   : > { %v2585_v49 = vsel %vm133_vm0, %v2583_v23, %v2584_v63  ;;  %v2589_v15 = vadd.f32 %v2584_v63, %v2576_v53  ;;  %v2604_v32 = vmul.f32 %v7967_v60, %v2603_v30  ;;  %v2605_v35 = vmul.f32 %v7975_v22, %v2603_v30 }
 0x1db   : > { %v8150_v56 = vadd.f32 %v2563_v9, %v7918_v37  ;;  %v2588_v27 = vadd.f32 %v2585_v49, %v2575_v2  ;;  %v2600_v40 = vadd.f32 %v2598_v18, %v2594_v0  ;;  %v2601_v26 = vadd.f32 %v2599_v42, %v2595_v8 }
 0x1dc   : > { %v2608_v33 = vrot.slane %v2604_v32, 1  ;;  %v2609_v7 = vrot.slane %v2605_v35, 1  ;;  %v2619_v55 = vmul.f32 %v7967_v60, %v2618_v47  ;;  %v2620_v4 = vmul.f32 %v7975_v22, %v2618_v47 }
 0x1dd   : > { %v8155_v50 = vadd.f32 %v2589_v15, %v7923_v13  ;;  %v2622_v38 = vstv %s8116_s17  ;;  %v2628_v11 = vstv %s8121_s28  ;;  %v2643_v28 = vstv %s8123_s29  ;;  %s8333_s17 = sld [smem:[#allocation7 + $0xe6]]  ;;  %s8335_s28 = sld [smem:[#allocation7 + $0x108]] }
 0x1de   : > { %v2610_v37 = vsel %vm133_vm0, %v2608_v33, %v2609_v7  ;;  %v2614_v52 = vadd.f32 %v2609_v7, %v2601_v26  ;;  %v2623_v45 = vmul.f32 %v7993_v57, %v2622_v38  ;;  %v2624_v3 = vmul.f32 %v7996_v61, %v2622_v38  ;;  %s8348_s29 = sld [smem:[#allocation7 + $0x109]] }
 0x1df   : > { %v8170_v13 = vadd.f32 %v2588_v27, %v7938_v29  ;;  %v2613_v43 = vadd.f32 %v2610_v37, %v2600_v40  ;;  %v2629_v44 = vmul.f32 %v7967_v60, %v2628_v11  ;;  %v2630_v25 = vmul.f32 %v7975_v22, %v2628_v11  ;;  %v8199_v27 = vld [vmem:[%s7290_s23 + $0x750] sm:$0xff] }
 0x1e0   : > { %v2625_v54 = vadd.f32 %v2623_v45, %v2619_v55  ;;  %v2626_v6 = vadd.f32 %v2624_v3, %v2620_v4  ;;  %v2644_v19 = vmul.f32 %v7967_v60, %v2643_v28  ;;  %v2645_v41 = vmul.f32 %v7975_v22, %v2643_v28  ;;  %v8225_v45 = vld [vmem:[%s7290_s23 + $0xa90] sm:$0xff] }
 0x1e1   : > { %v8177_v9 = vadd.f32 %v2614_v52, %v7945_v46  ;;  %v2633_v20 = vrot.slane %v2629_v44, 1  ;;  %v2634_v12 = vrot.slane %v2630_v25, 1  ;;  %v2647_v2 = vstv %s8140_s30  ;;  %s8353_s30 = sld [smem:[#allocation7 + $0x10a]] }
 0x1e2   : > { %v2648_v29 = vmul.f32 %v7993_v57, %v2647_v2  ;;  %v2649_v53 = vmul.f32 %v7996_v61, %v2647_v2  ;;  %v2653_v0 = vstv %s8145_s6  ;;  %v2668_v8 = vstv %s8147_s7  ;;  %s8355_s6 = sld [smem:[#allocation7 + $0x12c]]  ;;  %s8372_s7 = sld [smem:[#allocation7 + $0x12d]] }
 0x1e3   : > { %v2635_v23 = vsel %vm133_vm0, %v2633_v20, %v2634_v12  ;;  %v2639_v63 = vadd.f32 %v2634_v12, %v2626_v6  ;;  %v2654_v46 = vmul.f32 %v7967_v60, %v2653_v0  ;;  %v2655_v31 = vmul.f32 %v7975_v22, %v2653_v0 }
 0x1e4   : > { %v8194_v18 = vadd.f32 %v2613_v43, %v7962_v59  ;;  %v2638_v42 = vadd.f32 %v2635_v23, %v2625_v54  ;;  %v2650_v30 = vadd.f32 %v2648_v29, %v2644_v19  ;;  %v2651_v47 = vadd.f32 %v2649_v53, %v2645_v41  ;;  %v8207_v59 = vld [vmem:[%s7290_s23 + $0x758] sm:$0x1f] }
 0x1e5   : > { %v2658_v49 = vrot.slane %v2654_v46, 1  ;;  %v2659_v15 = vrot.slane %v2655_v31, 1  ;;  %v2669_v32 = vmul.f32 %v7967_v60, %v2668_v8  ;;  %v2670_v35 = vmul.f32 %v7975_v22, %v2668_v8 }
 0x1e6   : > { %v8202_v40 = vadd.f32 %v2639_v63, %v7970_v34  ;;  %v2672_v26 = vstv %s8160_s8  ;;  %v2678_v33 = vstv %s8165_s9  ;;  %v2703_v7 = vstv %s8167_s10  ;;  %s8377_s8 = sld [smem:[#allocation7 + $0x12e]]  ;;  %s8379_s9 = sld [smem:[#allocation7 + $0x150]] }
 0x1e7   : > { %v2660_v55 = vsel %vm133_vm0, %v2658_v49, %v2659_v15  ;;  %v2664_v4 = vadd.f32 %v2659_v15, %v2651_v47  ;;  %v2673_v38 = vmul.f32 %v7993_v57, %v2672_v26  ;;  %v2674_v11 = vmul.f32 %v7996_v61, %v2672_v26  ;;  %v8228_v57 = vld [vmem:[%s7290_s23 + $0xa98] sm:$0x1f]  ;;  %s8392_s10 = sld [smem:[#allocation7 + $0xf]] }
 0x1e8   : > { %v8220_v34 = vadd.f32 %v2638_v42, %v7988_v48  ;;  %v2663_v28 = vadd.f32 %v2660_v55, %v2650_v30  ;;  %v2679_v37 = vmul.f32 %v7967_v60, %v2678_v33  ;;  %v2680_v52 = vmul.f32 %v7975_v22, %v2678_v33 }
 0x1e9   : > { %v2675_v61 = vadd.f32 %v2673_v38, %v2669_v32  ;;  %v2676_v3 = vadd.f32 %v2674_v11, %v2670_v35  ;;  %v2704_v43 = vmul.f32 %v8199_v27, %v2703_v7  ;;  %v2705_v44 = vmul.f32 %v8207_v59, %v2703_v7 }
 0x1ea   : > { %v8233_v48 = vadd.f32 %v2664_v4, %v8001_v51  ;;  %v2683_v25 = vrot.slane %v2679_v37, 1  ;;  %v2684_v54 = vrot.slane %v2680_v52, 1  ;;  %v2707_v6 = vstv %s8184_s3  ;;  %s8397_s3 = sld [smem:[#allocation7 + $0x151]] }
 0x1eb   : > { %v2708_v60 = vmul.f32 %v8225_v45, %v2707_v6  ;;  %v2709_v22 = vmul.f32 %v8228_v57, %v2707_v6  ;;  %v2713_v19 = vstv %s8189_s11  ;;  %v2728_v41 = vstv %s8191_s12  ;;  %s8399_s11 = sld [smem:[#allocation7 + $0x152]]  ;;  %s8416_s12 = sld [smem:[#allocation7 + $0x10]] }
 0x1ec   : > { %v2685_v20 = vsel %vm133_vm0, %v2683_v25, %v2684_v54  ;;  %v2689_v12 = vadd.f32 %v2684_v54, %v2676_v3  ;;  %v2714_v51 = vmul.f32 %v8199_v27, %v2713_v19  ;;  %v2715_v2 = vmul.f32 %v8207_v59, %v2713_v19 }
 0x1ed   : > { %v8250_v29 = vadd.f32 %v2663_v28, %v8018_v1  ;;  %v2688_v53 = vadd.f32 %v2685_v20, %v2675_v61  ;;  %v2710_v0 = vadd.f32 %v2708_v60, %v2704_v43  ;;  %v2711_v8 = vadd.f32 %v2709_v22, %v2705_v44 }
 0x1ee   : > { %v2718_v23 = vrot.slane %v2714_v51, 1  ;;  %v2719_v63 = vrot.slane %v2715_v2, 1  ;;  %v2729_v46 = vmul.f32 %v8199_v27, %v2728_v41  ;;  %v2730_v31 = vmul.f32 %v8207_v59, %v2728_v41 }
 0x1ef   : > { %v8255_v42 = vadd.f32 %v2689_v12, %v8023_v39  ;;  %v2732_v30 = vstv %s8210_s14  ;;  %v2738_v47 = vstv %s8215_s15  ;;  %v2753_v49 = vstv %s8217_s13  ;;  %s8421_s14 = sld [smem:[#allocation7 + $0x11]]  ;;  %s8423_s15 = sld [smem:[#allocation7 + $0x33]] }
 0x1f0   : > { %v2720_v1 = vsel %vm133_vm0, %v2718_v23, %v2719_v63  ;;  %v2724_v15 = vadd.f32 %v2719_v63, %v2711_v8  ;;  %v2733_v32 = vmul.f32 %v8225_v45, %v2732_v30  ;;  %v2734_v35 = vmul.f32 %v8228_v57, %v2732_v30  ;;  %s8442_s13 = sld [smem:[#allocation7 + $0x34]] }
 0x1f1   : > { %v8270_v39 = vadd.f32 %v2688_v53, %v8038_v5  ;;  %v2723_v26 = vadd.f32 %v2720_v1, %v2710_v0  ;;  %v2739_v33 = vmul.f32 %v8199_v27, %v2738_v47  ;;  %v2740_v7 = vmul.f32 %v8207_v59, %v2738_v47 }
 0x1f2   : > { %v2735_v55 = vadd.f32 %v2733_v32, %v2729_v46  ;;  %v2736_v4 = vadd.f32 %v2734_v35, %v2730_v31  ;;  %v2754_v38 = vmul.f32 %v8199_v27, %v2753_v49  ;;  %v2755_v11 = vmul.f32 %v8207_v59, %v2753_v49 }
 0x1f3   : > { %v8277_v28 = vadd.f32 %v2724_v15, %v8045_v36  ;;  %v2743_v37 = vrot.slane %v2739_v33, 1  ;;  %v2744_v52 = vrot.slane %v2740_v7, 1  ;;  %v2757_v61 = vstv %s8240_s18  ;;  %s8447_s18 = sld [smem:[#allocation7 + $0x35]] }
 0x1f4   : > { %v2758_v5 = vmul.f32 %v8225_v45, %v2757_v61  ;;  %v2759_v3 = vmul.f32 %v8228_v57, %v2757_v61  ;;  %v2763_v43 = vstv %s8245_s19  ;;  %v2778_v44 = vstv %s8247_s16  ;;  %s8449_s19 = sld [smem:[#allocation7 + $0x57]]  ;;  %s8472_s16 = sld [smem:[#allocation7 + $0x58]] }
 0x1f5   : > { %v2745_v25 = vsel %vm133_vm0, %v2743_v37, %v2744_v52  ;;  %v2749_v54 = vadd.f32 %v2744_v52, %v2736_v4  ;;  %v2764_v36 = vmul.f32 %v8199_v27, %v2763_v43  ;;  %v2765_v6 = vmul.f32 %v8207_v59, %v2763_v43 }
 0x1f6   : > { %v8294_v60 = vadd.f32 %v2723_v26, %v8062_v17  ;;  %v2748_v22 = vadd.f32 %v2745_v25, %v2735_v55  ;;  %v2760_v19 = vadd.f32 %v2758_v5, %v2754_v38  ;;  %v2761_v41 = vadd.f32 %v2759_v3, %v2755_v11 }
 0x1f7   : > { %v2768_v20 = vrot.slane %v2764_v36, 1  ;;  %v2769_v12 = vrot.slane %v2765_v6, 1  ;;  %v2779_v51 = vmul.f32 %v8199_v27, %v2778_v44  ;;  %v2780_v2 = vmul.f32 %v8207_v59, %v2778_v44 }
 0x1f8   : > { %v8299_v53 = vadd.f32 %v2749_v54, %v8067_v16  ;;  %v2782_v0 = vstv %s8260_s4  ;;  %v2788_v8 = vstv %s8265_s21  ;;  %v2803_v23 = vstv %s8267_s0  ;;  %s8477_s4 = sld [smem:[#allocation7 + $0x59]]  ;;  %s8479_s21 = sld [smem:[#allocation7 + $0x7b]] }
 0x1f9   : > { %v2770_v17 = vsel %vm133_vm0, %v2768_v20, %v2769_v12  ;;  %v2774_v63 = vadd.f32 %v2769_v12, %v2761_v41  ;;  %v2783_v46 = vmul.f32 %v8225_v45, %v2782_v0  ;;  %v2784_v31 = vmul.f32 %v8228_v57, %v2782_v0  ;;  %s8492_s0 = sld [smem:[#allocation7 + $0x7c]] }
 0x1fa   : > { %v8314_v16 = vadd.f32 %v2748_v22, %v8082_v14  ;;  %v2773_v30 = vadd.f32 %v2770_v17, %v2760_v19  ;;  %v2789_v47 = vmul.f32 %v8199_v27, %v2788_v8  ;;  %v2790_v49 = vmul.f32 %v8207_v59, %v2788_v8 }
 0x1fb   : > { %v2785_v1 = vadd.f32 %v2783_v46, %v2779_v51  ;;  %v2786_v15 = vadd.f32 %v2784_v31, %v2780_v2  ;;  %v2804_v32 = vmul.f32 %v8199_v27, %v2803_v23  ;;  %v2805_v35 = vmul.f32 %v8207_v59, %v2803_v23 }
 0x1fc   : > { %v8321_v26 = vadd.f32 %v2774_v63, %v8089_v10  ;;  %v2793_v33 = vrot.slane %v2789_v47, 1  ;;  %v2794_v7 = vrot.slane %v2790_v49, 1  ;;  %v2807_v55 = vstv %s8284_s22  ;;  %s8497_s22 = sld [smem:[#allocation7 + $0x7d]] }
 0x1fd   : > { %v2808_v14 = vmul.f32 %v8225_v45, %v2807_v55  ;;  %v2809_v4 = vmul.f32 %v8228_v57, %v2807_v55  ;;  %v2813_v38 = vstv %s8289_s24  ;;  %v2828_v11 = vstv %s8291_s25  ;;  %s8499_s24 = sld [smem:[#allocation7 + $0x9f]]  ;;  %s8516_s25 = sld [smem:[#allocation7 + $0xa0]] }
 0x1fe   : > { %v2795_v37 = vsel %vm133_vm0, %v2793_v33, %v2794_v7  ;;  %v2799_v52 = vadd.f32 %v2794_v7, %v2786_v15  ;;  %v2814_v10 = vmul.f32 %v8199_v27, %v2813_v38  ;;  %v2815_v61 = vmul.f32 %v8207_v59, %v2813_v38 }
 0x1ff   : > { %v8338_v5 = vadd.f32 %v2773_v30, %v8106_v21  ;;  %v2798_v3 = vadd.f32 %v2795_v37, %v2785_v1  ;;  %v2810_v43 = vadd.f32 %v2808_v14, %v2804_v32  ;;  %v2811_v44 = vadd.f32 %v2809_v4, %v2805_v35 }
 0x200   : > { %v2818_v25 = vrot.slane %v2814_v10, 1  ;;  %v2819_v54 = vrot.slane %v2815_v61, 1  ;;  %v2829_v36 = vmul.f32 %v8199_v27, %v2828_v11  ;;  %v2830_v6 = vmul.f32 %v8207_v59, %v2828_v11 }
 0x201   : > { %v8343_v22 = vadd.f32 %v2799_v52, %v8111_v58  ;;  %v2832_v19 = vstv %s8304_s26  ;;  %v2838_v41 = vstv %s8309_s2  ;;  %v2853_v20 = vstv %s8311_s1  ;;  %s8521_s26 = sld [smem:[#allocation7 + $0xa1]]  ;;  %s8523_s2 = sld [smem:[#allocation7 + $0xc3]] }
 0x202   : > { %v2820_v21 = vsel %vm133_vm0, %v2818_v25, %v2819_v54  ;;  %v2824_v12 = vadd.f32 %v2819_v54, %v2811_v44  ;;  %v2833_v51 = vmul.f32 %v8225_v45, %v2832_v19  ;;  %v2834_v2 = vmul.f32 %v8228_v57, %v2832_v19  ;;  %s8536_s1 = sld [smem:[#allocation7 + $0xc4]] }
 0x203   : > { %v8358_v58 = vadd.f32 %v2798_v3, %v8126_v62  ;;  %v2823_v0 = vadd.f32 %v2820_v21, %v2810_v43  ;;  %v2839_v8 = vmul.f32 %v8199_v27, %v2838_v41  ;;  %v2840_v23 = vmul.f32 %v8207_v59, %v2838_v41 }
 0x204   : > { %v2835_v17 = vadd.f32 %v2833_v51, %v2829_v36  ;;  %v2836_v63 = vadd.f32 %v2834_v2, %v2830_v6  ;;  %v2854_v46 = vmul.f32 %v8199_v27, %v2853_v20  ;;  %v2855_v31 = vmul.f32 %v8207_v59, %v2853_v20 }
 0x205   : > { %v8365_v30 = vadd.f32 %v2824_v12, %v8133_v24  ;;  %v2843_v47 = vrot.slane %v2839_v8, 1  ;;  %v2844_v49 = vrot.slane %v2840_v23, 1  ;;  %v2857_v1 = vstv %s8328_s27  ;;  %s8541_s27 = sld [smem:[#allocation7 + $0xc5]] }
 0x206   : > { %v2858_v62 = vmul.f32 %v8225_v45, %v2857_v1  ;;  %v2859_v15 = vmul.f32 %v8228_v57, %v2857_v1  ;;  %v2863_v32 = vstv %s8333_s17  ;;  %v2878_v35 = vstv %s8335_s28  ;;  %s8543_s17 = sld [smem:[#allocation7 + $0xe7]]  ;;  %s8560_s28 = sld [smem:[#allocation7 + $0xe8]] }
 0x207   : > { %v2845_v33 = vsel %vm133_vm0, %v2843_v47, %v2844_v49  ;;  %v2849_v7 = vadd.f32 %v2844_v49, %v2836_v63  ;;  %v2864_v24 = vmul.f32 %v8199_v27, %v2863_v32  ;;  %v2865_v55 = vmul.f32 %v8207_v59, %v2863_v32 }
 0x208   : > { %v8382_v14 = vadd.f32 %v2823_v0, %v8150_v56  ;;  %v2848_v4 = vadd.f32 %v2845_v33, %v2835_v17  ;;  %v2860_v38 = vadd.f32 %v2858_v62, %v2854_v46  ;;  %v2861_v11 = vadd.f32 %v2859_v15, %v2855_v31 }
 0x209   : > { %v2868_v37 = vrot.slane %v2864_v24, 1  ;;  %v2869_v52 = vrot.slane %v2865_v55, 1  ;;  %v2879_v10 = vmul.f32 %v8199_v27, %v2878_v35  ;;  %v2880_v61 = vmul.f32 %v8207_v59, %v2878_v35 }
 0x20a   : > { %v8387_v3 = vadd.f32 %v2849_v7, %v8155_v50  ;;  %v2882_v43 = vstv %s8348_s29  ;;  %v2888_v44 = vstv %s8353_s30  ;;  %v2903_v25 = vstv %s8355_s6  ;;  %s8565_s29 = sld [smem:[#allocation7 + $0xe9]]  ;;  %s8567_s30 = sld [smem:[#allocation7 + $0x10b]] }
 0x20b   : > { %v2870_v56 = vsel %vm133_vm0, %v2868_v37, %v2869_v52  ;;  %v2874_v54 = vadd.f32 %v2869_v52, %v2861_v11  ;;  %v2883_v36 = vmul.f32 %v8225_v45, %v2882_v43  ;;  %v2884_v6 = vmul.f32 %v8228_v57, %v2882_v43  ;;  %s8580_s6 = sld [smem:[#allocation7 + $0x10c]] }
 0x20c   : > { %v8402_v50 = vadd.f32 %v2848_v4, %v8170_v13  ;;  %v2873_v19 = vadd.f32 %v2870_v56, %v2860_v38  ;;  %v2889_v41 = vmul.f32 %v8199_v27, %v2888_v44  ;;  %v2890_v20 = vmul.f32 %v8207_v59, %v2888_v44  ;;  %v8431_v4 = vld [vmem:[%s7290_s23 + $0xe0] sm:$0xff] }
 0x20d   : > { %v2885_v21 = vadd.f32 %v2883_v36, %v2879_v10  ;;  %v2886_v12 = vadd.f32 %v2884_v6, %v2880_v61  ;;  %v2904_v51 = vmul.f32 %v8199_v27, %v2903_v25  ;;  %v2905_v2 = vmul.f32 %v8207_v59, %v2903_v25  ;;  %v8457_v36 = vld [vmem:[%s7290_s23 + $0x420] sm:$0xff] }
 0x20e   : > { %v8409_v0 = vadd.f32 %v2874_v54, %v8177_v9  ;;  %v2893_v8 = vrot.slane %v2889_v41, 1  ;;  %v2894_v23 = vrot.slane %v2890_v20, 1  ;;  %v2907_v17 = vstv %s8372_s7  ;;  %s8585_s7 = sld [smem:[#allocation7 + $0x10d]] }
 0x20f   : > { %v2908_v13 = vmul.f32 %v8225_v45, %v2907_v17  ;;  %v2909_v63 = vmul.f32 %v8228_v57, %v2907_v17  ;;  %v2913_v46 = vstv %s8377_s8  ;;  %v2928_v31 = vstv %s8379_s9  ;;  %s8587_s8 = sld [smem:[#allocation7 + $0x12f]]  ;;  %s8604_s9 = sld [smem:[#allocation7 + $0x130]] }
 0x210   : > { %v2895_v47 = vsel %vm133_vm0, %v2893_v8, %v2894_v23  ;;  %v2899_v49 = vadd.f32 %v2894_v23, %v2886_v12  ;;  %v2914_v9 = vmul.f32 %v8199_v27, %v2913_v46  ;;  %v2915_v1 = vmul.f32 %v8207_v59, %v2913_v46 }
 0x211   : > { %v8426_v62 = vadd.f32 %v2873_v19, %v8194_v18  ;;  %v2898_v15 = vadd.f32 %v2895_v47, %v2885_v21  ;;  %v2910_v32 = vadd.f32 %v2908_v13, %v2904_v51  ;;  %v2911_v35 = vadd.f32 %v2909_v63, %v2905_v2  ;;  %v8439_v18 = vld [vmem:[%s7290_s23 + $0xe8] sm:$0x1f] }
 0x212   : > { %v2918_v33 = vrot.slane %v2914_v9, 1  ;;  %v2919_v7 = vrot.slane %v2915_v1, 1  ;;  %v2929_v24 = vmul.f32 %v8199_v27, %v2928_v31  ;;  %v2930_v55 = vmul.f32 %v8207_v59, %v2928_v31 }
 0x213   : > { %v8434_v38 = vadd.f32 %v2899_v49, %v8202_v40  ;;  %v2932_v11 = vstv %s8397_s3  ;;  %v2938_v37 = vstv %s8399_s11  ;;  %v2963_v52 = vstv %s8392_s10  ;;  %s8609_s10 = sld [smem:[#allocation7 + $0x131]]  ;;  %s8611_s3 = sld [smem:[#allocation7 + $0x153]] }
 0x214   : > { %v2920_v10 = vsel %vm133_vm0, %v2918_v33, %v2919_v7  ;;  %v2924_v61 = vadd.f32 %v2919_v7, %v2911_v35  ;;  %v2933_v43 = vmul.f32 %v8225_v45, %v2932_v11  ;;  %v2934_v44 = vmul.f32 %v8228_v57, %v2932_v11  ;;  %v8460_v45 = vld [vmem:[%s7290_s23 + $0x428] sm:$0x1f]  ;;  %s8624_s11 = sld [smem:[#allocation7 + $0x12]] }
 0x215   : > { %v8452_v40 = vadd.f32 %v2898_v15, %v8220_v34  ;;  %v2923_v25 = vadd.f32 %v2920_v10, %v2910_v32  ;;  %v2939_v56 = vmul.f32 %v8199_v27, %v2938_v37  ;;  %v2940_v54 = vmul.f32 %v8207_v59, %v2938_v37 }
 0x216   : > { %v2935_v57 = vadd.f32 %v2933_v43, %v2929_v24  ;;  %v2936_v6 = vadd.f32 %v2934_v44, %v2930_v55  ;;  %v2964_v19 = vmul.f32 %v8431_v4, %v2963_v52  ;;  %v2965_v41 = vmul.f32 %v8439_v18, %v2963_v52 }
 0x217   : > { %v8465_v34 = vadd.f32 %v2924_v61, %v8233_v48  ;;  %v2943_v20 = vrot.slane %v2939_v56, 1  ;;  %v2944_v21 = vrot.slane %v2940_v54, 1  ;;  %v2967_v12 = vstv %s8416_s12  ;;  %s8629_s12 = sld [smem:[#allocation7 + $0x154]] }
 0x218   : > { %v2968_v27 = vmul.f32 %v8457_v36, %v2967_v12  ;;  %v2969_v59 = vmul.f32 %v8460_v45, %v2967_v12  ;;  %v2973_v51 = vstv %s8421_s14  ;;  %v2988_v2 = vstv %s8423_s15  ;;  %s8631_s14 = sld [smem:[#allocation7 + $0x155]]  ;;  %s8648_s15 = sld [smem:[#allocation7 + $0x13]] }
 0x219   : > { %v2945_v8 = vsel %vm133_vm0, %v2943_v20, %v2944_v21  ;;  %v2949_v23 = vadd.f32 %v2944_v21, %v2936_v6  ;;  %v2974_v48 = vmul.f32 %v8431_v4, %v2973_v51  ;;  %v2975_v17 = vmul.f32 %v8439_v18, %v2973_v51 }
 0x21a   : > { %v8482_v13 = vadd.f32 %v2923_v25, %v8250_v29  ;;  %v2948_v63 = vadd.f32 %v2945_v8, %v2935_v57  ;;  %v2970_v46 = vadd.f32 %v2968_v27, %v2964_v19  ;;  %v2971_v31 = vadd.f32 %v2969_v59, %v2965_v41 }
 0x21b   : > { %v2978_v47 = vrot.slane %v2974_v48, 1  ;;  %v2979_v49 = vrot.slane %v2975_v17, 1  ;;  %v2989_v9 = vmul.f32 %v8431_v4, %v2988_v2  ;;  %v2990_v1 = vmul.f32 %v8439_v18, %v2988_v2 }
 0x21c   : > { %v8487_v15 = vadd.f32 %v2949_v23, %v8255_v42  ;;  %v2992_v32 = vstv %s8442_s13  ;;  %v2998_v35 = vstv %s8447_s18  ;;  %v3013_v33 = vstv %s8449_s19  ;;  %s8653_s13 = sld [smem:[#allocation7 + $0x14]]  ;;  %s8655_s18 = sld [smem:[#allocation7 + $0x36]] }
 0x21d   : > { %v2980_v29 = vsel %vm133_vm0, %v2978_v47, %v2979_v49  ;;  %v2984_v7 = vadd.f32 %v2979_v49, %v2971_v31  ;;  %v2993_v24 = vmul.f32 %v8457_v36, %v2992_v32  ;;  %v2994_v55 = vmul.f32 %v8460_v45, %v2992_v32  ;;  %s8674_s19 = sld [smem:[#allocation7 + $0x37]] }
 0x21e   : > { %v8502_v42 = vadd.f32 %v2948_v63, %v8270_v39  ;;  %v2983_v11 = vadd.f32 %v2980_v29, %v2970_v46  ;;  %v2999_v37 = vmul.f32 %v8431_v4, %v2998_v35  ;;  %v3000_v52 = vmul.f32 %v8439_v18, %v2998_v35 }
 0x21f   : > { %v2995_v10 = vadd.f32 %v2993_v24, %v2989_v9  ;;  %v2996_v61 = vadd.f32 %v2994_v55, %v2990_v1  ;;  %v3014_v43 = vmul.f32 %v8431_v4, %v3013_v33  ;;  %v3015_v44 = vmul.f32 %v8439_v18, %v3013_v33 }
 0x220   : > { %v8509_v25 = vadd.f32 %v2984_v7, %v8277_v28  ;;  %v3003_v56 = vrot.slane %v2999_v37, 1  ;;  %v3004_v54 = vrot.slane %v3000_v52, 1  ;;  %v3017_v57 = vstv %s8472_s16  ;;  %s8679_s16 = sld [smem:[#allocation7 + $0x38]] }
 0x221   : > { %v3018_v39 = vmul.f32 %v8457_v36, %v3017_v57  ;;  %v3019_v6 = vmul.f32 %v8460_v45, %v3017_v57  ;;  %v3023_v19 = vstv %s8477_s4  ;;  %v3038_v41 = vstv %s8479_s21  ;;  %s8681_s4 = sld [smem:[#allocation7 + $0x5a]]  ;;  %s8704_s21 = sld [smem:[#allocation7 + $0x5b]] }
 0x222   : > { %v3005_v20 = vsel %vm133_vm0, %v3003_v56, %v3004_v54  ;;  %v3009_v21 = vadd.f32 %v3004_v54, %v2996_v61  ;;  %v3024_v28 = vmul.f32 %v8431_v4, %v3023_v19  ;;  %v3025_v12 = vmul.f32 %v8439_v18, %v3023_v19 }
 0x223   : > { %v8526_v27 = vadd.f32 %v2983_v11, %v8294_v60  ;;  %v3008_v59 = vadd.f32 %v3005_v20, %v2995_v10  ;;  %v3020_v51 = vadd.f32 %v3018_v39, %v3014_v43  ;;  %v3021_v2 = vadd.f32 %v3019_v6, %v3015_v44 }
 0x224   : > { %v3028_v8 = vrot.slane %v3024_v28, 1  ;;  %v3029_v23 = vrot.slane %v3025_v12, 1  ;;  %v3039_v48 = vmul.f32 %v8431_v4, %v3038_v41  ;;  %v3040_v17 = vmul.f32 %v8439_v18, %v3038_v41 }
 0x225   : > { %v8531_v63 = vadd.f32 %v3009_v21, %v8299_v53  ;;  %v3042_v46 = vstv %s8492_s0  ;;  %v3048_v31 = vstv %s8497_s22  ;;  %v3063_v47 = vstv %s8499_s24  ;;  %s8709_s0 = sld [smem:[#allocation7 + $0x5c]]  ;;  %s8711_s22 = sld [smem:[#allocation7 + $0x7e]] }
 0x226   : > { %v3030_v60 = vsel %vm133_vm0, %v3028_v8, %v3029_v23  ;;  %v3034_v49 = vadd.f32 %v3029_v23, %v3021_v2  ;;  %v3043_v9 = vmul.f32 %v8457_v36, %v3042_v46  ;;  %v3044_v1 = vmul.f32 %v8460_v45, %v3042_v46  ;;  %s8724_s24 = sld [smem:[#allocation7 + $0x7f]] }
 0x227   : > { %v8546_v53 = vadd.f32 %v3008_v59, %v8314_v16  ;;  %v3033_v32 = vadd.f32 %v3030_v60, %v3020_v51  ;;  %v3049_v35 = vmul.f32 %v8431_v4, %v3048_v31  ;;  %v3050_v33 = vmul.f32 %v8439_v18, %v3048_v31 }
 0x228   : > { %v3045_v29 = vadd.f32 %v3043_v9, %v3039_v48  ;;  %v3046_v7 = vadd.f32 %v3044_v1, %v3040_v17  ;;  %v3064_v24 = vmul.f32 %v8431_v4, %v3063_v47  ;;  %v3065_v55 = vmul.f32 %v8439_v18, %v3063_v47 }
 0x229   : > { %v8553_v11 = vadd.f32 %v3034_v49, %v8321_v26  ;;  %v3053_v37 = vrot.slane %v3049_v35, 1  ;;  %v3054_v52 = vrot.slane %v3050_v33, 1  ;;  %v3067_v10 = vstv %s8516_s25  ;;  %s8729_s25 = sld [smem:[#allocation7 + $0x80]] }
 0x22a   : > { %v3068_v16 = vmul.f32 %v8457_v36, %v3067_v10  ;;  %v3069_v61 = vmul.f32 %v8460_v45, %v3067_v10  ;;  %v3073_v43 = vstv %s8521_s26  ;;  %v3088_v44 = vstv %s8523_s2  ;;  %s8731_s26 = sld [smem:[#allocation7 + $0xa2]]  ;;  %s8748_s2 = sld [smem:[#allocation7 + $0xa3]] }
 0x22b   : > { %v3055_v56 = vsel %vm133_vm0, %v3053_v37, %v3054_v52  ;;  %v3059_v54 = vadd.f32 %v3054_v52, %v3046_v7  ;;  %v3074_v26 = vmul.f32 %v8431_v4, %v3073_v43  ;;  %v3075_v57 = vmul.f32 %v8439_v18, %v3073_v43 }
 0x22c   : > { %v8570_v39 = vadd.f32 %v3033_v32, %v8338_v5  ;;  %v3058_v6 = vadd.f32 %v3055_v56, %v3045_v29  ;;  %v3070_v19 = vadd.f32 %v3068_v16, %v3064_v24  ;;  %v3071_v41 = vadd.f32 %v3069_v61, %v3065_v55 }
 0x22d   : > { %v3078_v20 = vrot.slane %v3074_v26, 1  ;;  %v3079_v21 = vrot.slane %v3075_v57, 1  ;;  %v3089_v28 = vmul.f32 %v8431_v4, %v3088_v44  ;;  %v3090_v12 = vmul.f32 %v8439_v18, %v3088_v44 }
 0x22e   : > { %v8575_v59 = vadd.f32 %v3059_v54, %v8343_v22  ;;  %v3092_v51 = vstv %s8536_s1  ;;  %v3098_v2 = vstv %s8541_s27  ;;  %v3113_v8 = vstv %s8543_s17  ;;  %s8753_s1 = sld [smem:[#allocation7 + $0xa4]]  ;;  %s8755_s27 = sld [smem:[#allocation7 + $0xc6]] }
 0x22f   : > { %v3080_v5 = vsel %vm133_vm0, %v3078_v20, %v3079_v21  ;;  %v3084_v23 = vadd.f32 %v3079_v21, %v3071_v41  ;;  %v3093_v48 = vmul.f32 %v8457_v36, %v3092_v51  ;;  %v3094_v17 = vmul.f32 %v8460_v45, %v3092_v51  ;;  %s8768_s17 = sld [smem:[#allocation7 + $0xc7]] }
 0x230   : > { %v8590_v22 = vadd.f32 %v3058_v6, %v8358_v58  ;;  %v3083_v46 = vadd.f32 %v3080_v5, %v3070_v19  ;;  %v3099_v31 = vmul.f32 %v8431_v4, %v3098_v2  ;;  %v3100_v47 = vmul.f32 %v8439_v18, %v3098_v2 }
 0x231   : > { %v3095_v60 = vadd.f32 %v3093_v48, %v3089_v28  ;;  %v3096_v49 = vadd.f32 %v3094_v17, %v3090_v12  ;;  %v3114_v9 = vmul.f32 %v8431_v4, %v3113_v8  ;;  %v3115_v1 = vmul.f32 %v8439_v18, %v3113_v8 }
 0x232   : > { %v8597_v32 = vadd.f32 %v3084_v23, %v8365_v30  ;;  %v3103_v35 = vrot.slane %v3099_v31, 1  ;;  %v3104_v33 = vrot.slane %v3100_v47, 1  ;;  %v3117_v29 = vstv %s8560_s28  ;;  %s8773_s28 = sld [smem:[#allocation7 + $0xc8]] }
 0x233   : > { %v3118_v58 = vmul.f32 %v8457_v36, %v3117_v29  ;;  %v3119_v7 = vmul.f32 %v8460_v45, %v3117_v29  ;;  %v3123_v24 = vstv %s8565_s29  ;;  %v3138_v55 = vstv %s8567_s30  ;;  %s8775_s29 = sld [smem:[#allocation7 + $0xea]]  ;;  %s8792_s30 = sld [smem:[#allocation7 + $0xeb]] }
 0x234   : > { %v3105_v37 = vsel %vm133_vm0, %v3103_v35, %v3104_v33  ;;  %v3109_v52 = vadd.f32 %v3104_v33, %v3096_v49  ;;  %v3124_v30 = vmul.f32 %v8431_v4, %v3123_v24  ;;  %v3125_v10 = vmul.f32 %v8439_v18, %v3123_v24 }
 0x235   : > { %v8614_v16 = vadd.f32 %v3083_v46, %v8382_v14  ;;  %v3108_v61 = vadd.f32 %v3105_v37, %v3095_v60  ;;  %v3120_v43 = vadd.f32 %v3118_v58, %v3114_v9  ;;  %v3121_v44 = vadd.f32 %v3119_v7, %v3115_v1 }
 0x236   : > { %v3128_v56 = vrot.slane %v3124_v30, 1  ;;  %v3129_v54 = vrot.slane %v3125_v10, 1  ;;  %v3139_v26 = vmul.f32 %v8431_v4, %v3138_v55  ;;  %v3140_v57 = vmul.f32 %v8439_v18, %v3138_v55 }
 0x237   : > { %v8619_v6 = vadd.f32 %v3109_v52, %v8387_v3  ;;  %v3142_v19 = vstv %s8580_s6  ;;  %v3148_v41 = vstv %s8585_s7  ;;  %v3163_v20 = vstv %s8587_s8  ;;  %s8797_s6 = sld [smem:[#allocation7 + $0xec]]  ;;  %s8799_s7 = sld [smem:[#allocation7 + $0x10e]] }
 0x238   : > { %v3130_v14 = vsel %vm133_vm0, %v3128_v56, %v3129_v54  ;;  %v3134_v21 = vadd.f32 %v3129_v54, %v3121_v44  ;;  %v3143_v28 = vmul.f32 %v8457_v36, %v3142_v19  ;;  %v3144_v12 = vmul.f32 %v8460_v45, %v3142_v19  ;;  %s8812_s8 = sld [smem:[#allocation7 + $0x10f]] }
 0x239   : > { %v8634_v3 = vadd.f32 %v3108_v61, %v8402_v50  ;;  %v3133_v51 = vadd.f32 %v3130_v14, %v3120_v43  ;;  %v3149_v2 = vmul.f32 %v8431_v4, %v3148_v41  ;;  %v3150_v8 = vmul.f32 %v8439_v18, %v3148_v41  ;;  %v8663_v61 = vld [vmem:[%s7290_s23 + $0x1a0] sm:$0xff] }
 0x23a   : > { %v3145_v5 = vadd.f32 %v3143_v28, %v3139_v26  ;;  %v3146_v23 = vadd.f32 %v3144_v12, %v3140_v57  ;;  %v3164_v48 = vmul.f32 %v8431_v4, %v3163_v20  ;;  %v3165_v17 = vmul.f32 %v8439_v18, %v3163_v20  ;;  %v8689_v28 = vld [vmem:[%s7290_s23 + $0x4e0] sm:$0xff] }
 0x23b   : > { %v8641_v46 = vadd.f32 %v3134_v21, %v8409_v0  ;;  %v3153_v31 = vrot.slane %v3149_v2, 1  ;;  %v3154_v47 = vrot.slane %v3150_v8, 1  ;;  %v3167_v60 = vstv %s8604_s9  ;;  %s8817_s9 = sld [smem:[#allocation7 + $0x110]] }
 0x23c   : > { %v3168_v50 = vmul.f32 %v8457_v36, %v3167_v60  ;;  %v3169_v49 = vmul.f32 %v8460_v45, %v3167_v60  ;;  %v3173_v9 = vstv %s8609_s10  ;;  %v3188_v1 = vstv %s8611_s3  ;;  %s8819_s10 = sld [smem:[#allocation7 + $0x132]]  ;;  %s8836_s3 = sld [smem:[#allocation7 + $0x133]] }
 0x23d   : > { %v3155_v35 = vsel %vm133_vm0, %v3153_v31, %v3154_v47  ;;  %v3159_v33 = vadd.f32 %v3154_v47, %v3146_v23  ;;  %v3174_v0 = vmul.f32 %v8431_v4, %v3173_v9  ;;  %v3175_v29 = vmul.f32 %v8439_v18, %v3173_v9 }
 0x23e   : > { %v8658_v58 = vadd.f32 %v3133_v51, %v8426_v62  ;;  %v3158_v7 = vadd.f32 %v3155_v35, %v3145_v5  ;;  %v3170_v24 = vadd.f32 %v3168_v50, %v3164_v48  ;;  %v3171_v55 = vadd.f32 %v3169_v49, %v3165_v17  ;;  %v8671_v62 = vld [vmem:[%s7290_s23 + $0x1a8] sm:$0x1f] }
 0x23f   : > { %v3178_v37 = vrot.slane %v3174_v0, 1  ;;  %v3179_v52 = vrot.slane %v3175_v29, 1  ;;  %v3189_v30 = vmul.f32 %v8431_v4, %v3188_v1  ;;  %v3190_v10 = vmul.f32 %v8439_v18, %v3188_v1 }
 0x240   : > { %v8666_v43 = vadd.f32 %v3159_v33, %v8434_v38  ;;  %v3192_v44 = vstv %s8629_s12  ;;  %v3198_v56 = vstv %s8631_s14  ;;  %v3223_v54 = vstv %s8624_s11  ;;  %s8841_s11 = sld [smem:[#allocation7 + $0x134]]  ;;  %s8843_s12 = sld [smem:[#allocation7 + $0x156]] }
 0x241   : > { %v3180_v26 = vsel %vm133_vm0, %v3178_v37, %v3179_v52  ;;  %v3184_v57 = vadd.f32 %v3179_v52, %v3171_v55  ;;  %v3193_v19 = vmul.f32 %v8457_v36, %v3192_v44  ;;  %v3194_v41 = vmul.f32 %v8460_v45, %v3192_v44  ;;  %v8692_v36 = vld [vmem:[%s7290_s23 + $0x4e8] sm:$0x1f]  ;;  %s8856_s14 = sld [smem:[#allocation7 + $0x15]] }
 0x242   : > { %v8684_v38 = vadd.f32 %v3158_v7, %v8452_v40  ;;  %v3183_v20 = vadd.f32 %v3180_v26, %v3170_v24  ;;  %v3199_v14 = vmul.f32 %v8431_v4, %v3198_v56  ;;  %v3200_v21 = vmul.f32 %v8439_v18, %v3198_v56 }
 0x243   : > { %v3195_v45 = vadd.f32 %v3193_v19, %v3189_v30  ;;  %v3196_v12 = vadd.f32 %v3194_v41, %v3190_v10  ;;  %v3224_v51 = vmul.f32 %v8663_v61, %v3223_v54  ;;  %v3225_v2 = vmul.f32 %v8671_v62, %v3223_v54 }
 0x244   : > { %v8697_v40 = vadd.f32 %v3184_v57, %v8465_v34  ;;  %v3203_v8 = vrot.slane %v3199_v14, 1  ;;  %v3204_v5 = vrot.slane %v3200_v21, 1  ;;  %v3227_v23 = vstv %s8648_s15  ;;  %s8861_s15 = sld [smem:[#allocation7 + $0x157]] }
 0x245   : > { %v3228_v4 = vmul.f32 %v8689_v28, %v3227_v23  ;;  %v3229_v18 = vmul.f32 %v8692_v36, %v3227_v23  ;;  %v3233_v48 = vstv %s8653_s13  ;;  %v3248_v17 = vstv %s8655_s18  ;;  %s8863_s13 = sld [smem:[#allocation7 + $0x158]]  ;;  %s8880_s18 = sld [smem:[#allocation7 + $0x16]] }
 0x246   : > { %v3205_v31 = vsel %vm133_vm0, %v3203_v8, %v3204_v5  ;;  %v3209_v47 = vadd.f32 %v3204_v5, %v3196_v12  ;;  %v3234_v34 = vmul.f32 %v8663_v61, %v3233_v48  ;;  %v3235_v60 = vmul.f32 %v8671_v62, %v3233_v48 }
 0x247   : > { %v8714_v50 = vadd.f32 %v3183_v20, %v8482_v13  ;;  %v3208_v49 = vadd.f32 %v3205_v31, %v3195_v45  ;;  %v3230_v9 = vadd.f32 %v3228_v4, %v3224_v51  ;;  %v3231_v1 = vadd.f32 %v3229_v18, %v3225_v2 }
 0x248   : > { %v3238_v35 = vrot.slane %v3234_v34, 1  ;;  %v3239_v33 = vrot.slane %v3235_v60, 1  ;;  %v3249_v0 = vmul.f32 %v8663_v61, %v3248_v17  ;;  %v3250_v29 = vmul.f32 %v8671_v62, %v3248_v17 }
 0x249   : > { %v8719_v7 = vadd.f32 %v3209_v47, %v8487_v15  ;;  %v3252_v24 = vstv %s8674_s19  ;;  %v3258_v55 = vstv %s8679_s16  ;;  %v3273_v37 = vstv %s8681_s4  ;;  %s8885_s19 = sld [smem:[#allocation7 + $0x17]]  ;;  %s8887_s16 = sld [smem:[#allocation7 + $0x39]] }
 0x24a   : > { %v3240_v13 = vsel %vm133_vm0, %v3238_v35, %v3239_v33  ;;  %v3244_v52 = vadd.f32 %v3239_v33, %v3231_v1  ;;  %v3253_v30 = vmul.f32 %v8689_v28, %v3252_v24  ;;  %v3254_v10 = vmul.f32 %v8692_v36, %v3252_v24  ;;  %s8906_s4 = sld [smem:[#allocation7 + $0x3a]] }
 0x24b   : > { %v8734_v15 = vadd.f32 %v3208_v49, %v8502_v42  ;;  %v3243_v44 = vadd.f32 %v3240_v13, %v3230_v9  ;;  %v3259_v56 = vmul.f32 %v8663_v61, %v3258_v55  ;;  %v3260_v54 = vmul.f32 %v8671_v62, %v3258_v55 }
 0x24c   : > { %v3255_v26 = vadd.f32 %v3253_v30, %v3249_v0  ;;  %v3256_v57 = vadd.f32 %v3254_v10, %v3250_v29  ;;  %v3274_v19 = vmul.f32 %v8663_v61, %v3273_v37  ;;  %v3275_v41 = vmul.f32 %v8671_v62, %v3273_v37 }
 0x24d   : > { %v8741_v20 = vadd.f32 %v3244_v52, %v8509_v25  ;;  %v3263_v14 = vrot.slane %v3259_v56, 1  ;;  %v3264_v21 = vrot.slane %v3260_v54, 1  ;;  %v3277_v45 = vstv %s8704_s21  ;;  %s8911_s21 = sld [smem:[#allocation7 + $0x3b]] }
 0x24e   : > { %v3278_v42 = vmul.f32 %v8689_v28, %v3277_v45  ;;  %v3279_v12 = vmul.f32 %v8692_v36, %v3277_v45  ;;  %v3283_v51 = vstv %s8709_s0  ;;  %v3298_v2 = vstv %s8711_s22  ;;  %s8913_s0 = sld [smem:[#allocation7 + $0x5d]]  ;;  %s8936_s22 = sld [smem:[#allocation7 + $0x5e]] }
 0x24f   : > { %v3265_v8 = vsel %vm133_vm0, %v3263_v14, %v3264_v21  ;;  %v3269_v5 = vadd.f32 %v3264_v21, %v3256_v57  ;;  %v3284_v25 = vmul.f32 %v8663_v61, %v3283_v51  ;;  %v3285_v23 = vmul.f32 %v8671_v62, %v3283_v51 }
 0x250   : > { %v8758_v4 = vadd.f32 %v3243_v44, %v8526_v27  ;;  %v3268_v18 = vadd.f32 %v3265_v8, %v3255_v26  ;;  %v3280_v48 = vadd.f32 %v3278_v42, %v3274_v19  ;;  %v3281_v17 = vadd.f32 %v3279_v12, %v3275_v41 }
 0x251   : > { %v3288_v31 = vrot.slane %v3284_v25, 1  ;;  %v3289_v47 = vrot.slane %v3285_v23, 1  ;;  %v3299_v34 = vmul.f32 %v8663_v61, %v3298_v2  ;;  %v3300_v60 = vmul.f32 %v8671_v62, %v3298_v2 }
 0x252   : > { %v8763_v49 = vadd.f32 %v3269_v5, %v8531_v63  ;;  %v3302_v9 = vstv %s8724_s24  ;;  %v3308_v1 = vstv %s8729_s25  ;;  %v3323_v35 = vstv %s8731_s26  ;;  %s8941_s24 = sld [smem:[#allocation7 + $0x5f]]  ;;  %s8943_s25 = sld [smem:[#allocation7 + $0x81]] }
 0x253   : > { %v3290_v27 = vsel %vm133_vm0, %v3288_v31, %v3289_v47  ;;  %v3294_v33 = vadd.f32 %v3289_v47, %v3281_v17  ;;  %v3303_v0 = vmul.f32 %v8689_v28, %v3302_v9  ;;  %v3304_v29 = vmul.f32 %v8692_v36, %v3302_v9  ;;  %s8956_s26 = sld [smem:[#allocation7 + $0x82]] }
 0x254   : > { %v8778_v63 = vadd.f32 %v3268_v18, %v8546_v53  ;;  %v3293_v24 = vadd.f32 %v3290_v27, %v3280_v48  ;;  %v3309_v55 = vmul.f32 %v8663_v61, %v3308_v1  ;;  %v3310_v37 = vmul.f32 %v8671_v62, %v3308_v1 }
 0x255   : > { %v3305_v13 = vadd.f32 %v3303_v0, %v3299_v34  ;;  %v3306_v52 = vadd.f32 %v3304_v29, %v3300_v60  ;;  %v3324_v30 = vmul.f32 %v8663_v61, %v3323_v35  ;;  %v3325_v10 = vmul.f32 %v8671_v62, %v3323_v35 }
 0x256   : > { %v8785_v44 = vadd.f32 %v3294_v33, %v8553_v11  ;;  %v3313_v56 = vrot.slane %v3309_v55, 1  ;;  %v3314_v54 = vrot.slane %v3310_v37, 1  ;;  %v3327_v26 = vstv %s8748_s2  ;;  %s8961_s2 = sld [smem:[#allocation7 + $0x83]] }
 0x257   : > { %v3328_v53 = vmul.f32 %v8689_v28, %v3327_v26  ;;  %v3329_v57 = vmul.f32 %v8692_v36, %v3327_v26  ;;  %v3333_v19 = vstv %s8753_s1  ;;  %v3348_v41 = vstv %s8755_s27  ;;  %s8963_s1 = sld [smem:[#allocation7 + $0xa5]]  ;;  %s8980_s27 = sld [smem:[#allocation7 + $0xa6]] }
 0x258   : > { %v3315_v14 = vsel %vm133_vm0, %v3313_v56, %v3314_v54  ;;  %v3319_v21 = vadd.f32 %v3314_v54, %v3306_v52  ;;  %v3334_v11 = vmul.f32 %v8663_v61, %v3333_v19  ;;  %v3335_v45 = vmul.f32 %v8671_v62, %v3333_v19 }
 0x259   : > { %v8802_v42 = vadd.f32 %v3293_v24, %v8570_v39  ;;  %v3318_v12 = vadd.f32 %v3315_v14, %v3305_v13  ;;  %v3330_v51 = vadd.f32 %v3328_v53, %v3324_v30  ;;  %v3331_v2 = vadd.f32 %v3329_v57, %v3325_v10 }
 0x25a   : > { %v3338_v8 = vrot.slane %v3334_v11, 1  ;;  %v3339_v5 = vrot.slane %v3335_v45, 1  ;;  %v3349_v25 = vmul.f32 %v8663_v61, %v3348_v41  ;;  %v3350_v23 = vmul.f32 %v8671_v62, %v3348_v41 }
 0x25b   : > { %v8807_v18 = vadd.f32 %v3319_v21, %v8575_v59  ;;  %v3352_v48 = vstv %s8768_s17  ;;  %v3358_v17 = vstv %s8773_s28  ;;  %v3373_v31 = vstv %s8775_s29  ;;  %s8985_s17 = sld [smem:[#allocation7 + $0xa7]]  ;;  %s8987_s28 = sld [smem:[#allocation7 + $0xc9]] }
 0x25c   : > { %v3340_v39 = vsel %vm133_vm0, %v3338_v8, %v3339_v5  ;;  %v3344_v47 = vadd.f32 %v3339_v5, %v3331_v2  ;;  %v3353_v34 = vmul.f32 %v8689_v28, %v3352_v48  ;;  %v3354_v60 = vmul.f32 %v8692_v36, %v3352_v48  ;;  %s9000_s29 = sld [smem:[#allocation7 + $0xca]] }
 0x25d   : > { %v8822_v59 = vadd.f32 %v3318_v12, %v8590_v22  ;;  %v3343_v9 = vadd.f32 %v3340_v39, %v3330_v51  ;;  %v3359_v1 = vmul.f32 %v8663_v61, %v3358_v17  ;;  %v3360_v35 = vmul.f32 %v8671_v62, %v3358_v17 }
 0x25e   : > { %v3355_v27 = vadd.f32 %v3353_v34, %v3349_v25  ;;  %v3356_v33 = vadd.f32 %v3354_v60, %v3350_v23  ;;  %v3374_v0 = vmul.f32 %v8663_v61, %v3373_v31  ;;  %v3375_v29 = vmul.f32 %v8671_v62, %v3373_v31 }
 0x25f   : > { %v8829_v24 = vadd.f32 %v3344_v47, %v8597_v32  ;;  %v3363_v55 = vrot.slane %v3359_v1, 1  ;;  %v3364_v37 = vrot.slane %v3360_v35, 1  ;;  %v3377_v13 = vstv %s8792_s30  ;;  %s9005_s30 = sld [smem:[#allocation7 + $0xcb]] }
 0x260   : > { %v3378_v22 = vmul.f32 %v8689_v28, %v3377_v13  ;;  %v3379_v52 = vmul.f32 %v8692_v36, %v3377_v13  ;;  %v3383_v30 = vstv %s8797_s6  ;;  %v3398_v10 = vstv %s8799_s7  ;;  %s9007_s6 = sld [smem:[#allocation7 + $0xed]]  ;;  %s9024_s7 = sld [smem:[#allocation7 + $0xee]] }
 0x261   : > { %v3365_v56 = vsel %vm133_vm0, %v3363_v55, %v3364_v37  ;;  %v3369_v54 = vadd.f32 %v3364_v37, %v3356_v33  ;;  %v3384_v32 = vmul.f32 %v8663_v61, %v3383_v30  ;;  %v3385_v26 = vmul.f32 %v8671_v62, %v3383_v30 }
 0x262   : > { %v8846_v53 = vadd.f32 %v3343_v9, %v8614_v16  ;;  %v3368_v57 = vadd.f32 %v3365_v56, %v3355_v27  ;;  %v3380_v19 = vadd.f32 %v3378_v22, %v3374_v0  ;;  %v3381_v41 = vadd.f32 %v3379_v52, %v3375_v29 }
 0x263   : > { %v3388_v14 = vrot.slane %v3384_v32, 1  ;;  %v3389_v21 = vrot.slane %v3385_v26, 1  ;;  %v3399_v11 = vmul.f32 %v8663_v61, %v3398_v10  ;;  %v3400_v45 = vmul.f32 %v8671_v62, %v3398_v10 }
 0x264   : > { %v8851_v12 = vadd.f32 %v3369_v54, %v8619_v6  ;;  %v3402_v51 = vstv %s8812_s8  ;;  %v3408_v2 = vstv %s8817_s9  ;;  %v3423_v8 = vstv %s8819_s10  ;;  %s9029_s8 = sld [smem:[#allocation7 + $0xef]]  ;;  %s9031_s9 = sld [smem:[#allocation7 + $0x111]] }
 0x265   : > { %v3390_v16 = vsel %vm133_vm0, %v3388_v14, %v3389_v21  ;;  %v3394_v5 = vadd.f32 %v3389_v21, %v3381_v41  ;;  %v3403_v25 = vmul.f32 %v8689_v28, %v3402_v51  ;;  %v3404_v23 = vmul.f32 %v8692_v36, %v3402_v51  ;;  %s9044_s10 = sld [smem:[#allocation7 + $0x112]] }
 0x266   : > { %v8866_v6 = vadd.f32 %v3368_v57, %v8634_v3  ;;  %v3393_v48 = vadd.f32 %v3390_v16, %v3380_v19  ;;  %v3409_v17 = vmul.f32 %v8663_v61, %v3408_v2  ;;  %v3410_v31 = vmul.f32 %v8671_v62, %v3408_v2  ;;  %v8895_v57 = vld [vmem:[%s7290_s23 + $0x820] sm:$0xff] }
 0x267   : > { %v3405_v39 = vadd.f32 %v3403_v25, %v3399_v11  ;;  %v3406_v47 = vadd.f32 %v3404_v23, %v3400_v45  ;;  %v3424_v34 = vmul.f32 %v8663_v61, %v3423_v8  ;;  %v3425_v60 = vmul.f32 %v8671_v62, %v3423_v8  ;;  %v8921_v25 = vld [vmem:[%s7290_s23 + $0xb60] sm:$0xff] }
 0x268   : > { %v8873_v9 = vadd.f32 %v3394_v5, %v8641_v46  ;;  %v3413_v1 = vrot.slane %v3409_v17, 1  ;;  %v3414_v35 = vrot.slane %v3410_v31, 1  ;;  %v3427_v27 = vstv %s8836_s3  ;;  %s9049_s3 = sld [smem:[#allocation7 + $0x113]] }
 0x269   : > { %v3428_v3 = vmul.f32 %v8689_v28, %v3427_v27  ;;  %v3429_v33 = vmul.f32 %v8692_v36, %v3427_v27  ;;  %v3433_v0 = vstv %s8841_s11  ;;  %v3448_v29 = vstv %s8843_s12  ;;  %s9051_s11 = sld [smem:[#allocation7 + $0x135]]  ;;  %s9068_s12 = sld [smem:[#allocation7 + $0x136]] }
 0x26a   : > { %v3415_v55 = vsel %vm133_vm0, %v3413_v1, %v3414_v35  ;;  %v3419_v37 = vadd.f32 %v3414_v35, %v3406_v47  ;;  %v3434_v46 = vmul.f32 %v8663_v61, %v3433_v0  ;;  %v3435_v13 = vmul.f32 %v8671_v62, %v3433_v0 }
 0x26b   : > { %v8890_v22 = vadd.f32 %v3393_v48, %v8658_v58  ;;  %v3418_v52 = vadd.f32 %v3415_v55, %v3405_v39  ;;  %v3430_v30 = vadd.f32 %v3428_v3, %v3424_v34  ;;  %v3431_v10 = vadd.f32 %v3429_v33, %v3425_v60  ;;  %v8903_v58 = vld [vmem:[%s7290_s23 + $0x828] sm:$0x1f] }
 0x26c   : > { %v3438_v56 = vrot.slane %v3434_v46, 1  ;;  %v3439_v54 = vrot.slane %v3435_v13, 1  ;;  %v3449_v32 = vmul.f32 %v8663_v61, %v3448_v29  ;;  %v3450_v26 = vmul.f32 %v8671_v62, %v3448_v29 }
 0x26d   : > { %v8898_v19 = vadd.f32 %v3419_v37, %v8666_v43  ;;  %v3452_v41 = vstv %s8861_s15  ;;  %v3458_v14 = vstv %s8863_s13  ;;  %v3483_v21 = vstv %s8856_s14  ;;  %s9073_s14 = sld [smem:[#allocation7 + $0x137]]  ;;  %s9075_s15 = sld [smem:[#allocation7 + $0x159]] }
 0x26e   : > { %v3440_v11 = vsel %vm133_vm0, %v3438_v56, %v3439_v54  ;;  %v3444_v45 = vadd.f32 %v3439_v54, %v3431_v10  ;;  %v3453_v51 = vmul.f32 %v8689_v28, %v3452_v41  ;;  %v3454_v2 = vmul.f32 %v8692_v36, %v3452_v41  ;;  %v8924_v28 = vld [vmem:[%s7290_s23 + $0xb68] sm:$0x1f]  ;;  %s9088_s13 = sld [smem:[#allocation7 + $0x18]] }
 0x26f   : > { %v8916_v43 = vadd.f32 %v3418_v52, %v8684_v38  ;;  %v3443_v8 = vadd.f32 %v3440_v11, %v3430_v30  ;;  %v3459_v16 = vmul.f32 %v8663_v61, %v3458_v14  ;;  %v3460_v5 = vmul.f32 %v8671_v62, %v3458_v14 }
 0x270   : > { %v3455_v36 = vadd.f32 %v3453_v51, %v3449_v32  ;;  %v3456_v23 = vadd.f32 %v3454_v2, %v3450_v26  ;;  %v3484_v48 = vmul.f32 %v8895_v57, %v3483_v21  ;;  %v3485_v17 = vmul.f32 %v8903_v58, %v3483_v21 }
 0x271   : > { %v8929_v38 = vadd.f32 %v3444_v45, %v8697_v40  ;;  %v3463_v31 = vrot.slane %v3459_v16, 1  ;;  %v3464_v39 = vrot.slane %v3460_v5, 1  ;;  %v3487_v47 = vstv %s8880_s18  ;;  %s9093_s18 = sld [smem:[#allocation7 + $0x15a]] }
 0x272   : > { %v3488_v61 = vmul.f32 %v8921_v25, %v3487_v47  ;;  %v3489_v62 = vmul.f32 %v8924_v28, %v3487_v47  ;;  %v3493_v34 = vstv %s8885_s19  ;;  %v3508_v60 = vstv %s8887_s16  ;;  %s9095_s19 = sld [smem:[#allocation7 + $0x15b]]  ;;  %s9112_s16 = sld [smem:[#allocation7 + $0x19]] }
 0x273   : > { %v3465_v1 = vsel %vm133_vm0, %v3463_v31, %v3464_v39  ;;  %v3469_v35 = vadd.f32 %v3464_v39, %v3456_v23  ;;  %v3494_v40 = vmul.f32 %v8895_v57, %v3493_v34  ;;  %v3495_v27 = vmul.f32 %v8903_v58, %v3493_v34 }
 0x274   : > { %v8946_v3 = vadd.f32 %v3443_v8, %v8714_v50  ;;  %v3468_v33 = vadd.f32 %v3465_v1, %v3455_v36  ;;  %v3490_v0 = vadd.f32 %v3488_v61, %v3484_v48  ;;  %v3491_v29 = vadd.f32 %v3489_v62, %v3485_v17 }
 0x275   : > { %v3498_v55 = vrot.slane %v3494_v40, 1  ;;  %v3499_v37 = vrot.slane %v3495_v27, 1  ;;  %v3509_v46 = vmul.f32 %v8895_v57, %v3508_v60  ;;  %v3510_v13 = vmul.f32 %v8903_v58, %v3508_v60 }
 0x276   : > { %v8951_v52 = vadd.f32 %v3469_v35, %v8719_v7  ;;  %v3512_v30 = vstv %s8906_s4  ;;  %v3518_v10 = vstv %s8911_s21  ;;  %v3533_v56 = vstv %s8913_s0  ;;  %s9117_s4 = sld [smem:[#allocation7 + $0x1a]]  ;;  %s9119_s21 = sld [smem:[#allocation7 + $0x3c]] }
 0x277   : > { %v3500_v50 = vsel %vm133_vm0, %v3498_v55, %v3499_v37  ;;  %v3504_v54 = vadd.f32 %v3499_v37, %v3491_v29  ;;  %v3513_v32 = vmul.f32 %v8921_v25, %v3512_v30  ;;  %v3514_v26 = vmul.f32 %v8924_v28, %v3512_v30  ;;  %s9138_s0 = sld [smem:[#allocation7 + $0x3d]] }
 0x278   : > { %v8966_v7 = vadd.f32 %v3468_v33, %v8734_v15  ;;  %v3503_v41 = vadd.f32 %v3500_v50, %v3490_v0  ;;  %v3519_v14 = vmul.f32 %v8895_v57, %v3518_v10  ;;  %v3520_v21 = vmul.f32 %v8903_v58, %v3518_v10 }
 0x279   : > { %v3515_v11 = vadd.f32 %v3513_v32, %v3509_v46  ;;  %v3516_v45 = vadd.f32 %v3514_v26, %v3510_v13  ;;  %v3534_v51 = vmul.f32 %v8895_v57, %v3533_v56  ;;  %v3535_v2 = vmul.f32 %v8903_v58, %v3533_v56 }
 0x27a   : > { %v8973_v8 = vadd.f32 %v3504_v54, %v8741_v20  ;;  %v3523_v16 = vrot.slane %v3519_v14, 1  ;;  %v3524_v5 = vrot.slane %v3520_v21, 1  ;;  %v3537_v36 = vstv %s8936_s22  ;;  %s9143_s22 = sld [smem:[#allocation7 + $0x3e]] }
 0x27b   : > { %v3538_v15 = vmul.f32 %v8921_v25, %v3537_v36  ;;  %v3539_v23 = vmul.f32 %v8924_v28, %v3537_v36  ;;  %v3543_v48 = vstv %s8941_s24  ;;  %v3558_v17 = vstv %s8943_s25  ;;  %s9145_s24 = sld [smem:[#allocation7 + $0x60]]  ;;  %s9168_s25 = sld [smem:[#allocation7 + $0x61]] }
 0x27c   : > { %v3525_v31 = vsel %vm133_vm0, %v3523_v16, %v3524_v5  ;;  %v3529_v39 = vadd.f32 %v3524_v5, %v3516_v45  ;;  %v3544_v20 = vmul.f32 %v8895_v57, %v3543_v48  ;;  %v3545_v47 = vmul.f32 %v8903_v58, %v3543_v48 }
 0x27d   : > { %v8990_v61 = vadd.f32 %v3503_v41, %v8758_v4  ;;  %v3528_v62 = vadd.f32 %v3525_v31, %v3515_v11  ;;  %v3540_v34 = vadd.f32 %v3538_v15, %v3534_v51  ;;  %v3541_v60 = vadd.f32 %v3539_v23, %v3535_v2 }
 0x27e   : > { %v3548_v1 = vrot.slane %v3544_v20, 1  ;;  %v3549_v35 = vrot.slane %v3545_v47, 1  ;;  %v3559_v40 = vmul.f32 %v8895_v57, %v3558_v17  ;;  %v3560_v27 = vmul.f32 %v8903_v58, %v3558_v17 }
 0x27f   : > { %v8995_v33 = vadd.f32 %v3529_v39, %v8763_v49  ;;  %v3562_v0 = vstv %s8956_s26  ;;  %v3568_v29 = vstv %s8961_s2  ;;  %v3583_v55 = vstv %s8963_s1  ;;  %s9173_s26 = sld [smem:[#allocation7 + $0x62]]  ;;  %s9175_s2 = sld [smem:[#allocation7 + $0x84]] }
 0x280   : > { %v3550_v4 = vsel %vm133_vm0, %v3548_v1, %v3549_v35  ;;  %v3554_v37 = vadd.f32 %v3549_v35, %v3541_v60  ;;  %v3563_v46 = vmul.f32 %v8921_v25, %v3562_v0  ;;  %v3564_v13 = vmul.f32 %v8924_v28, %v3562_v0  ;;  %s9188_s1 = sld [smem:[#allocation7 + $0x85]] }
 0x281   : > { %v9010_v49 = vadd.f32 %v3528_v62, %v8778_v63  ;;  %v3553_v30 = vadd.f32 %v3550_v4, %v3540_v34  ;;  %v3569_v10 = vmul.f32 %v8895_v57, %v3568_v29  ;;  %v3570_v56 = vmul.f32 %v8903_v58, %v3568_v29 }
 0x282   : > { %v3565_v50 = vadd.f32 %v3563_v46, %v3559_v40  ;;  %v3566_v54 = vadd.f32 %v3564_v13, %v3560_v27  ;;  %v3584_v32 = vmul.f32 %v8895_v57, %v3583_v55  ;;  %v3585_v26 = vmul.f32 %v8903_v58, %v3583_v55 }
 0x283   : > { %v9017_v41 = vadd.f32 %v3554_v37, %v8785_v44  ;;  %v3573_v14 = vrot.slane %v3569_v10, 1  ;;  %v3574_v21 = vrot.slane %v3570_v56, 1  ;;  %v3587_v11 = vstv %s8980_s27  ;;  %s9193_s27 = sld [smem:[#allocation7 + $0x86]] }
 0x284   : > { %v3588_v63 = vmul.f32 %v8921_v25, %v3587_v11  ;;  %v3589_v45 = vmul.f32 %v8924_v28, %v3587_v11  ;;  %v3593_v51 = vstv %s8985_s17  ;;  %v3608_v2 = vstv %s8987_s28  ;;  %s9195_s17 = sld [smem:[#allocation7 + $0xa8]]  ;;  %s9212_s28 = sld [smem:[#allocation7 + $0xa9]] }
 0x285   : > { %v3575_v16 = vsel %vm133_vm0, %v3573_v14, %v3574_v21  ;;  %v3579_v5 = vadd.f32 %v3574_v21, %v3566_v54  ;;  %v3594_v44 = vmul.f32 %v8895_v57, %v3593_v51  ;;  %v3595_v36 = vmul.f32 %v8903_v58, %v3593_v51 }
 0x286   : > { %v9034_v15 = vadd.f32 %v3553_v30, %v8802_v42  ;;  %v3578_v23 = vadd.f32 %v3575_v16, %v3565_v50  ;;  %v3590_v48 = vadd.f32 %v3588_v63, %v3584_v32  ;;  %v3591_v17 = vadd.f32 %v3589_v45, %v3585_v26 }
 0x287   : > { %v3598_v31 = vrot.slane %v3594_v44, 1  ;;  %v3599_v39 = vrot.slane %v3595_v36, 1  ;;  %v3609_v20 = vmul.f32 %v8895_v57, %v3608_v2  ;;  %v3610_v47 = vmul.f32 %v8903_v58, %v3608_v2 }
 0x288   : > { %v9039_v62 = vadd.f32 %v3579_v5, %v8807_v18  ;;  %v3612_v34 = vstv %s9000_s29  ;;  %v3618_v60 = vstv %s9005_s30  ;;  %v3633_v1 = vstv %s9007_s6  ;;  %s9217_s29 = sld [smem:[#allocation7 + $0xaa]]  ;;  %s9219_s30 = sld [smem:[#allocation7 + $0xcc]] }
 0x289   : > { %v3600_v42 = vsel %vm133_vm0, %v3598_v31, %v3599_v39  ;;  %v3604_v35 = vadd.f32 %v3599_v39, %v3591_v17  ;;  %v3613_v40 = vmul.f32 %v8921_v25, %v3612_v34  ;;  %v3614_v27 = vmul.f32 %v8924_v28, %v3612_v34  ;;  %s9232_s6 = sld [smem:[#allocation7 + $0xcd]] }
 0x28a   : > { %v9054_v18 = vadd.f32 %v3578_v23, %v8822_v59  ;;  %v3603_v0 = vadd.f32 %v3600_v42, %v3590_v48  ;;  %v3619_v29 = vmul.f32 %v8895_v57, %v3618_v60  ;;  %v3620_v55 = vmul.f32 %v8903_v58, %v3618_v60 }
 0x28b   : > { %v3615_v4 = vadd.f32 %v3613_v40, %v3609_v20  ;;  %v3616_v37 = vadd.f32 %v3614_v27, %v3610_v47  ;;  %v3634_v46 = vmul.f32 %v8895_v57, %v3633_v1  ;;  %v3635_v13 = vmul.f32 %v8903_v58, %v3633_v1 }
 0x28c   : > { %v9061_v30 = vadd.f32 %v3604_v35, %v8829_v24  ;;  %v3623_v10 = vrot.slane %v3619_v29, 1  ;;  %v3624_v56 = vrot.slane %v3620_v55, 1  ;;  %v3637_v50 = vstv %s9024_s7  ;;  %s9237_s7 = sld [smem:[#allocation7 + $0xce]] }
 0x28d   : > { %v3638_v59 = vmul.f32 %v8921_v25, %v3637_v50  ;;  %v3639_v54 = vmul.f32 %v8924_v28, %v3637_v50  ;;  %v3643_v32 = vstv %s9029_s8  ;;  %v3658_v26 = vstv %s9031_s9  ;;  %s9239_s8 = sld [smem:[#allocation7 + $0xf0]]  ;;  %s9256_s9 = sld [smem:[#allocation7 + $0xf1]] }
 0x28e   : > { %v3625_v14 = vsel %vm133_vm0, %v3623_v10, %v3624_v56  ;;  %v3629_v21 = vadd.f32 %v3624_v56, %v3616_v37  ;;  %v3644_v24 = vmul.f32 %v8895_v57, %v3643_v32  ;;  %v3645_v11 = vmul.f32 %v8903_v58, %v3643_v32 }
 0x28f   : > { %v9078_v63 = vadd.f32 %v3603_v0, %v8846_v53  ;;  %v3628_v45 = vadd.f32 %v3625_v14, %v3615_v4  ;;  %v3640_v51 = vadd.f32 %v3638_v59, %v3634_v46  ;;  %v3641_v2 = vadd.f32 %v3639_v54, %v3635_v13 }
 0x290   : > { %v3648_v16 = vrot.slane %v3644_v24, 1  ;;  %v3649_v5 = vrot.slane %v3645_v11, 1  ;;  %v3659_v44 = vmul.f32 %v8895_v57, %v3658_v26  ;;  %v3660_v36 = vmul.f32 %v8903_v58, %v3658_v26 }
 0x291   : > { %v9083_v23 = vadd.f32 %v3629_v21, %v8851_v12  ;;  %v3662_v48 = vstv %s9044_s10  ;;  %v3668_v17 = vstv %s9049_s3  ;;  %v3683_v31 = vstv %s9051_s11  ;;  %s9261_s10 = sld [smem:[#allocation7 + $0xf2]]  ;;  %s9263_s3 = sld [smem:[#allocation7 + $0x114]] }
 0x292   : > { %v3650_v53 = vsel %vm133_vm0, %v3648_v16, %v3649_v5  ;;  %v3654_v39 = vadd.f32 %v3649_v5, %v3641_v2  ;;  %v3663_v20 = vmul.f32 %v8921_v25, %v3662_v48  ;;  %v3664_v47 = vmul.f32 %v8924_v28, %v3662_v48  ;;  %s9276_s11 = sld [smem:[#allocation7 + $0x115]] }
 0x293   : > { %v9098_v12 = vadd.f32 %v3628_v45, %v8866_v6  ;;  %v3653_v34 = vadd.f32 %v3650_v53, %v3640_v51  ;;  %v3669_v60 = vmul.f32 %v8895_v57, %v3668_v17  ;;  %v3670_v1 = vmul.f32 %v8903_v58, %v3668_v17  ;;  %v9127_v45 = vld [vmem:[%s7290_s23 + $0x1b0] sm:$0xff] }
 0x294   : > { %v3665_v42 = vadd.f32 %v3663_v20, %v3659_v44  ;;  %v3666_v35 = vadd.f32 %v3664_v47, %v3660_v36  ;;  %v3684_v40 = vmul.f32 %v8895_v57, %v3683_v31  ;;  %v3685_v27 = vmul.f32 %v8903_v58, %v3683_v31  ;;  %v9153_v20 = vld [vmem:[%s7290_s23 + $0x4f0] sm:$0xff] }
 0x295   : > { %v9105_v0 = vadd.f32 %v3654_v39, %v8873_v9  ;;  %v3673_v29 = vrot.slane %v3669_v60, 1  ;;  %v3674_v55 = vrot.slane %v3670_v1, 1  ;;  %v3687_v4 = vstv %s9068_s12  ;;  %s9281_s12 = sld [smem:[#allocation7 + $0x116]] }
 0x296   : > { %v3688_v6 = vmul.f32 %v8921_v25, %v3687_v4  ;;  %v3689_v37 = vmul.f32 %v8924_v28, %v3687_v4  ;;  %v3693_v46 = vstv %s9073_s14  ;;  %v3708_v13 = vstv %s9075_s15  ;;  %s9283_s14 = sld [smem:[#allocation7 + $0x138]]  ;;  %s9300_s15 = sld [smem:[#allocation7 + $0x139]] }
 0x297   : > { %v3675_v10 = vsel %vm133_vm0, %v3673_v29, %v3674_v55  ;;  %v3679_v56 = vadd.f32 %v3674_v55, %v3666_v35  ;;  %v3694_v9 = vmul.f32 %v8895_v57, %v3693_v46  ;;  %v3695_v50 = vmul.f32 %v8903_v58, %v3693_v46 }
 0x298   : > { %v9122_v59 = vadd.f32 %v3653_v34, %v8890_v22  ;;  %v3678_v54 = vadd.f32 %v3675_v10, %v3665_v42  ;;  %v3690_v32 = vadd.f32 %v3688_v6, %v3684_v40  ;;  %v3691_v26 = vadd.f32 %v3689_v37, %v3685_v27  ;;  %v9135_v22 = vld [vmem:[%s7290_s23 + $0x1b8] sm:$0x1f] }
 0x299   : > { %v3698_v14 = vrot.slane %v3694_v9, 1  ;;  %v3699_v21 = vrot.slane %v3695_v50, 1  ;;  %v3709_v24 = vmul.f32 %v8895_v57, %v3708_v13  ;;  %v3710_v11 = vmul.f32 %v8903_v58, %v3708_v13 }
 0x29a   : > { %v9130_v51 = vadd.f32 %v3679_v56, %v8898_v19  ;;  %v3712_v2 = vstv %s9093_s18  ;;  %v3718_v16 = vstv %s9095_s19  ;;  %v3743_v5 = vstv %s9088_s13  ;;  %s9305_s13 = sld [smem:[#allocation7 + $0x13a]]  ;;  %s9307_s18 = sld [smem:[#allocation7 + $0x15c]] }
 0x29b   : > { %v3700_v44 = vsel %vm133_vm0, %v3698_v14, %v3699_v21  ;;  %v3704_v36 = vadd.f32 %v3699_v21, %v3691_v26  ;;  %v3713_v48 = vmul.f32 %v8921_v25, %v3712_v2  ;;  %v3714_v17 = vmul.f32 %v8924_v28, %v3712_v2  ;;  %v9156_v25 = vld [vmem:[%s7290_s23 + $0x4f8] sm:$0x1f]  ;;  %s9320_s19 = sld [smem:[#allocation7 + $0x1b]] }
 0x29c   : > { %v9148_v19 = vadd.f32 %v3678_v54, %v8916_v43  ;;  %v3703_v31 = vadd.f32 %v3700_v44, %v3690_v32  ;;  %v3719_v53 = vmul.f32 %v8895_v57, %v3718_v16  ;;  %v3720_v39 = vmul.f32 %v8903_v58, %v3718_v16 }
 0x29d   : > { %v3715_v28 = vadd.f32 %v3713_v48, %v3709_v24  ;;  %v3716_v47 = vadd.f32 %v3714_v17, %v3710_v11  ;;  %v3744_v34 = vmul.f32 %v9127_v45, %v3743_v5  ;;  %v3745_v60 = vmul.f32 %v9135_v22, %v3743_v5 }
 0x29e   : > { %v9161_v43 = vadd.f32 %v3704_v36, %v8929_v38  ;;  %v3723_v1 = vrot.slane %v3719_v53, 1  ;;  %v3724_v42 = vrot.slane %v3720_v39, 1  ;;  %v3747_v35 = vstv %s9112_s16  ;;  %s9325_s16 = sld [smem:[#allocation7 + $0x15d]] }
 0x29f   : > { %v3748_v57 = vmul.f32 %v9153_v20, %v3747_v35  ;;  %v3749_v58 = vmul.f32 %v9156_v25, %v3747_v35  ;;  %v3753_v40 = vstv %s9117_s4  ;;  %v3768_v27 = vstv %s9119_s21  ;;  %s9327_s4 = sld [smem:[#allocation7 + $0x15e]]  ;;  %s9344_s21 = sld [smem:[#allocation7 + $0x1c]] }
 0x2a0   : > { %v3725_v29 = vsel %vm133_vm0, %v3723_v1, %v3724_v42  ;;  %v3729_v55 = vadd.f32 %v3724_v42, %v3716_v47  ;;  %v3754_v38 = vmul.f32 %v9127_v45, %v3753_v40  ;;  %v3755_v4 = vmul.f32 %v9135_v22, %v3753_v40 }
 0x2a1   : > { %v9178_v6 = vadd.f32 %v3703_v31, %v8946_v3  ;;  %v3728_v37 = vadd.f32 %v3725_v29, %v3715_v28  ;;  %v3750_v46 = vadd.f32 %v3748_v57, %v3744_v34  ;;  %v3751_v13 = vadd.f32 %v3749_v58, %v3745_v60 }
 0x2a2   : > { %v3758_v10 = vrot.slane %v3754_v38, 1  ;;  %v3759_v56 = vrot.slane %v3755_v4, 1  ;;  %v3769_v9 = vmul.f32 %v9127_v45, %v3768_v27  ;;  %v3770_v50 = vmul.f32 %v9135_v22, %v3768_v27 }
 0x2a3   : > { %v9183_v54 = vadd.f32 %v3729_v55, %v8951_v52  ;;  %v3772_v32 = vstv %s9138_s0  ;;  %v3778_v26 = vstv %s9143_s22  ;;  %v3793_v14 = vstv %s9145_s24  ;;  %s9349_s0 = sld [smem:[#allocation7 + $0x1d]]  ;;  %s9351_s22 = sld [smem:[#allocation7 + $0x3f]] }
 0x2a4   : > { %v3760_v3 = vsel %vm133_vm0, %v3758_v10, %v3759_v56  ;;  %v3764_v21 = vadd.f32 %v3759_v56, %v3751_v13  ;;  %v3773_v24 = vmul.f32 %v9153_v20, %v3772_v32  ;;  %v3774_v11 = vmul.f32 %v9156_v25, %v3772_v32  ;;  %s9370_s24 = sld [smem:[#allocation7 + $0x40]] }
 0x2a5   : > { %v9198_v52 = vadd.f32 %v3728_v37, %v8966_v7  ;;  %v3763_v2 = vadd.f32 %v3760_v3, %v3750_v46  ;;  %v3779_v16 = vmul.f32 %v9127_v45, %v3778_v26  ;;  %v3780_v5 = vmul.f32 %v9135_v22, %v3778_v26 }
 0x2a6   : > { %v3775_v44 = vadd.f32 %v3773_v24, %v3769_v9  ;;  %v3776_v36 = vadd.f32 %v3774_v11, %v3770_v50  ;;  %v3794_v48 = vmul.f32 %v9127_v45, %v3793_v14  ;;  %v3795_v17 = vmul.f32 %v9135_v22, %v3793_v14 }
 0x2a7   : > { %v9205_v31 = vadd.f32 %v3764_v21, %v8973_v8  ;;  %v3783_v53 = vrot.slane %v3779_v16, 1  ;;  %v3784_v39 = vrot.slane %v3780_v5, 1  ;;  %v3797_v28 = vstv %s9168_s25  ;;  %s9375_s25 = sld [smem:[#allocation7 + $0x41]] }
 0x2a8   : > { %v3798_v7 = vmul.f32 %v9153_v20, %v3797_v28  ;;  %v3799_v47 = vmul.f32 %v9156_v25, %v3797_v28  ;;  %v3803_v34 = vstv %s9173_s26  ;;  %v3818_v60 = vstv %s9175_s2  ;;  %s9377_s26 = sld [smem:[#allocation7 + $0x63]]  ;;  %s9400_s2 = sld [smem:[#allocation7 + $0x64]] }
 0x2a9   : > { %v3785_v1 = vsel %vm133_vm0, %v3783_v53, %v3784_v39  ;;  %v3789_v42 = vadd.f32 %v3784_v39, %v3776_v36  ;;  %v3804_v8 = vmul.f32 %v9127_v45, %v3803_v34  ;;  %v3805_v35 = vmul.f32 %v9135_v22, %v3803_v34 }
 0x2aa   : > { %v9222_v57 = vadd.f32 %v3763_v2, %v8990_v61  ;;  %v3788_v58 = vadd.f32 %v3785_v1, %v3775_v44  ;;  %v3800_v40 = vadd.f32 %v3798_v7, %v3794_v48  ;;  %v3801_v27 = vadd.f32 %v3799_v47, %v3795_v17 }
 0x2ab   : > { %v3808_v29 = vrot.slane %v3804_v8, 1  ;;  %v3809_v55 = vrot.slane %v3805_v35, 1  ;;  %v3819_v38 = vmul.f32 %v9127_v45, %v3818_v60  ;;  %v3820_v4 = vmul.f32 %v9135_v22, %v3818_v60 }
 0x2ac   : > { %v9227_v37 = vadd.f32 %v3789_v42, %v8995_v33  ;;  %v3822_v46 = vstv %s9188_s1  ;;  %v3828_v13 = vstv %s9193_s27  ;;  %v3843_v10 = vstv %s9195_s17  ;;  %s9405_s1 = sld [smem:[#allocation7 + $0x65]]  ;;  %s9407_s27 = sld [smem:[#allocation7 + $0x87]] }
 0x2ad   : > { %v3810_v61 = vsel %vm133_vm0, %v3808_v29, %v3809_v55  ;;  %v3814_v56 = vadd.f32 %v3809_v55, %v3801_v27  ;;  %v3823_v9 = vmul.f32 %v9153_v20, %v3822_v46  ;;  %v3824_v50 = vmul.f32 %v9156_v25, %v3822_v46  ;;  %s9420_s17 = sld [smem:[#allocation7 + $0x88]] }
 0x2ae   : > { %v9242_v33 = vadd.f32 %v3788_v58, %v9010_v49  ;;  %v3813_v32 = vadd.f32 %v3810_v61, %v3800_v40  ;;  %v3829_v26 = vmul.f32 %v9127_v45, %v3828_v13  ;;  %v3830_v14 = vmul.f32 %v9135_v22, %v3828_v13 }
 0x2af   : > { %v3825_v3 = vadd.f32 %v3823_v9, %v3819_v38  ;;  %v3826_v21 = vadd.f32 %v3824_v50, %v3820_v4  ;;  %v3844_v24 = vmul.f32 %v9127_v45, %v3843_v10  ;;  %v3845_v11 = vmul.f32 %v9135_v22, %v3843_v10 }
 0x2b0   : > { %v9249_v2 = vadd.f32 %v3814_v56, %v9017_v41  ;;  %v3833_v16 = vrot.slane %v3829_v26, 1  ;;  %v3834_v5 = vrot.slane %v3830_v14, 1  ;;  %v3847_v44 = vstv %s9212_s28  ;;  %s9425_s28 = sld [smem:[#allocation7 + $0x89]] }
 0x2b1   : > { %v3848_v49 = vmul.f32 %v9153_v20, %v3847_v44  ;;  %v3849_v36 = vmul.f32 %v9156_v25, %v3847_v44  ;;  %v3853_v48 = vstv %s9217_s29  ;;  %v3868_v17 = vstv %s9219_s30  ;;  %s9427_s29 = sld [smem:[#allocation7 + $0xab]]  ;;  %s9444_s30 = sld [smem:[#allocation7 + $0xac]] }
 0x2b2   : > { %v3835_v53 = vsel %vm133_vm0, %v3833_v16, %v3834_v5  ;;  %v3839_v39 = vadd.f32 %v3834_v5, %v3826_v21  ;;  %v3854_v41 = vmul.f32 %v9127_v45, %v3853_v48  ;;  %v3855_v28 = vmul.f32 %v9135_v22, %v3853_v48 }
 0x2b3   : > { %v9266_v7 = vadd.f32 %v3813_v32, %v9034_v15  ;;  %v3838_v47 = vadd.f32 %v3835_v53, %v3825_v3  ;;  %v3850_v34 = vadd.f32 %v3848_v49, %v3844_v24  ;;  %v3851_v60 = vadd.f32 %v3849_v36, %v3845_v11 }
 0x2b4   : > { %v3858_v1 = vrot.slane %v3854_v41, 1  ;;  %v3859_v42 = vrot.slane %v3855_v28, 1  ;;  %v3869_v8 = vmul.f32 %v9127_v45, %v3868_v17  ;;  %v3870_v35 = vmul.f32 %v9135_v22, %v3868_v17 }
 0x2b5   : > { %v9271_v58 = vadd.f32 %v3839_v39, %v9039_v62  ;;  %v3872_v40 = vstv %s9232_s6  ;;  %v3878_v27 = vstv %s9237_s7  ;;  %v3893_v29 = vstv %s9239_s8  ;;  %s9449_s6 = sld [smem:[#allocation7 + $0xad]]  ;;  %s9451_s7 = sld [smem:[#allocation7 + $0xcf]] }
 0x2b6   : > { %v3860_v15 = vsel %vm133_vm0, %v3858_v1, %v3859_v42  ;;  %v3864_v55 = vadd.f32 %v3859_v42, %v3851_v60  ;;  %v3873_v38 = vmul.f32 %v9153_v20, %v3872_v40  ;;  %v3874_v4 = vmul.f32 %v9156_v25, %v3872_v40  ;;  %s9464_s8 = sld [smem:[#allocation7 + $0xd0]] }
 0x2b7   : > { %v9286_v62 = vadd.f32 %v3838_v47, %v9054_v18  ;;  %v3863_v46 = vadd.f32 %v3860_v15, %v3850_v34  ;;  %v3879_v13 = vmul.f32 %v9127_v45, %v3878_v27  ;;  %v3880_v10 = vmul.f32 %v9135_v22, %v3878_v27 }
 0x2b8   : > { %v3875_v61 = vadd.f32 %v3873_v38, %v3869_v8  ;;  %v3876_v56 = vadd.f32 %v3874_v4, %v3870_v35  ;;  %v3894_v9 = vmul.f32 %v9127_v45, %v3893_v29  ;;  %v3895_v50 = vmul.f32 %v9135_v22, %v3893_v29 }
 0x2b9   : > { %v9293_v32 = vadd.f32 %v3864_v55, %v9061_v30  ;;  %v3883_v26 = vrot.slane %v3879_v13, 1  ;;  %v3884_v14 = vrot.slane %v3880_v10, 1  ;;  %v3897_v3 = vstv %s9256_s9  ;;  %s9469_s9 = sld [smem:[#allocation7 + $0xd1]] }
 0x2ba   : > { %v3898_v18 = vmul.f32 %v9153_v20, %v3897_v3  ;;  %v3899_v21 = vmul.f32 %v9156_v25, %v3897_v3  ;;  %v3903_v24 = vstv %s9261_s10  ;;  %v3918_v11 = vstv %s9263_s3  ;;  %s9471_s10 = sld [smem:[#allocation7 + $0xf3]]  ;;  %s9488_s3 = sld [smem:[#allocation7 + $0xf4]] }
 0x2bb   : > { %v3885_v16 = vsel %vm133_vm0, %v3883_v26, %v3884_v14  ;;  %v3889_v5 = vadd.f32 %v3884_v14, %v3876_v56  ;;  %v3904_v30 = vmul.f32 %v9127_v45, %v3903_v24  ;;  %v3905_v44 = vmul.f32 %v9135_v22, %v3903_v24 }
 0x2bc   : > { %v9310_v49 = vadd.f32 %v3863_v46, %v9078_v63  ;;  %v3888_v36 = vadd.f32 %v3885_v16, %v3875_v61  ;;  %v3900_v48 = vadd.f32 %v3898_v18, %v3894_v9  ;;  %v3901_v17 = vadd.f32 %v3899_v21, %v3895_v50 }
 0x2bd   : > { %v3908_v53 = vrot.slane %v3904_v30, 1  ;;  %v3909_v39 = vrot.slane %v3905_v44, 1  ;;  %v3919_v41 = vmul.f32 %v9127_v45, %v3918_v11  ;;  %v3920_v28 = vmul.f32 %v9135_v22, %v3918_v11 }
 0x2be   : > { %v9315_v47 = vadd.f32 %v3889_v5, %v9083_v23  ;;  %v3922_v34 = vstv %s9276_s11  ;;  %v3928_v60 = vstv %s9281_s12  ;;  %v3943_v1 = vstv %s9283_s14  ;;  %s9493_s11 = sld [smem:[#allocation7 + $0xf5]]  ;;  %s9495_s12 = sld [smem:[#allocation7 + $0x117]] }
 0x2bf   : > { %v3910_v63 = vsel %vm133_vm0, %v3908_v53, %v3909_v39  ;;  %v3914_v42 = vadd.f32 %v3909_v39, %v3901_v17  ;;  %v3923_v8 = vmul.f32 %v9153_v20, %v3922_v34  ;;  %v3924_v35 = vmul.f32 %v9156_v25, %v3922_v34  ;;  %s9508_s14 = sld [smem:[#allocation7 + $0x118]] }
 0x2c0   : > { %v9330_v23 = vadd.f32 %v3888_v36, %v9098_v12  ;;  %v3913_v40 = vadd.f32 %v3910_v63, %v3900_v48  ;;  %v3929_v27 = vmul.f32 %v9127_v45, %v3928_v60  ;;  %v3930_v29 = vmul.f32 %v9135_v22, %v3928_v60  ;;  %v9359_v36 = vld [vmem:[%s7290_s23 + $0x270] sm:$0xff] }
 0x2c1   : > { %v3925_v15 = vadd.f32 %v3923_v8, %v3919_v41  ;;  %v3926_v55 = vadd.f32 %v3924_v35, %v3920_v28  ;;  %v3944_v38 = vmul.f32 %v9127_v45, %v3943_v1  ;;  %v3945_v4 = vmul.f32 %v9135_v22, %v3943_v1  ;;  %v9385_v8 = vld [vmem:[%s7290_s23 + $0x5b0] sm:$0xff] }
 0x2c2   : > { %v9337_v46 = vadd.f32 %v3914_v42, %v9105_v0  ;;  %v3933_v13 = vrot.slane %v3929_v27, 1  ;;  %v3934_v10 = vrot.slane %v3930_v29, 1  ;;  %v3947_v61 = vstv %s9300_s15  ;;  %s9513_s15 = sld [smem:[#allocation7 + $0x119]] }
 0x2c3   : > { %v3948_v12 = vmul.f32 %v9153_v20, %v3947_v61  ;;  %v3949_v56 = vmul.f32 %v9156_v25, %v3947_v61  ;;  %v3953_v9 = vstv %s9305_s13  ;;  %v3968_v50 = vstv %s9307_s18  ;;  %s9515_s13 = sld [smem:[#allocation7 + $0x13b]]  ;;  %s9532_s18 = sld [smem:[#allocation7 + $0x13c]] }
 0x2c4   : > { %v3935_v26 = vsel %vm133_vm0, %v3933_v13, %v3934_v10  ;;  %v3939_v14 = vadd.f32 %v3934_v10, %v3926_v55  ;;  %v3954_v0 = vmul.f32 %v9127_v45, %v3953_v9  ;;  %v3955_v3 = vmul.f32 %v9135_v22, %v3953_v9 }
 0x2c5   : > { %v9354_v18 = vadd.f32 %v3913_v40, %v9122_v59  ;;  %v3938_v21 = vadd.f32 %v3935_v26, %v3925_v15  ;;  %v3950_v24 = vadd.f32 %v3948_v12, %v3944_v38  ;;  %v3951_v11 = vadd.f32 %v3949_v56, %v3945_v4  ;;  %v9367_v59 = vld [vmem:[%s7290_s23 + $0x278] sm:$0x1f] }
 0x2c6   : > { %v3958_v16 = vrot.slane %v3954_v0, 1  ;;  %v3959_v5 = vrot.slane %v3955_v3, 1  ;;  %v3969_v30 = vmul.f32 %v9127_v45, %v3968_v50  ;;  %v3970_v44 = vmul.f32 %v9135_v22, %v3968_v50 }
 0x2c7   : > { %v9362_v48 = vadd.f32 %v3939_v14, %v9130_v51  ;;  %v3972_v17 = vstv %s9325_s16  ;;  %v3978_v53 = vstv %s9327_s4  ;;  %v4003_v39 = vstv %s9320_s19  ;;  %s9537_s19 = sld [smem:[#allocation7 + $0x13d]]  ;;  %s9539_s16 = sld [smem:[#allocation7 + $0x15f]] }
 0x2c8   : > { %v3960_v41 = vsel %vm133_vm0, %v3958_v16, %v3959_v5  ;;  %v3964_v28 = vadd.f32 %v3959_v5, %v3951_v11  ;;  %v3973_v34 = vmul.f32 %v9153_v20, %v3972_v17  ;;  %v3974_v60 = vmul.f32 %v9156_v25, %v3972_v17  ;;  %v9388_v20 = vld [vmem:[%s7290_s23 + $0x5b8] sm:$0x1f]  ;;  %s9552_s4 = sld [smem:[#allocation7 + $0x1e]] }
 0x2c9   : > { %v9380_v51 = vadd.f32 %v3938_v21, %v9148_v19  ;;  %v3963_v1 = vadd.f32 %v3960_v41, %v3950_v24  ;;  %v3979_v63 = vmul.f32 %v9127_v45, %v3978_v53  ;;  %v3980_v42 = vmul.f32 %v9135_v22, %v3978_v53 }
 0x2ca   : > { %v3975_v25 = vadd.f32 %v3973_v34, %v3969_v30  ;;  %v3976_v35 = vadd.f32 %v3974_v60, %v3970_v44  ;;  %v4004_v40 = vmul.f32 %v9359_v36, %v4003_v39  ;;  %v4005_v27 = vmul.f32 %v9367_v59, %v4003_v39 }
 0x2cb   : > { %v9393_v19 = vadd.f32 %v3964_v28, %v9161_v43  ;;  %v3983_v29 = vrot.slane %v3979_v63, 1  ;;  %v3984_v15 = vrot.slane %v3980_v42, 1  ;;  %v4007_v55 = vstv %s9344_s21  ;;  %s9557_s21 = sld [smem:[#allocation7 + $0x160]] }
 0x2cc   : > { %v4008_v45 = vmul.f32 %v9385_v8, %v4007_v55  ;;  %v4009_v22 = vmul.f32 %v9388_v20, %v4007_v55  ;;  %v4013_v38 = vstv %s9349_s0  ;;  %v4028_v4 = vstv %s9351_s22  ;;  %s9559_s0 = sld [smem:[#allocation7 + $0x161]]  ;;  %s9576_s22 = sld [smem:[#allocation7 + $0x1f]] }
 0x2cd   : > { %v3985_v13 = vsel %vm133_vm0, %v3983_v29, %v3984_v15  ;;  %v3989_v10 = vadd.f32 %v3984_v15, %v3976_v35  ;;  %v4014_v43 = vmul.f32 %v9359_v36, %v4013_v38  ;;  %v4015_v61 = vmul.f32 %v9367_v59, %v4013_v38 }
 0x2ce   : > { %v9410_v12 = vadd.f32 %v3963_v1, %v9178_v6  ;;  %v3988_v56 = vadd.f32 %v3985_v13, %v3975_v25  ;;  %v4010_v9 = vadd.f32 %v4008_v45, %v4004_v40  ;;  %v4011_v50 = vadd.f32 %v4009_v22, %v4005_v27 }
 0x2cf   : > { %v4018_v26 = vrot.slane %v4014_v43, 1  ;;  %v4019_v14 = vrot.slane %v4015_v61, 1  ;;  %v4029_v0 = vmul.f32 %v9359_v36, %v4028_v4  ;;  %v4030_v3 = vmul.f32 %v9367_v59, %v4028_v4 }
 0x2d0   : > { %v9415_v21 = vadd.f32 %v3989_v10, %v9183_v54  ;;  %v4032_v24 = vstv %s9370_s24  ;;  %v4038_v11 = vstv %s9375_s25  ;;  %v4053_v16 = vstv %s9377_s26  ;;  %s9581_s24 = sld [smem:[#allocation7 + $0x20]]  ;;  %s9583_s25 = sld [smem:[#allocation7 + $0x42]] }
 0x2d1   : > { %v4020_v6 = vsel %vm133_vm0, %v4018_v26, %v4019_v14  ;;  %v4024_v5 = vadd.f32 %v4019_v14, %v4011_v50  ;;  %v4033_v30 = vmul.f32 %v9385_v8, %v4032_v24  ;;  %v4034_v44 = vmul.f32 %v9388_v20, %v4032_v24  ;;  %s9602_s26 = sld [smem:[#allocation7 + $0x43]] }
 0x2d2   : > { %v9430_v54 = vadd.f32 %v3988_v56, %v9198_v52  ;;  %v4023_v17 = vadd.f32 %v4020_v6, %v4010_v9  ;;  %v4039_v53 = vmul.f32 %v9359_v36, %v4038_v11  ;;  %v4040_v39 = vmul.f32 %v9367_v59, %v4038_v11 }
 0x2d3   : > { %v4035_v41 = vadd.f32 %v4033_v30, %v4029_v0  ;;  %v4036_v28 = vadd.f32 %v4034_v44, %v4030_v3  ;;  %v4054_v34 = vmul.f32 %v9359_v36, %v4053_v16  ;;  %v4055_v60 = vmul.f32 %v9367_v59, %v4053_v16 }
 0x2d4   : > { %v9437_v1 = vadd.f32 %v4024_v5, %v9205_v31  ;;  %v4043_v63 = vrot.slane %v4039_v53, 1  ;;  %v4044_v42 = vrot.slane %v4040_v39, 1  ;;  %v4057_v25 = vstv %s9400_s2  ;;  %s9607_s2 = sld [smem:[#allocation7 + $0x44]] }
 0x2d5   : > { %v4058_v52 = vmul.f32 %v9385_v8, %v4057_v25  ;;  %v4059_v35 = vmul.f32 %v9388_v20, %v4057_v25  ;;  %v4063_v40 = vstv %s9405_s1  ;;  %v4078_v27 = vstv %s9407_s27  ;;  %s9609_s1 = sld [smem:[#allocation7 + $0x66]]  ;;  %s9632_s27 = sld [smem:[#allocation7 + $0x67]] }
 0x2d6   : > { %v4045_v29 = vsel %vm133_vm0, %v4043_v63, %v4044_v42  ;;  %v4049_v15 = vadd.f32 %v4044_v42, %v4036_v28  ;;  %v4064_v31 = vmul.f32 %v9359_v36, %v4063_v40  ;;  %v4065_v55 = vmul.f32 %v9367_v59, %v4063_v40 }
 0x2d7   : > { %v9454_v45 = vadd.f32 %v4023_v17, %v9222_v57  ;;  %v4048_v22 = vadd.f32 %v4045_v29, %v4035_v41  ;;  %v4060_v38 = vadd.f32 %v4058_v52, %v4054_v34  ;;  %v4061_v4 = vadd.f32 %v4059_v35, %v4055_v60 }
 0x2d8   : > { %v4068_v13 = vrot.slane %v4064_v31, 1  ;;  %v4069_v10 = vrot.slane %v4065_v55, 1  ;;  %v4079_v43 = vmul.f32 %v9359_v36, %v4078_v27  ;;  %v4080_v61 = vmul.f32 %v9367_v59, %v4078_v27 }
 0x2d9   : > { %v9459_v56 = vadd.f32 %v4049_v15, %v9227_v37  ;;  %v4082_v9 = vstv %s9420_s17  ;;  %v4088_v50 = vstv %s9425_s28  ;;  %v4103_v26 = vstv %s9427_s29  ;;  %s9637_s17 = sld [smem:[#allocation7 + $0x68]]  ;;  %s9639_s28 = sld [smem:[#allocation7 + $0x8a]] }
 0x2da   : > { %v4070_v57 = vsel %vm133_vm0, %v4068_v13, %v4069_v10  ;;  %v4074_v14 = vadd.f32 %v4069_v10, %v4061_v4  ;;  %v4083_v0 = vmul.f32 %v9385_v8, %v4082_v9  ;;  %v4084_v3 = vmul.f32 %v9388_v20, %v4082_v9  ;;  %s9652_s29 = sld [smem:[#allocation7 + $0x8b]] }
 0x2db   : > { %v9474_v37 = vadd.f32 %v4048_v22, %v9242_v33  ;;  %v4073_v24 = vadd.f32 %v4070_v57, %v4060_v38  ;;  %v4089_v11 = vmul.f32 %v9359_v36, %v4088_v50  ;;  %v4090_v16 = vmul.f32 %v9367_v59, %v4088_v50 }
 0x2dc   : > { %v4085_v6 = vadd.f32 %v4083_v0, %v4079_v43  ;;  %v4086_v5 = vadd.f32 %v4084_v3, %v4080_v61  ;;  %v4104_v30 = vmul.f32 %v9359_v36, %v4103_v26  ;;  %v4105_v44 = vmul.f32 %v9367_v59, %v4103_v26 }
 0x2dd   : > { %v9481_v17 = vadd.f32 %v4074_v14, %v9249_v2  ;;  %v4093_v53 = vrot.slane %v4089_v11, 1  ;;  %v4094_v39 = vrot.slane %v4090_v16, 1  ;;  %v4107_v41 = vstv %s9444_s30  ;;  %s9657_s30 = sld [smem:[#allocation7 + $0x8c]] }
 0x2de   : > { %v4108_v33 = vmul.f32 %v9385_v8, %v4107_v41  ;;  %v4109_v28 = vmul.f32 %v9388_v20, %v4107_v41  ;;  %v4113_v34 = vstv %s9449_s6  ;;  %v4128_v60 = vstv %s9451_s7  ;;  %s9659_s6 = sld [smem:[#allocation7 + $0xae]]  ;;  %s9676_s7 = sld [smem:[#allocation7 + $0xaf]] }
 0x2df   : > { %v4095_v63 = vsel %vm133_vm0, %v4093_v53, %v4094_v39  ;;  %v4099_v42 = vadd.f32 %v4094_v39, %v4086_v5  ;;  %v4114_v2 = vmul.f32 %v9359_v36, %v4113_v34  ;;  %v4115_v25 = vmul.f32 %v9367_v59, %v4113_v34 }
 0x2e0   : > { %v9498_v52 = vadd.f32 %v4073_v24, %v9266_v7  ;;  %v4098_v35 = vadd.f32 %v4095_v63, %v4085_v6  ;;  %v4110_v40 = vadd.f32 %v4108_v33, %v4104_v30  ;;  %v4111_v27 = vadd.f32 %v4109_v28, %v4105_v44 }
 0x2e1   : > { %v4118_v29 = vrot.slane %v4114_v2, 1  ;;  %v4119_v15 = vrot.slane %v4115_v25, 1  ;;  %v4129_v31 = vmul.f32 %v9359_v36, %v4128_v60  ;;  %v4130_v55 = vmul.f32 %v9367_v59, %v4128_v60 }
 0x2e2   : > { %v9503_v22 = vadd.f32 %v4099_v42, %v9271_v58  ;;  %v4132_v38 = vstv %s9464_s8  ;;  %v4138_v4 = vstv %s9469_s9  ;;  %v4153_v13 = vstv %s9471_s10  ;;  %s9681_s8 = sld [smem:[#allocation7 + $0xb0]]  ;;  %s9683_s9 = sld [smem:[#allocation7 + $0xd2]] }
 0x2e3   : > { %v4120_v7 = vsel %vm133_vm0, %v4118_v29, %v4119_v15  ;;  %v4124_v10 = vadd.f32 %v4119_v15, %v4111_v27  ;;  %v4133_v43 = vmul.f32 %v9385_v8, %v4132_v38  ;;  %v4134_v61 = vmul.f32 %v9388_v20, %v4132_v38  ;;  %s9696_s10 = sld [smem:[#allocation7 + $0xd3]] }
 0x2e4   : > { %v9518_v58 = vadd.f32 %v4098_v35, %v9286_v62  ;;  %v4123_v9 = vadd.f32 %v4120_v7, %v4110_v40  ;;  %v4139_v50 = vmul.f32 %v9359_v36, %v4138_v4  ;;  %v4140_v26 = vmul.f32 %v9367_v59, %v4138_v4 }
 0x2e5   : > { %v4135_v57 = vadd.f32 %v4133_v43, %v4129_v31  ;;  %v4136_v14 = vadd.f32 %v4134_v61, %v4130_v55  ;;  %v4154_v0 = vmul.f32 %v9359_v36, %v4153_v13  ;;  %v4155_v3 = vmul.f32 %v9367_v59, %v4153_v13 }
 0x2e6   : > { %v9525_v24 = vadd.f32 %v4124_v10, %v9293_v32  ;;  %v4143_v11 = vrot.slane %v4139_v50, 1  ;;  %v4144_v16 = vrot.slane %v4140_v26, 1  ;;  %v4157_v6 = vstv %s9488_s3  ;;  %s9701_s3 = sld [smem:[#allocation7 + $0xd4]] }
 0x2e7   : > { %v4158_v62 = vmul.f32 %v9385_v8, %v4157_v6  ;;  %v4159_v5 = vmul.f32 %v9388_v20, %v4157_v6  ;;  %v4163_v30 = vstv %s9493_s11  ;;  %v4178_v44 = vstv %s9495_s12  ;;  %s9703_s11 = sld [smem:[#allocation7 + $0xf6]]  ;;  %s9720_s12 = sld [smem:[#allocation7 + $0xf7]] }
 0x2e8   : > { %v4145_v53 = vsel %vm133_vm0, %v4143_v11, %v4144_v16  ;;  %v4149_v39 = vadd.f32 %v4144_v16, %v4136_v14  ;;  %v4164_v32 = vmul.f32 %v9359_v36, %v4163_v30  ;;  %v4165_v41 = vmul.f32 %v9367_v59, %v4163_v30 }
 0x2e9   : > { %v9542_v33 = vadd.f32 %v4123_v9, %v9310_v49  ;;  %v4148_v28 = vadd.f32 %v4145_v53, %v4135_v57  ;;  %v4160_v34 = vadd.f32 %v4158_v62, %v4154_v0  ;;  %v4161_v60 = vadd.f32 %v4159_v5, %v4155_v3 }
 0x2ea   : > { %v4168_v63 = vrot.slane %v4164_v32, 1  ;;  %v4169_v42 = vrot.slane %v4165_v41, 1  ;;  %v4179_v2 = vmul.f32 %v9359_v36, %v4178_v44  ;;  %v4180_v25 = vmul.f32 %v9367_v59, %v4178_v44 }
 0x2eb   : > { %v9547_v35 = vadd.f32 %v4149_v39, %v9315_v47  ;;  %v4182_v40 = vstv %s9508_s14  ;;  %v4188_v27 = vstv %s9513_s15  ;;  %v4203_v29 = vstv %s9515_s13  ;;  %s9725_s14 = sld [smem:[#allocation7 + $0xf8]]  ;;  %s9727_s15 = sld [smem:[#allocation7 + $0x11a]] }
 0x2ec   : > { %v4170_v49 = vsel %vm133_vm0, %v4168_v63, %v4169_v42  ;;  %v4174_v15 = vadd.f32 %v4169_v42, %v4161_v60  ;;  %v4183_v31 = vmul.f32 %v9385_v8, %v4182_v40  ;;  %v4184_v55 = vmul.f32 %v9388_v20, %v4182_v40  ;;  %s9740_s13 = sld [smem:[#allocation7 + $0x11b]] }
 0x2ed   : > { %v9562_v47 = vadd.f32 %v4148_v28, %v9330_v23  ;;  %v4173_v38 = vadd.f32 %v4170_v49, %v4160_v34  ;;  %v4189_v4 = vmul.f32 %v9359_v36, %v4188_v27  ;;  %v4190_v13 = vmul.f32 %v9367_v59, %v4188_v27  ;;  %v9591_v28 = vld [vmem:[%s7290_s23 + $0x8f0] sm:$0xff] }
 0x2ee   : > { %v4185_v7 = vadd.f32 %v4183_v31, %v4179_v2  ;;  %v4186_v10 = vadd.f32 %v4184_v55, %v4180_v25  ;;  %v4204_v43 = vmul.f32 %v9359_v36, %v4203_v29  ;;  %v4205_v61 = vmul.f32 %v9367_v59, %v4203_v29  ;;  %v9617_v31 = vld [vmem:[%s7290_s23 + $0xc30] sm:$0xff] }
 0x2ef   : > { %v9569_v9 = vadd.f32 %v4174_v15, %v9337_v46  ;;  %v4193_v50 = vrot.slane %v4189_v4, 1  ;;  %v4194_v26 = vrot.slane %v4190_v13, 1  ;;  %v4207_v57 = vstv %s9532_s18  ;;  %s9745_s18 = sld [smem:[#allocation7 + $0x11c]] }
 0x2f0   : > { %v4208_v23 = vmul.f32 %v9385_v8, %v4207_v57  ;;  %v4209_v14 = vmul.f32 %v9388_v20, %v4207_v57  ;;  %v4213_v0 = vstv %s9537_s19  ;;  %v4228_v3 = vstv %s9539_s16  ;;  %s9747_s19 = sld [smem:[#allocation7 + $0x13e]]  ;;  %s9764_s16 = sld [smem:[#allocation7 + $0x13f]] }
 0x2f1   : > { %v4195_v11 = vsel %vm133_vm0, %v4193_v50, %v4194_v26  ;;  %v4199_v16 = vadd.f32 %v4194_v26, %v4186_v10  ;;  %v4214_v46 = vmul.f32 %v9359_v36, %v4213_v0  ;;  %v4215_v6 = vmul.f32 %v9367_v59, %v4213_v0 }
 0x2f2   : > { %v9586_v62 = vadd.f32 %v4173_v38, %v9354_v18  ;;  %v4198_v5 = vadd.f32 %v4195_v11, %v4185_v7  ;;  %v4210_v30 = vadd.f32 %v4208_v23, %v4204_v43  ;;  %v4211_v44 = vadd.f32 %v4209_v14, %v4205_v61  ;;  %v9599_v18 = vld [vmem:[%s7290_s23 + $0x8f8] sm:$0x1f] }
 0x2f3   : > { %v4218_v53 = vrot.slane %v4214_v46, 1  ;;  %v4219_v39 = vrot.slane %v4215_v6, 1  ;;  %v4229_v32 = vmul.f32 %v9359_v36, %v4228_v3  ;;  %v4230_v41 = vmul.f32 %v9367_v59, %v4228_v3 }
 0x2f4   : > { %v9594_v34 = vadd.f32 %v4199_v16, %v9362_v48  ;;  %v4232_v60 = vstv %s9557_s21  ;;  %v4238_v63 = vstv %s9559_s0  ;;  %v4263_v42 = vstv %s9552_s4  ;;  %s9769_s4 = sld [smem:[#allocation7 + $0x140]]  ;;  %s9771_s21 = sld [smem:[#allocation7 + $0x162]] }
 0x2f5   : > { %v4220_v2 = vsel %vm133_vm0, %v4218_v53, %v4219_v39  ;;  %v4224_v25 = vadd.f32 %v4219_v39, %v4211_v44  ;;  %v4233_v40 = vmul.f32 %v9385_v8, %v4232_v60  ;;  %v4234_v27 = vmul.f32 %v9388_v20, %v4232_v60  ;;  %v9620_v8 = vld [vmem:[%s7290_s23 + $0xc38] sm:$0x1f]  ;;  %s9784_s0 = sld [smem:[#allocation7 + $0x21]] }
 0x2f6   : > { %v9612_v48 = vadd.f32 %v4198_v5, %v9380_v51  ;;  %v4223_v29 = vadd.f32 %v4220_v2, %v4210_v30  ;;  %v4239_v49 = vmul.f32 %v9359_v36, %v4238_v63  ;;  %v4240_v15 = vmul.f32 %v9367_v59, %v4238_v63 }
 0x2f7   : > { %v4235_v20 = vadd.f32 %v4233_v40, %v4229_v32  ;;  %v4236_v55 = vadd.f32 %v4234_v27, %v4230_v41  ;;  %v4264_v38 = vmul.f32 %v9591_v28, %v4263_v42  ;;  %v4265_v4 = vmul.f32 %v9599_v18, %v4263_v42 }
 0x2f8   : > { %v9625_v51 = vadd.f32 %v4224_v25, %v9393_v19  ;;  %v4243_v13 = vrot.slane %v4239_v49, 1  ;;  %v4244_v7 = vrot.slane %v4240_v15, 1  ;;  %v4267_v10 = vstv %s9576_s22  ;;  %s9789_s22 = sld [smem:[#allocation7 + $0x163]] }
 0x2f9   : > { %v4268_v36 = vmul.f32 %v9617_v31, %v4267_v10  ;;  %v4269_v59 = vmul.f32 %v9620_v8, %v4267_v10  ;;  %v4273_v43 = vstv %s9581_s24  ;;  %v4288_v61 = vstv %s9583_s25  ;;  %s9791_s24 = sld [smem:[#allocation7 + $0x164]]  ;;  %s9808_s25 = sld [smem:[#allocation7 + $0x22]] }
 0x2fa   : > { %v4245_v50 = vsel %vm133_vm0, %v4243_v13, %v4244_v7  ;;  %v4249_v26 = vadd.f32 %v4244_v7, %v4236_v55  ;;  %v4274_v19 = vmul.f32 %v9591_v28, %v4273_v43  ;;  %v4275_v57 = vmul.f32 %v9599_v18, %v4273_v43 }
 0x2fb   : > { %v9642_v23 = vadd.f32 %v4223_v29, %v9410_v12  ;;  %v4248_v14 = vadd.f32 %v4245_v50, %v4235_v20  ;;  %v4270_v0 = vadd.f32 %v4268_v36, %v4264_v38  ;;  %v4271_v3 = vadd.f32 %v4269_v59, %v4265_v4 }
 0x2fc   : > { %v4278_v11 = vrot.slane %v4274_v19, 1  ;;  %v4279_v16 = vrot.slane %v4275_v57, 1  ;;  %v4289_v46 = vmul.f32 %v9591_v28, %v4288_v61  ;;  %v4290_v6 = vmul.f32 %v9599_v18, %v4288_v61 }
 0x2fd   : > { %v9647_v5 = vadd.f32 %v4249_v26, %v9415_v21  ;;  %v4292_v30 = vstv %s9602_s26  ;;  %v4298_v44 = vstv %s9607_s2  ;;  %v4313_v53 = vstv %s9609_s1  ;;  %s9813_s26 = sld [smem:[#allocation7 + $0x23]]  ;;  %s9815_s2 = sld [smem:[#allocation7 + $0x45]] }
 0x2fe   : > { %v4280_v12 = vsel %vm133_vm0, %v4278_v11, %v4279_v16  ;;  %v4284_v39 = vadd.f32 %v4279_v16, %v4271_v3  ;;  %v4293_v32 = vmul.f32 %v9617_v31, %v4292_v30  ;;  %v4294_v41 = vmul.f32 %v9620_v8, %v4292_v30  ;;  %s9834_s1 = sld [smem:[#allocation7 + $0x46]] }
 0x2ff   : > { %v9662_v21 = vadd.f32 %v4248_v14, %v9430_v54  ;;  %v4283_v60 = vadd.f32 %v4280_v12, %v4270_v0  ;;  %v4299_v63 = vmul.f32 %v9591_v28, %v4298_v44  ;;  %v4300_v42 = vmul.f32 %v9599_v18, %v4298_v44 }
 0x300   : > { %v4295_v2 = vadd.f32 %v4293_v32, %v4289_v46  ;;  %v4296_v25 = vadd.f32 %v4294_v41, %v4290_v6  ;;  %v4314_v40 = vmul.f32 %v9591_v28, %v4313_v53  ;;  %v4315_v27 = vmul.f32 %v9599_v18, %v4313_v53 }
 0x301   : > { %v9669_v29 = vadd.f32 %v4284_v39, %v9437_v1  ;;  %v4303_v49 = vrot.slane %v4299_v63, 1  ;;  %v4304_v15 = vrot.slane %v4300_v42, 1  ;;  %v4317_v20 = vstv %s9632_s27  ;;  %s9839_s27 = sld [smem:[#allocation7 + $0x47]] }
 0x302   : > { %v4318_v54 = vmul.f32 %v9617_v31, %v4317_v20  ;;  %v4319_v55 = vmul.f32 %v9620_v8, %v4317_v20  ;;  %v4323_v38 = vstv %s9637_s17  ;;  %v4338_v4 = vstv %s9639_s28  ;;  %s9841_s17 = sld [smem:[#allocation7 + $0x69]]  ;;  %s9869_s28 = sld [smem:[#allocation7 + $0x6b]] }
 0x303   : > { %v4305_v13 = vsel %vm133_vm0, %v4303_v49, %v4304_v15  ;;  %v4309_v7 = vadd.f32 %v4304_v15, %v4296_v25  ;;  %v4324_v1 = vmul.f32 %v9591_v28, %v4323_v38  ;;  %v4325_v10 = vmul.f32 %v9599_v18, %v4323_v38 }
 0x304   : > { %v9686_v36 = vadd.f32 %v4283_v60, %v9454_v45  ;;  %v4308_v59 = vadd.f32 %v4305_v13, %v4295_v2  ;;  %v4320_v43 = vadd.f32 %v4318_v54, %v4314_v40  ;;  %v4321_v61 = vadd.f32 %v4319_v55, %v4315_v27 }
 0x305   : > { %v4328_v50 = vrot.slane %v4324_v1, 1  ;;  %v4329_v26 = vrot.slane %v4325_v10, 1  ;;  %v4339_v19 = vmul.f32 %v9591_v28, %v4338_v4  ;;  %v4340_v57 = vmul.f32 %v9599_v18, %v4338_v4 }
 0x306   : > { %v9691_v14 = vadd.f32 %v4309_v7, %v9459_v56  ;;  %v4342_v0 = vstv %s9652_s29  ;;  %v4348_v3 = vstv %s9657_s30  ;;  %v4363_v11 = vstv %s9659_s6  ;;  %s9871_s29 = sld [smem:[#allocation7 + $0x8d]]  ;;  %s9884_s30 = sld [smem:[#allocation7 + $0x8e]] }
 0x307   : > { %v4330_v45 = vsel %vm133_vm0, %v4328_v50, %v4329_v26  ;;  %v4334_v16 = vadd.f32 %v4329_v26, %v4321_v61  ;;  %v4343_v46 = vmul.f32 %v9617_v31, %v4342_v0  ;;  %v4344_v6 = vmul.f32 %v9620_v8, %v4342_v0  ;;  %s9889_s6 = sld [smem:[#allocation7 + $0x8f]] }
 0x308   : > { %v9706_v56 = vadd.f32 %v4308_v59, %v9474_v37  ;;  %v4333_v30 = vadd.f32 %v4330_v45, %v4320_v43  ;;  %v4349_v44 = vmul.f32 %v9591_v28, %v4348_v3  ;;  %v4350_v53 = vmul.f32 %v9599_v18, %v4348_v3 }
 0x309   : > { %v4345_v12 = vadd.f32 %v4343_v46, %v4339_v19  ;;  %v4346_v39 = vadd.f32 %v4344_v6, %v4340_v57  ;;  %v4364_v32 = vmul.f32 %v9591_v28, %v4363_v11  ;;  %v4365_v41 = vmul.f32 %v9599_v18, %v4363_v11 }
 0x30a   : > { %v9713_v60 = vadd.f32 %v4334_v16, %v9481_v17  ;;  %v4353_v63 = vrot.slane %v4349_v44, 1  ;;  %v4354_v42 = vrot.slane %v4350_v53, 1  ;;  %v4367_v2 = vstv %s9676_s7  ;;  %s9891_s7 = sld [smem:[#allocation7 + $0xb1]] }
 0x30b   : > { %v4368_v37 = vmul.f32 %v9617_v31, %v4367_v2  ;;  %v4369_v25 = vmul.f32 %v9620_v8, %v4367_v2  ;;  %v4373_v40 = vstv %s9681_s8  ;;  %v4388_v27 = vstv %s9683_s9  ;;  %s9908_s8 = sld [smem:[#allocation7 + $0xb2]]  ;;  %s9913_s9 = sld [smem:[#allocation7 + $0xb3]] }
 0x30c   : > { %v4355_v49 = vsel %vm133_vm0, %v4353_v63, %v4354_v42  ;;  %v4359_v15 = vadd.f32 %v4354_v42, %v4346_v39  ;;  %v4374_v17 = vmul.f32 %v9591_v28, %v4373_v40  ;;  %v4375_v20 = vmul.f32 %v9599_v18, %v4373_v40 }
 0x30d   : > { %v9730_v54 = vadd.f32 %v4333_v30, %v9498_v52  ;;  %v4358_v55 = vadd.f32 %v4355_v49, %v4345_v12  ;;  %v4370_v38 = vadd.f32 %v4368_v37, %v4364_v32  ;;  %v4371_v4 = vadd.f32 %v4369_v25, %v4365_v41 }
 0x30e   : > { %v4378_v13 = vrot.slane %v4374_v17, 1  ;;  %v4379_v7 = vrot.slane %v4375_v20, 1  ;;  %v4389_v1 = vmul.f32 %v9591_v28, %v4388_v27  ;;  %v4390_v10 = vmul.f32 %v9599_v18, %v4388_v27 }
 0x30f   : > { %v9735_v59 = vadd.f32 %v4359_v15, %v9503_v22  ;;  %v4392_v43 = vstv %s9696_s10  ;;  %v4398_v61 = vstv %s9701_s3  ;;  %v4413_v50 = vstv %s9703_s11  ;;  %s9915_s10 = sld [smem:[#allocation7 + $0xd5]]  ;;  %s9928_s3 = sld [smem:[#allocation7 + $0xd6]] }
 0x310   : > { %v4380_v52 = vsel %vm133_vm0, %v4378_v13, %v4379_v7  ;;  %v4384_v26 = vadd.f32 %v4379_v7, %v4371_v4  ;;  %v4393_v19 = vmul.f32 %v9617_v31, %v4392_v43  ;;  %v4394_v57 = vmul.f32 %v9620_v8, %v4392_v43  ;;  %s9933_s11 = sld [smem:[#allocation7 + $0xd7]] }
 0x311   : > { %v9750_v22 = vadd.f32 %v4358_v55, %v9518_v58  ;;  %v4383_v0 = vadd.f32 %v4380_v52, %v4370_v38  ;;  %v4399_v3 = vmul.f32 %v9591_v28, %v4398_v61  ;;  %v4400_v11 = vmul.f32 %v9599_v18, %v4398_v61 }
 0x312   : > { %v4395_v45 = vadd.f32 %v4393_v19, %v4389_v1  ;;  %v4396_v16 = vadd.f32 %v4394_v57, %v4390_v10  ;;  %v4414_v46 = vmul.f32 %v9591_v28, %v4413_v50  ;;  %v4415_v6 = vmul.f32 %v9599_v18, %v4413_v50 }
 0x313   : > { %v9757_v30 = vadd.f32 %v4384_v26, %v9525_v24  ;;  %v4403_v44 = vrot.slane %v4399_v3, 1  ;;  %v4404_v53 = vrot.slane %v4400_v11, 1  ;;  %v4417_v12 = vstv %s9720_s12  ;;  %s9935_s12 = sld [smem:[#allocation7 + $0xf9]] }
 0x314   : > { %v4418_v58 = vmul.f32 %v9617_v31, %v4417_v12  ;;  %v4419_v39 = vmul.f32 %v9620_v8, %v4417_v12  ;;  %v4423_v32 = vstv %s9725_s14  ;;  %v4438_v41 = vstv %s9727_s15  ;;  %s9952_s14 = sld [smem:[#allocation7 + $0xfa]]  ;;  %s9957_s15 = sld [smem:[#allocation7 + $0xfb]] }
 0x315   : > { %v4405_v63 = vsel %vm133_vm0, %v4403_v44, %v4404_v53  ;;  %v4409_v42 = vadd.f32 %v4404_v53, %v4396_v16  ;;  %v4424_v24 = vmul.f32 %v9591_v28, %v4423_v32  ;;  %v4425_v2 = vmul.f32 %v9599_v18, %v4423_v32 }
 0x316   : > { %v9774_v37 = vadd.f32 %v4383_v0, %v9542_v33  ;;  %v4408_v25 = vadd.f32 %v4405_v63, %v4395_v45  ;;  %v4420_v40 = vadd.f32 %v4418_v58, %v4414_v46  ;;  %v4421_v27 = vadd.f32 %v4419_v39, %v4415_v6 }
 0x317   : > { %v4428_v49 = vrot.slane %v4424_v24, 1  ;;  %v4429_v15 = vrot.slane %v4425_v2, 1  ;;  %v4439_v17 = vmul.f32 %v9591_v28, %v4438_v41  ;;  %v4440_v20 = vmul.f32 %v9599_v18, %v4438_v41 }
 0x318   : > { %v9779_v55 = vadd.f32 %v4409_v42, %v9547_v35  ;;  %v4442_v38 = vstv %s9740_s13  ;;  %v4448_v4 = vstv %s9745_s18  ;;  %v4463_v13 = vstv %s9747_s19  ;;  %s9959_s13 = sld [smem:[#allocation7 + $0x11d]]  ;;  %s9972_s18 = sld [smem:[#allocation7 + $0x11e]] }
 0x319   : > { %v4430_v33 = vsel %vm133_vm0, %v4428_v49, %v4429_v15  ;;  %v4434_v7 = vadd.f32 %v4429_v15, %v4421_v27  ;;  %v4443_v1 = vmul.f32 %v9617_v31, %v4442_v38  ;;  %v4444_v10 = vmul.f32 %v9620_v8, %v4442_v38  ;;  %s9977_s19 = sld [smem:[#allocation7 + $0x11f]] }
 0x31a   : > { %v9794_v35 = vadd.f32 %v4408_v25, %v9562_v47  ;;  %v4433_v43 = vadd.f32 %v4430_v33, %v4420_v40  ;;  %v4449_v61 = vmul.f32 %v9591_v28, %v4448_v4  ;;  %v4450_v50 = vmul.f32 %v9599_v18, %v4448_v4  ;;  %v9823_v25 = vld [vmem:[%s7290_s23 + $0x280] sm:$0xff] }
 0x31b   : > { %v4445_v52 = vadd.f32 %v4443_v1, %v4439_v17  ;;  %v4446_v26 = vadd.f32 %v4444_v10, %v4440_v20  ;;  %v4464_v19 = vmul.f32 %v9591_v28, %v4463_v13  ;;  %v4465_v57 = vmul.f32 %v9599_v18, %v4463_v13  ;;  %v9849_v1 = vld [vmem:[%s7290_s23 + $0x5c0] sm:$0xff] }
 0x31c   : > { %v9801_v0 = vadd.f32 %v4434_v7, %v9569_v9  ;;  %v4453_v3 = vrot.slane %v4449_v61, 1  ;;  %v4454_v11 = vrot.slane %v4450_v50, 1  ;;  %v4467_v45 = vstv %s9764_s16  ;;  %s9979_s16 = sld [smem:[#allocation7 + $0x141]] }
 0x31d   : > { %v4468_v47 = vmul.f32 %v9617_v31, %v4467_v45  ;;  %v4469_v16 = vmul.f32 %v9620_v8, %v4467_v45  ;;  %v4473_v46 = vstv %s9769_s4  ;;  %v4488_v6 = vstv %s9771_s21  ;;  %s9996_s4 = sld [smem:[#allocation7 + $0x142]]  ;;  %s10001_s21 = sld [smem:[#allocation7 + $0x143]] }
 0x31e   : > { %v4455_v44 = vsel %vm133_vm0, %v4453_v3, %v4454_v11  ;;  %v4459_v53 = vadd.f32 %v4454_v11, %v4446_v26  ;;  %v4474_v9 = vmul.f32 %v9591_v28, %v4473_v46  ;;  %v4475_v12 = vmul.f32 %v9599_v18, %v4473_v46 }
 0x31f   : > { %v9818_v58 = vadd.f32 %v4433_v43, %v9586_v62  ;;  %v4458_v39 = vadd.f32 %v4455_v44, %v4445_v52  ;;  %v4470_v32 = vadd.f32 %v4468_v47, %v4464_v19  ;;  %v4471_v41 = vadd.f32 %v4469_v16, %v4465_v57  ;;  %v9831_v62 = vld [vmem:[%s7290_s23 + $0x288] sm:$0x1f] }
 0x320   : > { %v4478_v63 = vrot.slane %v4474_v9, 1  ;;  %v4479_v42 = vrot.slane %v4475_v12, 1  ;;  %v4489_v24 = vmul.f32 %v9591_v28, %v4488_v6  ;;  %v4490_v2 = vmul.f32 %v9599_v18, %v4488_v6 }
 0x321   : > { %v9826_v40 = vadd.f32 %v4459_v53, %v9594_v34  ;;  %v4492_v27 = vstv %s9789_s22  ;;  %v4498_v49 = vstv %s9791_s24  ;;  %v4523_v15 = vstv %s9784_s0  ;;  %s10003_s0 = sld [smem:[#allocation7 + $0x165]]  ;;  %s10019_s22 = sld [smem:[#allocation7 + $0x166]] }
 0x322   : > { %v4480_v17 = vsel %vm133_vm0, %v4478_v63, %v4479_v42  ;;  %v4484_v20 = vadd.f32 %v4479_v42, %v4471_v41  ;;  %v4493_v38 = vmul.f32 %v9617_v31, %v4492_v27  ;;  %v4494_v4 = vmul.f32 %v9620_v8, %v4492_v27  ;;  %v9852_v31 = vld [vmem:[%s7290_s23 + $0x5c8] sm:$0x1f]  ;;  %s9864_s23 = sld [smem:[#allocation7 + $0x6a]]  ;;  %s10021_s24 = sld [smem:[#allocation7 + $0x167]] }
 0x323   : > { %v9844_v34 = vadd.f32 %v4458_v39, %v9612_v48  ;;  %v4483_v13 = vadd.f32 %v4480_v17, %v4470_v32  ;;  %v4499_v33 = vmul.f32 %v9591_v28, %v4498_v49  ;;  %v4500_v7 = vmul.f32 %v9599_v18, %v4498_v49 }
 0x324   : > { %v4495_v8 = vadd.f32 %v4493_v38, %v4489_v24  ;;  %v4496_v10 = vadd.f32 %v4494_v4, %v4490_v2  ;;  %v4524_v43 = vmul.f32 %v9823_v25, %v4523_v15  ;;  %v4525_v61 = vmul.f32 %v9831_v62, %v4523_v15 }
 0x325   : > { %v9857_v48 = vadd.f32 %v4484_v20, %v9625_v51  ;;  %v4503_v50 = vrot.slane %v4499_v33, 1  ;;  %v4504_v52 = vrot.slane %v4500_v7, 1  ;;  %v4527_v26 = vstv %s9808_s25 }
 0x326   : > { %v4528_v28 = vmul.f32 %v9849_v1, %v4527_v26  ;;  %v4529_v18 = vmul.f32 %v9852_v31, %v4527_v26  ;;  %v4533_v19 = vstv %s9813_s26  ;;  %v4548_v57 = vstv %s9815_s2 }
 0x327   : > { %v4505_v3 = vsel %vm133_vm0, %v4503_v50, %v4504_v52  ;;  %v4509_v11 = vadd.f32 %v4504_v52, %v4496_v10  ;;  %v4534_v51 = vmul.f32 %v9823_v25, %v4533_v19  ;;  %v4535_v45 = vmul.f32 %v9831_v62, %v4533_v19 }
 0x328   : > { %v9874_v47 = vadd.f32 %v4483_v13, %v9642_v23  ;;  %v4508_v16 = vadd.f32 %v4505_v3, %v4495_v8  ;;  %v4530_v46 = vadd.f32 %v4528_v28, %v4524_v43  ;;  %v4531_v6 = vadd.f32 %v4529_v18, %v4525_v61 }
 0x329   : > { %v4538_v44 = vrot.slane %v4534_v51, 1  ;;  %v4539_v53 = vrot.slane %v4535_v45, 1  ;;  %v4549_v9 = vmul.f32 %v9823_v25, %v4548_v57  ;;  %v4550_v12 = vmul.f32 %v9831_v62, %v4548_v57 }
 0x32a   : > { %v9879_v39 = vadd.f32 %v4509_v11, %v9647_v5  ;;  %v4552_v32 = vstv %s9834_s1  ;;  %v4558_v41 = vstv %s9839_s27  ;;  %v4573_v63 = vstv %s9841_s17 }
 0x32b   : > { %v4540_v23 = vsel %vm133_vm0, %v4538_v44, %v4539_v53  ;;  %v4544_v42 = vadd.f32 %v4539_v53, %v4531_v6  ;;  %v4553_v24 = vmul.f32 %v9849_v1, %v4552_v32  ;;  %v4554_v2 = vmul.f32 %v9852_v31, %v4552_v32 }
 0x32c   : > { %v9894_v5 = vadd.f32 %v4508_v16, %v9662_v21  ;;  %v4543_v27 = vadd.f32 %v4540_v23, %v4530_v46  ;;  %v4559_v49 = vmul.f32 %v9823_v25, %v4558_v41  ;;  %v4560_v15 = vmul.f32 %v9831_v62, %v4558_v41 }
 0x32d   : > { %v4555_v17 = vadd.f32 %v4553_v24, %v4549_v9  ;;  %v4556_v20 = vadd.f32 %v4554_v2, %v4550_v12  ;;  %v4574_v38 = vmul.f32 %v9823_v25, %v4573_v63  ;;  %v4575_v4 = vmul.f32 %v9831_v62, %v4573_v63 }
 0x32e   : > { %v9901_v13 = vadd.f32 %v4544_v42, %v9669_v29  ;;  %v4563_v33 = vrot.slane %v4559_v49, 1  ;;  %v4564_v7 = vrot.slane %v4560_v15, 1  ;;  %v4577_v8 = vstv %s9864_s23 }
 0x32f   : > { %v4578_v21 = vmul.f32 %v9849_v1, %v4577_v8  ;;  %v4579_v10 = vmul.f32 %v9852_v31, %v4577_v8  ;;  %v4583_v43 = vstv %s9869_s28  ;;  %v4598_v61 = vstv %s9871_s29 }
 0x330   : > { %v4565_v50 = vsel %vm133_vm0, %v4563_v33, %v4564_v7  ;;  %v4569_v52 = vadd.f32 %v4564_v7, %v4556_v20  ;;  %v4584_v29 = vmul.f32 %v9823_v25, %v4583_v43  ;;  %v4585_v26 = vmul.f32 %v9831_v62, %v4583_v43 }
 0x331   : > { %v9918_v28 = vadd.f32 %v4543_v27, %v9686_v36  ;;  %v4568_v18 = vadd.f32 %v4565_v50, %v4555_v17  ;;  %v4580_v19 = vadd.f32 %v4578_v21, %v4574_v38  ;;  %v4581_v57 = vadd.f32 %v4579_v10, %v4575_v4 }
 0x332   : > { %v4588_v3 = vrot.slane %v4584_v29, 1  ;;  %v4589_v11 = vrot.slane %v4585_v26, 1  ;;  %v4599_v51 = vmul.f32 %v9823_v25, %v4598_v61  ;;  %v4600_v45 = vmul.f32 %v9831_v62, %v4598_v61 }
 0x333   : > { %v9923_v16 = vadd.f32 %v4569_v52, %v9691_v14  ;;  %v4602_v46 = vstv %s9884_s30  ;;  %v4608_v6 = vstv %s9889_s6  ;;  %v4623_v44 = vstv %s9891_s7 }
 0x334   : > { %v4590_v36 = vsel %vm133_vm0, %v4588_v3, %v4589_v11  ;;  %v4594_v53 = vadd.f32 %v4589_v11, %v4581_v57  ;;  %v4603_v9 = vmul.f32 %v9849_v1, %v4602_v46  ;;  %v4604_v12 = vmul.f32 %v9852_v31, %v4602_v46 }
 0x335   : > { %v9938_v14 = vadd.f32 %v4568_v18, %v9706_v56  ;;  %v4593_v32 = vadd.f32 %v4590_v36, %v4580_v19  ;;  %v4609_v41 = vmul.f32 %v9823_v25, %v4608_v6  ;;  %v4610_v63 = vmul.f32 %v9831_v62, %v4608_v6 }
 0x336   : > { %v4605_v23 = vadd.f32 %v4603_v9, %v4599_v51  ;;  %v4606_v42 = vadd.f32 %v4604_v12, %v4600_v45  ;;  %v4624_v24 = vmul.f32 %v9823_v25, %v4623_v44  ;;  %v4625_v2 = vmul.f32 %v9831_v62, %v4623_v44 }
 0x337   : > { %v9945_v27 = vadd.f32 %v4594_v53, %v9713_v60  ;;  %v4613_v49 = vrot.slane %v4609_v41, 1  ;;  %v4614_v15 = vrot.slane %v4610_v63, 1  ;;  %v4627_v17 = vstv %s9908_s8 }
 0x338   : > { %v4628_v56 = vmul.f32 %v9849_v1, %v4627_v17  ;;  %v4629_v20 = vmul.f32 %v9852_v31, %v4627_v17  ;;  %v4633_v38 = vstv %s9913_s9  ;;  %v4648_v4 = vstv %s9915_s10 }
 0x339   : > { %v4615_v33 = vsel %vm133_vm0, %v4613_v49, %v4614_v15  ;;  %v4619_v7 = vadd.f32 %v4614_v15, %v4606_v42  ;;  %v4634_v60 = vmul.f32 %v9823_v25, %v4633_v38  ;;  %v4635_v8 = vmul.f32 %v9831_v62, %v4633_v38 }
 0x33a   : > { %v9962_v21 = vadd.f32 %v4593_v32, %v9730_v54  ;;  %v4618_v10 = vadd.f32 %v4615_v33, %v4605_v23  ;;  %v4630_v43 = vadd.f32 %v4628_v56, %v4624_v24  ;;  %v4631_v61 = vadd.f32 %v4629_v20, %v4625_v2 }
 0x33b   : > { %v4638_v50 = vrot.slane %v4634_v60, 1  ;;  %v4639_v52 = vrot.slane %v4635_v8, 1  ;;  %v4649_v29 = vmul.f32 %v9823_v25, %v4648_v4  ;;  %v4650_v26 = vmul.f32 %v9831_v62, %v4648_v4 }
 0x33c   : > { %v9967_v18 = vadd.f32 %v4619_v7, %v9735_v59  ;;  %v4652_v19 = vstv %s9928_s3  ;;  %v4658_v57 = vstv %s9933_s11  ;;  %v4673_v3 = vstv %s9935_s12 }
 0x33d   : > { %v4640_v54 = vsel %vm133_vm0, %v4638_v50, %v4639_v52  ;;  %v4644_v11 = vadd.f32 %v4639_v52, %v4631_v61  ;;  %v4653_v51 = vmul.f32 %v9849_v1, %v4652_v19  ;;  %v4654_v45 = vmul.f32 %v9852_v31, %v4652_v19 }
 0x33e   : > { %v9982_v59 = vadd.f32 %v4618_v10, %v9750_v22  ;;  %v4643_v46 = vadd.f32 %v4640_v54, %v4630_v43  ;;  %v4659_v6 = vmul.f32 %v9823_v25, %v4658_v57  ;;  %v4660_v44 = vmul.f32 %v9831_v62, %v4658_v57 }
 0x33f   : > { %v4655_v36 = vadd.f32 %v4653_v51, %v4649_v29  ;;  %v4656_v53 = vadd.f32 %v4654_v45, %v4650_v26  ;;  %v4674_v9 = vmul.f32 %v9823_v25, %v4673_v3  ;;  %v4675_v12 = vmul.f32 %v9831_v62, %v4673_v3 }
 0x340   : > { %v9989_v32 = vadd.f32 %v4644_v11, %v9757_v30  ;;  %v4663_v41 = vrot.slane %v4659_v6, 1  ;;  %v4664_v63 = vrot.slane %v4660_v44, 1  ;;  %v4677_v23 = vstv %s9952_s14 }
 0x341   : > { %v4678_v22 = vmul.f32 %v9849_v1, %v4677_v23  ;;  %v4679_v42 = vmul.f32 %v9852_v31, %v4677_v23  ;;  %v4683_v24 = vstv %s9957_s15  ;;  %v4698_v2 = vstv %s9959_s13 }
 0x342   : > { %v4665_v49 = vsel %vm133_vm0, %v4663_v41, %v4664_v63  ;;  %v4669_v15 = vadd.f32 %v4664_v63, %v4656_v53  ;;  %v4684_v30 = vmul.f32 %v9823_v25, %v4683_v24  ;;  %v4685_v17 = vmul.f32 %v9831_v62, %v4683_v24 }
 0x343   : > { %v10006_v56 = vadd.f32 %v4643_v46, %v9774_v37  ;;  %v4668_v20 = vadd.f32 %v4665_v49, %v4655_v36  ;;  %v4680_v38 = vadd.f32 %v4678_v22, %v4674_v9  ;;  %v4681_v4 = vadd.f32 %v4679_v42, %v4675_v12 }
 0x344   : > { %v4688_v33 = vrot.slane %v4684_v30, 1  ;;  %v4689_v7 = vrot.slane %v4685_v17, 1  ;;  %v4699_v60 = vmul.f32 %v9823_v25, %v4698_v2  ;;  %v4700_v8 = vmul.f32 %v9831_v62, %v4698_v2 }
 0x345   : > { %v10011_v10 = vadd.f32 %v4669_v15, %v9779_v55  ;;  %v4702_v43 = vstv %s9972_s18  ;;  %v4708_v61 = vstv %s9977_s19  ;;  %v4723_v50 = vstv %s9979_s16 }
 0x346   : > { %v4690_v52 = vsel %vm133_vm0, %v4688_v33, %v4689_v7  ;;  %v4694_v29 = vadd.f32 %v4689_v7, %v4681_v4  ;;  %v4703_v37 = vmul.f32 %v9849_v1, %v4702_v43  ;;  %v4704_v26 = vmul.f32 %v9852_v31, %v4702_v43 }
 0x347   : > { %v10024_v55 = vadd.f32 %v4668_v20, %v9794_v35  ;;  %v4693_v19 = vadd.f32 %v4690_v52, %v4680_v38  ;;  %v4709_v57 = vmul.f32 %v9823_v25, %v4708_v61  ;;  %v4710_v3 = vmul.f32 %v9831_v62, %v4708_v61 }
 0x348   : > { %v4705_v54 = vadd.f32 %v4703_v37, %v4699_v60  ;;  %v4706_v11 = vadd.f32 %v4704_v26, %v4700_v8  ;;  %v4724_v51 = vmul.f32 %v9823_v25, %v4723_v50  ;;  %v4725_v45 = vmul.f32 %v9831_v62, %v4723_v50 }
 0x349   : > { %v10031_v46 = vadd.f32 %v4694_v29, %v9801_v0  ;;  %v4713_v6 = vrot.slane %v4709_v57, 1  ;;  %v4714_v44 = vrot.slane %v4710_v3, 1  ;;  %v4727_v36 = vstv %s9996_s4 }
 0x34a   : > { %v4728_v35 = vmul.f32 %v9849_v1, %v4727_v36  ;;  %v4729_v53 = vmul.f32 %v9852_v31, %v4727_v36  ;;  %v4733_v9 = vstv %s10001_s21  ;;  %v4748_v12 = vstv %s10003_s0 }
 0x34b   : > { %v4715_v41 = vsel %vm133_vm0, %v4713_v6, %v4714_v44  ;;  %v4719_v63 = vadd.f32 %v4714_v44, %v4706_v11  ;;  %v4734_v23 = vmul.f32 %v9823_v25, %v4733_v9  ;;  %v4735_v22 = vmul.f32 %v9831_v62, %v4733_v9 }
 0x34c   : > { %v10042_v0 = vadd.f32 %v4693_v19, %v9818_v58  ;;  %v4718_v42 = vadd.f32 %v4715_v41, %v4705_v54  ;;  %v4730_v24 = vadd.f32 %v4728_v35, %v4724_v51  ;;  %v4731_v2 = vadd.f32 %v4729_v53, %v4725_v45 }
 0x34d   : > { %v4738_v49 = vrot.slane %v4734_v23, 1  ;;  %v4739_v15 = vrot.slane %v4735_v22, 1  ;;  %v4749_v30 = vmul.f32 %v9823_v25, %v4748_v12  ;;  %v4750_v17 = vmul.f32 %v9831_v62, %v4748_v12 }
 0x34e   : > { %v10047_v20 = vadd.f32 %v4719_v63, %v9826_v40  ;;  %v4752_v38 = vstv %s10019_s22  ;;  %v4758_v4 = vstv %s10021_s24  ;;  %v4772_v33 = vmax.f32 %v9918_v28, 0.0 }
 0x34f   : > { %v4740_v7 = vsel %vm133_vm0, %v4738_v49, %v4739_v15  ;;  %v4744_v58 = vadd.f32 %v4739_v15, %v4731_v2  ;;  %v4753_v60 = vmul.f32 %v9849_v1, %v4752_v38  ;;  %v4754_v8 = vmul.f32 %v9852_v31, %v4752_v38 }
 0x350   : > { %v10056_v43 = vadd.f32 %v4718_v42, %v9844_v34  ;;  %v4759_v61 = vmul.f32 %v9823_v25, %v4758_v4  ;;  %v4760_v50 = vmul.f32 %v9831_v62, %v4758_v4  ;;  %v4773_v40 = vmax.f32 %v9901_v13, 0.0 }
 0x351   : > { %v4743_v52 = vadd.f32 %v4740_v7, %v4730_v24  ;;  %v10062_v29 = vadd.f32 %v4744_v58, %v9857_v48  ;;  %v4756_v28 = vadd.f32 %v4754_v8, %v4750_v17  ;;  %v4755_v37 = vadd.f32 %v4753_v60, %v4749_v30 }
 0x352   : > { %v4763_v26 = vrot.slane %v4759_v61, 1  ;;  %v4764_v1 = vrot.slane %v4760_v50, 1  ;;  %v4775_v31 = vsel %vm4774_vm1, %v4773_v40, -inf  ;;  %v4783_v34 = vmax.f32 %v9938_v14, 0.0 }
 0x353   : > { %v4776_v19 = vmax.f32 %v4772_v33, %v4775_v31  ;;  %v4784_v25 = vmax.f32 %v9923_v16, 0.0  ;;  %v4793_v62 = vmax.f32 %v9962_v21, 0.0  ;;  %v4794_v48 = vmax.f32 %v9945_v27, 0.0 }
 0x354   : > { %v4765_v13 = vsel %vm133_vm0, %v4763_v26, %v4764_v1  ;;  %v4769_v57 = vadd.f32 %v4764_v1, %v4756_v28  ;;  %v4803_v3 = vmax.f32 %v9982_v59, 0.0  ;;  %v10072_v54 = vadd.f32 %v4743_v52, %v9874_v47 }
 0x355   : > { %v4777_v11 = vrot.slane %v4776_v19, 4  ;;  %v4785_v51 = vsel %vm4774_vm1, %v4784_v25, -inf  ;;  %v4804_v45 = vmax.f32 %v9967_v18, 0.0  ;;  %v4768_v14 = vadd.f32 %v4765_v13, %v4755_v37 }
 0x356   : > { %v10077_v16 = vadd.f32 %v4769_v57, %v9879_v39  ;;  %v4786_v21 = vmax.f32 %v4783_v34, %v4785_v51  ;;  %v4795_v6 = vsel %vm4774_vm1, %v4794_v48, -inf  ;;  %v4813_v59 = vmax.f32 %v10006_v56, 0.0 }
 0x357   : > { %v4778_v44 = vmax.f32 %v4776_v19, %v4777_v11  ;;  %v4796_v36 = vmax.f32 %v4793_v62, %v4795_v6  ;;  %v4805_v27 = vsel %vm4774_vm1, %v4804_v45, -inf  ;;  %v4814_v53 = vmax.f32 %v9989_v32, 0.0 }
 0x358   : > { %v4787_v47 = vrot.slane %v4786_v21, 4  ;;  %v4806_v35 = vmax.f32 %v4803_v3, %v4805_v27  ;;  %v4823_v9 = vmax.f32 %v10024_v55, 0.0  ;;  %v4824_v39 = vmax.f32 %v10011_v10, 0.0 }
 0x359   : > { %v4779_v18 = vrot.slane %v4778_v44, 2  ;;  %v4797_v12 = vrot.slane %v4796_v36, 4  ;;  %v4833_v41 = vmax.f32 %v10042_v0, 0.0  ;;  %v4815_v22 = vsel %vm4774_vm1, %v4814_v53, -inf }
 0x35a   : > { %v4788_v63 = vmax.f32 %v4786_v21, %v4787_v47  ;;  %v4807_v23 = vrot.slane %v4806_v35, 4  ;;  %v4834_v42 = vmax.f32 %v10031_v46, 0.0  ;;  %v4816_v2 = vmax.f32 %v4813_v59, %v4815_v22 }
 0x35b   : > { %v4780_v24 = vmax.f32 %v4778_v44, %v4779_v18  ;;  %v4798_v56 = vmax.f32 %v4796_v36, %v4797_v12  ;;  %v4825_v49 = vsel %vm4774_vm1, %v4824_v39, -inf  ;;  %v4770_v4 = vadd.f32 %v4768_v14, %v9894_v5 }
 0x35c   : > { %v4789_v32 = vrot.slane %v4788_v63, 2  ;;  %v4808_v15 = vmax.f32 %v4806_v35, %v4807_v23  ;;  %v4826_v55 = vmax.f32 %v4823_v9, %v4825_v49  ;;  %v4835_v30 = vsel %vm4774_vm1, %v4834_v42, -inf }
 0x35d   : > { %v4781_v17 = vrot.slane %v4780_v24, 1  ;;  %v4799_v10 = vrot.slane %v4798_v56, 2  ;;  %v4817_v38 = vrot.slane %v4816_v2, 4  ;;  %v4836_v0 = vmax.f32 %v4833_v41, %v4835_v30 }
 0x35e   : > { %v4790_v33 = vmax.f32 %v4788_v63, %v4789_v32  ;;  %v4809_v7 = vrot.slane %v4808_v15, 2  ;;  %v4827_v58 = vrot.slane %v4826_v55, 4  ;;  %v4843_v61 = vmax.f32 %v10056_v43, 0.0 }
 0x35f   : > { %v4800_v46 = vmax.f32 %v4798_v56, %v4799_v10  ;;  %v4818_v60 = vmax.f32 %v4816_v2, %v4817_v38  ;;  %v4837_v8 = vrot.slane %v4836_v0, 4  ;;  %v4844_v28 = vmax.f32 %v10047_v20, 0.0 }
 0x360   : > { %v4791_v50 = vrot.slane %v4790_v33, 1  ;;  %v4810_v40 = vmax.f32 %v4808_v15, %v4809_v7  ;;  %v4828_v52 = vmax.f32 %v4826_v55, %v4827_v58  ;;  %v4782_v37 = vmax.f32 %v4780_v24, %v4781_v17  ;;  %v4873_v17 = vld [vmem:[%s10123_s5] sm:$0xff] }
 0x361   : > { %v4801_v26 = vrot.slane %v4800_v46, 1  ;;  %v4819_v1 = vrot.slane %v4818_v60, 2  ;;  %v4838_v31 = vmax.f32 %v4836_v0, %v4837_v8  ;;  %v4845_v5 = vsel %vm4774_vm1, %v4844_v28, -inf }
 0x362   : > { %v4811_v19 = vrot.slane %v4810_v40, 1  ;;  %v4829_v34 = vrot.slane %v4828_v52, 2  ;;  %v4853_v25 = vmax.f32 %v10072_v54, 0.0  ;;  %v4792_v62 = vmax.f32 %v4790_v33, %v4791_v50 }
 0x363   : > { %v4820_v13 = vmax.f32 %v4818_v60, %v4819_v1  ;;  %v4839_v57 = vrot.slane %v4838_v31, 2  ;;  %v4846_v48 = vmax.f32 %v4843_v61, %v4845_v5  ;;  %v4802_v43 = vmax.f32 %v4800_v46, %v4801_v26  ;;  %v4874_v46 = vld [vmem:[%s10123_s5 + $0x8] sm:$0x3] }
 0x364   : > { %v4830_v3 = vmax.f32 %v4828_v52, %v4829_v34  ;;  %v4854_v11 = vmax.f32 %v10062_v29, 0.0  ;;  %v4863_v51 = vmax.f32 %v4770_v4, 0.0  ;;  %v4864_v21 = vmax.f32 %v10077_v16, 0.0 }
 0x365   : > { %v4821_v20 = vrot.slane %v4820_v13, 1  ;;  %v4840_v45 = vmax.f32 %v4838_v31, %v4839_v57  ;;  %v4847_v14 = vrot.slane %v4846_v48, 4  ;;  %v4812_v6 = vmax.f32 %v4810_v40, %v4811_v19 }
 0x366   : > { %v4831_v44 = vrot.slane %v4830_v3, 1  ;;  %v4855_v36 = vsel %vm4774_vm1, %v4854_v11, -inf  ;;  %v4865_v35 = vsel %vm4774_vm1, %v4864_v21, -inf  ;;  %v4876_v29 = vsel %vm4875_vm2, %v4782_v37, %v4792_v62 }
 0x367   : > { %v4841_v54 = vrot.slane %v4840_v45, 1  ;;  %v4848_v27 = vmax.f32 %v4846_v48, %v4847_v14  ;;  %v4856_v59 = vmax.f32 %v4853_v25, %v4855_v36  ;;  %v4822_v47 = vmax.f32 %v4820_v13, %v4821_v20 }
 0x368   : > { %v4832_v53 = vmax.f32 %v4830_v3, %v4831_v44  ;;  %v4866_v12 = vmax.f32 %v4863_v51, %v4865_v35  ;;  %v4878_v39 = vsel %vm4877_vm3, %v4876_v29, %v4802_v43 }
 0x369   : > { %v4849_v9 = vrot.slane %v4848_v27, 2  ;;  %v4857_v18 = vrot.slane %v4856_v59, 4  ;;  %v4842_v16 = vmax.f32 %v4840_v45, %v4841_v54  ;;  %v4880_v22 = vsel %vm4879_vm4, %v4878_v39, %v4812_v6 }
 0x36a   : > { %v4867_v23 = vrot.slane %v4866_v12, 4  ;;  %v4881_v42 = vsel %vm4774_vm1, %v4880_v22, %v4822_v47 }
 0x36b   : > { %v4850_v41 = vmax.f32 %v4848_v27, %v4849_v9  ;;  %v4858_v63 = vmax.f32 %v4856_v59, %v4857_v18  ;;  %v4883_v49 = vsel %vm4882_vm5, %v4881_v42, %v4832_v53 }
 0x36c   : > { %v4868_v2 = vmax.f32 %v4866_v12, %v4867_v23  ;;  %v4885_v32 = vsel %vm4884_vm6, %v4883_v49, %v4842_v16 }
 0x36d   : > { %v4851_v24 = vrot.slane %v4850_v41, 1  ;;  %v4859_v56 = vrot.slane %v4858_v63, 2 }
 0x36e   : > { %v4869_v30 = vrot.slane %v4868_v2, 2 }
 0x36f   : > { %v4852_v15 = vmax.f32 %v4850_v41, %v4851_v24  ;;  %v4860_v55 = vmax.f32 %v4858_v63, %v4859_v56 }
 0x370   : > { %v4870_v38 = vmax.f32 %v4868_v2, %v4869_v30 }
 0x371   : > { %v4861_v10 = vrot.slane %v4860_v55, 1  ;;  %v4886_v0 = vsel %vm133_vm0, %v4885_v32, %v4852_v15 }
 0x372   : > { %v4888_v4 = vmax.f32 %v4873_v17, %v4886_v0  ;;  %v4871_v7 = vrot.slane %v4870_v38, 1 }
 0x373   : > { %v4862_v33 = vmax.f32 %v4860_v55, %v4861_v10  ;;  %1630 = sbr.rel (!%p1628_p7) target bundleno = 302 (0x12e), region = 129 }
 0x374   : > { %4890 = vst [vmem:[%s10123_s5] sm:$0xff] %v4888_v4  ;;  %v4872_v58 = vmax.f32 %v4870_v38, %v4871_v7 }
 0x376   : > { %v4887_v60 = vsel %vm4875_vm2, %v4862_v33, %v4872_v58 }
 0x377   : > { %v4889_v8 = vmax.f32 %v4874_v46, %v4887_v60 }
 0x379   : > { %4891 = vst [vmem:[%s10123_s5 + $0x8] sm:$0x3] %v4889_v8 }
 0x37a   :  { %4896 = vsyncpa [#allocation4], 1 }
 0x37b   :  { %4897 = vsyncpa [#allocation6], 1 }
 0x37c   :  { %4898 = vsyncpa [#allocation9], 1 }

</bundles_post_ra>
